<compile_context>
chip_gen: v5e
topology: v5e:2x2
jax: 0.10.0
libtpu: 0.0.40
codegen_flags: <defaults>
</compile_context>

<pallas_src>
import jax
import jax.numpy as jnp
from jax.experimental import pallas as pl
from jax.experimental.pallas import tpu as pltpu

IMG_HW = 32                      # image size implied by the module (4x pool -> 2x2x128 = 512)
_MXU_DTYPE = jnp.bfloat16

# (H == W, Cin, Cout) per conv layer.  Note Cout * W == 512 for every layer.
_CONV_DIMS = ((32, 1, 16), (16, 16, 32), (8, 32, 64), (4, 64, 128))


# ----------------------------------------------------------------------------
# Parameter initialization (synthetic, PyTorch-like uniform init)
# ----------------------------------------------------------------------------
def init_params(key):
    def dense(k, fan_in, fan_out):
        kw, kb = jax.random.split(k)
        s = 1.0 / jnp.sqrt(float(fan_in))
        w = jax.random.uniform(kw, (fan_in, fan_out), jnp.float32, -s, s)
        b = jax.random.uniform(kb, (fan_out,), jnp.float32, -s, s)
        return w, b

    def conv(k, cin, cout):
        kw, kb = jax.random.split(k)
        fan_in = cin * 9
        s = 1.0 / jnp.sqrt(float(fan_in))
        w = jax.random.uniform(kw, (3, 3, cin, cout), jnp.float32, -s, s)   # HWIO
        b = jax.random.uniform(kb, (cout,), jnp.float32, -s, s)
        return w, b

    ks = jax.random.split(key, 9)
    return {
        "conv1": conv(ks[0], 1, 16),
        "conv2": conv(ks[1], 16, 32),
        "conv3": conv(ks[2], 32, 64),
        "conv4": conv(ks[3], 64, 128),
        "fc1": dense(ks[4], 1, 256),          # linear_layers[0]
        "fc2": dense(ks[5], 256, 128),        # linear_layers[2]
        "fc3": dense(ks[6], 512 + 128, 256),  # linear_layers2[0]
        "fc4": dense(ks[7], 256, 128),        # linear_layers2[2]
        "fc5": dense(ks[8], 128, 1),          # linear_layers2[4]
    }


# ----------------------------------------------------------------------------
# One-time weight preprocessing: fold conv taps, zero padding, pooling order,
# NCHW flatten and the concat into dense matrices so the whole forward pass is a
# chain of 2-D matmuls inside a single kernel.
# ----------------------------------------------------------------------------
def prepare_params(params, batch, mxu_dtype=_MXU_DTYPE):
    fp32 = jnp.float32
    prepped = []
    for name, (hw, cin, cout) in zip(("conv1", "conv2", "conv3", "conv4"), _CONV_DIMS):
        k, b = params[name]                                  # (3, 3, cin, cout) HWIO
        rows = batch * hw                                    # activation rows = B * H
        assert cout * hw == 512
        # 0/1 within-image row (h) shift matrices, one per dy (offsets -1, 0, +1).
        u = jnp.stack([jnp.kron(jnp.eye(batch, dtype=fp32),
                                jnp.eye(hw, k=d, dtype=fp32)) for d in (-1, 0, 1)])
        # Banded conv matrices: A[dy][ci*W + u, co*W + w] = k[dy, u-w+1, ci, co], |u-w| <= 1.
        d_band = jnp.stack([jnp.eye(hw, k=1 - dx, dtype=fp32) for dx in range(3)])
        a = jnp.einsum("yxio,xuw->yiuow", k, d_band).reshape(3, cin * hw, cout * hw)
        brow = jnp.repeat(b, hw)[None, :]                    # (1, cout*W): bias per (c, w) lane
        # 0/1 row-pair selectors for the h half of MaxPool2d(2, 2).
        rp = jnp.stack([jnp.kron(jnp.eye(rows // 2, dtype=fp32), jnp.array([[1.0, 0.0]], fp32)),
                        jnp.kron(jnp.eye(rows // 2, dtype=fp32), jnp.array([[0.0, 1.0]], fp32))])
        prepped += [u.astype(mxu_dtype), a.astype(mxu_dtype),
                    brow.astype(fp32), rp.astype(mxu_dtype)]

    # 0/1 lane-pair selectors for the w half of MaxPool2d(2, 2) (512 lanes every layer).
    s = jnp.stack([jnp.kron(jnp.eye(256, dtype=fp32), jnp.array([[1.0], [0.0]], fp32)),
                   jnp.kron(jnp.eye(256, dtype=fp32), jnp.array([[0.0], [1.0]], fp32))])
    # 0/1 row selectors splitting the final (B*2, 256) activation into its h=0 / h=1 rows.
    f = jnp.stack([jnp.kron(jnp.eye(batch, dtype=fp32), jnp.array([[1.0, 0.0]], fp32)),
                   jnp.kron(jnp.eye(batch, dtype=fp32), jnp.array([[0.0, 1.0]], fp32))])
    prepped += [s.astype(mxu_dtype), f.astype(mxu_dtype)]

    w1, b1 = params["fc1"]
    w2, b2 = params["fc2"]
    w3, b3 = params["fc3"]
    w4, b4 = params["fc4"]
    w5, b5 = params["fc5"]
    # fc3 input is cat([y (128), x_flat (512)]); x_flat uses PyTorch NCHW order f = c*4+h*2+w.
    # The kernel's conv output has rows (b, h) and lanes (c*2 + w); fold the flatten order
    # into two 256x256 slices of w3, one per h.
    w3y = w3[:128]
    w3x = w3[128:].reshape(128, 2, 2, 256)            # (c, h, w, n)
    w3x0 = w3x[:, 0].reshape(256, 256)                # lane index c*2 + w, h = 0
    w3x1 = w3x[:, 1].reshape(256, 256)                # lane index c*2 + w, h = 1
    # fc5 is 1-wide: pad to 128 output lanes so the final store is lane-dense.
    w5p = jnp.zeros((128, 128), fp32).at[:, :1].set(w5)
    b5p = jnp.zeros((1, 128), fp32).at[0, 0].set(b5[0])
    prepped += [
        w1.astype(fp32), b1[None, :].astype(fp32),                 # fc1 (elementwise, f32)
        w2.astype(mxu_dtype), b2[None, :].astype(fp32),            # fc2
        w3y.astype(mxu_dtype), w3x0.astype(mxu_dtype), w3x1.astype(mxu_dtype),
        b3[None, :].astype(fp32),                                  # fc3
        w4.astype(mxu_dtype), b4[None, :].astype(fp32),            # fc4
        w5p.astype(mxu_dtype), b5p.astype(fp32),                   # fc5 (lane-padded)
    ]
    return prepped


# ----------------------------------------------------------------------------
# The fused Pallas kernel: whole NetCV_Conv forward in one invocation.
# ----------------------------------------------------------------------------
def _netcv_fused_kernel(img_ref, twist_ref, *refs):
    fp32 = jnp.float32
    bf = _MXU_DTYPE
    out_ref = refs[-1]
    s_ref, f_ref = refs[16], refs[17]
    (w1_ref, b1_ref, w2_ref, b2_ref, w3y_ref, w3x0_ref, w3x1_ref, b3_ref,
     w4_ref, b4_ref, w5_ref, b5_ref) = refs[18:30]

    def mm(a, b):
        return jnp.dot(a, b, preferred_element_type=fp32)

    # ---- conv tower: conv3x3(pad=1) + bias + ReLU + MaxPool2d(2,2), all as matmuls ----
    x = img_ref[...]                                            # (B*32, 32) f32
    for layer in range(4):
        u_ref, a_ref, brow_ref, rp_ref = refs[4 * layer:4 * layer + 4]
        xb = x.astype(bf)
        acc = mm(mm(u_ref[0], xb).astype(bf), a_ref[0])         # dy = 0 (row shift -1)
        acc = acc + mm(mm(u_ref[1], xb).astype(bf), a_ref[1])   # dy = 1
        acc = acc + mm(mm(u_ref[2], xb).astype(bf), a_ref[2])   # dy = 2 (row shift +1)
        y = jnp.maximum(acc + brow_ref[...], 0.0)               # (B*H, Cout*W) f32
        yb = y.astype(bf)
        t = jnp.maximum(mm(rp_ref[0], yb), mm(rp_ref[1], yb))   # pool over h pairs
        tb = t.astype(bf)
        x = jnp.maximum(mm(tb, s_ref[0]), mm(tb, s_ref[1]))     # pool over w pairs

    # x: (B*2, 128*2); the NCHW flatten order is baked into w3x0 / w3x1.
    p4 = x.astype(bf)
    h0 = mm(f_ref[0], p4).astype(bf)                            # (B, 256) rows with h == 0
    h1 = mm(f_ref[1], p4).astype(bf)                            # (B, 256) rows with h == 1

    # ---- twist branch: Linear(1,256)+ReLU, Linear(256,128)+ReLU ----
    y1 = jnp.maximum(twist_ref[...] * w1_ref[...] + b1_ref[...], 0.0)        # (B, 256)
    y2 = jnp.maximum(mm(y1.astype(bf), w2_ref[...]) + b2_ref[...], 0.0)      # (B, 128)

    # ---- head: fc3(cat(y2, x_flat)) + ReLU, fc4 + ReLU, fc5 ----
    z = jnp.maximum(mm(y2.astype(bf), w3y_ref[...]) + mm(h0, w3x0_ref[...])
                    + mm(h1, w3x1_ref[...]) + b3_ref[...], 0.0)              # (B, 256)
    z = jnp.maximum(mm(z.astype(bf), w4_ref[...]) + b4_ref[...], 0.0)        # (B, 128)
    out_ref[...] = mm(z.astype(bf), w5_ref[...]) + b5_ref[...]               # (B, 128)


def netcv_conv_forward(prepped, img_nchw, twist):
    """img_nchw: (B, 1, 32, 32) f32 (PyTorch NCHW); twist: (B, 1) f32 -> (B, 1) f32."""
    batch = img_nchw.shape[0]
    # Rows = (b, h), lanes = w (Cin = 1), matching the kernel's layer-1 layout.
    img2d = img_nchw.astype(jnp.float32).reshape(batch * IMG_HW, IMG_HW)
    inputs = [img2d, twist.astype(jnp.float32)] + list(prepped)
    out = pl.pallas_call(
        _netcv_fused_kernel,
        out_shape=jax.ShapeDtypeStruct((batch, 128), jnp.float32),
        in_specs=[pl.BlockSpec(memory_space=pltpu.MemorySpace.VMEM)] * len(inputs),
        out_specs=pl.BlockSpec(memory_space=pltpu.MemorySpace.VMEM),
    )(*inputs)
    return out[:, :1]     # fc5 is 1-wide; the kernel writes a lane-dense 128-wide slab


# ----------------------------------------------------------------------------
# Pure-JAX reference (mirrors the kernel's bf16 rounding points; math in f32)
# ----------------------------------------------------------------------------
def reference_forward(params, img_nchw, twist, mxu_dtype=_MXU_DTYPE):
    rnd = lambda a: a.astype(mxu_dtype).astype(jnp.float32)
    x = jnp.transpose(img_nchw, (0, 2, 3, 1)).astype(jnp.float32)       # NHWC
    for name in ("conv1", "conv2", "conv3", "conv4"):
        k, b = params[name]
        bsz, hh, ww, _ = x.shape
        cout = k.shape[-1]
        xp = jnp.pad(rnd(x), ((0, 0), (1, 1), (1, 1), (0, 0)))
        kr = rnd(k)
        acc = jnp.zeros((bsz, hh, ww, cout), jnp.float32)
        for dy in range(3):
            for dx in range(3):
                acc = acc + jnp.einsum("bhwc,cd->bhwd",
                                       xp[:, dy:dy + hh, dx:dx + ww, :], kr[dy, dx],
                                       preferred_element_type=jnp.float32)
        y = rnd(jnp.maximum(acc + b, 0.0))
        x = y.reshape(bsz, hh // 2, 2, ww // 2, 2, cout).max(axis=(2, 4))
    bsz = x.shape[0]
    x_flat = jnp.transpose(x, (0, 3, 1, 2)).reshape(bsz, -1)            # NCHW-order flatten

    w1, b1 = params["fc1"]
    w2, b2 = params["fc2"]
    w3, b3 = params["fc3"]
    w4, b4 = params["fc4"]
    w5, b5 = params["fc5"]
    y = jnp.maximum(twist * w1 + b1, 0.0)
    y = jnp.maximum(rnd(y) @ rnd(w2) + b2, 0.0)
    z = jnp.concatenate([rnd(y), x_flat], axis=1)
    z = jnp.maximum(z @ rnd(w3) + b3, 0.0)
    z = jnp.maximum(rnd(z) @ rnd(w4) + b4, 0.0)
    return rnd(z) @ rnd(w5) + b5


if __name__ == "__main__":
    key = jax.random.PRNGKey(0)
    kp, ki, kt = jax.random.split(key, 3)

    params = init_params(kp)

    B = 2
    img = jax.random.normal(ki, (B, 1, IMG_HW, IMG_HW), jnp.float32)    # NCHW
    twist = jax.random.normal(kt, (B, 1), jnp.float32)

    prepped = prepare_params(params, batch=B)                           # one-time prep

    fwd = jax.jit(netcv_conv_forward)
    out = jax.block_until_ready(fwd(prepped, img, twist))

    ref = jax.block_until_ready(jax.jit(reference_forward)(params, img, twist))

    assert out.shape == (B, 1), out.shape
    assert bool(jnp.all(jnp.isfinite(out)))
    err = float(jnp.max(jnp.abs(out - ref)))
    scale = float(jnp.max(jnp.abs(ref)))
    assert err <= 2e-2 * (1.0 + scale), (err, scale)
    print("KERNEL_OK")
</pallas_src>

<mosaic_0001>
module attributes {stable_mosaic.version = 11 : i64} {
  func.func @_netcv_fused_kernel(%arg0: memref<64x32xf32, #tpu.memory_space<vmem>>, %arg1: memref<2x1xf32, #tpu.memory_space<vmem>>, %arg2: memref<3x64x64xbf16, #tpu.memory_space<vmem>>, %arg3: memref<3x32x512xbf16, #tpu.memory_space<vmem>>, %arg4: memref<1x512xf32, #tpu.memory_space<vmem>>, %arg5: memref<2x32x64xbf16, #tpu.memory_space<vmem>>, %arg6: memref<3x32x32xbf16, #tpu.memory_space<vmem>>, %arg7: memref<3x256x512xbf16, #tpu.memory_space<vmem>>, %arg8: memref<1x512xf32, #tpu.memory_space<vmem>>, %arg9: memref<2x16x32xbf16, #tpu.memory_space<vmem>>, %arg10: memref<3x16x16xbf16, #tpu.memory_space<vmem>>, %arg11: memref<3x256x512xbf16, #tpu.memory_space<vmem>>, %arg12: memref<1x512xf32, #tpu.memory_space<vmem>>, %arg13: memref<2x8x16xbf16, #tpu.memory_space<vmem>>, %arg14: memref<3x8x8xbf16, #tpu.memory_space<vmem>>, %arg15: memref<3x256x512xbf16, #tpu.memory_space<vmem>>, %arg16: memref<1x512xf32, #tpu.memory_space<vmem>>, %arg17: memref<2x4x8xbf16, #tpu.memory_space<vmem>>, %arg18: memref<2x512x256xbf16, #tpu.memory_space<vmem>>, %arg19: memref<2x2x4xbf16, #tpu.memory_space<vmem>>, %arg20: memref<1x256xf32, #tpu.memory_space<vmem>>, %arg21: memref<1x256xf32, #tpu.memory_space<vmem>>, %arg22: memref<256x128xbf16, #tpu.memory_space<vmem>>, %arg23: memref<1x128xf32, #tpu.memory_space<vmem>>, %arg24: memref<128x256xbf16, #tpu.memory_space<vmem>>, %arg25: memref<256x256xbf16, #tpu.memory_space<vmem>>, %arg26: memref<256x256xbf16, #tpu.memory_space<vmem>>, %arg27: memref<1x256xf32, #tpu.memory_space<vmem>>, %arg28: memref<256x128xbf16, #tpu.memory_space<vmem>>, %arg29: memref<1x128xf32, #tpu.memory_space<vmem>>, %arg30: memref<128x128xbf16, #tpu.memory_space<vmem>>, %arg31: memref<1x128xf32, #tpu.memory_space<vmem>>, %arg32: memref<2x128xf32, #tpu.memory_space<vmem>>) attributes {dimension_semantics = [], scalar_prefetch = 0 : i64, scratch_operands = 0 : i64, tpu.core_type = #tpu.core_type<tc>} {
    %c0 = arith.constant 0 : index
    %c0_0 = arith.constant 0 : index
    %0 = vector.load %arg0[%c0, %c0_0] : memref<64x32xf32, #tpu.memory_space<vmem>>, vector<64x32xf32>
    %1 = arith.truncf %0 : vector<64x32xf32> to vector<64x32xbf16>
    %c0_1 = arith.constant 0 : index
    %c0_2 = arith.constant 0 : index
    %c0_3 = arith.constant 0 : index
    %2 = vector.load %arg2[%c0_1, %c0_2, %c0_3] : memref<3x64x64xbf16, #tpu.memory_space<vmem>>, vector<1x64x64xbf16>
    %3 = vector.shape_cast %2 : vector<1x64x64xbf16> to vector<64x64xbf16>
    %cst = arith.constant dense<0.000000e+00> : vector<64x32xf32>
    %4 = tpu.matmul %3, %1, %cst {dimension_numbers = #tpu.dot_dimension_numbers<[1], [0], [0], [1], [0, 0, 1, 1], [], []>} : vector<64x64xbf16>, vector<64x32xbf16>, vector<64x32xf32> -> vector<64x32xf32>
    %5 = arith.truncf %4 : vector<64x32xf32> to vector<64x32xbf16>
    %c0_4 = arith.constant 0 : index
    %c0_5 = arith.constant 0 : index
    %c0_6 = arith.constant 0 : index
    %6 = vector.load %arg3[%c0_4, %c0_5, %c0_6] : memref<3x32x512xbf16, #tpu.memory_space<vmem>>, vector<1x32x512xbf16>
    %7 = vector.shape_cast %6 : vector<1x32x512xbf16> to vector<32x512xbf16>
    %cst_7 = arith.constant dense<0.000000e+00> : vector<64x512xf32>
    %8 = tpu.matmul %5, %7, %cst_7 {dimension_numbers = #tpu.dot_dimension_numbers<[1], [0], [0], [1], [0, 0, 1, 1], [], []>} : vector<64x32xbf16>, vector<32x512xbf16>, vector<64x512xf32> -> vector<64x512xf32>
    %c1 = arith.constant 1 : index
    %c0_8 = arith.constant 0 : index
    %c0_9 = arith.constant 0 : index
    %9 = vector.load %arg2[%c1, %c0_8, %c0_9] : memref<3x64x64xbf16, #tpu.memory_space<vmem>>, vector<1x64x64xbf16>
    %10 = vector.shape_cast %9 : vector<1x64x64xbf16> to vector<64x64xbf16>
    %cst_10 = arith.constant dense<0.000000e+00> : vector<64x32xf32>
    %11 = tpu.matmul %10, %1, %cst_10 {dimension_numbers = #tpu.dot_dimension_numbers<[1], [0], [0], [1], [0, 0, 1, 1], [], []>} : vector<64x64xbf16>, vector<64x32xbf16>, vector<64x32xf32> -> vector<64x32xf32>
    %12 = arith.truncf %11 : vector<64x32xf32> to vector<64x32xbf16>
    %c1_11 = arith.constant 1 : index
    %c0_12 = arith.constant 0 : index
    %c0_13 = arith.constant 0 : index
    %13 = vector.load %arg3[%c1_11, %c0_12, %c0_13] : memref<3x32x512xbf16, #tpu.memory_space<vmem>>, vector<1x32x512xbf16>
    %14 = vector.shape_cast %13 : vector<1x32x512xbf16> to vector<32x512xbf16>
    %cst_14 = arith.constant dense<0.000000e+00> : vector<64x512xf32>
    %15 = tpu.matmul %12, %14, %cst_14 {dimension_numbers = #tpu.dot_dimension_numbers<[1], [0], [0], [1], [0, 0, 1, 1], [], []>} : vector<64x32xbf16>, vector<32x512xbf16>, vector<64x512xf32> -> vector<64x512xf32>
    %16 = arith.addf %8, %15 : vector<64x512xf32>
    %c2 = arith.constant 2 : index
    %c0_15 = arith.constant 0 : index
    %c0_16 = arith.constant 0 : index
    %17 = vector.load %arg2[%c2, %c0_15, %c0_16] : memref<3x64x64xbf16, #tpu.memory_space<vmem>>, vector<1x64x64xbf16>
    %18 = vector.shape_cast %17 : vector<1x64x64xbf16> to vector<64x64xbf16>
    %cst_17 = arith.constant dense<0.000000e+00> : vector<64x32xf32>
    %19 = tpu.matmul %18, %1, %cst_17 {dimension_numbers = #tpu.dot_dimension_numbers<[1], [0], [0], [1], [0, 0, 1, 1], [], []>} : vector<64x64xbf16>, vector<64x32xbf16>, vector<64x32xf32> -> vector<64x32xf32>
    %20 = arith.truncf %19 : vector<64x32xf32> to vector<64x32xbf16>
    %c2_18 = arith.constant 2 : index
    %c0_19 = arith.constant 0 : index
    %c0_20 = arith.constant 0 : index
    %21 = vector.load %arg3[%c2_18, %c0_19, %c0_20] : memref<3x32x512xbf16, #tpu.memory_space<vmem>>, vector<1x32x512xbf16>
    %22 = vector.shape_cast %21 : vector<1x32x512xbf16> to vector<32x512xbf16>
    %cst_21 = arith.constant dense<0.000000e+00> : vector<64x512xf32>
    %23 = tpu.matmul %20, %22, %cst_21 {dimension_numbers = #tpu.dot_dimension_numbers<[1], [0], [0], [1], [0, 0, 1, 1], [], []>} : vector<64x32xbf16>, vector<32x512xbf16>, vector<64x512xf32> -> vector<64x512xf32>
    %24 = arith.addf %16, %23 : vector<64x512xf32>
    %c0_22 = arith.constant 0 : index
    %c0_23 = arith.constant 0 : index
    %25 = vector.load %arg4[%c0_22, %c0_23] : memref<1x512xf32, #tpu.memory_space<vmem>>, vector<1x512xf32>
    %26 = vector.broadcast %25 : vector<1x512xf32> to vector<64x512xf32>
    %27 = arith.addf %24, %26 : vector<64x512xf32>
    %cst_24 = arith.constant 0.000000e+00 : f32
    %28 = vector.broadcast %cst_24 : f32 to vector<64x512xf32>
    %29 = arith.maximumf %27, %28 : vector<64x512xf32>
    %30 = arith.truncf %29 : vector<64x512xf32> to vector<64x512xbf16>
    %c0_25 = arith.constant 0 : index
    %c0_26 = arith.constant 0 : index
    %c0_27 = arith.constant 0 : index
    %31 = vector.load %arg5[%c0_25, %c0_26, %c0_27] : memref<2x32x64xbf16, #tpu.memory_space<vmem>>, vector<1x32x64xbf16>
    %32 = vector.shape_cast %31 : vector<1x32x64xbf16> to vector<32x64xbf16>
    %cst_28 = arith.constant dense<0.000000e+00> : vector<32x512xf32>
    %33 = tpu.matmul %32, %30, %cst_28 {dimension_numbers = #tpu.dot_dimension_numbers<[1], [0], [0], [1], [0, 0, 1, 1], [], []>} : vector<32x64xbf16>, vector<64x512xbf16>, vector<32x512xf32> -> vector<32x512xf32>
    %c1_29 = arith.constant 1 : index
    %c0_30 = arith.constant 0 : index
    %c0_31 = arith.constant 0 : index
    %34 = vector.load %arg5[%c1_29, %c0_30, %c0_31] : memref<2x32x64xbf16, #tpu.memory_space<vmem>>, vector<1x32x64xbf16>
    %35 = vector.shape_cast %34 : vector<1x32x64xbf16> to vector<32x64xbf16>
    %cst_32 = arith.constant dense<0.000000e+00> : vector<32x512xf32>
    %36 = tpu.matmul %35, %30, %cst_32 {dimension_numbers = #tpu.dot_dimension_numbers<[1], [0], [0], [1], [0, 0, 1, 1], [], []>} : vector<32x64xbf16>, vector<64x512xbf16>, vector<32x512xf32> -> vector<32x512xf32>
    %37 = arith.maximumf %33, %36 : vector<32x512xf32>
    %38 = arith.truncf %37 : vector<32x512xf32> to vector<32x512xbf16>
    %c0_33 = arith.constant 0 : index
    %c0_34 = arith.constant 0 : index
    %c0_35 = arith.constant 0 : index
    %39 = vector.load %arg18[%c0_33, %c0_34, %c0_35] : memref<2x512x256xbf16, #tpu.memory_space<vmem>>, vector<1x512x256xbf16>
    %40 = vector.shape_cast %39 : vector<1x512x256xbf16> to vector<512x256xbf16>
    %cst_36 = arith.constant dense<0.000000e+00> : vector<32x256xf32>
    %41 = tpu.matmul %38, %40, %cst_36 {dimension_numbers = #tpu.dot_dimension_numbers<[1], [0], [0], [1], [0, 0, 1, 1], [], []>} : vector<32x512xbf16>, vector<512x256xbf16>, vector<32x256xf32> -> vector<32x256xf32>
    %c1_37 = arith.constant 1 : index
    %c0_38 = arith.constant 0 : index
    %c0_39 = arith.constant 0 : index
    %42 = vector.load %arg18[%c1_37, %c0_38, %c0_39] : memref<2x512x256xbf16, #tpu.memory_space<vmem>>, vector<1x512x256xbf16>
    %43 = vector.shape_cast %42 : vector<1x512x256xbf16> to vector<512x256xbf16>
    %cst_40 = arith.constant dense<0.000000e+00> : vector<32x256xf32>
    %44 = tpu.matmul %38, %43, %cst_40 {dimension_numbers = #tpu.dot_dimension_numbers<[1], [0], [0], [1], [0, 0, 1, 1], [], []>} : vector<32x512xbf16>, vector<512x256xbf16>, vector<32x256xf32> -> vector<32x256xf32>
    %45 = arith.maximumf %41, %44 : vector<32x256xf32>
    %46 = arith.truncf %45 : vector<32x256xf32> to vector<32x256xbf16>
    %c0_41 = arith.constant 0 : index
    %c0_42 = arith.constant 0 : index
    %c0_43 = arith.constant 0 : index
    %47 = vector.load %arg6[%c0_41, %c0_42, %c0_43] : memref<3x32x32xbf16, #tpu.memory_space<vmem>>, vector<1x32x32xbf16>
    %48 = vector.shape_cast %47 : vector<1x32x32xbf16> to vector<32x32xbf16>
    %cst_44 = arith.constant dense<0.000000e+00> : vector<32x256xf32>
    %49 = tpu.matmul %48, %46, %cst_44 {dimension_numbers = #tpu.dot_dimension_numbers<[1], [0], [0], [1], [0, 0, 1, 1], [], []>} : vector<32x32xbf16>, vector<32x256xbf16>, vector<32x256xf32> -> vector<32x256xf32>
    %50 = arith.truncf %49 : vector<32x256xf32> to vector<32x256xbf16>
    %c0_45 = arith.constant 0 : index
    %c0_46 = arith.constant 0 : index
    %c0_47 = arith.constant 0 : index
    %51 = vector.load %arg7[%c0_45, %c0_46, %c0_47] : memref<3x256x512xbf16, #tpu.memory_space<vmem>>, vector<1x256x512xbf16>
    %52 = vector.shape_cast %51 : vector<1x256x512xbf16> to vector<256x512xbf16>
    %cst_48 = arith.constant dense<0.000000e+00> : vector<32x512xf32>
    %53 = tpu.matmul %50, %52, %cst_48 {dimension_numbers = #tpu.dot_dimension_numbers<[1], [0], [0], [1], [0, 0, 1, 1], [], []>} : vector<32x256xbf16>, vector<256x512xbf16>, vector<32x512xf32> -> vector<32x512xf32>
    %c1_49 = arith.constant 1 : index
    %c0_50 = arith.constant 0 : index
    %c0_51 = arith.constant 0 : index
    %54 = vector.load %arg6[%c1_49, %c0_50, %c0_51] : memref<3x32x32xbf16, #tpu.memory_space<vmem>>, vector<1x32x32xbf16>
    %55 = vector.shape_cast %54 : vector<1x32x32xbf16> to vector<32x32xbf16>
    %cst_52 = arith.constant dense<0.000000e+00> : vector<32x256xf32>
    %56 = tpu.matmul %55, %46, %cst_52 {dimension_numbers = #tpu.dot_dimension_numbers<[1], [0], [0], [1], [0, 0, 1, 1], [], []>} : vector<32x32xbf16>, vector<32x256xbf16>, vector<32x256xf32> -> vector<32x256xf32>
    %57 = arith.truncf %56 : vector<32x256xf32> to vector<32x256xbf16>
    %c1_53 = arith.constant 1 : index
    %c0_54 = arith.constant 0 : index
    %c0_55 = arith.constant 0 : index
    %58 = vector.load %arg7[%c1_53, %c0_54, %c0_55] : memref<3x256x512xbf16, #tpu.memory_space<vmem>>, vector<1x256x512xbf16>
    %59 = vector.shape_cast %58 : vector<1x256x512xbf16> to vector<256x512xbf16>
    %cst_56 = arith.constant dense<0.000000e+00> : vector<32x512xf32>
    %60 = tpu.matmul %57, %59, %cst_56 {dimension_numbers = #tpu.dot_dimension_numbers<[1], [0], [0], [1], [0, 0, 1, 1], [], []>} : vector<32x256xbf16>, vector<256x512xbf16>, vector<32x512xf32> -> vector<32x512xf32>
    %61 = arith.addf %53, %60 : vector<32x512xf32>
    %c2_57 = arith.constant 2 : index
    %c0_58 = arith.constant 0 : index
    %c0_59 = arith.constant 0 : index
    %62 = vector.load %arg6[%c2_57, %c0_58, %c0_59] : memref<3x32x32xbf16, #tpu.memory_space<vmem>>, vector<1x32x32xbf16>
    %63 = vector.shape_cast %62 : vector<1x32x32xbf16> to vector<32x32xbf16>
    %cst_60 = arith.constant dense<0.000000e+00> : vector<32x256xf32>
    %64 = tpu.matmul %63, %46, %cst_60 {dimension_numbers = #tpu.dot_dimension_numbers<[1], [0], [0], [1], [0, 0, 1, 1], [], []>} : vector<32x32xbf16>, vector<32x256xbf16>, vector<32x256xf32> -> vector<32x256xf32>
    %65 = arith.truncf %64 : vector<32x256xf32> to vector<32x256xbf16>
    %c2_61 = arith.constant 2 : index
    %c0_62 = arith.constant 0 : index
    %c0_63 = arith.constant 0 : index
    %66 = vector.load %arg7[%c2_61, %c0_62, %c0_63] : memref<3x256x512xbf16, #tpu.memory_space<vmem>>, vector<1x256x512xbf16>
    %67 = vector.shape_cast %66 : vector<1x256x512xbf16> to vector<256x512xbf16>
    %cst_64 = arith.constant dense<0.000000e+00> : vector<32x512xf32>
    %68 = tpu.matmul %65, %67, %cst_64 {dimension_numbers = #tpu.dot_dimension_numbers<[1], [0], [0], [1], [0, 0, 1, 1], [], []>} : vector<32x256xbf16>, vector<256x512xbf16>, vector<32x512xf32> -> vector<32x512xf32>
    %69 = arith.addf %61, %68 : vector<32x512xf32>
    %c0_65 = arith.constant 0 : index
    %c0_66 = arith.constant 0 : index
    %70 = vector.load %arg8[%c0_65, %c0_66] : memref<1x512xf32, #tpu.memory_space<vmem>>, vector<1x512xf32>
    %71 = vector.broadcast %70 : vector<1x512xf32> to vector<32x512xf32>
    %72 = arith.addf %69, %71 : vector<32x512xf32>
    %cst_67 = arith.constant 0.000000e+00 : f32
    %73 = vector.broadcast %cst_67 : f32 to vector<32x512xf32>
    %74 = arith.maximumf %72, %73 : vector<32x512xf32>
    %75 = arith.truncf %74 : vector<32x512xf32> to vector<32x512xbf16>
    %c0_68 = arith.constant 0 : index
    %c0_69 = arith.constant 0 : index
    %c0_70 = arith.constant 0 : index
    %76 = vector.load %arg9[%c0_68, %c0_69, %c0_70] : memref<2x16x32xbf16, #tpu.memory_space<vmem>>, vector<1x16x32xbf16>
    %77 = vector.shape_cast %76 : vector<1x16x32xbf16> to vector<16x32xbf16>
    %cst_71 = arith.constant dense<0.000000e+00> : vector<16x512xf32>
    %78 = tpu.matmul %77, %75, %cst_71 {dimension_numbers = #tpu.dot_dimension_numbers<[1], [0], [0], [1], [0, 0, 1, 1], [], []>} : vector<16x32xbf16>, vector<32x512xbf16>, vector<16x512xf32> -> vector<16x512xf32>
    %c1_72 = arith.constant 1 : index
    %c0_73 = arith.constant 0 : index
    %c0_74 = arith.constant 0 : index
    %79 = vector.load %arg9[%c1_72, %c0_73, %c0_74] : memref<2x16x32xbf16, #tpu.memory_space<vmem>>, vector<1x16x32xbf16>
    %80 = vector.shape_cast %79 : vector<1x16x32xbf16> to vector<16x32xbf16>
    %cst_75 = arith.constant dense<0.000000e+00> : vector<16x512xf32>
    %81 = tpu.matmul %80, %75, %cst_75 {dimension_numbers = #tpu.dot_dimension_numbers<[1], [0], [0], [1], [0, 0, 1, 1], [], []>} : vector<16x32xbf16>, vector<32x512xbf16>, vector<16x512xf32> -> vector<16x512xf32>
    %82 = arith.maximumf %78, %81 : vector<16x512xf32>
    %83 = arith.truncf %82 : vector<16x512xf32> to vector<16x512xbf16>
    %c0_76 = arith.constant 0 : index
    %c0_77 = arith.constant 0 : index
    %c0_78 = arith.constant 0 : index
    %84 = vector.load %arg18[%c0_76, %c0_77, %c0_78] : memref<2x512x256xbf16, #tpu.memory_space<vmem>>, vector<1x512x256xbf16>
    %85 = vector.shape_cast %84 : vector<1x512x256xbf16> to vector<512x256xbf16>
    %cst_79 = arith.constant dense<0.000000e+00> : vector<16x256xf32>
    %86 = tpu.matmul %83, %85, %cst_79 {dimension_numbers = #tpu.dot_dimension_numbers<[1], [0], [0], [1], [0, 0, 1, 1], [], []>} : vector<16x512xbf16>, vector<512x256xbf16>, vector<16x256xf32> -> vector<16x256xf32>
    %c1_80 = arith.constant 1 : index
    %c0_81 = arith.constant 0 : index
    %c0_82 = arith.constant 0 : index
    %87 = vector.load %arg18[%c1_80, %c0_81, %c0_82] : memref<2x512x256xbf16, #tpu.memory_space<vmem>>, vector<1x512x256xbf16>
    %88 = vector.shape_cast %87 : vector<1x512x256xbf16> to vector<512x256xbf16>
    %cst_83 = arith.constant dense<0.000000e+00> : vector<16x256xf32>
    %89 = tpu.matmul %83, %88, %cst_83 {dimension_numbers = #tpu.dot_dimension_numbers<[1], [0], [0], [1], [0, 0, 1, 1], [], []>} : vector<16x512xbf16>, vector<512x256xbf16>, vector<16x256xf32> -> vector<16x256xf32>
    %90 = arith.maximumf %86, %89 : vector<16x256xf32>
    %91 = arith.truncf %90 : vector<16x256xf32> to vector<16x256xbf16>
    %c0_84 = arith.constant 0 : index
    %c0_85 = arith.constant 0 : index
    %c0_86 = arith.constant 0 : index
    %92 = vector.load %arg10[%c0_84, %c0_85, %c0_86] : memref<3x16x16xbf16, #tpu.memory_space<vmem>>, vector<1x16x16xbf16>
    %93 = vector.shape_cast %92 : vector<1x16x16xbf16> to vector<16x16xbf16>
    %cst_87 = arith.constant dense<0.000000e+00> : vector<16x256xf32>
    %94 = tpu.matmul %93, %91, %cst_87 {dimension_numbers = #tpu.dot_dimension_numbers<[1], [0], [0], [1], [0, 0, 1, 1], [], []>} : vector<16x16xbf16>, vector<16x256xbf16>, vector<16x256xf32> -> vector<16x256xf32>
    %95 = arith.truncf %94 : vector<16x256xf32> to vector<16x256xbf16>
    %c0_88 = arith.constant 0 : index
    %c0_89 = arith.constant 0 : index
    %c0_90 = arith.constant 0 : index
    %96 = vector.load %arg11[%c0_88, %c0_89, %c0_90] : memref<3x256x512xbf16, #tpu.memory_space<vmem>>, vector<1x256x512xbf16>
    %97 = vector.shape_cast %96 : vector<1x256x512xbf16> to vector<256x512xbf16>
    %cst_91 = arith.constant dense<0.000000e+00> : vector<16x512xf32>
    %98 = tpu.matmul %95, %97, %cst_91 {dimension_numbers = #tpu.dot_dimension_numbers<[1], [0], [0], [1], [0, 0, 1, 1], [], []>} : vector<16x256xbf16>, vector<256x512xbf16>, vector<16x512xf32> -> vector<16x512xf32>
    %c1_92 = arith.constant 1 : index
    %c0_93 = arith.constant 0 : index
    %c0_94 = arith.constant 0 : index
    %99 = vector.load %arg10[%c1_92, %c0_93, %c0_94] : memref<3x16x16xbf16, #tpu.memory_space<vmem>>, vector<1x16x16xbf16>
    %100 = vector.shape_cast %99 : vector<1x16x16xbf16> to vector<16x16xbf16>
    %cst_95 = arith.constant dense<0.000000e+00> : vector<16x256xf32>
    %101 = tpu.matmul %100, %91, %cst_95 {dimension_numbers = #tpu.dot_dimension_numbers<[1], [0], [0], [1], [0, 0, 1, 1], [], []>} : vector<16x16xbf16>, vector<16x256xbf16>, vector<16x256xf32> -> vector<16x256xf32>
    %102 = arith.truncf %101 : vector<16x256xf32> to vector<16x256xbf16>
    %c1_96 = arith.constant 1 : index
    %c0_97 = arith.constant 0 : index
    %c0_98 = arith.constant 0 : index
    %103 = vector.load %arg11[%c1_96, %c0_97, %c0_98] : memref<3x256x512xbf16, #tpu.memory_space<vmem>>, vector<1x256x512xbf16>
    %104 = vector.shape_cast %103 : vector<1x256x512xbf16> to vector<256x512xbf16>
    %cst_99 = arith.constant dense<0.000000e+00> : vector<16x512xf32>
    %105 = tpu.matmul %102, %104, %cst_99 {dimension_numbers = #tpu.dot_dimension_numbers<[1], [0], [0], [1], [0, 0, 1, 1], [], []>} : vector<16x256xbf16>, vector<256x512xbf16>, vector<16x512xf32> -> vector<16x512xf32>
    %106 = arith.addf %98, %105 : vector<16x512xf32>
    %c2_100 = arith.constant 2 : index
    %c0_101 = arith.constant 0 : index
    %c0_102 = arith.constant 0 : index
    %107 = vector.load %arg10[%c2_100, %c0_101, %c0_102] : memref<3x16x16xbf16, #tpu.memory_space<vmem>>, vector<1x16x16xbf16>
    %108 = vector.shape_cast %107 : vector<1x16x16xbf16> to vector<16x16xbf16>
    %cst_103 = arith.constant dense<0.000000e+00> : vector<16x256xf32>
    %109 = tpu.matmul %108, %91, %cst_103 {dimension_numbers = #tpu.dot_dimension_numbers<[1], [0], [0], [1], [0, 0, 1, 1], [], []>} : vector<16x16xbf16>, vector<16x256xbf16>, vector<16x256xf32> -> vector<16x256xf32>
    %110 = arith.truncf %109 : vector<16x256xf32> to vector<16x256xbf16>
    %c2_104 = arith.constant 2 : index
    %c0_105 = arith.constant 0 : index
    %c0_106 = arith.constant 0 : index
    %111 = vector.load %arg11[%c2_104, %c0_105, %c0_106] : memref<3x256x512xbf16, #tpu.memory_space<vmem>>, vector<1x256x512xbf16>
    %112 = vector.shape_cast %111 : vector<1x256x512xbf16> to vector<256x512xbf16>
    %cst_107 = arith.constant dense<0.000000e+00> : vector<16x512xf32>
    %113 = tpu.matmul %110, %112, %cst_107 {dimension_numbers = #tpu.dot_dimension_numbers<[1], [0], [0], [1], [0, 0, 1, 1], [], []>} : vector<16x256xbf16>, vector<256x512xbf16>, vector<16x512xf32> -> vector<16x512xf32>
    %114 = arith.addf %106, %113 : vector<16x512xf32>
    %c0_108 = arith.constant 0 : index
    %c0_109 = arith.constant 0 : index
    %115 = vector.load %arg12[%c0_108, %c0_109] : memref<1x512xf32, #tpu.memory_space<vmem>>, vector<1x512xf32>
    %116 = vector.broadcast %115 : vector<1x512xf32> to vector<16x512xf32>
    %117 = arith.addf %114, %116 : vector<16x512xf32>
    %cst_110 = arith.constant 0.000000e+00 : f32
    %118 = vector.broadcast %cst_110 : f32 to vector<16x512xf32>
    %119 = arith.maximumf %117, %118 : vector<16x512xf32>
    %120 = arith.truncf %119 : vector<16x512xf32> to vector<16x512xbf16>
    %c0_111 = arith.constant 0 : index
    %c0_112 = arith.constant 0 : index
    %c0_113 = arith.constant 0 : index
    %121 = vector.load %arg13[%c0_111, %c0_112, %c0_113] : memref<2x8x16xbf16, #tpu.memory_space<vmem>>, vector<1x8x16xbf16>
    %122 = vector.shape_cast %121 : vector<1x8x16xbf16> to vector<8x16xbf16>
    %cst_114 = arith.constant dense<0.000000e+00> : vector<8x512xf32>
    %123 = tpu.matmul %122, %120, %cst_114 {dimension_numbers = #tpu.dot_dimension_numbers<[1], [0], [0], [1], [0, 0, 1, 1], [], []>} : vector<8x16xbf16>, vector<16x512xbf16>, vector<8x512xf32> -> vector<8x512xf32>
    %c1_115 = arith.constant 1 : index
    %c0_116 = arith.constant 0 : index
    %c0_117 = arith.constant 0 : index
    %124 = vector.load %arg13[%c1_115, %c0_116, %c0_117] : memref<2x8x16xbf16, #tpu.memory_space<vmem>>, vector<1x8x16xbf16>
    %125 = vector.shape_cast %124 : vector<1x8x16xbf16> to vector<8x16xbf16>
    %cst_118 = arith.constant dense<0.000000e+00> : vector<8x512xf32>
    %126 = tpu.matmul %125, %120, %cst_118 {dimension_numbers = #tpu.dot_dimension_numbers<[1], [0], [0], [1], [0, 0, 1, 1], [], []>} : vector<8x16xbf16>, vector<16x512xbf16>, vector<8x512xf32> -> vector<8x512xf32>
    %127 = arith.maximumf %123, %126 : vector<8x512xf32>
    %128 = arith.truncf %127 : vector<8x512xf32> to vector<8x512xbf16>
    %c0_119 = arith.constant 0 : index
    %c0_120 = arith.constant 0 : index
    %c0_121 = arith.constant 0 : index
    %129 = vector.load %arg18[%c0_119, %c0_120, %c0_121] : memref<2x512x256xbf16, #tpu.memory_space<vmem>>, vector<1x512x256xbf16>
    %130 = vector.shape_cast %129 : vector<1x512x256xbf16> to vector<512x256xbf16>
    %cst_122 = arith.constant dense<0.000000e+00> : vector<8x256xf32>
    %131 = tpu.matmul %128, %130, %cst_122 {dimension_numbers = #tpu.dot_dimension_numbers<[1], [0], [0], [1], [0, 0, 1, 1], [], []>} : vector<8x512xbf16>, vector<512x256xbf16>, vector<8x256xf32> -> vector<8x256xf32>
    %c1_123 = arith.constant 1 : index
    %c0_124 = arith.constant 0 : index
    %c0_125 = arith.constant 0 : index
    %132 = vector.load %arg18[%c1_123, %c0_124, %c0_125] : memref<2x512x256xbf16, #tpu.memory_space<vmem>>, vector<1x512x256xbf16>
    %133 = vector.shape_cast %132 : vector<1x512x256xbf16> to vector<512x256xbf16>
    %cst_126 = arith.constant dense<0.000000e+00> : vector<8x256xf32>
    %134 = tpu.matmul %128, %133, %cst_126 {dimension_numbers = #tpu.dot_dimension_numbers<[1], [0], [0], [1], [0, 0, 1, 1], [], []>} : vector<8x512xbf16>, vector<512x256xbf16>, vector<8x256xf32> -> vector<8x256xf32>
    %135 = arith.maximumf %131, %134 : vector<8x256xf32>
    %136 = arith.truncf %135 : vector<8x256xf32> to vector<8x256xbf16>
    %c0_127 = arith.constant 0 : index
    %c0_128 = arith.constant 0 : index
    %c0_129 = arith.constant 0 : index
    %137 = vector.load %arg14[%c0_127, %c0_128, %c0_129] : memref<3x8x8xbf16, #tpu.memory_space<vmem>>, vector<1x8x8xbf16>
    %138 = vector.shape_cast %137 : vector<1x8x8xbf16> to vector<8x8xbf16>
    %cst_130 = arith.constant dense<0.000000e+00> : vector<8x256xf32>
    %139 = tpu.matmul %138, %136, %cst_130 {dimension_numbers = #tpu.dot_dimension_numbers<[1], [0], [0], [1], [0, 0, 1, 1], [], []>} : vector<8x8xbf16>, vector<8x256xbf16>, vector<8x256xf32> -> vector<8x256xf32>
    %140 = arith.truncf %139 : vector<8x256xf32> to vector<8x256xbf16>
    %c0_131 = arith.constant 0 : index
    %c0_132 = arith.constant 0 : index
    %c0_133 = arith.constant 0 : index
    %141 = vector.load %arg15[%c0_131, %c0_132, %c0_133] : memref<3x256x512xbf16, #tpu.memory_space<vmem>>, vector<1x256x512xbf16>
    %142 = vector.shape_cast %141 : vector<1x256x512xbf16> to vector<256x512xbf16>
    %cst_134 = arith.constant dense<0.000000e+00> : vector<8x512xf32>
    %143 = tpu.matmul %140, %142, %cst_134 {dimension_numbers = #tpu.dot_dimension_numbers<[1], [0], [0], [1], [0, 0, 1, 1], [], []>} : vector<8x256xbf16>, vector<256x512xbf16>, vector<8x512xf32> -> vector<8x512xf32>
    %c1_135 = arith.constant 1 : index
    %c0_136 = arith.constant 0 : index
    %c0_137 = arith.constant 0 : index
    %144 = vector.load %arg14[%c1_135, %c0_136, %c0_137] : memref<3x8x8xbf16, #tpu.memory_space<vmem>>, vector<1x8x8xbf16>
    %145 = vector.shape_cast %144 : vector<1x8x8xbf16> to vector<8x8xbf16>
    %cst_138 = arith.constant dense<0.000000e+00> : vector<8x256xf32>
    %146 = tpu.matmul %145, %136, %cst_138 {dimension_numbers = #tpu.dot_dimension_numbers<[1], [0], [0], [1], [0, 0, 1, 1], [], []>} : vector<8x8xbf16>, vector<8x256xbf16>, vector<8x256xf32> -> vector<8x256xf32>
    %147 = arith.truncf %146 : vector<8x256xf32> to vector<8x256xbf16>
    %c1_139 = arith.constant 1 : index
    %c0_140 = arith.constant 0 : index
    %c0_141 = arith.constant 0 : index
    %148 = vector.load %arg15[%c1_139, %c0_140, %c0_141] : memref<3x256x512xbf16, #tpu.memory_space<vmem>>, vector<1x256x512xbf16>
    %149 = vector.shape_cast %148 : vector<1x256x512xbf16> to vector<256x512xbf16>
    %cst_142 = arith.constant dense<0.000000e+00> : vector<8x512xf32>
    %150 = tpu.matmul %147, %149, %cst_142 {dimension_numbers = #tpu.dot_dimension_numbers<[1], [0], [0], [1], [0, 0, 1, 1], [], []>} : vector<8x256xbf16>, vector<256x512xbf16>, vector<8x512xf32> -> vector<8x512xf32>
    %151 = arith.addf %143, %150 : vector<8x512xf32>
    %c2_143 = arith.constant 2 : index
    %c0_144 = arith.constant 0 : index
    %c0_145 = arith.constant 0 : index
    %152 = vector.load %arg14[%c2_143, %c0_144, %c0_145] : memref<3x8x8xbf16, #tpu.memory_space<vmem>>, vector<1x8x8xbf16>
    %153 = vector.shape_cast %152 : vector<1x8x8xbf16> to vector<8x8xbf16>
    %cst_146 = arith.constant dense<0.000000e+00> : vector<8x256xf32>
    %154 = tpu.matmul %153, %136, %cst_146 {dimension_numbers = #tpu.dot_dimension_numbers<[1], [0], [0], [1], [0, 0, 1, 1], [], []>} : vector<8x8xbf16>, vector<8x256xbf16>, vector<8x256xf32> -> vector<8x256xf32>
    %155 = arith.truncf %154 : vector<8x256xf32> to vector<8x256xbf16>
    %c2_147 = arith.constant 2 : index
    %c0_148 = arith.constant 0 : index
    %c0_149 = arith.constant 0 : index
    %156 = vector.load %arg15[%c2_147, %c0_148, %c0_149] : memref<3x256x512xbf16, #tpu.memory_space<vmem>>, vector<1x256x512xbf16>
    %157 = vector.shape_cast %156 : vector<1x256x512xbf16> to vector<256x512xbf16>
    %cst_150 = arith.constant dense<0.000000e+00> : vector<8x512xf32>
    %158 = tpu.matmul %155, %157, %cst_150 {dimension_numbers = #tpu.dot_dimension_numbers<[1], [0], [0], [1], [0, 0, 1, 1], [], []>} : vector<8x256xbf16>, vector<256x512xbf16>, vector<8x512xf32> -> vector<8x512xf32>
    %159 = arith.addf %151, %158 : vector<8x512xf32>
    %c0_151 = arith.constant 0 : index
    %c0_152 = arith.constant 0 : index
    %160 = vector.load %arg16[%c0_151, %c0_152] : memref<1x512xf32, #tpu.memory_space<vmem>>, vector<1x512xf32>
    %161 = vector.broadcast %160 : vector<1x512xf32> to vector<8x512xf32>
    %162 = arith.addf %159, %161 : vector<8x512xf32>
    %cst_153 = arith.constant 0.000000e+00 : f32
    %163 = vector.broadcast %cst_153 : f32 to vector<8x512xf32>
    %164 = arith.maximumf %162, %163 : vector<8x512xf32>
    %165 = arith.truncf %164 : vector<8x512xf32> to vector<8x512xbf16>
    %c0_154 = arith.constant 0 : index
    %c0_155 = arith.constant 0 : index
    %c0_156 = arith.constant 0 : index
    %166 = vector.load %arg17[%c0_154, %c0_155, %c0_156] : memref<2x4x8xbf16, #tpu.memory_space<vmem>>, vector<1x4x8xbf16>
    %167 = vector.shape_cast %166 : vector<1x4x8xbf16> to vector<4x8xbf16>
    %cst_157 = arith.constant dense<0.000000e+00> : vector<4x512xf32>
    %168 = tpu.matmul %167, %165, %cst_157 {dimension_numbers = #tpu.dot_dimension_numbers<[1], [0], [0], [1], [0, 0, 1, 1], [], []>} : vector<4x8xbf16>, vector<8x512xbf16>, vector<4x512xf32> -> vector<4x512xf32>
    %c1_158 = arith.constant 1 : index
    %c0_159 = arith.constant 0 : index
    %c0_160 = arith.constant 0 : index
    %169 = vector.load %arg17[%c1_158, %c0_159, %c0_160] : memref<2x4x8xbf16, #tpu.memory_space<vmem>>, vector<1x4x8xbf16>
    %170 = vector.shape_cast %169 : vector<1x4x8xbf16> to vector<4x8xbf16>
    %cst_161 = arith.constant dense<0.000000e+00> : vector<4x512xf32>
    %171 = tpu.matmul %170, %165, %cst_161 {dimension_numbers = #tpu.dot_dimension_numbers<[1], [0], [0], [1], [0, 0, 1, 1], [], []>} : vector<4x8xbf16>, vector<8x512xbf16>, vector<4x512xf32> -> vector<4x512xf32>
    %172 = arith.maximumf %168, %171 : vector<4x512xf32>
    %173 = arith.truncf %172 : vector<4x512xf32> to vector<4x512xbf16>
    %c0_162 = arith.constant 0 : index
    %c0_163 = arith.constant 0 : index
    %c0_164 = arith.constant 0 : index
    %174 = vector.load %arg18[%c0_162, %c0_163, %c0_164] : memref<2x512x256xbf16, #tpu.memory_space<vmem>>, vector<1x512x256xbf16>
    %175 = vector.shape_cast %174 : vector<1x512x256xbf16> to vector<512x256xbf16>
    %cst_165 = arith.constant dense<0.000000e+00> : vector<4x256xf32>
    %176 = tpu.matmul %173, %175, %cst_165 {dimension_numbers = #tpu.dot_dimension_numbers<[1], [0], [0], [1], [0, 0, 1, 1], [], []>} : vector<4x512xbf16>, vector<512x256xbf16>, vector<4x256xf32> -> vector<4x256xf32>
    %c1_166 = arith.constant 1 : index
    %c0_167 = arith.constant 0 : index
    %c0_168 = arith.constant 0 : index
    %177 = vector.load %arg18[%c1_166, %c0_167, %c0_168] : memref<2x512x256xbf16, #tpu.memory_space<vmem>>, vector<1x512x256xbf16>
    %178 = vector.shape_cast %177 : vector<1x512x256xbf16> to vector<512x256xbf16>
    %cst_169 = arith.constant dense<0.000000e+00> : vector<4x256xf32>
    %179 = tpu.matmul %173, %178, %cst_169 {dimension_numbers = #tpu.dot_dimension_numbers<[1], [0], [0], [1], [0, 0, 1, 1], [], []>} : vector<4x512xbf16>, vector<512x256xbf16>, vector<4x256xf32> -> vector<4x256xf32>
    %180 = arith.maximumf %176, %179 : vector<4x256xf32>
    %181 = arith.truncf %180 : vector<4x256xf32> to vector<4x256xbf16>
    %c0_170 = arith.constant 0 : index
    %c0_171 = arith.constant 0 : index
    %c0_172 = arith.constant 0 : index
    %182 = vector.load %arg19[%c0_170, %c0_171, %c0_172] : memref<2x2x4xbf16, #tpu.memory_space<vmem>>, vector<1x2x4xbf16>
    %183 = vector.shape_cast %182 : vector<1x2x4xbf16> to vector<2x4xbf16>
    %cst_173 = arith.constant dense<0.000000e+00> : vector<2x256xf32>
    %184 = tpu.matmul %183, %181, %cst_173 {dimension_numbers = #tpu.dot_dimension_numbers<[1], [0], [0], [1], [0, 0, 1, 1], [], []>} : vector<2x4xbf16>, vector<4x256xbf16>, vector<2x256xf32> -> vector<2x256xf32>
    %185 = arith.truncf %184 : vector<2x256xf32> to vector<2x256xbf16>
    %c1_174 = arith.constant 1 : index
    %c0_175 = arith.constant 0 : index
    %c0_176 = arith.constant 0 : index
    %186 = vector.load %arg19[%c1_174, %c0_175, %c0_176] : memref<2x2x4xbf16, #tpu.memory_space<vmem>>, vector<1x2x4xbf16>
    %187 = vector.shape_cast %186 : vector<1x2x4xbf16> to vector<2x4xbf16>
    %cst_177 = arith.constant dense<0.000000e+00> : vector<2x256xf32>
    %188 = tpu.matmul %187, %181, %cst_177 {dimension_numbers = #tpu.dot_dimension_numbers<[1], [0], [0], [1], [0, 0, 1, 1], [], []>} : vector<2x4xbf16>, vector<4x256xbf16>, vector<2x256xf32> -> vector<2x256xf32>
    %189 = arith.truncf %188 : vector<2x256xf32> to vector<2x256xbf16>
    %c0_178 = arith.constant 0 : index
    %c0_179 = arith.constant 0 : index
    %190 = vector.load %arg1[%c0_178, %c0_179] : memref<2x1xf32, #tpu.memory_space<vmem>>, vector<2x1xf32>
    %c0_180 = arith.constant 0 : index
    %c0_181 = arith.constant 0 : index
    %191 = vector.load %arg20[%c0_180, %c0_181] : memref<1x256xf32, #tpu.memory_space<vmem>>, vector<1x256xf32>
    %192 = vector.broadcast %190 : vector<2x1xf32> to vector<2x256xf32>
    %193 = vector.broadcast %191 : vector<1x256xf32> to vector<2x256xf32>
    %194 = arith.mulf %192, %193 : vector<2x256xf32>
    %c0_182 = arith.constant 0 : index
    %c0_183 = arith.constant 0 : index
    %195 = vector.load %arg21[%c0_182, %c0_183] : memref<1x256xf32, #tpu.memory_space<vmem>>, vector<1x256xf32>
    %196 = vector.broadcast %195 : vector<1x256xf32> to vector<2x256xf32>
    %197 = arith.addf %194, %196 : vector<2x256xf32>
    %cst_184 = arith.constant 0.000000e+00 : f32
    %198 = vector.broadcast %cst_184 : f32 to vector<2x256xf32>
    %199 = arith.maximumf %197, %198 : vector<2x256xf32>
    %200 = arith.truncf %199 : vector<2x256xf32> to vector<2x256xbf16>
    %c0_185 = arith.constant 0 : index
    %c0_186 = arith.constant 0 : index
    %201 = vector.load %arg22[%c0_185, %c0_186] : memref<256x128xbf16, #tpu.memory_space<vmem>>, vector<256x128xbf16>
    %cst_187 = arith.constant dense<0.000000e+00> : vector<2x128xf32>
    %202 = tpu.matmul %200, %201, %cst_187 {dimension_numbers = #tpu.dot_dimension_numbers<[1], [0], [0], [1], [0, 0, 1, 1], [], []>} : vector<2x256xbf16>, vector<256x128xbf16>, vector<2x128xf32> -> vector<2x128xf32>
    %c0_188 = arith.constant 0 : index
    %c0_189 = arith.constant 0 : index
    %203 = vector.load %arg23[%c0_188, %c0_189] : memref<1x128xf32, #tpu.memory_space<vmem>>, vector<1x128xf32>
    %204 = vector.broadcast %203 : vector<1x128xf32> to vector<2x128xf32>
    %205 = arith.addf %202, %204 : vector<2x128xf32>
    %cst_190 = arith.constant 0.000000e+00 : f32
    %206 = vector.broadcast %cst_190 : f32 to vector<2x128xf32>
    %207 = arith.maximumf %205, %206 : vector<2x128xf32>
    %208 = arith.truncf %207 : vector<2x128xf32> to vector<2x128xbf16>
    %c0_191 = arith.constant 0 : index
    %c0_192 = arith.constant 0 : index
    %209 = vector.load %arg24[%c0_191, %c0_192] : memref<128x256xbf16, #tpu.memory_space<vmem>>, vector<128x256xbf16>
    %cst_193 = arith.constant dense<0.000000e+00> : vector<2x256xf32>
    %210 = tpu.matmul %208, %209, %cst_193 {dimension_numbers = #tpu.dot_dimension_numbers<[1], [0], [0], [1], [0, 0, 1, 1], [], []>} : vector<2x128xbf16>, vector<128x256xbf16>, vector<2x256xf32> -> vector<2x256xf32>
    %c0_194 = arith.constant 0 : index
    %c0_195 = arith.constant 0 : index
    %211 = vector.load %arg25[%c0_194, %c0_195] : memref<256x256xbf16, #tpu.memory_space<vmem>>, vector<256x256xbf16>
    %cst_196 = arith.constant dense<0.000000e+00> : vector<2x256xf32>
    %212 = tpu.matmul %185, %211, %cst_196 {dimension_numbers = #tpu.dot_dimension_numbers<[1], [0], [0], [1], [0, 0, 1, 1], [], []>} : vector<2x256xbf16>, vector<256x256xbf16>, vector<2x256xf32> -> vector<2x256xf32>
    %213 = arith.addf %210, %212 : vector<2x256xf32>
    %c0_197 = arith.constant 0 : index
    %c0_198 = arith.constant 0 : index
    %214 = vector.load %arg26[%c0_197, %c0_198] : memref<256x256xbf16, #tpu.memory_space<vmem>>, vector<256x256xbf16>
    %cst_199 = arith.constant dense<0.000000e+00> : vector<2x256xf32>
    %215 = tpu.matmul %189, %214, %cst_199 {dimension_numbers = #tpu.dot_dimension_numbers<[1], [0], [0], [1], [0, 0, 1, 1], [], []>} : vector<2x256xbf16>, vector<256x256xbf16>, vector<2x256xf32> -> vector<2x256xf32>
    %216 = arith.addf %213, %215 : vector<2x256xf32>
    %c0_200 = arith.constant 0 : index
    %c0_201 = arith.constant 0 : index
    %217 = vector.load %arg27[%c0_200, %c0_201] : memref<1x256xf32, #tpu.memory_space<vmem>>, vector<1x256xf32>
    %218 = vector.broadcast %217 : vector<1x256xf32> to vector<2x256xf32>
    %219 = arith.addf %216, %218 : vector<2x256xf32>
    %cst_202 = arith.constant 0.000000e+00 : f32
    %220 = vector.broadcast %cst_202 : f32 to vector<2x256xf32>
    %221 = arith.maximumf %219, %220 : vector<2x256xf32>
    %222 = arith.truncf %221 : vector<2x256xf32> to vector<2x256xbf16>
    %c0_203 = arith.constant 0 : index
    %c0_204 = arith.constant 0 : index
    %223 = vector.load %arg28[%c0_203, %c0_204] : memref<256x128xbf16, #tpu.memory_space<vmem>>, vector<256x128xbf16>
    %cst_205 = arith.constant dense<0.000000e+00> : vector<2x128xf32>
    %224 = tpu.matmul %222, %223, %cst_205 {dimension_numbers = #tpu.dot_dimension_numbers<[1], [0], [0], [1], [0, 0, 1, 1], [], []>} : vector<2x256xbf16>, vector<256x128xbf16>, vector<2x128xf32> -> vector<2x128xf32>
    %c0_206 = arith.constant 0 : index
    %c0_207 = arith.constant 0 : index
    %225 = vector.load %arg29[%c0_206, %c0_207] : memref<1x128xf32, #tpu.memory_space<vmem>>, vector<1x128xf32>
    %226 = vector.broadcast %225 : vector<1x128xf32> to vector<2x128xf32>
    %227 = arith.addf %224, %226 : vector<2x128xf32>
    %cst_208 = arith.constant 0.000000e+00 : f32
    %228 = vector.broadcast %cst_208 : f32 to vector<2x128xf32>
    %229 = arith.maximumf %227, %228 : vector<2x128xf32>
    %230 = arith.truncf %229 : vector<2x128xf32> to vector<2x128xbf16>
    %c0_209 = arith.constant 0 : index
    %c0_210 = arith.constant 0 : index
    %231 = vector.load %arg30[%c0_209, %c0_210] : memref<128x128xbf16, #tpu.memory_space<vmem>>, vector<128x128xbf16>
    %cst_211 = arith.constant dense<0.000000e+00> : vector<2x128xf32>
    %232 = tpu.matmul %230, %231, %cst_211 {dimension_numbers = #tpu.dot_dimension_numbers<[1], [0], [0], [1], [0, 0, 1, 1], [], []>} : vector<2x128xbf16>, vector<128x128xbf16>, vector<2x128xf32> -> vector<2x128xf32>
    %c0_212 = arith.constant 0 : index
    %c0_213 = arith.constant 0 : index
    %233 = vector.load %arg31[%c0_212, %c0_213] : memref<1x128xf32, #tpu.memory_space<vmem>>, vector<1x128xf32>
    %234 = vector.broadcast %233 : vector<1x128xf32> to vector<2x128xf32>
    %235 = arith.addf %232, %234 : vector<2x128xf32>
    %c0_214 = arith.constant 0 : index
    %c0_215 = arith.constant 0 : index
    %236 = vector.load %arg32[%c0_214, %c0_215] : memref<2x128xf32, #tpu.memory_space<vmem>>, vector<2x128xf32>
    tpu.vector_store %arg32[%c0_214, %c0_215], %235 {strides = array<i32>} : memref<2x128xf32, #tpu.memory_space<vmem>>, vector<2x128xf32>,
    return
  }
}

</mosaic_0001>

<bundles_post_ra>
// kernel: netcv_conv_forward.1
= control target key start
LH: loop header
LB: loop body
LE: loop exit
PB: predicated region body
PF: predicated region fallthrough
CT: control target
= control target key end

     0   :  { %s15123_s6 = smov 1   ;;  %s15124_s10 = smov 2   ;;  %s17368_s0 = inlined_call_operand.smem [shape: u32[33], index: -1, kind: input, shape index: {}] }
   0x1   :  { %s15194_s5 = sld [smem:[%s17368_s0]]   ;;  %s15125_s14 = smov 3  }
   0x2   :  { %s15199_s9 = sld [smem:[%s17368_s0 + %s15123_s6]]   ;;  %s15126_s18 = smov 4  }
   0x3   :  { %s15204_s13 = sld [smem:[%s17368_s0 + %s15124_s10]]   ;;  %s15127_s22 = smov 5  }
   0x4   :  { %s15209_s17 = sld [smem:[%s17368_s0 + %s15125_s14]]   ;;  %s15128_s26 = smov 6  }
   0x5   :  { %s15214_s21 = sld [smem:[%s17368_s0 + %s15126_s18]]   ;;  %s15129_s30 = smov 7  }
   0x6   :  { %s15219_s25 = sld [smem:[%s17368_s0 + %s15127_s22]]   ;;  %s15130_s4 = smov 8  }
   0x7   :  { %s15224_s29 = sld [smem:[%s17368_s0 + %s15128_s26]]   ;;  %s15131_s10 = smov 9  }
   0x8   :  { %17619 = sst [smem:[#allocation48_spill]] %s15199_s9  ;;  %s15132_s15 = smov 10  }
   0x9   :  { %s15229_s3 = sld [smem:[%s17368_s0 + %s15129_s30]]   ;;  %s15133_s20 = smov 11  }
   0xa   :  { %s15234_s8 = sld [smem:[%s17368_s0 + %s15130_s4]]   ;;  %s15134_s26 = smov 12  }
   0xb   :  { %s15239_s14 = sld [smem:[%s17368_s0 + %s15131_s10]]   ;;  %s15135_s1 = smov 13  }
   0xc   :  { %s15244_s19 = sld [smem:[%s17368_s0 + %s15132_s15]]   ;;  %s15136_s7 = smov 14  }
   0xd   :  { %s15249_s24 = sld [smem:[%s17368_s0 + %s15133_s20]]   ;;  %s15137_s15 = smov 15  }
   0xe   :  { %s15254_s30 = sld [smem:[%s17368_s0 + %s15134_s26]]   ;;  %s15138_s22 = smov 16  }
   0xf   :  { %s15259_s6 = sld [smem:[%s17368_s0 + %s15135_s1]]   ;;  %s15139_s28 = smov 17  }
  0x10   :  { %s15264_s12 = sld [smem:[%s17368_s0 + %s15136_s7]]   ;;  %s15140_s7 = smov 18  }
  0x11   :  { %17620 = sst [smem:[#allocation49_spill]] %s15239_s14 }
  0x12   :  { %s15269_s20 = sld [smem:[%s17368_s0 + %s15137_s15]]   ;;  %s15141_s15 = smov 19  }
  0x13   :  { %17621 = sst [smem:[#allocation50_spill]] %s15249_s24 }
  0x14   :  { %s15274_s27 = sld [smem:[%s17368_s0 + %s15138_s22]]   ;;  %s15142_s22 = smov 20  }
  0x15   :  { %17622 = sst [smem:[#allocation51_spill]] %s15259_s6 }
  0x16   :  { %17623 = sst [smem:[#allocation52_spill]] %s15264_s12 }
  0x17   :  { %s15279_s4 = sld [smem:[%s17368_s0 + %s15139_s28]]   ;;  %s15143_s28 = smov 21  }
  0x18   :  { %s15284_s9 = sld [smem:[%s17368_s0 + %s15140_s7]]   ;;  %s15144_s7 = smov 22  }
  0x19   :  { %s15289_s6 = sld [smem:[%s17368_s0 + %s15141_s15]]   ;;  %s15145_s15 = smov 23  }
  0x1a   :  { %17624 = sst [smem:[#allocation53_spill]] %s15274_s27 }
  0x1b   :  { %s15294_s27 = sld [smem:[%s17368_s0 + %s15142_s22]]   ;;  %s15146_s22 = smov 24  }
  0x1c   :  { %s15304_s12 = sld [smem:[%s17368_s0 + %s15144_s7]]   ;;  %s15148_s7 = smov 26  }
  0x1d   :  { %17625 = sst [smem:[#allocation54_spill]] %s15279_s4 }
  0x1e   :  { %s15299_s4 = sld [smem:[%s17368_s0 + %s15143_s28]]   ;;  %s15147_s28 = smov 25  }
  0x1f   :  { %17626 = sst [smem:[#allocation55_spill]] %s15289_s6 }
  0x20   :  { %s15309_s6 = sld [smem:[%s17368_s0 + %s15145_s15]]   ;;  %s15149_s15 = smov 27  }
  0x21   :  { %17627 = sst [smem:[#allocation56_spill]] %s15294_s27 }
  0x22   :  { %17629 = sst [smem:[#allocation58_spill]] %s15304_s12 }
  0x23   :  { %s15314_s27 = sld [smem:[%s17368_s0 + %s15146_s22]]   ;;  %s15150_s22 = smov 28  }
  0x24   :  { %17628 = sst [smem:[#allocation57_spill]] %s15299_s4 }
  0x25   :  { %s15319_s4 = sld [smem:[%s17368_s0 + %s15147_s28]]   ;;  %s15151_s28 = smov 29  }
  0x26   :  { %17630 = sst [smem:[#allocation59_spill]] %s15309_s6 }
  0x27   :  { %s15324_s12 = sld [smem:[%s17368_s0 + %s15148_s7]]   ;;  %s15152_s7 = smov 30  }
  0x28   :  { %s15329_s6 = sld [smem:[%s17368_s0 + %s15149_s15]]   ;;  %s15153_s15 = smov 31  }
  0x29   :  { %s15334_s24 = sld [smem:[%s17368_s0 + %s15150_s22]]   ;;  %s15154_s22 = smov 32  }
  0x2a   :  { %s15344_s14 = sld [smem:[%s17368_s0 + %s15152_s7]]  }
  0x2b   :  { %17631 = sst [smem:[#allocation60_spill]] %s15319_s4 }
  0x2c   :  { %s15339_s4 = sld [smem:[%s17368_s0 + %s15151_s28]]  }
  0x2e   :  { %17632 = sst [smem:[#allocation61_spill]] %s15329_s6 }
  0x2f   :  { %17633 = sst [smem:[#allocation62_spill]] %s15334_s24 }
  0x30   :  { %s15349_s6 = sld [smem:[%s17368_s0 + %s15153_s15]]  }
  0x31   :  { %s15354_s24 = sld [smem:[%s17368_s0 + %s15154_s22]]  }
  0x32   :  { %70 = vsyncpa [#allocation3], 0 }
  0x33   :  { %71 = vsyncpa [#allocation5], 0 }
  0x34   :  { %72 = vsyncpa [#allocation8], 0 }
  0x35   :  { %73 = vsyncpa [#allocation11], 0 }
  0x36   :  { %74 = vsyncpa [#allocation14], 0 }
  0x37   :  { %75 = vsyncpa [#allocation17], 0 }
  0x38   :  { %76 = vsyncpa [#allocation20], 0 }
  0x39   :  { %77 = vsyncpa [#allocation23], 0 }
  0x3a   :  { %78 = vsyncpa [#allocation26], 0 }
  0x3b   :  { %79 = vsyncpa [#allocation29], 0 }
  0x3c   :  { %80 = vsyncpa [#allocation32], 0  ;;  %s101_s28 = sshll.u32 %s15204_s13, 4  ;;  %s102_s28 = int_to_ptr.hbm [resolvable:$true] %s101_s28 }
  0x3d   :  { %81 = vsyncpa [#allocation35], 0  ;;  %s15155_s0 = smov [#allocation4]   ;;  %s128_s2 = sshll.u32 %s15214_s21, 4  ;;  %s129_s2 = int_to_ptr.hbm [resolvable:$true] %s128_s2 }
  0x3e   :  { %s103_s1 = sshll.u32 %s15155_s0, 4  ;;  %s14571_s7 = sshra.s32 %s102_s28, 4  ;;  %s104_s1 = int_to_ptr.vmem [resolvable:$true] %s103_s1  ;;  %s14572_s7 = int_to_ptr.hbm [resolvable:$true] %s14571_s7 }
  0x3f   :  { %s14573_s10 = scalar_lea.hbm %s14572_s7, 96  ;;  %s14575_s11 = scalar_lea.hbm %s15204_s13, 96 }
  0x40   :  { %p14574_p0 = scmp.ne.s32.totalorder %s14572_s7, %s14573_s10  ;;  %p14576_p1 = scmp.lt.s32.totalorder %s14572_s7, %s15204_s13 }
  0x41   :  { %p14577_p2 = scmp.lt.s32.totalorder %s14575_s11, %s14573_s10 }
  0x43   :  { %p14578_p3 = por %p14577_p2, %p14576_p1 }
  0x45   :  { %p14579_p4 = pnand %p14578_p3, %p14574_p0 }
  0x47   :  { %14582 = shalt.err (!%p14579_p4)
}
  0x48   :  { %s15156_s15 = smov 64   ;;  %s15157_s16 = smov 4  }
  0x49   :  { %109 = dma.hbm_to_vmem [thread:$0]  %s102_s28, 1536, %s104_s1, [#allocation5], %s15156_s15, %s15156_s15, %s15157_s16  }
  0x4a   :  { %s15158_s18 = smov [#allocation7]   ;;  %s151_s23 = sshll.u32 %s15224_s29, 4  ;;  %s15364_s23 = int_to_ptr.hbm [resolvable:$true] %s151_s23 }
  0x4b   :  { %s130_s22 = sshll.u32 %s15158_s18, 4  ;;  %s14595_s13 = sshra.s32 %s129_s2, 4  ;;  %s131_s22 = int_to_ptr.vmem [resolvable:$true] %s130_s22  ;;  %s14596_s13 = int_to_ptr.hbm [resolvable:$true] %s14595_s13 }
  0x4c   :  { %s14597_s26 = scalar_lea.hbm %s14596_s13, 4  ;;  %s14599_s0 = scalar_lea.hbm %s15214_s21, 4 }
  0x4d   :  { %p14598_p5 = scmp.ne.s32.totalorder %s14596_s13, %s14597_s26  ;;  %p14600_p6 = scmp.lt.s32.totalorder %s14596_s13, %s15214_s21 }
  0x4e   :  { %p14601_p7 = scmp.lt.s32.totalorder %s14599_s0, %s14597_s26 }
  0x50   :  { %p14602_p8 = por %p14601_p7, %p14600_p6 }
  0x52   :  { %p14603_p9 = pnand %p14602_p8, %p14598_p5 }
  0x54   :  { %14606 = shalt.err (!%p14603_p9)
}
  0x55   :  { %133 = dma.hbm_to_vmem [thread:$0]  %s129_s2, 64, %s131_s22, [#allocation8]  }
  0x56   :  { %s178_s28 = sshll.u32 %s15234_s8, 4  ;;  %s15159_s1 = smov [#allocation10]   ;;  %s179_s28 = int_to_ptr.hbm [resolvable:$true] %s178_s28 }
  0x57   :  { %s153_s7 = sshll.u32 %s15159_s1, 4  ;;  %s14619_s10 = sshra.s32 %s15364_s23, 4  ;;  %s154_s7 = int_to_ptr.vmem [resolvable:$true] %s153_s7  ;;  %s14620_s10 = int_to_ptr.hbm [resolvable:$true] %s14619_s10 }
  0x58   :  { %s14621_s11 = scalar_lea.hbm %s14620_s10, 48  ;;  %s14623_s18 = scalar_lea.hbm %s15224_s29, 48 }
  0x59   :  { %p14622_p10 = scmp.ne.s32.totalorder %s14620_s10, %s14621_s11  ;;  %p14624_p11 = scmp.lt.s32.totalorder %s14620_s10, %s15224_s29 }
  0x5a   :  { %p14625_p12 = scmp.lt.s32.totalorder %s14623_s18, %s14621_s11 }
  0x5c   :  { %p14626_p13 = por %p14625_p12, %p14624_p11 }
  0x5e   :  { %p14627_p0 = pnand %p14626_p13, %p14622_p10 }
  0x60   :  { %14630 = shalt.err (!%p14627_p0)
}
  0x61   :  { %159 = dma.hbm_to_vmem [thread:$0]  %s15364_s23, 768, %s154_s7, [#allocation11], %s15156_s15, %s15156_s15, %s15157_s16  }
  0x62   :  { %s15160_s21 = smov [#allocation13]   ;;  %s201_s22 = sshll.u32 %s15244_s19, 4  ;;  %s15377_s22 = int_to_ptr.hbm [resolvable:$true] %s201_s22 }
  0x63   :  { %s180_s2 = sshll.u32 %s15160_s21, 4  ;;  %s14643_s13 = sshra.s32 %s179_s28, 4  ;;  %s181_s2 = int_to_ptr.vmem [resolvable:$true] %s180_s2  ;;  %s14644_s13 = int_to_ptr.hbm [resolvable:$true] %s14643_s13 }
  0x64   :  { %s14645_s29 = scalar_lea.hbm %s14644_s13, 4  ;;  %s14647_s26 = scalar_lea.hbm %s15234_s8, 4 }
  0x65   :  { %p14646_p1 = scmp.ne.s32.totalorder %s14644_s13, %s14645_s29  ;;  %p14648_p2 = scmp.lt.s32.totalorder %s14644_s13, %s15234_s8 }
  0x66   :  { %p14649_p3 = scmp.lt.s32.totalorder %s14647_s26, %s14645_s29 }
  0x68   :  { %p14650_p4 = por %p14649_p3, %p14648_p2 }
  0x6a   :  { %p14651_p5 = pnand %p14650_p4, %p14646_p1 }
  0x6c   :  { %14654 = shalt.err (!%p14651_p5)
}
  0x6d   :  { %183 = dma.hbm_to_vmem [thread:$0]  %s179_s28, 64, %s181_s2, [#allocation14]  }
  0x6e   :  { %s228_s23 = sshll.u32 %s15254_s30, 4  ;;  %s15161_s0 = smov [#allocation16]   ;;  %s229_s23 = int_to_ptr.hbm [resolvable:$true] %s228_s23 }
  0x6f   :  { %s203_s1 = sshll.u32 %s15161_s0, 4  ;;  %s14667_s7 = sshra.s32 %s15377_s22, 4  ;;  %s204_s1 = int_to_ptr.vmem [resolvable:$true] %s203_s1  ;;  %s14668_s7 = int_to_ptr.hbm [resolvable:$true] %s14667_s7 }
  0x70   :  { %s14669_s10 = scalar_lea.hbm %s14668_s7, 24  ;;  %s14671_s11 = scalar_lea.hbm %s15244_s19, 24 }
  0x71   :  { %p14670_p6 = scmp.ne.s32.totalorder %s14668_s7, %s14669_s10  ;;  %p14672_p7 = scmp.lt.s32.totalorder %s14668_s7, %s15244_s19 }
  0x72   :  { %p14673_p8 = scmp.lt.s32.totalorder %s14671_s11, %s14669_s10 }
  0x74   :  { %p14674_p9 = por %p14673_p8, %p14672_p7 }
  0x76   :  { %p14675_p10 = pnand %p14674_p9, %p14670_p6 }
  0x78   :  { %14678 = shalt.err (!%p14675_p10)
}
  0x79   :  { %209 = dma.hbm_to_vmem [thread:$0]  %s15377_s22, 384, %s204_s1, [#allocation17], %s15156_s15, %s15156_s15, %s15157_s16  }
  0x7a   :  { %s15162_s8 = smov [#allocation19]   ;;  %s14691_s18 = sshra.s32 %s229_s23, 4  ;;  %s14692_s18 = int_to_ptr.hbm [resolvable:$true] %s14691_s18 }
  0x7b   :  { %s230_s28 = sshll.u32 %s15162_s8, 4  ;;  %s14693_s21 = scalar_lea.hbm %s14692_s18, 4  ;;  %s231_s28 = int_to_ptr.vmem [resolvable:$true] %s230_s28 }
  0x7c   :  { %p14694_p11 = scmp.ne.s32.totalorder %s14692_s18, %s14693_s21  ;;  %s14695_s2 = scalar_lea.hbm %s15254_s30, 4 }
  0x7d   :  { %p14696_p12 = scmp.lt.s32.totalorder %s14692_s18, %s15254_s30  ;;  %p14697_p13 = scmp.lt.s32.totalorder %s14695_s2, %s14693_s21 }
  0x7f   :  { %p14698_p0 = por %p14697_p13, %p14696_p12 }
  0x81   :  { %p14699_p1 = pnand %p14698_p0, %p14694_p11 }
  0x83   :  { %14702 = shalt.err (!%p14699_p1)
}
  0x84   :  { %233 = dma.hbm_to_vmem [thread:$0]  %s229_s23, 64, %s231_s28, [#allocation20]  }
  0x85   :  { %s253_s19 = sshll.u32 %s15269_s20, 4  ;;  %s15163_s22 = smov [#allocation22]   ;;  %s254_s19 = int_to_ptr.hbm [resolvable:$true] %s253_s19 }
  0x86   :  { %s255_s13 = sshll.u32 %s15163_s22, 4  ;;  %s14715_s29 = sshra.s32 %s254_s19, 4  ;;  %s256_s13 = int_to_ptr.vmem [resolvable:$true] %s255_s13  ;;  %s14716_s29 = int_to_ptr.hbm [resolvable:$true] %s14715_s29 }
  0x87   :  { %s14717_s26 = scalar_lea.hbm %s14716_s29, 1536  ;;  %s14719_s0 = scalar_lea.hbm %s15269_s20, 1536 }
  0x88   :  { %p14718_p2 = scmp.ne.s32.totalorder %s14716_s29, %s14717_s26  ;;  %p14720_p3 = scmp.lt.s32.totalorder %s14716_s29, %s15269_s20 }
  0x89   :  { %p14721_p4 = scmp.lt.s32.totalorder %s14719_s0, %s14717_s26 }
  0x8b   :  { %p14722_p5 = por %p14721_p4, %p14720_p3 }
  0x8d   :  { %p14723_p6 = pnand %p14722_p5, %p14718_p2 }
  0x8f   :  { %14726 = shalt.err (!%p14723_p6)
}
  0x90   :  { %s15164_s30 = smov 256   ;;  %s15165_s23 = smov 16  }
  0x91   :  { %261 = dma.hbm_to_vmem [thread:$0]  %s254_s19, 24576, %s256_s13, [#allocation23], %s15164_s30, %s15164_s30, %s15165_s23  }
  0x92   :  { %s281_s1 = sshll.u32 %s15284_s9, 4  ;;  %s15166_s7 = smov [#allocation25]   ;;  %s282_s1 = int_to_ptr.hbm [resolvable:$true] %s281_s1 }
  0x93   :  { %s283_s10 = sshll.u32 %s15166_s7, 4  ;;  %s315_s11 = sshll.u32 %s15314_s27, 4  ;;  %s284_s10 = int_to_ptr.vmem [resolvable:$true] %s283_s10  ;;  %s15399_s11 = int_to_ptr.hbm [resolvable:$true] %s315_s11 }
  0x94   :  { %s14739_s20 = sshra.s32 %s282_s1, 4  ;;  %s14743_s28 = scalar_lea.hbm %s15284_s9, 1024  ;;  %s14740_s20 = int_to_ptr.hbm [resolvable:$true] %s14739_s20 }
  0x95   :  { %s14741_s8 = scalar_lea.hbm %s14740_s20, 1024  ;;  %p14744_p8 = scmp.lt.s32.totalorder %s14740_s20, %s15284_s9 }
  0x96   :  { %p14742_p7 = scmp.ne.s32.totalorder %s14740_s20, %s14741_s8  ;;  %p14745_p9 = scmp.lt.s32.totalorder %s14743_s28, %s14741_s8 }
  0x98   :  { %p14746_p10 = por %p14745_p9, %p14744_p8 }
  0x9a   :  { %p14747_p11 = pnand %p14746_p10, %p14742_p7 }
  0x9c   :  { %14750 = shalt.err (!%p14747_p11)
}
  0x9d   :  { %s15167_s18 = smov 128   ;;  %s15168_s21 = smov 8  }
  0x9e   :  { %289 = dma.hbm_to_vmem [thread:$0]  %s282_s1, 16384, %s284_s10, [#allocation26], %s15167_s18, %s15167_s18, %s15168_s21  }
  0x9f   :  { %s341_s2 = sshll.u32 %s15324_s12, 4  ;;  %s15169_s19 = smov [#allocation28]   ;;  %s15407_s2 = int_to_ptr.hbm [resolvable:$true] %s341_s2 }
  0xa0   :  { %s317_s22 = sshll.u32 %s15169_s19, 4  ;;  %s14763_s9 = sshra.s32 %s15399_s11, 4  ;;  %s318_s22 = int_to_ptr.vmem [resolvable:$true] %s317_s22  ;;  %s14764_s9 = int_to_ptr.hbm [resolvable:$true] %s14763_s9 }
  0xa1   :  { %s14765_s13 = scalar_lea.hbm %s14764_s9, 128  ;;  %s14767_s29 = scalar_lea.hbm %s15314_s27, 128 }
  0xa2   :  { %p14766_p12 = scmp.ne.s32.totalorder %s14764_s9, %s14765_s13  ;;  %p14768_p13 = scmp.lt.s32.totalorder %s14764_s9, %s15314_s27 }
  0xa3   :  { %p14769_p0 = scmp.lt.s32.totalorder %s14767_s29, %s14765_s13 }
  0xa5   :  { %p14770_p1 = por %p14769_p0, %p14768_p13 }
  0xa7   :  { %p14771_p2 = pnand %p14770_p1, %p14766_p12 }
  0xa9   :  { %14774 = shalt.err (!%p14771_p2)
}
  0xaa   :  { %323 = dma.hbm_to_vmem [thread:$0]  %s15399_s11, 2048, %s318_s22, [#allocation29], %s15167_s18, %s15167_s18, %s15168_s21  }
  0xab   :  { %s15170_s26 = smov [#allocation31]   ;;  %s86_s1 = sshll.u32 %s15194_s5, 4  ;;  %s15417_s1 = int_to_ptr.hbm [resolvable:$true] %s86_s1 }
  0xac   :  { %s343_s0 = sshll.u32 %s15170_s26, 4  ;;  %s14787_s27 = sshra.s32 %s15407_s2, 4  ;;  %s344_s0 = int_to_ptr.vmem [resolvable:$true] %s343_s0  ;;  %s14788_s27 = int_to_ptr.hbm [resolvable:$true] %s14787_s27 }
  0xad   :  { %s14789_s7 = scalar_lea.hbm %s14788_s27, 256  ;;  %s14791_s10 = scalar_lea.hbm %s15324_s12, 256 }
  0xae   :  { %p14790_p3 = scmp.ne.s32.totalorder %s14788_s27, %s14789_s7  ;;  %p14792_p4 = scmp.lt.s32.totalorder %s14788_s27, %s15324_s12 }
  0xaf   :  { %p14793_p5 = scmp.lt.s32.totalorder %s14791_s10, %s14789_s7 }
  0xb1   :  { %p14794_p6 = por %p14793_p5, %p14792_p4 }
  0xb3   :  { %p14795_p7 = pnand %p14794_p6, %p14790_p3 }
  0xb5   :  { %14798 = shalt.err (!%p14795_p7)
}
  0xb6   :  { %349 = dma.hbm_to_vmem [thread:$0]  %s15407_s2, 4096, %s344_s0, [#allocation32], %s15167_s18, %s15167_s18, %s15168_s21  }
  0xb7   :  { %s114_s11 = sshll.u32 %s15209_s17, 4  ;;  %s15171_s20 = smov [#allocation2]   ;;  %s15427_s11 = int_to_ptr.hbm [resolvable:$true] %s114_s11 }
  0xb8   :  { %s88_s8 = sshll.u32 %s15171_s20, 4  ;;  %s14811_s12 = sshra.s32 %s15417_s1, 4  ;;  %s89_s8 = int_to_ptr.vmem [resolvable:$true] %s88_s8  ;;  %s14812_s12 = int_to_ptr.hbm [resolvable:$true] %s14811_s12 }
  0xb9   :  { %s14813_s28 = scalar_lea.hbm %s14812_s12, 64  ;;  %s14815_s19 = scalar_lea.hbm %s15194_s5, 64 }
  0xba   :  { %p14814_p8 = scmp.ne.s32.totalorder %s14812_s12, %s14813_s28  ;;  %p14816_p9 = scmp.lt.s32.totalorder %s14812_s12, %s15194_s5 }
  0xbb   :  { %p14817_p10 = scmp.lt.s32.totalorder %s14815_s19, %s14813_s28 }
  0xbd   :  { %p14818_p11 = por %p14817_p10, %p14816_p9 }
  0xbf   :  { %p14819_p12 = pnand %p14818_p11, %p14814_p8 }
  0xc1   :  { %14822 = shalt.err (!%p14819_p12)
}
  0xc2   :  { %94 = dma.hbm_to_vmem [thread:$0]  %s15417_s1, 1024, %s89_s8, [#allocation3], %s15167_s18, %s15167_s18, %s15168_s21  }
  0xc3   :  { %s15172_s2 = smov [#allocation6]   ;;  %s138_s9 = sshll.u32 %s15219_s25, 4  ;;  %s15437_s9 = int_to_ptr.hbm [resolvable:$true] %s138_s9 }
  0xc4   :  { %s116_s22 = sshll.u32 %s15172_s2, 4  ;;  %s14835_s5 = sshra.s32 %s15427_s11, 4  ;;  %s117_s22 = int_to_ptr.vmem [resolvable:$true] %s116_s22  ;;  %s14836_s5 = int_to_ptr.hbm [resolvable:$true] %s14835_s5 }
  0xc5   :  { %s14837_s13 = scalar_lea.hbm %s14836_s5, 192  ;;  %s14839_s29 = scalar_lea.hbm %s15209_s17, 192 }
  0xc6   :  { %p14838_p13 = scmp.ne.s32.totalorder %s14836_s5, %s14837_s13  ;;  %p14840_p0 = scmp.lt.s32.totalorder %s14836_s5, %s15209_s17 }
  0xc7   :  { %p14841_p1 = scmp.lt.s32.totalorder %s14839_s29, %s14837_s13 }
  0xc9   :  { %p14842_p2 = por %p14841_p1, %p14840_p0 }
  0xcb   :  { %p14843_p3 = pnand %p14842_p2, %p14838_p13 }
  0xcd   :  { %14846 = shalt.err (!%p14843_p3)
}
  0xce   :  { %122 = dma.hbm_to_vmem [thread:$0]  %s15427_s11, 3072, %s117_s22, [#allocation5], %s15164_s30, %s15164_s30, %s15165_s23  }
  0xcf   :  { %s164_s26 = sshll.u32 %s15229_s3, 4  ;;  %s15173_s0 = smov [#allocation9]   ;;  %s15447_s26 = int_to_ptr.hbm [resolvable:$true] %s164_s26 }
  0xd0   :  { %s140_s1 = sshll.u32 %s15173_s0, 4  ;;  %s14859_s17 = sshra.s32 %s15437_s9, 4  ;;  %s141_s1 = int_to_ptr.vmem [resolvable:$true] %s140_s1  ;;  %s14860_s17 = int_to_ptr.hbm [resolvable:$true] %s14859_s17 }
  0xd1   :  { %s14861_s27 = scalar_lea.hbm %s14860_s17, 32  ;;  %s14863_s7 = scalar_lea.hbm %s15219_s25, 32 }
  0xd2   :  { %p14862_p4 = scmp.ne.s32.totalorder %s14860_s17, %s14861_s27  ;;  %p14864_p5 = scmp.lt.s32.totalorder %s14860_s17, %s15219_s25 }
  0xd3   :  { %p14865_p6 = scmp.lt.s32.totalorder %s14863_s7, %s14861_s27 }
  0xd5   :  { %p14866_p7 = por %p14865_p6, %p14864_p5 }
  0xd7   :  { %p14867_p8 = pnand %p14866_p7, %p14862_p4 }
  0xd9   :  { %14870 = shalt.err (!%p14867_p8)
}
  0xda   :  { %s17634_s10 = sld [smem:[#allocation49_spill]]  ;;  %s15174_s11 = smov [#allocation12]  }
  0xdb   :  { %146 = dma.hbm_to_vmem [thread:$0]  %s15437_s9, 512, %s141_s1, [#allocation8], %s15156_s15, %s15156_s15, %s15157_s16  }
  0xdc   :  { %s166_s20 = sshll.u32 %s15174_s11, 4  ;;  %s14883_s25 = sshra.s32 %s15447_s26, 4  ;;  %s167_s20 = int_to_ptr.vmem [resolvable:$true] %s166_s20  ;;  %s14884_s25 = int_to_ptr.hbm [resolvable:$true] %s14883_s25 }
  0xdd   :  { %s14885_s12 = scalar_lea.hbm %s14884_s25, 1536  ;;  %s14887_s28 = scalar_lea.hbm %s15229_s3, 1536 }
  0xde   :  { %p14886_p9 = scmp.ne.s32.totalorder %s14884_s25, %s14885_s12  ;;  %p14888_p10 = scmp.lt.s32.totalorder %s14884_s25, %s15229_s3 }
  0xdf   :  { %p14889_p11 = scmp.lt.s32.totalorder %s14887_s28, %s14885_s12 }
  0xe0   :  { %s188_s8 = sshll.u32 %s17634_s10, 4  ;;  %s15457_s8 = int_to_ptr.hbm [resolvable:$true] %s188_s8 }
  0xe1   :  { %p14890_p12 = por %p14889_p11, %p14888_p10 }
  0xe3   :  { %p14891_p13 = pnand %p14890_p12, %p14886_p9 }
  0xe5   :  { %14894 = shalt.err (!%p14891_p13)
}
  0xe6   :  { %s17635_s19 = sld [smem:[#allocation50_spill]]  ;;  %s15175_s22 = smov [#allocation15]  }
  0xe7   :  { %172 = dma.hbm_to_vmem [thread:$0]  %s15447_s26, 24576, %s167_s20, [#allocation11], %s15164_s30, %s15164_s30, %s15165_s23  }
  0xe8   :  { %s190_s9 = sshll.u32 %s15175_s22, 4  ;;  %s14907_s3 = sshra.s32 %s15457_s8, 4  ;;  %s191_s9 = int_to_ptr.vmem [resolvable:$true] %s190_s9  ;;  %s14908_s3 = int_to_ptr.hbm [resolvable:$true] %s14907_s3 }
  0xe9   :  { %s14909_s5 = scalar_lea.hbm %s14908_s3, 16  ;;  %s14911_s13 = scalar_lea.hbm %s17634_s10, 16 }
  0xea   :  { %p14910_p0 = scmp.ne.s32.totalorder %s14908_s3, %s14909_s5  ;;  %p14912_p1 = scmp.lt.s32.totalorder %s14908_s3, %s17634_s10 }
  0xeb   :  { %p14913_p2 = scmp.lt.s32.totalorder %s14911_s13, %s14909_s5 }
  0xec   :  { %s214_s2 = sshll.u32 %s17635_s19, 4  ;;  %s15467_s2 = int_to_ptr.hbm [resolvable:$true] %s214_s2 }
  0xed   :  { %p14914_p3 = por %p14913_p2, %p14912_p1 }
  0xef   :  { %p14915_p4 = pnand %p14914_p3, %p14910_p0 }
  0xf1   :  { %14918 = shalt.err (!%p14915_p4)
}
  0xf2   :  { %s17636_s29 = sld [smem:[#allocation52_spill]]  ;;  %s15176_s26 = smov [#allocation18]  }
  0xf3   :  { %196 = dma.hbm_to_vmem [thread:$0]  %s15457_s8, 256, %s191_s9, [#allocation14], %s15156_s15, %s15156_s15, %s15157_s16  }
  0xf4   :  { %s216_s0 = sshll.u32 %s15176_s26, 4  ;;  %s14931_s17 = sshra.s32 %s15467_s2, 4  ;;  %s217_s0 = int_to_ptr.vmem [resolvable:$true] %s216_s0  ;;  %s14932_s17 = int_to_ptr.hbm [resolvable:$true] %s14931_s17 }
  0xf5   :  { %s14933_s27 = scalar_lea.hbm %s14932_s17, 1536  ;;  %s14935_s7 = scalar_lea.hbm %s17635_s19, 1536 }
  0xf6   :  { %p14934_p5 = scmp.ne.s32.totalorder %s14932_s17, %s14933_s27  ;;  %p14936_p6 = scmp.lt.s32.totalorder %s14932_s17, %s17635_s19 }
  0xf7   :  { %p14937_p7 = scmp.lt.s32.totalorder %s14935_s7, %s14933_s27 }
  0xf8   :  { %s240_s1 = sshll.u32 %s17636_s29, 4  ;;  %s15477_s1 = int_to_ptr.hbm [resolvable:$true] %s240_s1 }
  0xf9   :  { %p14938_p8 = por %p14937_p7, %p14936_p6 }
  0xfb   :  { %p14939_p9 = pnand %p14938_p8, %p14934_p5 }
  0xfd   :  { %14942 = shalt.err (!%p14939_p9)
}
  0xfe   :  { %s17637_s10 = sld [smem:[#allocation54_spill]]  ;;  %s15177_s20 = smov [#allocation21]  }
  0xff   :  { %222 = dma.hbm_to_vmem [thread:$0]  %s15467_s2, 24576, %s217_s0, [#allocation17], %s15164_s30, %s15164_s30, %s15165_s23  }
 0x100   :  { %s242_s8 = sshll.u32 %s15177_s20, 4  ;;  %s14955_s25 = sshra.s32 %s15477_s1, 4  ;;  %s243_s8 = int_to_ptr.vmem [resolvable:$true] %s242_s8  ;;  %s14956_s25 = int_to_ptr.hbm [resolvable:$true] %s14955_s25 }
 0x101   :  { %s14957_s12 = scalar_lea.hbm %s14956_s25, 12  ;;  %s14959_s28 = scalar_lea.hbm %s17636_s29, 12 }
 0x102   :  { %p14958_p10 = scmp.ne.s32.totalorder %s14956_s25, %s14957_s12  ;;  %p14960_p11 = scmp.lt.s32.totalorder %s14956_s25, %s17636_s29 }
 0x103   :  { %p14961_p12 = scmp.lt.s32.totalorder %s14959_s28, %s14957_s12 }
 0x104   :  { %s268_s11 = sshll.u32 %s17637_s10, 4  ;;  %s15487_s11 = int_to_ptr.hbm [resolvable:$true] %s268_s11 }
 0x105   :  { %p14962_p13 = por %p14961_p12, %p14960_p11 }
 0x107   :  { %p14963_p0 = pnand %p14962_p13, %p14958_p10 }
 0x109   :  { %14966 = shalt.err (!%p14963_p0)
}
 0x10a   :  { %248 = dma.hbm_to_vmem [thread:$0]  %s15477_s1, 192, %s243_s8, [#allocation20], %s15156_s15, %s15156_s15, %s15157_s16  }
 0x10b   :  { %s15178_s30 = smov [#allocation24]   ;;  %s14979_s19 = sshra.s32 %s15487_s11, 4  ;;  %s14980_s19 = int_to_ptr.hbm [resolvable:$true] %s14979_s19 }
 0x10c   :  { %s270_s23 = sshll.u32 %s15178_s30, 4  ;;  %s14981_s2 = scalar_lea.hbm %s14980_s19, 4  ;;  %s271_s23 = int_to_ptr.vmem [resolvable:$true] %s270_s23 }
 0x10d   :  { %p14982_p1 = scmp.ne.s32.totalorder %s14980_s19, %s14981_s2  ;;  %s14983_s22 = scalar_lea.hbm %s17637_s10, 4 }
 0x10e   :  { %p14984_p2 = scmp.lt.s32.totalorder %s14980_s19, %s17637_s10  ;;  %p14985_p3 = scmp.lt.s32.totalorder %s14983_s22, %s14981_s2 }
 0x110   :  { %p14986_p4 = por %p14985_p3, %p14984_p2 }
 0x112   :  { %p14987_p5 = pnand %p14986_p4, %p14982_p1 }
 0x114   :  { %14990 = shalt.err (!%p14987_p5)
}
 0x115   :  { %s15179_s9 = smov 32   ;;  %s17638_s3 = sld [smem:[#allocation58_spill]] }
 0x116   :  { %s17639_s5 = sld [smem:[#allocation60_spill]]  ;;  %s15180_s13 = smov 2  }
 0x117   :  { %276 = dma.hbm_to_vmem [thread:$0]  %s15487_s11, 64, %s271_s23, [#allocation23], %s15179_s9, %s15179_s9, %s15180_s13  }
 0x118   :  { %s15181_s26 = smov [#allocation27]  }
 0x119   :  { %s302_s0 = sshll.u32 %s15181_s26, 4  ;;  %s303_s0 = int_to_ptr.vmem [resolvable:$true] %s302_s0 }
 0x11b   :  { %s300_s29 = sshll.u32 %s17638_s3, 4  ;;  %s15007_s7 = scalar_lea.hbm %s17638_s3, 128  ;;  %s301_s29 = int_to_ptr.hbm [resolvable:$true] %s300_s29 }
 0x11c   :  { %s328_s1 = sshll.u32 %s17639_s5, 4  ;;  %s15003_s17 = sshra.s32 %s301_s29, 4  ;;  %s15004_s17 = int_to_ptr.hbm [resolvable:$true] %s15003_s17  ;;  %s329_s1 = int_to_ptr.hbm [resolvable:$true] %s328_s1 }
 0x11d   :  { %s15005_s27 = scalar_lea.hbm %s15004_s17, 128  ;;  %p15008_p7 = scmp.lt.s32.totalorder %s15004_s17, %s17638_s3 }
 0x11e   :  { %p15006_p6 = scmp.ne.s32.totalorder %s15004_s17, %s15005_s27  ;;  %p15009_p8 = scmp.lt.s32.totalorder %s15007_s7, %s15005_s27 }
 0x120   :  { %p15010_p9 = por %p15009_p8, %p15008_p7 }
 0x122   :  { %p15011_p10 = pnand %p15010_p9, %p15006_p6 }
 0x124   :  { %15014 = shalt.err (!%p15011_p10)
}
 0x125   :  { %s17640_s10 = sld [smem:[#allocation62_spill]]  ;;  %s15182_s11 = smov [#allocation30]  }
 0x126   :  { %308 = dma.hbm_to_vmem [thread:$0]  %s301_s29, 2048, %s303_s0, [#allocation26], %s15156_s15, %s15156_s15, %s15157_s16  }
 0x127   :  { %s330_s20 = sshll.u32 %s15182_s11, 4  ;;  %s15027_s25 = sshra.s32 %s329_s1, 4  ;;  %s331_s20 = int_to_ptr.vmem [resolvable:$true] %s330_s20  ;;  %s15028_s25 = int_to_ptr.hbm [resolvable:$true] %s15027_s25 }
 0x128   :  { %s15029_s12 = scalar_lea.hbm %s15028_s25, 256  ;;  %s15031_s28 = scalar_lea.hbm %s17639_s5, 256 }
 0x129   :  { %p15030_p11 = scmp.ne.s32.totalorder %s15028_s25, %s15029_s12  ;;  %p15032_p12 = scmp.lt.s32.totalorder %s15028_s25, %s17639_s5 }
 0x12a   :  { %p15033_p13 = scmp.lt.s32.totalorder %s15031_s28, %s15029_s12 }
 0x12b   :  { %s356_s8 = sshll.u32 %s17640_s10, 4  ;;  %s15508_s8 = int_to_ptr.hbm [resolvable:$true] %s356_s8 }
 0x12c   :  { %p15034_p0 = por %p15033_p13, %p15032_p12 }
 0x12e   :  { %p15035_p1 = pnand %p15034_p0, %p15030_p11 }
 0x130   :  { %15038 = shalt.err (!%p15035_p1)
}
 0x131   :  { %336 = dma.hbm_to_vmem [thread:$0]  %s329_s1, 4096, %s331_s20, [#allocation29], %s15167_s18, %s15167_s18, %s15168_s21  }
 0x132   :  { %s371_s30 = sshll.u32 %s15344_s14, 4  ;;  %s15183_s23 = smov [#allocation33]   ;;  %s15516_s30 = int_to_ptr.hbm [resolvable:$true] %s371_s30 }
 0x133   :  { %s358_s19 = sshll.u32 %s15183_s23, 4  ;;  %s15051_s2 = sshra.s32 %s15508_s8, 4  ;;  %s359_s19 = int_to_ptr.vmem [resolvable:$true] %s358_s19  ;;  %s15052_s2 = int_to_ptr.hbm [resolvable:$true] %s15051_s2 }
 0x134   :  { %s15053_s22 = scalar_lea.hbm %s15052_s2, 128  ;;  %s15055_s9 = scalar_lea.hbm %s17640_s10, 128 }
 0x135   :  { %p15054_p2 = scmp.ne.s32.totalorder %s15052_s2, %s15053_s22  ;;  %p15056_p3 = scmp.lt.s32.totalorder %s15052_s2, %s17640_s10 }
 0x136   :  { %p15057_p4 = scmp.lt.s32.totalorder %s15055_s9, %s15053_s22 }
 0x138   :  { %p15058_p5 = por %p15057_p4, %p15056_p3 }
 0x13a   :  { %p15059_p6 = pnand %p15058_p5, %p15054_p2 }
 0x13c   :  { %15062 = shalt.err (!%p15059_p6)
}
 0x13d   :  { %364 = dma.hbm_to_vmem [thread:$0]  %s15508_s8, 2048, %s359_s19, [#allocation32], %s15156_s15, %s15156_s15, %s15157_s16  }
 0x13e   :  { %s15184_s18 = smov [#allocation34]   ;;  %s15075_s3 = sshra.s32 %s15516_s30, 4  ;;  %s15076_s3 = int_to_ptr.hbm [resolvable:$true] %s15075_s3 }
 0x13f   :  { %s373_s21 = sshll.u32 %s15184_s18, 4  ;;  %s15077_s5 = scalar_lea.hbm %s15076_s3, 64  ;;  %s374_s21 = int_to_ptr.vmem [resolvable:$true] %s373_s21 }
 0x140   :  { %p15078_p7 = scmp.ne.s32.totalorder %s15076_s3, %s15077_s5  ;;  %s15079_s13 = scalar_lea.hbm %s15344_s14, 64 }
 0x141   :  { %p15080_p8 = scmp.lt.s32.totalorder %s15076_s3, %s15344_s14  ;;  %p15081_p9 = scmp.lt.s32.totalorder %s15079_s13, %s15077_s5 }
 0x143   :  { %p15082_p10 = por %p15081_p9, %p15080_p8 }
 0x145   :  { %p15083_p11 = pnand %p15082_p10, %p15078_p7 }
 0x147   :  { %15086 = shalt.err (!%p15083_p11)
}
 0x148   :  { %379 = dma.hbm_to_vmem [thread:$0]  %s15516_s30, 1024, %s374_s21, [#allocation35], %s15156_s15, %s15156_s15, %s15157_s16  }
 0x149   :  { %15099 = dma.done.wait [#allocation3], 1024  }
 0x14a   :  { %15100 = vsyncadd [#allocation3], 4294966272 }
 0x14b   :  { %15101 = dma.done.wait [#allocation5], 4608  }
 0x14c   :  { %15102 = vsyncadd [#allocation5], 4294962688 }
 0x14d   :  { %15103 = dma.done.wait [#allocation8], 576  }
 0x14e   :  { %15104 = vsyncadd [#allocation8], 4294966720 }
 0x14f   :  { %15105 = dma.done.wait [#allocation11], 25344  }
 0x150   :  { %15106 = vsyncadd [#allocation11], 4294941952 }
 0x151   :  { %15107 = dma.done.wait [#allocation14], 320  }
 0x152   :  { %15108 = vsyncadd [#allocation14], 4294966976 }
 0x153   :  { %15109 = dma.done.wait [#allocation17], 24960  }
 0x154   :  { %15110 = vsyncadd [#allocation17], 4294942336 }
 0x155   :  { %15111 = dma.done.wait [#allocation20], 256  }
 0x156   :  { %15112 = vsyncadd [#allocation20], 4294967040 }
 0x157   :  { %15113 = dma.done.wait [#allocation23], 24640  }
 0x158   :  { %15114 = vsyncadd [#allocation23], 4294942656 }
 0x159   :  { %15115 = dma.done.wait [#allocation26], 18432  }
 0x15a   :  { %15116 = vsyncadd [#allocation26], 4294948864 }
 0x15b   :  { %15117 = dma.done.wait [#allocation29], 6144  }
 0x15c   :  { %15118 = vsyncadd [#allocation29], 4294961152 }
 0x15d   :  { %15119 = dma.done.wait [#allocation32], 6144  }
 0x15e   :  { %15120 = vsyncadd [#allocation32], 4294961152 }
 0x15f   :  { %15121 = dma.done.wait [#allocation35], 1024  }
 0x160   :  { %15122 = vsyncadd [#allocation35], 4294966272  ;;  %v477_v0 = vld [vmem:[#allocation2 + $0x30] sm:$0xff]  ;;  %v478_v1 = vld [vmem:[#allocation2 + $0x38] sm:$0xff]  ;;  %vm511_vm0 = vcmask 523264   ;;  %vm688_vm1 = vcmask 261120  }
 0x161   :  { %v475_v2 = vld [vmem:[#allocation2 + $0x20] sm:$0xff]  ;;  %v15532_v3 = vpack.c.bf16 %v478_v1, %v477_v0  ;;  %v476_v4 = vld [vmem:[#allocation2 + $0x28] sm:$0xff]  ;;  %v473_v6 = vld [vmem:[#allocation2 + $0x10] sm:$0xff]  ;;  %vm4906_vm2 = vcmask 130048   ;;  %s17901_s14 = sld [smem:[#allocation51_spill]]  ;;  %vm6888_vm3 = vcmask 1043456  }
 0x162   :  { %v481_v5 = vpack.c.bf16 %v476_v4, %v475_v2  ;;  %v474_v7 = vld [vmem:[#allocation2 + $0x18] sm:$0xff]  ;;  %v471_v9 = vld [vmem:[#allocation2] sm:$0xff]  ;;  %v472_v10 = vld [vmem:[#allocation2 + $0x8] sm:$0xff]  ;;  %vm6884_vm4 = vcmask 64512   ;;  %s18009_s15 = sld [smem:[#allocation53_spill]]  ;;  %vm8831_vm5 = vcmask 1041408  }
 0x163   :  { %528 = vmatpush.bf16.msra.mxu0 %v15532_v3  ;;  %610 = vmatpush.bf16.msra.mxu1 %v15532_v3  ;;  %v480_v8 = vpack.c.bf16 %v474_v7, %v473_v6  ;;  %v479_v11 = vpack.c.bf16 %v472_v10, %v471_v9  ;;  %v13629_v12 = vld [vmem:[#allocation4] sm:$0xff]  ;;  %v13630_v14 = vld [vmem:[#allocation4 + $0x8] sm:$0xff]  ;;  %v13631_v16 = vld [vmem:[#allocation4 + $0x10] sm:$0xff]  ;;  %s18072_s16 = sld [smem:[#allocation48_spill]]  ;;  %vm8827_vm6 = vcmask 31744  }
 0x164   :  { %v13641_v13 = vld [vmem:[#allocation4 + $0x20] sm:$0xff]  ;;  %v13642_v15 = vld [vmem:[#allocation4 + $0x28] sm:$0xff]  ;;  %v13643_v17 = vld [vmem:[#allocation4 + $0x30] sm:$0xff]  ;;  %s18106_s29 = sld [smem:[#allocation55_spill]] }
 0x165   :  { %v13632_v18 = vld [vmem:[#allocation4 + $0x18] sm:$0xff]  ;;  %v10057_v20 = vld [vmem:[#allocation6 + $0x60] sm:$0xf]  ;;  %v13651_v21 = vld [vmem:[#allocation6 + $0x6c] sm:$0xf0]  ;;  %s18107_s26 = sld [smem:[#allocation56_spill]] }
 0x166   :  { %v13644_v19 = vld [vmem:[#allocation4 + $0x38] sm:$0xff]  ;;  %v13649_v22 = vld [vmem:[#allocation6 + $0x64] sm:$0xf]  ;;  %v10058_v23 = vor.u32 %v13651_v21, %v10057_v20  ;;  %v10059_v24 = vld [vmem:[#allocation6 + $0x70] sm:$0xf0]  ;;  %s18108_s0 = sld [smem:[#allocation57_spill]] }
 0x167   :  { %529 = vmatpush.bf16.msra.mxu0 %v481_v5  ;;  %611 = vmatpush.bf16.msra.mxu1 %v481_v5  ;;  %v10105_v25 = vld [vmem:[#allocation6 + $0x20] sm:$0xf]  ;;  %v13639_v26 = vld [vmem:[#allocation6 + $0x2c] sm:$0xf0]  ;;  %v10062_v27 = vor.u32 %v13649_v22, %v10059_v24  ;;  %v13637_v29 = vld [vmem:[#allocation6 + $0x24] sm:$0xf] }
 0x168   :  { %v10106_v28 = vor.u32 %v13639_v26, %v10105_v25  ;;  %v10107_v30 = vld [vmem:[#allocation6 + $0x30] sm:$0xf0]  ;;  %707 = vmatpush.bf16.msra.mxu2 %v10058_v23  ;;  %v10041_v32 = vld [vmem:[#allocation6 + $0x40] sm:$0xf]  ;;  %v13647_v33 = vld [vmem:[#allocation6 + $0x4c] sm:$0xf0] }
 0x169   :  { %v10110_v31 = vor.u32 %v13637_v29, %v10107_v30  ;;  %736 = vmatpush.bf16.msra.mxu3 %v10062_v27  ;;  %v13645_v34 = vld [vmem:[#allocation6 + $0x44] sm:$0xf]  ;;  %v10042_v35 = vor.u32 %v13647_v33, %v10041_v32  ;;  %v10043_v36 = vld [vmem:[#allocation6 + $0x50] sm:$0xf0]  ;;  %v10089_v37 = vld [vmem:[#allocation6] sm:$0xf] }
 0x16a   :  { %v13635_v38 = vld [vmem:[#allocation6 + $0xc] sm:$0xf0]  ;;  %v10046_v39 = vor.u32 %v13645_v34, %v10043_v36  ;;  %v13633_v41 = vld [vmem:[#allocation6 + $0x4] sm:$0xf]  ;;  %v10091_v42 = vld [vmem:[#allocation6 + $0x10] sm:$0xf0] }
 0x16b   :  { %530 = vmatpush.bf16.msra.mxu0 %v480_v8  ;;  %612 = vmatpush.bf16.msra.mxu1 %v480_v8  ;;  %v10090_v40 = vor.u32 %v13635_v38, %v10089_v37  ;;  %v10094_v43 = vor.u32 %v13633_v41, %v10091_v42  ;;  %v10065_v56 = vld [vmem:[#allocation6 + $0x68] sm:$0xf]  ;;  %v13652_v57 = vld [vmem:[#allocation6 + $0x74] sm:$0xf0]  ;;  %v13650_v58 = vld [vmem:[#allocation6 + $0x6c] sm:$0xf] }
 0x16c   :  { %708 = vmatpush.bf16.msra.mxu2 %v10042_v35  ;;  %v10066_v59 = vor.u32 %v13652_v57, %v10065_v56  ;;  %v10067_v60 = vld [vmem:[#allocation6 + $0x78] sm:$0xf0]  ;;  %v10049_v61 = vld [vmem:[#allocation6 + $0x48] sm:$0xf]  ;;  %v13648_v62 = vld [vmem:[#allocation6 + $0x54] sm:$0xf0] }
 0x16d   :  { %737 = vmatpush.bf16.msra.mxu3 %v10046_v39  ;;  %v10070_v63 = vor.u32 %v13650_v58, %v10067_v60  ;;  %v13646_v0 = vld [vmem:[#allocation6 + $0x4c] sm:$0xf]  ;;  %v10051_v1 = vld [vmem:[#allocation6 + $0x58] sm:$0xf0]  ;;  %v10050_v2 = vor.u32 %v13648_v62, %v10049_v61  ;;  %v10097_v24 = vld [vmem:[#allocation6 + $0x8] sm:$0xf] }
 0x16e   :  { %v13638_v20 = vld [vmem:[#allocation6 + $0x2c] sm:$0xf]  ;;  %v10115_v22 = vld [vmem:[#allocation6 + $0x38] sm:$0xf0]  ;;  %v13636_v25 = vld [vmem:[#allocation6 + $0x14] sm:$0xf0] }
 0x16f   :  { %531 = vmatpush.bf16.msra.mxu0 %v479_v11  ;;  %613 = vmatpush.bf16.msra.mxu1 %v479_v11  ;;  %v10118_v23 = vor.u32 %v13638_v20, %v10115_v22  ;;  %v13634_v26 = vld [vmem:[#allocation6 + $0xc] sm:$0xf]  ;;  %v10098_v27 = vor.u32 %v13636_v25, %v10097_v24  ;;  %v13655_v29 = vld [vmem:[#allocation4 + $0x50] sm:$0xff]  ;;  %v13661_v57 = vld [vmem:[#allocation6 + $0xa4] sm:$0xf]  ;;  %s18109_s1 = sld [smem:[#allocation59_spill]] }
 0x170   :  { %765 = vmatpush.bf16.msrb.mxu2 %v10066_v59  ;;  %v13663_v56 = vld [vmem:[#allocation6 + $0xac] sm:$0xf0]  ;;  %v10175_v58 = vld [vmem:[#allocation6 + $0xb0] sm:$0xf0]  ;;  %v10181_v59 = vld [vmem:[#allocation6 + $0xa8] sm:$0xf] }
 0x171   :  { %794 = vmatpush.bf16.msrb.mxu3 %v10070_v63  ;;  %v13664_v60 = vld [vmem:[#allocation6 + $0xb4] sm:$0xf0]  ;;  %v10178_v61 = vor.u32 %v13661_v57, %v10175_v58  ;;  %v13662_v63 = vld [vmem:[#allocation6 + $0xac] sm:$0xf]  ;;  %s18110_s17 = sld [smem:[#allocation61_spill]] }
 0x172   :  { %10015 = vmatmul.msk.bf16.vlgmr.msra.gmra.mxu0 %vm511_vm0, %v13629_v12  ;;  %10035 = vmatmul.msk.bf16.vlgmr.msra.gmra.mxu1 %vm511_vm0, %v13641_v13  ;;  %v10182_v62 = vor.u32 %v13664_v60, %v10181_v59 }
 0x173   :  { %875 = vmatpush.bf16.msrb.mxu0 %v10106_v28  ;;  %904 = vmatpush.bf16.msrb.mxu1 %v10110_v31  ;;  %v10099_v28 = vld [vmem:[#allocation6 + $0x18] sm:$0xf0] }
 0x174   :  { %766 = vmatpush.bf16.msrb.mxu2 %v10050_v2  ;;  %v10102_v30 = vor.u32 %v13634_v26, %v10099_v28  ;;  %v13656_v31 = vld [vmem:[#allocation4 + $0x58] sm:$0xff] }
 0x177   :  { %876 = vmatpush.bf16.msrb.mxu0 %v10090_v40  ;;  %905 = vmatpush.bf16.msrb.mxu1 %v10094_v43 }
 0x17b   :  { %1030 = vmatpush.bf16.msra.mxu0 %v15532_v3 }
 0x17f   :  { %1031 = vmatpush.bf16.msra.mxu0 %v481_v5  ;;  %v10054_v5 = vor.u32 %v13646_v0, %v10051_v1  ;;  %v10183_v0 = vld [vmem:[#allocation6 + $0xb8] sm:$0xf0] }
 0x180   :  { %v10186_v1 = vor.u32 %v13662_v63, %v10183_v0 }
 0x181   :  { %795 = vmatpush.bf16.msrb.mxu3 %v10054_v5  ;;  %v13659_v5 = vld [vmem:[#allocation6 + $0x8c] sm:$0xf0] }
 0x182   :  { %10016 = vmatmul.msk.bf16.gmra.mxu0 %vm511_vm0, %v13630_v14  ;;  %10036 = vmatmul.msk.bf16.gmra.mxu1 %vm511_vm0, %v13642_v15 }
 0x183   :  { %1032 = vmatpush.bf16.msra.mxu0 %v480_v8 }
 0x187   :  { %1033 = vmatpush.bf16.msra.mxu0 %v479_v11 }
 0x192   :  { %10017 = vmatmul.msk.bf16.gmra.mxu0 %vm511_vm0, %v13631_v16  ;;  %10037 = vmatmul.msk.bf16.gmra.mxu1 %vm511_vm0, %v13643_v17  ;;  %v13653_v16 = vld [vmem:[#allocation4 + $0x40] sm:$0xff]  ;;  %v13654_v17 = vld [vmem:[#allocation4 + $0x48] sm:$0xff] }
 0x1a2   :  { %10018 = vmatmul.msk.bf16.gmra.mxu0 %vm511_vm0, %v13632_v18  ;;  %10038 = vmatmul.msk.bf16.gmra.mxu1 %vm511_vm0, %v13644_v19  ;;  %v10113_v18 = vld [vmem:[#allocation6 + $0x28] sm:$0xf]  ;;  %v13640_v19 = vld [vmem:[#allocation6 + $0x34] sm:$0xf0] }
 0x1a3   :  { %v10114_v21 = vor.u32 %v13640_v19, %v10113_v18 }
 0x1ef   :  { %v533_v44 = vpop.f32.mrf.mxu0  ;;  %v615_v45 = vpop.f32.mrf.mxu1 }
 0x1f7   :  { %v535_v46 = vpop.f32.mrf.mxu0  ;;  %v617_v47 = vpop.f32.mrf.mxu1 }
 0x1f8   :  { %v15545_v48 = vpack.c.bf16 %v535_v46, %v533_v44  ;;  %v635_v49 = vpack.c.bf16 %v617_v47, %v615_v45 }
 0x1fa   :  { %10071 = vmatmul.msk.bf16.vlgmr.msra.gmra.mxu2 %vm688_vm1, %v635_v49  ;;  %10075 = vmatmul.msk.bf16.vlgmr.msra.gmra.mxu3 %vm688_vm1, %v635_v49 }
 0x1fb   :  { %10119 = vmatmul.msk.bf16.vlgmr.msrb.gmra.mxu0 %vm688_vm1, %v15545_v48  ;;  %10123 = vmatmul.msk.bf16.vlgmr.msrb.gmra.mxu1 %vm688_vm1, %v15545_v48 }
 0x1fc   :  { %933 = vmatpush.bf16.msra.mxu2 %v10114_v21  ;;  %962 = vmatpush.bf16.msra.mxu3 %v10118_v23 }
 0x1fd   :  { %1213 = vmatpush.bf16.msrb.mxu0 %v10186_v1 }
 0x1ff   :  { %v538_v50 = vpop.f32.mrf.mxu0  ;;  %v620_v51 = vpop.f32.mrf.mxu1 }
 0x200   :  { %934 = vmatpush.bf16.msra.mxu2 %v10098_v27  ;;  %963 = vmatpush.bf16.msra.mxu3 %v10102_v30 }
 0x207   :  { %v540_v52 = vpop.f32.mrf.mxu0  ;;  %v622_v53 = vpop.f32.mrf.mxu1 }
 0x208   :  { %v15553_v54 = vpack.c.bf16 %v540_v52, %v538_v50  ;;  %v636_v55 = vpack.c.bf16 %v622_v53, %v620_v51 }
 0x20a   :  { %10072 = vmatmul.msk.bf16.gmra.mxu2 %vm688_vm1, %v636_v55  ;;  %10076 = vmatmul.msk.bf16.gmra.mxu3 %vm688_vm1, %v636_v55 }
 0x20b   :  { %10120 = vmatmul.msk.bf16.gmra.mxu0 %vm688_vm1, %v15553_v54  ;;  %10124 = vmatmul.msk.bf16.gmra.mxu1 %vm688_vm1, %v15553_v54 }
 0x20f   :  { %v543_v3 = vpop.f32.mrf.mxu0  ;;  %v625_v4 = vpop.f32.mrf.mxu1 }
 0x217   :  { %v545_v6 = vpop.f32.mrf.mxu0  ;;  %v627_v7 = vpop.f32.mrf.mxu1 }
 0x218   :  { %v15561_v8 = vpack.c.bf16 %v545_v6, %v543_v3  ;;  %v637_v9 = vpack.c.bf16 %v627_v7, %v625_v4  ;;  %v10157_v4 = vld [vmem:[#allocation6 + $0x80] sm:$0xf]  ;;  %v13657_v6 = vld [vmem:[#allocation6 + $0x84] sm:$0xf] }
 0x21a   :  { %10073 = vmatmul.msk.bf16.gmra.mxu2 %vm688_vm1, %v637_v9  ;;  %10077 = vmatmul.msk.bf16.gmra.mxu3 %vm688_vm1, %v637_v9 }
 0x21b   :  { %10121 = vmatmul.msk.bf16.gmra.mxu0 %vm688_vm1, %v15561_v8  ;;  %10125 = vmatmul.msk.bf16.gmra.mxu1 %vm688_vm1, %v15561_v8 }
 0x21f   :  { %v548_v10 = vpop.f32.mrf.mxu0  ;;  %v630_v11 = vpop.f32.mrf.mxu1 }
 0x227   :  { %v550_v12 = vpop.f32.mrf.mxu0  ;;  %v632_v13 = vpop.f32.mrf.mxu1 }
 0x228   :  { %v15569_v14 = vpack.c.bf16 %v550_v12, %v548_v10  ;;  %v638_v15 = vpack.c.bf16 %v632_v13, %v630_v11  ;;  %v10158_v10 = vor.u32 %v13659_v5, %v10157_v4  ;;  %v10165_v11 = vld [vmem:[#allocation6 + $0x88] sm:$0xf]  ;;  %v13660_v12 = vld [vmem:[#allocation6 + $0x94] sm:$0xf0] }
 0x22a   :  { %10074 = vmatmul.msk.bf16.gmra.mxu2 %vm688_vm1, %v638_v15  ;;  %10078 = vmatmul.msk.bf16.gmra.mxu3 %vm688_vm1, %v638_v15 }
 0x22b   :  { %10122 = vmatmul.msk.bf16.gmra.mxu0 %vm688_vm1, %v15569_v14  ;;  %10126 = vmatmul.msk.bf16.gmra.mxu1 %vm688_vm1, %v15569_v14 }
 0x23a   :  { %10079 = vmatmul.msk.bf16.vlgmr.msrb.gmra.mxu2 %vm688_vm1, %v635_v49  ;;  %10083 = vmatmul.msk.bf16.vlgmr.msrb.gmra.mxu3 %vm688_vm1, %v635_v49 }
 0x23b   :  { %10151 = vmatmul.msk.bf16.vlgmr.msra.gmra.mxu0 %vm511_vm0, %v13653_v16  ;;  %1155 = vmatpush.bf16.msrb.mxu2 %v10178_v61  ;;  %v13658_v16 = vld [vmem:[#allocation6 + $0x8c] sm:$0xf] }
 0x23c   :  { %1184 = vmatpush.bf16.msrb.mxu3 %v10182_v62 }
 0x24a   :  { %10080 = vmatmul.msk.bf16.gmra.mxu2 %vm688_vm1, %v636_v55  ;;  %10084 = vmatmul.msk.bf16.gmra.mxu3 %vm688_vm1, %v636_v55  ;;  %v10173_v55 = vld [vmem:[#allocation6 + $0xa0] sm:$0xf] }
 0x24b   :  { %10152 = vmatmul.msk.bf16.gmra.mxu0 %vm511_vm0, %v13654_v17  ;;  %v10167_v17 = vld [vmem:[#allocation6 + $0x98] sm:$0xf0] }
 0x24c   :  { %v10170_v19 = vor.u32 %v13658_v16, %v10167_v17 }
 0x24e   :  { %1214 = vmatpush.bf16.msrb.mxu0 %v10170_v19 }
 0x25a   :  { %10081 = vmatmul.msk.bf16.gmra.mxu2 %vm688_vm1, %v637_v9  ;;  %10085 = vmatmul.msk.bf16.gmra.mxu3 %vm688_vm1, %v637_v9 }
 0x25b   :  { %10153 = vmatmul.msk.bf16.gmra.mxu0 %vm511_vm0, %v13655_v29 }
 0x26a   :  { %10082 = vmatmul.msk.bf16.gmra.mxu2 %vm688_vm1, %v638_v15  ;;  %10086 = vmatmul.msk.bf16.gmra.mxu3 %vm688_vm1, %v638_v15  ;;  %v10166_v15 = vor.u32 %v13660_v12, %v10165_v11 }
 0x26b   :  { %10154 = vmatmul.msk.bf16.gmra.mxu0 %vm511_vm0, %v13656_v31 }
 0x26c   :  { %1185 = vmatpush.bf16.msrb.mxu3 %v10166_v15 }
 0x278   :  { %v878_v32 = vpop.f32.mrf.mxu0  ;;  %v907_v33 = vpop.f32.mrf.mxu1 }
 0x27a   :  { %10127 = vmatmul.msk.bf16.vlgmr.msra.gmra.mxu2 %vm688_vm1, %v15545_v48  ;;  %10131 = vmatmul.msk.bf16.vlgmr.msra.gmra.mxu3 %vm688_vm1, %v15545_v48 }
 0x27d   :  { %v710_v34 = vpop.f32.mrf.mxu2  ;;  %v739_v35 = vpop.f32.mrf.mxu3 }
 0x27e   :  { %v15593_v36 = vadd.f32 %v878_v32, %v710_v34  ;;  %v15595_v37 = vadd.f32 %v907_v33, %v739_v35 }
 0x280   :  { %v15597_v38 = vpop.f32.mrf.mxu0  ;;  %v15599_v39 = vpop.f32.mrf.mxu1 }
 0x285   :  { %v15601_v40 = vpop.f32.mrf.mxu2  ;;  %v15603_v41 = vpop.f32.mrf.mxu3 }
 0x288   :  { %v883_v42 = vpop.f32.mrf.mxu0  ;;  %v912_v43 = vpop.f32.mrf.mxu1 }
 0x28a   :  { %10128 = vmatmul.msk.bf16.gmra.mxu2 %vm688_vm1, %v15553_v54  ;;  %10132 = vmatmul.msk.bf16.gmra.mxu3 %vm688_vm1, %v15553_v54  ;;  %v10174_v54 = vor.u32 %v13663_v56, %v10173_v55 }
 0x28c   :  { %1126 = vmatpush.bf16.msra.mxu1 %v10174_v54 }
 0x28d   :  { %v715_v44 = vpop.f32.mrf.mxu2  ;;  %v744_v45 = vpop.f32.mrf.mxu3 }
 0x28e   :  { %v15609_v46 = vadd.f32 %v883_v42, %v715_v44  ;;  %v15611_v47 = vadd.f32 %v912_v43, %v744_v45 }
 0x290   :  { %v15613_v48 = vpop.f32.mrf.mxu0  ;;  %v15615_v49 = vpop.f32.mrf.mxu1  ;;  %1127 = vmatpush.bf16.msra.mxu1 %v10158_v10 }
 0x295   :  { %v15617_v50 = vpop.f32.mrf.mxu2  ;;  %v15619_v51 = vpop.f32.mrf.mxu3 }
 0x298   :  { %v888_v52 = vpop.f32.mrf.mxu0  ;;  %v917_v53 = vpop.f32.mrf.mxu1 }
 0x29a   :  { %10129 = vmatmul.msk.bf16.gmra.mxu2 %vm688_vm1, %v15561_v8  ;;  %10133 = vmatmul.msk.bf16.gmra.mxu3 %vm688_vm1, %v15561_v8  ;;  %v10159_v8 = vld [vmem:[#allocation6 + $0x90] sm:$0xf0] }
 0x29b   :  { %v10162_v13 = vor.u32 %v13657_v6, %v10159_v8 }
 0x29d   :  { %v720_v2 = vpop.f32.mrf.mxu2  ;;  %v749_v3 = vpop.f32.mrf.mxu3  ;;  %1156 = vmatpush.bf16.msrb.mxu2 %v10162_v13 }
 0x29e   :  { %v15625_v7 = vadd.f32 %v888_v52, %v720_v2  ;;  %v15627_v9 = vadd.f32 %v917_v53, %v749_v3 }
 0x2a0   :  { %v15629_v18 = vpop.f32.mrf.mxu0  ;;  %v15631_v20 = vpop.f32.mrf.mxu1 }
 0x2a5   :  { %v15633_v21 = vpop.f32.mrf.mxu2  ;;  %v15635_v22 = vpop.f32.mrf.mxu3 }
 0x2a8   :  { %v893_v23 = vpop.f32.mrf.mxu0  ;;  %v922_v24 = vpop.f32.mrf.mxu1 }
 0x2aa   :  { %10130 = vmatmul.msk.bf16.gmra.mxu2 %vm688_vm1, %v15569_v14  ;;  %10134 = vmatmul.msk.bf16.gmra.mxu3 %vm688_vm1, %v15569_v14 }
 0x2ad   :  { %v725_v25 = vpop.f32.mrf.mxu2  ;;  %v754_v26 = vpop.f32.mrf.mxu3 }
 0x2ae   :  { %v15641_v27 = vadd.f32 %v893_v23, %v725_v25  ;;  %v15643_v28 = vadd.f32 %v922_v24, %v754_v26 }
 0x2b0   :  { %v15645_v29 = vpop.f32.mrf.mxu0 }
 0x2b5   :  { %v15647_v30 = vpop.f32.mrf.mxu2  ;;  %v15649_v31 = vpop.f32.mrf.mxu3 }
 0x2b8   :  { %v1035_v32 = vpop.f32.mrf.mxu0 }
 0x2bd   :  { %v768_v33 = vpop.f32.mrf.mxu2  ;;  %v797_v34 = vpop.f32.mrf.mxu3 }
 0x2c0   :  { %v1037_v35 = vpop.f32.mrf.mxu0 }
 0x2c1   :  { %v1055_v42 = vpack.c.bf16 %v1037_v35, %v1035_v32 }
 0x2c3   :  { %10187 = vmatmul.msk.bf16.vlgmr.msra.gmra.mxu1 %vm688_vm1, %v1055_v42  ;;  %10191 = vmatmul.msk.bf16.vlgmr.msrb.gmra.mxu2 %vm688_vm1, %v1055_v42 }
 0x2c4   :  { %10195 = vmatmul.msk.bf16.vlgmr.msrb.gmra.mxu3 %vm688_vm1, %v1055_v42  ;;  %10199 = vmatmul.msk.bf16.vlgmr.msrb.gmra.mxu0 %vm688_vm1, %v1055_v42 }
 0x2c5   :  { %v15655_v14 = vpop.f32.mrf.mxu2  ;;  %v15657_v43 = vpop.f32.mrf.mxu3 }
 0x2c8   :  { %v1040_v44 = vpop.f32.mrf.mxu0 }
 0x2cd   :  { %v773_v45 = vpop.f32.mrf.mxu2  ;;  %v802_v52 = vpop.f32.mrf.mxu3 }
 0x2d0   :  { %v1042_v53 = vpop.f32.mrf.mxu0 }
 0x2d1   :  { %v1056_v55 = vpack.c.bf16 %v1042_v53, %v1040_v44 }
 0x2d3   :  { %10188 = vmatmul.msk.bf16.gmra.mxu1 %vm688_vm1, %v1056_v55  ;;  %10192 = vmatmul.msk.bf16.gmra.mxu2 %vm688_vm1, %v1056_v55 }
 0x2d4   :  { %10196 = vmatmul.msk.bf16.gmra.mxu3 %vm688_vm1, %v1056_v55  ;;  %10200 = vmatmul.msk.bf16.gmra.mxu0 %vm688_vm1, %v1056_v55  ;;  %v15707_v55 = vpop.f32.mrf.mxu1 }
 0x2d5   :  { %v15663_v56 = vpop.f32.mrf.mxu2  ;;  %v15665_v57 = vpop.f32.mrf.mxu3 }
 0x2d8   :  { %v1045_v54 = vpop.f32.mrf.mxu0 }
 0x2dd   :  { %v778_v58 = vpop.f32.mrf.mxu2  ;;  %v807_v59 = vpop.f32.mrf.mxu3 }
 0x2e0   :  { %v1047_v60 = vpop.f32.mrf.mxu0 }
 0x2e1   :  { %v1057_v61 = vpack.c.bf16 %v1047_v60, %v1045_v54 }
 0x2e3   :  { %10189 = vmatmul.msk.bf16.gmra.mxu1 %vm688_vm1, %v1057_v61  ;;  %10193 = vmatmul.msk.bf16.gmra.mxu2 %vm688_vm1, %v1057_v61 }
 0x2e4   :  { %10197 = vmatmul.msk.bf16.gmra.mxu3 %vm688_vm1, %v1057_v61  ;;  %10201 = vmatmul.msk.bf16.gmra.mxu0 %vm688_vm1, %v1057_v61 }
 0x2e5   :  { %v15671_v62 = vpop.f32.mrf.mxu2  ;;  %v15673_v63 = vpop.f32.mrf.mxu3 }
 0x2e8   :  { %v1050_v0 = vpop.f32.mrf.mxu0 }
 0x2ed   :  { %v783_v1 = vpop.f32.mrf.mxu2  ;;  %v812_v2 = vpop.f32.mrf.mxu3 }
 0x2f0   :  { %v1052_v3 = vpop.f32.mrf.mxu0 }
 0x2f1   :  { %v1058_v4 = vpack.c.bf16 %v1052_v3, %v1050_v0  ;;  %v15714_v0 = vld [vmem:[#allocation7] sm:$0xf] }
 0x2f3   :  { %10190 = vmatmul.msk.bf16.gmra.mxu1 %vm688_vm1, %v1058_v4  ;;  %10194 = vmatmul.msk.bf16.gmra.mxu2 %vm688_vm1, %v1058_v4 }
 0x2f4   :  { %10198 = vmatmul.msk.bf16.gmra.mxu3 %vm688_vm1, %v1058_v4  ;;  %10202 = vmatmul.msk.bf16.gmra.mxu0 %vm688_vm1, %v1058_v4  ;;  %v15719_v4 = vperm.slane %v15714_v0, 0 }
 0x2f5   :  { %v15679_v5 = vpop.f32.mrf.mxu2  ;;  %v15681_v6 = vpop.f32.mrf.mxu3 }
 0x2fd   :  { %v936_v10 = vpop.f32.mrf.mxu2  ;;  %v965_v8 = vpop.f32.mrf.mxu3 }
 0x2fe   :  { %v937_v11 = vadd.f32 %v936_v10, %v768_v33  ;;  %v966_v12 = vadd.f32 %v965_v8, %v797_v34 }
 0x305   :  { %v15683_v13 = vpop.f32.mrf.mxu2  ;;  %v15685_v15 = vpop.f32.mrf.mxu3 }
 0x30d   :  { %v941_v16 = vpop.f32.mrf.mxu2  ;;  %v970_v17 = vpop.f32.mrf.mxu3 }
 0x30e   :  { %v15687_v19 = vadd.f32 %v941_v16, %v773_v45  ;;  %v15689_v23 = vadd.f32 %v970_v17, %v802_v52 }
 0x315   :  { %v15691_v24 = vpop.f32.mrf.mxu2  ;;  %v15693_v25 = vpop.f32.mrf.mxu3 }
 0x31d   :  { %v946_v26 = vpop.f32.mrf.mxu2  ;;  %v975_v32 = vpop.f32.mrf.mxu3 }
 0x31e   :  { %v15695_v35 = vadd.f32 %v946_v26, %v778_v58  ;;  %v15697_v33 = vadd.f32 %v975_v32, %v807_v59 }
 0x325   :  { %v15699_v34 = vpop.f32.mrf.mxu2  ;;  %v15701_v42 = vpop.f32.mrf.mxu3 }
 0x32d   :  { %v951_v44 = vpop.f32.mrf.mxu2  ;;  %v980_v53 = vpop.f32.mrf.mxu3 }
 0x32e   :  { %v15703_v45 = vadd.f32 %v951_v44, %v783_v1  ;;  %v15705_v52 = vadd.f32 %v980_v53, %v812_v2  ;;  %v881_v2 = vadd.f32 %v15597_v38, %v15601_v40  ;;  %v910_v53 = vadd.f32 %v15599_v39, %v15603_v41 }
 0x335   :  { %v15709_v54 = vpop.f32.mrf.mxu2  ;;  %v15711_v60 = vpop.f32.mrf.mxu3 }
 0x340   :  { %v1129_v58 = vpop.f32.mrf.mxu1 }
 0x341   :  { %v1236_v59 = vadd.f32 %v1129_v58, %v15593_v36  ;;  %v1216_v61 = vpop.f32.mrf.mxu0 }
 0x342   :  { %v15716_v3 = vadd.f32 %v1216_v61, %v966_v12  ;;  %v15730_v12 = vperm.slane %v15714_v0, 1 }
 0x343   :  { %v1278_v36 = vadd.f32 %v15719_v4, %v1236_v59 }
 0x345   :  { %v1310_v38 = vmax.f32 %v1278_v36, 0.0 }
 0x346   :  { %v1158_v1 = vpop.f32.mrf.mxu2 }
 0x347   :  { %v1237_v10 = vadd.f32 %v1158_v1, %v15595_v37  ;;  %v1187_v8 = vpop.f32.mrf.mxu3 }
 0x348   :  { %v15724_v16 = vadd.f32 %v1187_v8, %v937_v11  ;;  %v1131_v17 = vpop.f32.mrf.mxu1 }
 0x349   :  { %v1240_v26 = vadd.f32 %v1131_v17, %v881_v2  ;;  %v15727_v32 = vpop.f32.mrf.mxu0  ;;  %v1279_v11 = vadd.f32 %v15730_v12, %v1237_v10  ;;  %v886_v10 = vadd.f32 %v15613_v48, %v15617_v50 }
 0x34a   :  { %17641 = vst [vmem:[#allocation63_spill] sm:$0xff] %v15724_v16 }
 0x34b   :  { %v1282_v44 = vadd.f32 %v15719_v4, %v1240_v26  ;;  %v1311_v17 = vmax.f32 %v1279_v11, 0.0 }
 0x34d   :  { %v1314_v40 = vmax.f32 %v1282_v44, 0.0 }
 0x34e   :  { %v1160_v37 = vpop.f32.mrf.mxu2 }
 0x34f   :  { %v1241_v58 = vadd.f32 %v1160_v37, %v910_v53  ;;  %v15736_v61 = vpop.f32.mrf.mxu3  ;;  %v15738_v59 = vpack.c.bf16 %v1314_v40, %v1310_v38 }
 0x350   :  { %v1134_v1 = vpop.f32.mrf.mxu1 }
 0x351   :  { %v1283_v2 = vadd.f32 %v15730_v12, %v1241_v58  ;;  %v15741_v8 = vpop.f32.mrf.mxu0  ;;  %v1244_v16 = vadd.f32 %v1134_v1, %v15609_v46  ;;  %v915_v46 = vadd.f32 %v15615_v49, %v15619_v51  ;;  %v891_v51 = vadd.f32 %v15629_v18, %v15633_v21 }
 0x353   :  { %v1315_v26 = vmax.f32 %v1283_v2, 0.0  ;;  %v1286_v53 = vadd.f32 %v15719_v4, %v1244_v16 }
 0x355   :  { %v15744_v39 = vpack.c.bf16 %v1315_v26, %v1311_v17  ;;  %v1318_v58 = vmax.f32 %v1286_v53, 0.0 }
 0x356   :  { %v1163_v41 = vpop.f32.mrf.mxu2 }
 0x357   :  { %17642 = vst [vmem:[#allocation64_spill] sm:$0xff] %v15744_v39  ;;  %v15748_v36 = vpop.f32.mrf.mxu3  ;;  %v1245_v37 = vadd.f32 %v1163_v41, %v15611_v47 }
 0x358   :  { %v1136_v44 = vpop.f32.mrf.mxu1 }
 0x359   :  { %v1248_v38 = vadd.f32 %v1136_v44, %v886_v10  ;;  %v1223_v40 = vpop.f32.mrf.mxu0  ;;  %v1287_v17 = vadd.f32 %v15730_v12, %v1245_v37 }
 0x35b   :  { %v1290_v11 = vadd.f32 %v15719_v4, %v1248_v38  ;;  %v1319_v47 = vmax.f32 %v1287_v17, 0.0  ;;  %v920_v17 = vadd.f32 %v15631_v20, %v15635_v22  ;;  %v978_v20 = vadd.f32 %v15701_v42, %v15673_v63 }
 0x35c   :  { %v983_v63 = vadd.f32 %v15711_v60, %v15681_v6  ;;  %v1273_v42 = vperm.slane %v15714_v0, 3  ;;  %v954_v6 = vadd.f32 %v15709_v54, %v15679_v5  ;;  %v15803_v60 = vperm.slane %v15714_v0, 2 }
 0x35d   :  { %v1322_v1 = vmax.f32 %v1290_v11, 0.0 }
 0x35e   :  { %v1165_v2 = vpop.f32.mrf.mxu2 }
 0x35f   :  { %v1249_v48 = vadd.f32 %v1165_v2, %v915_v46  ;;  %v15756_v50 = vpop.f32.mrf.mxu3  ;;  %v15758_v26 = vpack.c.bf16 %v1322_v1, %v1318_v58 }
 0x360   :  { %v1139_v16 = vpop.f32.mrf.mxu1 }
 0x361   :  { %v1291_v10 = vadd.f32 %v15730_v12, %v1249_v48  ;;  %v1226_v44 = vpop.f32.mrf.mxu0  ;;  %v1252_v38 = vadd.f32 %v1139_v16, %v15625_v7 }
 0x363   :  { %v1323_v41 = vmax.f32 %v1291_v10, 0.0  ;;  %v1294_v11 = vadd.f32 %v15719_v4, %v1252_v38 }
 0x365   :  { %v15762_v39 = vpack.c.bf16 %v1323_v41, %v1319_v47  ;;  %v1326_v7 = vmax.f32 %v1294_v11, 0.0 }
 0x366   :  { %v1168_v49 = vpop.f32.mrf.mxu2 }
 0x367   :  { %v1197_v53 = vpop.f32.mrf.mxu3  ;;  %v1253_v1 = vadd.f32 %v1168_v49, %v15627_v9 }
 0x368   :  { %v1141_v37 = vpop.f32.mrf.mxu1 }
 0x369   :  { %v1256_v46 = vadd.f32 %v1141_v37, %v891_v51  ;;  %v1228_v58 = vpop.f32.mrf.mxu0  ;;  %v1295_v10 = vadd.f32 %v15730_v12, %v1253_v1  ;;  %v896_v1 = vadd.f32 %v15645_v29, %v15647_v30  ;;  %v944_v30 = vadd.f32 %v15691_v24, %v15663_v56 }
 0x36b   :  { %v1298_v2 = vadd.f32 %v15719_v4, %v1256_v46  ;;  %v1327_v37 = vmax.f32 %v1295_v10, 0.0 }
 0x36d   :  { %v1330_v48 = vmax.f32 %v1298_v2, 0.0  ;;  %v925_v2 = vadd.f32 %v15707_v55, %v15649_v31 }
 0x36e   :  { %v1170_v16 = vpop.f32.mrf.mxu2 }
 0x36f   :  { %v1257_v47 = vadd.f32 %v1170_v16, %v920_v17  ;;  %v1199_v18 = vpop.f32.mrf.mxu3  ;;  %v15772_v21 = vpack.c.bf16 %v1330_v48, %v1326_v7  ;;  %v939_v17 = vadd.f32 %v15683_v13, %v15655_v14  ;;  %v968_v48 = vadd.f32 %v15685_v15, %v15657_v43 }
 0x370   :  { %v1144_v41 = vpop.f32.mrf.mxu1  ;;  %v1255_v43 = vadd.f32 %v1226_v44, %v15697_v33  ;;  %v1247_v33 = vadd.f32 %v15741_v8, %v15689_v23 }
 0x371   :  { %v1299_v38 = vadd.f32 %v15730_v12, %v1257_v47  ;;  %v1231_v51 = vpop.f32.mrf.mxu0  ;;  %v1260_v49 = vadd.f32 %v1144_v41, %v15641_v27  ;;  %v973_v27 = vadd.f32 %v15693_v25, %v15665_v57  ;;  %v949_v57 = vadd.f32 %v15699_v34, %v15671_v62 }
 0x372   :  { %v1263_v22 = vadd.f32 %v1231_v51, %v15705_v52  ;;  %v1259_v52 = vadd.f32 %v1228_v58, %v978_v20  ;;  %v1297_v5 = vadd.f32 %v1273_v42, %v1255_v43 }
 0x373   :  { %v1331_v9 = vmax.f32 %v1299_v38, 0.0  ;;  %v1251_v31 = vadd.f32 %v1223_v40, %v973_v27  ;;  %v1302_v14 = vadd.f32 %v15719_v4, %v1260_v49  ;;  %v1243_v40 = vadd.f32 %v15727_v32, %v968_v48 }
 0x374   :  { %v1305_v15 = vadd.f32 %v1273_v42, %v1263_v22  ;;  %v1301_v58 = vadd.f32 %v1273_v42, %v1259_v52  ;;  %v1258_v54 = vadd.f32 %v1199_v18, %v949_v57  ;;  %v1289_v49 = vadd.f32 %v1273_v42, %v1247_v33  ;;  %v10285_v33 = vld [vmem:[#allocation25 + $0x60] sm:$0xf] }
 0x375   :  { %v15776_v46 = vpack.c.bf16 %v1331_v9, %v1327_v37  ;;  %v1293_v34 = vadd.f32 %v1273_v42, %v1251_v31  ;;  %v1334_v44 = vmax.f32 %v1302_v14, 0.0  ;;  %v1285_v8 = vadd.f32 %v1273_v42, %v1243_v40 }
 0x376   :  { %v1173_v11 = vpop.f32.mrf.mxu2  ;;  %v1337_v0 = vmax.f32 %v1305_v15, 0.0  ;;  %v1250_v18 = vadd.f32 %v15756_v50, %v944_v30  ;;  %v1329_v22 = vmax.f32 %v1297_v5, 0.0  ;;  %v1281_v52 = vadd.f32 %v1273_v42, %v15716_v3  ;;  %v13680_v5 = vld [vmem:[#allocation25 + $0x54] sm:$0xf0] }
 0x377   :  { %v1202_v7 = vpop.f32.mrf.mxu3  ;;  %v1261_v56 = vadd.f32 %v1173_v11, %v15643_v28  ;;  %v1254_v28 = vadd.f32 %v1197_v53, %v15695_v35  ;;  %v1300_v35 = vadd.f32 %v15803_v60, %v1258_v54  ;;  %v1246_v11 = vadd.f32 %v15748_v36, %v15687_v19 }
 0x378   :  { %v1146_v29 = vpop.f32.mrf.mxu1  ;;  %v1262_v16 = vadd.f32 %v1202_v7, %v15703_v45  ;;  %v1333_v45 = vmax.f32 %v1301_v58, 0.0  ;;  %v1242_v50 = vadd.f32 %v15736_v61, %v939_v17  ;;  %v1321_v30 = vmax.f32 %v1289_v49, 0.0  ;;  %v13666_v58 = vld [vmem:[#allocation9 + $0x8] sm:$0xff]  ;;  %v13670_v49 = vld [vmem:[#allocation25 + $0x4] sm:$0xf0] }
 0x379   :  { %v1264_v13 = vadd.f32 %v1146_v29, %v896_v1  ;;  %v1233_v55 = vpop.f32.mrf.mxu0  ;;  %v1325_v1 = vmax.f32 %v1293_v34, 0.0  ;;  %v1296_v7 = vadd.f32 %v15803_v60, %v1254_v28  ;;  %v1292_v19 = vadd.f32 %v15803_v60, %v1250_v18  ;;  %v10261_v28 = vld [vmem:[#allocation25 + $0x30] sm:$0xf]  ;;  %v13683_v18 = vld [vmem:[#allocation25 + $0x74] sm:$0xf] }
 0x37a   :  { %v1267_v25 = vadd.f32 %v1233_v55, %v983_v63  ;;  %v1304_v37 = vadd.f32 %v15803_v60, %v1262_v16  ;;  %v1353_v63 = vpack.c.bf16 %v1333_v45, %v1329_v22  ;;  %v1332_v36 = vmax.f32 %v1300_v35, 0.0  ;;  %v13668_v16 = vld [vmem:[#allocation9 + $0x18] sm:$0xff]  ;;  %v10295_v22 = vld [vmem:[#allocation25 + $0x78] sm:$0xf0] }
 0x37b   :  { %v1306_v24 = vadd.f32 %v15719_v4, %v1264_v13  ;;  %v1303_v4 = vadd.f32 %v15730_v12, %v1261_v56  ;;  %v1317_v14 = vmax.f32 %v1285_v8, 0.0  ;;  %v1288_v13 = vadd.f32 %v15803_v60, %v1246_v11  ;;  %v13667_v56 = vld [vmem:[#allocation9 + $0x10] sm:$0xff]  ;;  %v10287_v11 = vld [vmem:[#allocation25 + $0x68] sm:$0xf0] }
 0x37c   :  { %v1309_v62 = vadd.f32 %v1273_v42, %v1267_v25  ;;  %v1336_v48 = vmax.f32 %v1304_v37, 0.0  ;;  %v1328_v55 = vmax.f32 %v1296_v7, 0.0  ;;  %v1349_v57 = vpack.c.bf16 %v1325_v1, %v1321_v30  ;;  %v17643_v42 = vld [vmem:[#allocation63_spill] sm:$0xff]  ;;  %v10245_v37 = vld [vmem:[#allocation25 + $0x10] sm:$0xf] }
 0x37d   :  { %v1338_v10 = vmax.f32 %v1306_v24, 0.0  ;;  %v1313_v3 = vmax.f32 %v1281_v52, 0.0  ;;  %v1284_v61 = vadd.f32 %v15803_v60, %v1242_v50  ;;  %v1280_v43 = vadd.f32 %v15803_v60, %v17643_v42  ;;  %v10237_v8 = vld [vmem:[#allocation25] sm:$0xf]  ;;  %v13730_v50 = vld [vmem:[#allocation25 + $0x1e4] sm:$0xf0] }
 0x37e   :  { %v1341_v47 = vmax.f32 %v1309_v62, 0.0  ;;  %v1175_v41 = vpop.f32.mrf.mxu2  ;;  %v1352_v17 = vpack.c.bf16 %v1332_v36, %v1328_v55  ;;  %v1320_v15 = vmax.f32 %v1288_v13, 0.0  ;;  %v13684_v62 = vld [vmem:[#allocation25 + $0x74] sm:$0xf0]  ;;  %v15880_v35 = vor.u32 %v13683_v18, %v10295_v22  ;;  %v10477_v52 = vld [vmem:[#allocation25 + $0x1e0] sm:$0xf] }
 0x37f   :  { %v1354_v32 = vpack.c.bf16 %v1338_v10, %v1334_v44  ;;  %v1265_v38 = vadd.f32 %v1175_v41, %v925_v2  ;;  %v1204_v51 = vpop.f32.mrf.mxu3  ;;  %v1335_v2 = vmax.f32 %v1303_v4, 0.0  ;;  %v1345_v25 = vpack.c.bf16 %v1317_v14, %v1313_v3  ;;  %v10277_v10 = vld [vmem:[#allocation25 + $0x50] sm:$0xf]  ;;  %v13676_v4 = vld [vmem:[#allocation25 + $0x34] sm:$0xf0] }
 0x380   :  { %v1357_v9 = vpack.c.bf16 %v1341_v47, %v1337_v0  ;;  %v1266_v23 = vadd.f32 %v1204_v51, %v954_v6  ;;  %v13665_v6 = vld [vmem:[#allocation9] sm:$0xff]  ;;  %v1316_v24 = vmax.f32 %v1284_v61, 0.0  ;;  %v1312_v40 = vmax.f32 %v1280_v43, 0.0  ;;  %v10269_v0 = vld [vmem:[#allocation25 + $0x40] sm:$0xf]  ;;  %17650 = vst [vmem:[#allocation68_spill] sm:$0xff] %v15880_v35 }
 0x381   :  { %v1307_v20 = vadd.f32 %v15730_v12, %v1265_v38  ;;  %1382 = vmatpush.bf16.msrb.mxu1 %v1354_v32  ;;  %1479 = vmatpush.bf16.msra.mxu0 %v1354_v32  ;;  %v15860_v54 = vor.u32 %v13680_v5, %v10277_v10  ;;  %v13678_v47 = vld [vmem:[#allocation25 + $0x44] sm:$0xf0]  ;;  %v15866_v32 = vor.u32 %v13676_v4, %v10261_v28  ;;  %v10253_v38 = vld [vmem:[#allocation25 + $0x20] sm:$0xf]  ;;  %v10421_v30 = vld [vmem:[#allocation25 + $0x170] sm:$0xf] }
 0x382   :  { %v1308_v53 = vadd.f32 %v15803_v60, %v1266_v23  ;;  %1439 = vmatpush.bf16.msra.mxu3 %v1357_v9  ;;  %v1344_v60 = vpack.c.bf16 %v1316_v24, %v1312_v40  ;;  %v15863_v41 = vor.u32 %v13678_v47, %v10269_v0  ;;  %v13674_v51 = vld [vmem:[#allocation25 + $0x24] sm:$0xf0]  ;;  %v13677_v36 = vld [vmem:[#allocation25 + $0x44] sm:$0xf]  ;;  %v10271_v14 = vld [vmem:[#allocation25 + $0x48] sm:$0xf0] }
 0x383   :  { %v1339_v27 = vmax.f32 %v1307_v20, 0.0  ;;  %v15871_v45 = vor.u32 %v13674_v51, %v10253_v38  ;;  %v15877_v20 = vor.u32 %v13670_v49, %v10237_v8  ;;  %v15897_v13 = vor.u32 %v13677_v36, %v10271_v14  ;;  %v10469_v55 = vld [vmem:[#allocation25 + $0x1d0] sm:$0xf]  ;;  %v10413_v61 = vld [vmem:[#allocation25 + $0x160] sm:$0xf] }
 0x384   :  { %v1340_v12 = vmax.f32 %v1308_v53, 0.0  ;;  %17645 = vst [vmem:[#allocation63_spill] sm:$0xff] %v15863_v41  ;;  %v13681_v53 = vld [vmem:[#allocation25 + $0x64] sm:$0xf]  ;;  %v10263_v43 = vld [vmem:[#allocation25 + $0x38] sm:$0xf0] }
 0x385   :  { %v1355_v29 = vpack.c.bf16 %v1339_v27, %v1335_v2  ;;  %1383 = vmatpush.bf16.msrb.mxu1 %v15772_v21  ;;  %1480 = vmatpush.bf16.msra.mxu0 %v15772_v21  ;;  %v1324_v21 = vmax.f32 %v1292_v19, 0.0  ;;  %17647 = vst [vmem:[#allocation65_spill] sm:$0xff] %v15871_v45  ;;  %v15883_v1 = vor.u32 %v13681_v53, %v10287_v11  ;;  %v10485_v2 = vld [vmem:[#allocation25 + $0x1f0] sm:$0xf]  ;;  %v13732_v27 = vld [vmem:[#allocation25 + $0x1f4] sm:$0xf0] }
 0x386   :  { %v1356_v31 = vpack.c.bf16 %v1340_v12, %v1336_v48  ;;  %1440 = vmatpush.bf16.msra.mxu3 %v1353_v63  ;;  %17649 = vst [vmem:[#allocation67_spill] sm:$0xff] %v15877_v20  ;;  %v15886_v7 = vor.u32 %v13732_v27, %v10485_v2  ;;  %v13679_v48 = vld [vmem:[#allocation25 + $0x54] sm:$0xf]  ;;  %v10279_v12 = vld [vmem:[#allocation25 + $0x58] sm:$0xf0] }
 0x387   :  { %17651 = vst [vmem:[#allocation69_spill] sm:$0xff] %v15883_v1  ;;  %v13716_v19 = vld [vmem:[#allocation25 + $0x174] sm:$0xf0]  ;;  %v10397_v10 = vld [vmem:[#allocation25 + $0x140] sm:$0xf] }
 0x388   :  { %1420 = vmatpush.bf16.msra.mxu2 %v1356_v31  ;;  %17652 = vst [vmem:[#allocation70_spill] sm:$0xff] %v15886_v7  ;;  %v13712_v40 = vld [vmem:[#allocation25 + $0x154] sm:$0xf0]  ;;  %v13710_v5 = vld [vmem:[#allocation25 + $0x144] sm:$0xf0] }
 0x389   :  { %1384 = vmatpush.bf16.msrb.mxu1 %v15758_v26  ;;  %1481 = vmatpush.bf16.msra.mxu0 %v15758_v26  ;;  %v1348_v26 = vpack.c.bf16 %v1324_v21, %v1320_v15  ;;  %17656 = vst [vmem:[#allocation74_spill] sm:$0xff] %v15897_v13  ;;  %v13714_v21 = vld [vmem:[#allocation25 + $0x164] sm:$0xf0]  ;;  %v13671_v0 = vld [vmem:[#allocation25 + $0x14] sm:$0xf]  ;;  %v15922_v47 = vor.u32 %v13710_v5, %v10397_v10 }
 0x38a   :  { %1441 = vmatpush.bf16.msra.mxu3 %v1349_v57  ;;  %v15904_v42 = vor.u32 %v13714_v21, %v10413_v61  ;;  %v10247_v28 = vld [vmem:[#allocation25 + $0x18] sm:$0xf0]  ;;  %v10445_v51 = vld [vmem:[#allocation25 + $0x1a0] sm:$0xf]  ;;  %v10389_v49 = vld [vmem:[#allocation25 + $0x130] sm:$0xf] }
 0x38b   :  { %17664 = vst [vmem:[#allocation82_spill] sm:$0xff] %v15922_v47  ;;  %v15926_v38 = vor.u32 %v13671_v0, %v10247_v28  ;;  %v13708_v18 = vld [vmem:[#allocation25 + $0x134] sm:$0xf0]  ;;  %v13669_v22 = vld [vmem:[#allocation25 + $0x4] sm:$0xf] }
 0x38c   :  { %1421 = vmatpush.bf16.msra.mxu2 %v1352_v17  ;;  %17658 = vst [vmem:[#allocation76_spill] sm:$0xff] %v15904_v42  ;;  %v15932_v11 = vor.u32 %v13708_v18, %v10389_v49  ;;  %v10239_v2 = vld [vmem:[#allocation25 + $0x8] sm:$0xf0]  ;;  %v10357_v14 = vld [vmem:[#allocation25 + $0xf0] sm:$0xf] }
 0x38d   :  { %1385 = vmatpush.bf16.msrb.mxu1 %v15738_v59  ;;  %1482 = vmatpush.bf16.msra.mxu0 %v15738_v59  ;;  %v17644_v59 = vld [vmem:[#allocation64_spill] sm:$0xff]  ;;  %17665 = vst [vmem:[#allocation83_spill] sm:$0xff] %v15926_v38  ;;  %v10373_v10 = vld [vmem:[#allocation25 + $0x110] sm:$0xf]  ;;  %v13704_v0 = vld [vmem:[#allocation25 + $0x114] sm:$0xf0] }
 0x38e   :  { %1442 = vmatpush.bf16.msra.mxu3 %v1345_v25  ;;  %17646 = vst [vmem:[#allocation64_spill] sm:$0xff] %v15866_v32  ;;  %v13706_v21 = vld [vmem:[#allocation25 + $0x124] sm:$0xf0]  ;;  %v10541_v28 = vld [vmem:[#allocation25 + $0x260] sm:$0xf] }
 0x38f   :  { %17667 = vst [vmem:[#allocation85_spill] sm:$0xff] %v15932_v11  ;;  %v13731_v49 = vld [vmem:[#allocation25 + $0x1f4] sm:$0xf]  ;;  %v10487_v18 = vld [vmem:[#allocation25 + $0x1f8] sm:$0xf0] }
 0x390   :  { %1422 = vmatpush.bf16.msra.mxu2 %v1348_v26  ;;  %10211 = vmatmul.msk.bf16.vlgmr.msrb.gmra.mxu1 %vm511_vm0, %v13665_v6 }
 0x391   :  { %1401 = vmatpush.bf16.msra.mxu1 %v1355_v29  ;;  %10217 = vmatmul.msk.bf16.vlgmr.msra.gmra.mxu3 %vm511_vm0, %v13665_v6 }
 0x392   :  { %1536 = vmatpush.bf16.msrb.mxu3 %v1357_v9  ;;  %10227 = vmatmul.msk.bf16.vlgmr.msra.gmra.mxu0 %vm511_vm0, %v13667_v56  ;;  %v13672_v9 = vld [vmem:[#allocation25 + $0x14] sm:$0xf0] }
 0x393   :  { %v15874_v23 = vor.u32 %v13672_v9, %v10245_v37  ;;  %v13722_v37 = vld [vmem:[#allocation25 + $0x1a4] sm:$0xf0] }
 0x394   :  { %1423 = vmatpush.bf16.msra.mxu2 %v1344_v60  ;;  %v15929_v8 = vor.u32 %v13722_v37, %v10445_v51  ;;  %v13746_v51 = vld [vmem:[#allocation25 + $0x264] sm:$0xf0]  ;;  %v15963_v37 = vor.u32 %v13704_v0, %v10373_v10  ;;  %v10333_v10 = vld [vmem:[#allocation25 + $0xc0] sm:$0xf] }
 0x395   :  { %1402 = vmatpush.bf16.msra.mxu1 %v15776_v46  ;;  %17648 = vst [vmem:[#allocation66_spill] sm:$0xff] %v15874_v23  ;;  %v13694_v0 = vld [vmem:[#allocation25 + $0xc4] sm:$0xf0] }
 0x396   :  { %1537 = vmatpush.bf16.msrb.mxu3 %v1353_v63  ;;  %v15889_v63 = vor.u32 %v13679_v48, %v10279_v12  ;;  %17666 = vst [vmem:[#allocation84_spill] sm:$0xff] %v15929_v8  ;;  %v15935_v12 = vor.u32 %v13669_v22, %v10239_v2  ;;  %v15968_v22 = vor.u32 %v13731_v49, %v10487_v18  ;;  %v10341_v2 = vld [vmem:[#allocation25 + $0xd0] sm:$0xf] }
 0x397   :  { %10215 = vmatmul.msk.bf16.vlgmr.msra.gmra.mxu2 %vm511_vm0, %v13665_v6  ;;  %17673 = vst [vmem:[#allocation91_spill] sm:$0xff] %v15963_v37  ;;  %v15989_v18 = vor.u32 %v13694_v0, %v10333_v10  ;;  %v10415_v0 = vld [vmem:[#allocation25 + $0x168] sm:$0xf0] }
 0x398   :  { %1517 = vmatpush.bf16.msrb.mxu2 %v1356_v31  ;;  %17653 = vst [vmem:[#allocation71_spill] sm:$0xff] %v15889_v63  ;;  %v15895_v31 = vor.u32 %v13716_v19, %v10421_v30 }
 0x399   :  { %1403 = vmatpush.bf16.msra.mxu1 %v15762_v39  ;;  %17668 = vst [vmem:[#allocation86_spill] sm:$0xff] %v15935_v12 }
 0x39a   :  { %1538 = vmatpush.bf16.msrb.mxu3 %v1349_v57  ;;  %17655 = vst [vmem:[#allocation73_spill] sm:$0xff] %v15895_v31  ;;  %v13728_v57 = vld [vmem:[#allocation25 + $0x1d4] sm:$0xf0] }
 0x39b   :  { %v15900_v3 = vor.u32 %v13728_v57, %v10469_v55  ;;  %v13700_v55 = vld [vmem:[#allocation25 + $0xf4] sm:$0xf0]  ;;  %v10381_v57 = vld [vmem:[#allocation25 + $0x120] sm:$0xf]  ;;  %17675 = vst [vmem:[#allocation93_spill] sm:$0xff] %v15968_v22 }
 0x39c   :  { %1518 = vmatpush.bf16.msrb.mxu2 %v1352_v17  ;;  %v13675_v17 = vld [vmem:[#allocation25 + $0x34] sm:$0xf]  ;;  %v15947_v61 = vor.u32 %v13700_v55, %v10357_v14  ;;  %v10533_v14 = vld [vmem:[#allocation25 + $0x250] sm:$0xf]  ;;  %v13744_v55 = vld [vmem:[#allocation25 + $0x254] sm:$0xf0] }
 0x39d   :  { %1404 = vmatpush.bf16.msra.mxu1 %v17644_v59  ;;  %17657 = vst [vmem:[#allocation75_spill] sm:$0xff] %v15900_v3  ;;  %v15906_v15 = vor.u32 %v13675_v17, %v10263_v43  ;;  %v10549_v17 = vld [vmem:[#allocation25 + $0x270] sm:$0xf]  ;;  %v13748_v43 = vld [vmem:[#allocation25 + $0x274] sm:$0xf0] }
 0x39e   :  { %1539 = vmatpush.bf16.msrb.mxu3 %v1345_v25  ;;  %v10461_v25 = vld [vmem:[#allocation25 + $0x1c0] sm:$0xf] }
 0x39f   :  { %17659 = vst [vmem:[#allocation77_spill] sm:$0xff] %v15906_v15 }
 0x3a0   :  { %1519 = vmatpush.bf16.msrb.mxu2 %v1348_v26  ;;  %10212 = vmatmul.msk.bf16.gmra.mxu1 %vm511_vm0, %v13666_v58  ;;  %v10405_v26 = vld [vmem:[#allocation25 + $0x150] sm:$0xf] }
 0x3a1   :  { %1498 = vmatpush.bf16.msrb.mxu1 %v1355_v29  ;;  %10218 = vmatmul.msk.bf16.gmra.mxu3 %vm511_vm0, %v13666_v58  ;;  %v15892_v29 = vor.u32 %v13730_v50, %v10477_v52  ;;  %v10437_v52 = vld [vmem:[#allocation25 + $0x190] sm:$0xf]  ;;  %v13720_v50 = vld [vmem:[#allocation25 + $0x194] sm:$0xf0] }
 0x3a2   :  { %10228 = vmatmul.msk.bf16.gmra.mxu0 %vm511_vm0, %v13668_v16  ;;  %2016 = vmatpush.bf16.msra.mxu3 %v15886_v7  ;;  %v15940_v19 = vor.u32 %v13720_v50, %v10437_v52  ;;  %v13702_v50 = vld [vmem:[#allocation25 + $0x104] sm:$0xf0] }
 0x3a3   :  { %17654 = vst [vmem:[#allocation72_spill] sm:$0xff] %v15892_v29 }
 0x3a4   :  { %1520 = vmatpush.bf16.msrb.mxu2 %v1344_v60  ;;  %v13673_v60 = vld [vmem:[#allocation25 + $0x24] sm:$0xf]  ;;  %17669 = vst [vmem:[#allocation87_spill] sm:$0xff] %v15940_v19 }
 0x3a5   :  { %1499 = vmatpush.bf16.msrb.mxu1 %v15776_v46  ;;  %v10293_v46 = vld [vmem:[#allocation25 + $0x70] sm:$0xf] }
 0x3a6   :  { %v15853_v34 = vor.u32 %v13684_v62, %v10293_v46  ;;  %2017 = vmatpush.bf16.msra.mxu3 %v15892_v29  ;;  %v10453_v62 = vld [vmem:[#allocation25 + $0x1b0] sm:$0xf]  ;;  %v13776_v29 = vld [vmem:[#allocation25 + $0x354] sm:$0xf0] }
 0x3a7   :  { %10216 = vmatmul.msk.bf16.gmra.mxu2 %vm511_vm0, %v13666_v58 }
 0x3a8   :  { %1959 = vmatpush.bf16.msrb.mxu0 %v15853_v34  ;;  %1997 = vmatpush.bf16.msra.mxu2 %v15895_v31 }
 0x3a9   :  { %1500 = vmatpush.bf16.msrb.mxu1 %v15762_v39  ;;  %v13682_v39 = vld [vmem:[#allocation25 + $0x64] sm:$0xf0] }
 0x3aa   :  { %v15856_v44 = vor.u32 %v13682_v39, %v10285_v33  ;;  %2018 = vmatpush.bf16.msra.mxu3 %v15900_v3  ;;  %v13724_v33 = vld [vmem:[#allocation25 + $0x1b4] sm:$0xf0] }
 0x3ab   :  { %v15918_v39 = vor.u32 %v13724_v33, %v10453_v62  ;;  %v10349_v62 = vld [vmem:[#allocation25 + $0xe0] sm:$0xf]  ;;  %v13698_v33 = vld [vmem:[#allocation25 + $0xe4] sm:$0xf0] }
 0x3ac   :  { %1960 = vmatpush.bf16.msrb.mxu0 %v15856_v44  ;;  %1998 = vmatpush.bf16.msra.mxu2 %v15904_v42  ;;  %v15961_v5 = vor.u32 %v13698_v33, %v10349_v62 }
 0x3ad   :  { %1501 = vmatpush.bf16.msrb.mxu1 %v17644_v59  ;;  %17663 = vst [vmem:[#allocation81_spill] sm:$0xff] %v15918_v39 }
 0x3b0   :  { %10213 = vmatmul.msk.bf16.vlgmr.msra.gmra.mxu1 %vm511_vm0, %v13665_v6  ;;  %1961 = vmatpush.bf16.msrb.mxu0 %v15860_v54  ;;  %v13726_v6 = vld [vmem:[#allocation25 + $0x1c4] sm:$0xf0] }
 0x3b1   :  { %10233 = vmatmul.msk.bf16.vlgmr.msrb.gmra.mxu3 %vm511_vm0, %v13667_v56  ;;  %v15909_v24 = vor.u32 %v13726_v6, %v10461_v25  ;;  %v15951_v6 = vor.u32 %v13706_v21, %v10381_v57  ;;  %1978 = vmatpush.bf16.msra.mxu1 %v15947_v61 }
 0x3b3   :  { %17660 = vst [vmem:[#allocation78_spill] sm:$0xff] %v15909_v24  ;;  %2019 = vmatpush.bf16.msra.mxu3 %v15909_v24 }
 0x3b4   :  { %1962 = vmatpush.bf16.msrb.mxu0 %v15863_v41  ;;  %17670 = vst [vmem:[#allocation88_spill] sm:$0xff] %v15951_v6  ;;  %v13936_v41 = vld [vmem:[#allocation12 + $0x42c] sm:$0xf] }
 0x3b5   :  { %1979 = vmatpush.bf16.msra.mxu1 %v15961_v5 }
 0x3b7   :  { %10231 = vmatmul.msk.bf16.vlgmr.msrb.gmra.mxu2 %vm511_vm0, %v13667_v56  ;;  %2020 = vmatpush.bf16.msra.mxu3 %v15918_v39 }
 0x3b8   :  { %1963 = vmatpush.bf16.msrb.mxu0 %v15866_v32  ;;  %v13944_v32 = vld [vmem:[#allocation12 + $0x46c] sm:$0xf] }
 0x3bb   :  { %2021 = vmatpush.bf16.msra.mxu3 %v15929_v8 }
 0x3bc   :  { %1964 = vmatpush.bf16.msrb.mxu0 %v15871_v45 }
 0x3bf   :  { %2022 = vmatpush.bf16.msra.mxu3 %v15940_v19  ;;  %v10447_v19 = vld [vmem:[#allocation25 + $0x1a8] sm:$0xf0] }
 0x3c0   :  { %10214 = vmatmul.msk.bf16.gmra.mxu1 %vm511_vm0, %v13666_v58  ;;  %1965 = vmatpush.bf16.msrb.mxu0 %v15874_v23  ;;  %v15912_v58 = vor.u32 %v13712_v40, %v10405_v26  ;;  %v10429_v26 = vld [vmem:[#allocation25 + $0x180] sm:$0xf]  ;;  %v13718_v40 = vld [vmem:[#allocation25 + $0x184] sm:$0xf0] }
 0x3c1   :  { %10234 = vmatmul.msk.bf16.gmra.mxu3 %vm511_vm0, %v13668_v16 }
 0x3c2   :  { %17661 = vst [vmem:[#allocation79_spill] sm:$0xff] %v15912_v58  ;;  %1999 = vmatpush.bf16.msra.mxu2 %v15912_v58 }
 0x3c4   :  { %1966 = vmatpush.bf16.msrb.mxu0 %v15877_v20 }
 0x3c6   :  { %2000 = vmatpush.bf16.msra.mxu2 %v15922_v47 }
 0x3c7   :  { %10232 = vmatmul.msk.bf16.gmra.mxu2 %vm511_vm0, %v13668_v16 }
 0x3c8   :  { %2035 = vmatpush.bf16.msra.mxu0 %v15880_v35 }
 0x3ca   :  { %2001 = vmatpush.bf16.msra.mxu2 %v15932_v11 }
 0x3cc   :  { %2036 = vmatpush.bf16.msra.mxu0 %v15883_v1 }
 0x3ce   :  { %2002 = vmatpush.bf16.msra.mxu2 %v15951_v6 }
 0x3d0   :  { %10229 = vmatmul.msk.bf16.vlgmr.msrb.gmra.mxu1 %vm511_vm0, %v13667_v56  ;;  %2037 = vmatpush.bf16.msra.mxu0 %v15889_v63 }
 0x3d2   :  { %2003 = vmatpush.bf16.msra.mxu2 %v15963_v37 }
 0x3d4   :  { %2038 = vmatpush.bf16.msra.mxu0 %v15897_v13 }
 0x3d8   :  { %2039 = vmatpush.bf16.msra.mxu0 %v15906_v15 }
 0x3e0   :  { %10230 = vmatmul.msk.bf16.gmra.mxu1 %vm511_vm0, %v13668_v16  ;;  %v10255_v16 = vld [vmem:[#allocation25 + $0x28] sm:$0xf0] }
 0x3e1   :  { %v15915_v46 = vor.u32 %v13673_v60, %v10255_v16 }
 0x3e3   :  { %17662 = vst [vmem:[#allocation80_spill] sm:$0xff] %v15915_v46  ;;  %2040 = vmatpush.bf16.msra.mxu0 %v15915_v46 }
 0x3e7   :  { %2041 = vmatpush.bf16.msra.mxu0 %v15926_v38  ;;  %v10733_v38 = vld [vmem:[#allocation25 + $0x3e0] sm:$0xf] }
 0x3eb   :  { %2042 = vmatpush.bf16.msra.mxu0 %v15935_v12  ;;  %v10431_v12 = vld [vmem:[#allocation25 + $0x188] sm:$0xf0] }
 0x40d   :  { %v1387_v56 = vpop.f32.mrf.mxu1 }
 0x40f   :  { %v1484_v59 = vpop.f32.mrf.mxu0 }
 0x410   :  { %v1551_v27 = vmax.f32 %v1387_v56, %v1484_v59  ;;  %v15953_v56 = vor.u32 %v13748_v43, %v10549_v17  ;;  %v15956_v59 = vor.u32 %v13718_v40, %v10429_v26  ;;  %v15981_v17 = vor.u32 %v13744_v55, %v10533_v14  ;;  %v13729_v43 = vld [vmem:[#allocation25 + $0x1e4] sm:$0xf]  ;;  %v10479_v26 = vld [vmem:[#allocation25 + $0x1e8] sm:$0xf0]  ;;  %v13727_v55 = vld [vmem:[#allocation25 + $0x1d4] sm:$0xf] }
 0x411   :  { %v15984_v62 = vor.u32 %v13729_v43, %v10479_v26  ;;  %v10471_v43 = vld [vmem:[#allocation25 + $0x1d8] sm:$0xf0] }
 0x412   :  { %17671 = vst [vmem:[#allocation89_spill] sm:$0xff] %v15953_v56  ;;  %2023 = vmatpush.bf16.msra.mxu3 %v15956_v59 }
 0x413   :  { %17672 = vst [vmem:[#allocation90_spill] sm:$0xff] %v15956_v59 }
 0x414   :  { %v15924_v4 = vpop.f32.mrf.mxu3  ;;  %17677 = vst [vmem:[#allocation95_spill] sm:$0xff] %v15981_v17 }
 0x415   :  { %v1389_v9 = vpop.f32.mrf.mxu1  ;;  %17678 = vst [vmem:[#allocation96_spill] sm:$0xff] %v15984_v62 }
 0x416   :  { %2092 = vmatpush.bf16.msrb.mxu3 %v15968_v22 }
 0x417   :  { %v1486_v53 = vpop.f32.mrf.mxu0 }
 0x418   :  { %v1555_v48 = vmax.f32 %v1389_v9, %v1486_v53  ;;  %v15965_v9 = vor.u32 %v13746_v51, %v10541_v28  ;;  %v13715_v28 = vld [vmem:[#allocation25 + $0x174] sm:$0xf] }
 0x41a   :  { %v15937_v30 = vpack.c.bf16 %v1555_v48, %v1551_v27  ;;  %v15942_v36 = vpop.f32.mrf.mxu2  ;;  %17674 = vst [vmem:[#allocation92_spill] sm:$0xff] %v15965_v9  ;;  %v13696_v27 = vld [vmem:[#allocation25 + $0xd4] sm:$0xf0]  ;;  %v10365_v48 = vld [vmem:[#allocation25 + $0x100] sm:$0xf]  ;;  %2093 = vmatpush.bf16.msrb.mxu3 %v15984_v62 }
 0x41b   :  { %v15975_v52 = vor.u32 %v13696_v27, %v10341_v2  ;;  %v15979_v21 = vor.u32 %v13702_v50, %v10365_v48  ;;  %v10423_v2 = vld [vmem:[#allocation25 + $0x178] sm:$0xf0]  ;;  %v10525_v27 = vld [vmem:[#allocation25 + $0x240] sm:$0xf]  ;;  %v13742_v48 = vld [vmem:[#allocation25 + $0x244] sm:$0xf0] }
 0x41c   :  { %1967 = vmatmul.bf16.vlgmr.msrb.gmra.mxu0 %v15937_v30  ;;  %v15949_v25 = vpop.f32.mrf.mxu3  ;;  %v15991_v50 = vor.u32 %v13715_v28, %v10423_v2  ;;  %v15993_v14 = vor.u32 %v13742_v48, %v10525_v27  ;;  %v10517_v28 = vld [vmem:[#allocation25 + $0x230] sm:$0xf]  ;;  %v13725_v48 = vld [vmem:[#allocation25 + $0x1c4] sm:$0xf] }
 0x41d   :  { %v1392_v60 = vpop.f32.mrf.mxu1  ;;  %2496 = vmatpush.bf16.msrb.mxu0 %v15953_v56  ;;  %17676 = vst [vmem:[#allocation94_spill] sm:$0xff] %v15979_v21  ;;  %1980 = vmatpush.bf16.msra.mxu1 %v15975_v52 }
 0x41e   :  { %2004 = vmatpush.bf16.msra.mxu2 %v15979_v21  ;;  %17679 = vst [vmem:[#allocation97_spill] sm:$0xff] %v15991_v50 }
 0x41f   :  { %v1489_v16 = vpop.f32.mrf.mxu0  ;;  %17680 = vst [vmem:[#allocation98_spill] sm:$0xff] %v15993_v14 }
 0x420   :  { %v1559_v51 = vmax.f32 %v1392_v60, %v1489_v16  ;;  %v10325_v16 = vld [vmem:[#allocation25 + $0xb0] sm:$0xf] }
 0x421   :  { %2497 = vmatpush.bf16.msrb.mxu0 %v15965_v9  ;;  %1981 = vmatpush.bf16.msra.mxu1 %v15989_v18  ;;  %v13711_v9 = vld [vmem:[#allocation25 + $0x154] sm:$0xf] }
 0x422   :  { %v15970_v53 = vpop.f32.mrf.mxu2  ;;  %2073 = vmatpush.bf16.msrb.mxu2 %v15991_v50 }
 0x424   :  { %v15977_v57 = vpop.f32.mrf.mxu3 }
 0x425   :  { %v1394_v40 = vpop.f32.mrf.mxu1  ;;  %2498 = vmatpush.bf16.msrb.mxu0 %v15981_v17  ;;  %v15998_v17 = vor.u32 %v13727_v55, %v10471_v43  ;;  %v10463_v55 = vld [vmem:[#allocation25 + $0x1c8] sm:$0xf0] }
 0x427   :  { %v1491_v33 = vpop.f32.mrf.mxu0  ;;  %17681 = vst [vmem:[#allocation99_spill] sm:$0xff] %v15998_v17  ;;  %2094 = vmatpush.bf16.msrb.mxu3 %v15998_v17 }
 0x428   :  { %v1563_v49 = vmax.f32 %v1394_v40, %v1491_v33  ;;  %v13692_v40 = vld [vmem:[#allocation25 + $0xb4] sm:$0xf0]  ;;  %v13713_v33 = vld [vmem:[#allocation25 + $0x164] sm:$0xf] }
 0x429   :  { %2499 = vmatpush.bf16.msrb.mxu0 %v15993_v14  ;;  %v16006_v10 = vor.u32 %v13692_v40, %v10325_v16  ;;  %v16010_v2 = vor.u32 %v13713_v33, %v10415_v0  ;;  %v16017_v14 = vor.u32 %v13725_v48, %v10463_v55  ;;  %v10317_v16 = vld [vmem:[#allocation25 + $0xa0] sm:$0xf]  ;;  %v13690_v40 = vld [vmem:[#allocation25 + $0xa4] sm:$0xf0]  ;;  %v10407_v0 = vld [vmem:[#allocation25 + $0x158] sm:$0xf0] }
 0x42a   :  { %v15995_v26 = vpack.c.bf16 %v1563_v49, %v1559_v51  ;;  %v16000_v60 = vpop.f32.mrf.mxu2  ;;  %v13740_v51 = vld [vmem:[#allocation25 + $0x234] sm:$0xf0]  ;;  %v16022_v33 = vor.u32 %v13690_v40, %v10317_v16  ;;  %v16024_v56 = vor.u32 %v13711_v9, %v10407_v0  ;;  %v13723_v48 = vld [vmem:[#allocation25 + $0x1b4] sm:$0xf]  ;;  %v10455_v55 = vld [vmem:[#allocation25 + $0x1b8] sm:$0xf0] }
 0x42b   :  { %17682 = vst [vmem:[#allocation100_spill] sm:$0xff] %v16010_v2  ;;  %v16012_v27 = vor.u32 %v13740_v51, %v10517_v28  ;;  %1982 = vmatpush.bf16.msra.mxu1 %v16006_v10  ;;  %2074 = vmatpush.bf16.msrb.mxu2 %v16010_v2  ;;  %v10509_v28 = vld [vmem:[#allocation25 + $0x220] sm:$0xf]  ;;  %v13738_v51 = vld [vmem:[#allocation25 + $0x224] sm:$0xf0]  ;;  %v16029_v62 = vor.u32 %v13723_v48, %v10455_v55 }
 0x42c   :  { %1972 = vmatmul.bf16.gmra.mxu0 %v15995_v26  ;;  %v16008_v49 = vpop.f32.mrf.mxu3  ;;  %17684 = vst [vmem:[#allocation102_spill] sm:$0xff] %v16017_v14  ;;  %2095 = vmatpush.bf16.msrb.mxu3 %v16017_v14  ;;  %v16026_v17 = vor.u32 %v13738_v51, %v10509_v28  ;;  %v10309_v16 = vld [vmem:[#allocation25 + $0x90] sm:$0xf]  ;;  %v13688_v40 = vld [vmem:[#allocation25 + $0x94] sm:$0xf0] }
 0x42d   :  { %17683 = vst [vmem:[#allocation101_spill] sm:$0xff] %v16012_v27  ;;  %v16014_v43 = vpop.f32.mrf.mxu1  ;;  %2500 = vmatpush.bf16.msrb.mxu0 %v16012_v27  ;;  %v13709_v14 = vld [vmem:[#allocation25 + $0x144] sm:$0xf]  ;;  %v16036_v9 = vor.u32 %v13688_v40, %v10309_v16  ;;  %v10399_v0 = vld [vmem:[#allocation25 + $0x148] sm:$0xf0] }
 0x42e   :  { %17685 = vst [vmem:[#allocation103_spill] sm:$0xff] %v16022_v33  ;;  %v10501_v28 = vld [vmem:[#allocation25 + $0x210] sm:$0xf]  ;;  %v13736_v51 = vld [vmem:[#allocation25 + $0x214] sm:$0xf0]  ;;  %v16038_v59 = vor.u32 %v13709_v14, %v10399_v0 }
 0x42f   :  { %17686 = vst [vmem:[#allocation104_spill] sm:$0xff] %v16024_v56  ;;  %1983 = vmatpush.bf16.msra.mxu1 %v16022_v33  ;;  %2075 = vmatpush.bf16.msrb.mxu2 %v16024_v56  ;;  %v16040_v48 = vor.u32 %v13736_v51, %v10501_v28  ;;  %v13721_v55 = vld [vmem:[#allocation25 + $0x1a4] sm:$0xf]  ;;  %v10301_v16 = vld [vmem:[#allocation25 + $0x80] sm:$0xf] }
 0x430   :  { %17687 = vst [vmem:[#allocation105_spill] sm:$0xff] %v16026_v17  ;;  %2096 = vmatpush.bf16.msrb.mxu3 %v16029_v62  ;;  %v13686_v40 = vld [vmem:[#allocation25 + $0x84] sm:$0xf0]  ;;  %v10391_v0 = vld [vmem:[#allocation25 + $0x138] sm:$0xf0] }
 0x431   :  { %17688 = vst [vmem:[#allocation106_spill] sm:$0xff] %v16029_v62  ;;  %2501 = vmatpush.bf16.msrb.mxu0 %v16026_v17  ;;  %v16045_v17 = vor.u32 %v13721_v55, %v10447_v19  ;;  %v13707_v62 = vld [vmem:[#allocation25 + $0x134] sm:$0xf]  ;;  %v16050_v14 = vor.u32 %v13686_v40, %v10301_v16  ;;  %v10493_v28 = vld [vmem:[#allocation25 + $0x200] sm:$0xf] }
 0x432   :  { %v16031_v27 = vpop.f32.mrf.mxu2  ;;  %17689 = vst [vmem:[#allocation107_spill] sm:$0xff] %v16036_v9  ;;  %v13734_v51 = vld [vmem:[#allocation25 + $0x204] sm:$0xf0]  ;;  %v16052_v56 = vor.u32 %v13707_v62, %v10391_v0  ;;  %v13719_v19 = vld [vmem:[#allocation25 + $0x194] sm:$0xf] }
 0x433   :  { %17690 = vst [vmem:[#allocation108_spill] sm:$0xff] %v16038_v59  ;;  %1984 = vmatpush.bf16.msra.mxu1 %v16036_v9  ;;  %2076 = vmatpush.bf16.msrb.mxu2 %v16038_v59  ;;  %v16054_v39 = vor.u32 %v13734_v51, %v10493_v28  ;;  %v10439_v55 = vld [vmem:[#allocation25 + $0x198] sm:$0xf0]  ;;  %v13699_v16 = vld [vmem:[#allocation25 + $0xf4] sm:$0xf] }
 0x434   :  { %v1541_v22 = vpop.f32.mrf.mxu3  ;;  %17691 = vst [vmem:[#allocation109_spill] sm:$0xff] %v16040_v48  ;;  %2097 = vmatpush.bf16.msrb.mxu3 %v16045_v17  ;;  %v16057_v59 = vor.u32 %v13719_v19, %v10439_v55  ;;  %v10359_v40 = vld [vmem:[#allocation25 + $0xf8] sm:$0xf0]  ;;  %v10383_v0 = vld [vmem:[#allocation25 + $0x128] sm:$0xf0] }
 0x435   :  { %v16042_v8 = vpop.f32.mrf.mxu1  ;;  %17692 = vst [vmem:[#allocation110_spill] sm:$0xff] %v16045_v17  ;;  %2502 = vmatpush.bf16.msrb.mxu0 %v16040_v48  ;;  %v13705_v17 = vld [vmem:[#allocation25 + $0x124] sm:$0xf]  ;;  %v16063_v62 = vor.u32 %v13699_v16, %v10359_v40  ;;  %v13747_v28 = vld [vmem:[#allocation25 + $0x274] sm:$0xf] }
 0x436   :  { %17693 = vst [vmem:[#allocation111_spill] sm:$0xff] %v16050_v14  ;;  %v10551_v51 = vld [vmem:[#allocation25 + $0x278] sm:$0xf0]  ;;  %v16065_v19 = vor.u32 %v13705_v17, %v10383_v0  ;;  %v13697_v17 = vld [vmem:[#allocation25 + $0xe4] sm:$0xf] }
 0x437   :  { %17694 = vst [vmem:[#allocation112_spill] sm:$0xff] %v16052_v56  ;;  %1985 = vmatpush.bf16.msra.mxu1 %v16050_v14  ;;  %2077 = vmatpush.bf16.msrb.mxu2 %v16052_v56  ;;  %v16067_v55 = vor.u32 %v13747_v28, %v10551_v51  ;;  %v13717_v56 = vld [vmem:[#allocation25 + $0x184] sm:$0xf]  ;;  %v10351_v40 = vld [vmem:[#allocation25 + $0xe8] sm:$0xf0] }
 0x438   :  { %17695 = vst [vmem:[#allocation113_spill] sm:$0xff] %v16054_v39  ;;  %2098 = vmatpush.bf16.msrb.mxu3 %v16057_v59  ;;  %v16074_v16 = vor.u32 %v13717_v56, %v10431_v12  ;;  %v13703_v0 = vld [vmem:[#allocation25 + $0x114] sm:$0xf]  ;;  %v10741_v56 = vld [vmem:[#allocation25 + $0x3f0] sm:$0xf] }
 0x439   :  { %17696 = vst [vmem:[#allocation114_spill] sm:$0xff] %v16057_v59  ;;  %2503 = vmatpush.bf16.msrb.mxu0 %v16054_v39  ;;  %v1554_v39 = vmax.f32 %v15924_v4, %v1541_v22  ;;  %v16081_v4 = vor.u32 %v13697_v17, %v10351_v40  ;;  %v13745_v22 = vld [vmem:[#allocation25 + $0x264] sm:$0xf]  ;;  %v13796_v59 = vld [vmem:[#allocation25 + $0x3f4] sm:$0xf0] }
 0x43a   :  { %v1522_v48 = vpop.f32.mrf.mxu2  ;;  %17697 = vst [vmem:[#allocation115_spill] sm:$0xff] %v16063_v62  ;;  %v11355_v33 = vld [vmem:[#allocation12 + $0x478] sm:$0xf0] }
 0x43b   :  { %17698 = vst [vmem:[#allocation116_spill] sm:$0xff] %v16065_v19  ;;  %2054 = vmatpush.bf16.msrb.mxu1 %v16063_v62  ;;  %2078 = vmatpush.bf16.msrb.mxu2 %v16065_v19 }
 0x43c   :  { %2043 = vmatmul.bf16.vlgmr.msra.gmra.mxu0 %v15937_v30  ;;  %v1543_v2 = vpop.f32.mrf.mxu3  ;;  %17699 = vst [vmem:[#allocation117_spill] sm:$0xff] %v16067_v55  ;;  %2099 = vmatpush.bf16.msrb.mxu3 %v16074_v16 }
 0x43d   :  { %v1558_v24 = vmax.f32 %v15949_v25, %v1543_v2  ;;  %v16071_v50 = vpop.f32.mrf.mxu1  ;;  %17700 = vst [vmem:[#allocation118_spill] sm:$0xff] %v16074_v16  ;;  %2572 = vmatpush.bf16.msra.mxu0 %v16067_v55  ;;  %v10375_v25 = vld [vmem:[#allocation25 + $0x118] sm:$0xf0]  ;;  %v10543_v2 = vld [vmem:[#allocation25 + $0x268] sm:$0xf0]  ;;  %v16089_v55 = vor.u32 %v13796_v59, %v10741_v56 }
 0x43e   :  { %17701 = vst [vmem:[#allocation119_spill] sm:$0xff] %v16081_v4  ;;  %v16083_v51 = vor.u32 %v13703_v0, %v10375_v25  ;;  %v16085_v12 = vor.u32 %v13745_v22, %v10543_v2  ;;  %v13701_v16 = vld [vmem:[#allocation25 + $0x104] sm:$0xf]  ;;  %v10367_v0 = vld [vmem:[#allocation25 + $0x108] sm:$0xf0]  ;;  %v1553_v2 = vmax.f32 %v15942_v36, %v1522_v48 }
 0x43f   :  { %v16078_v28 = vpack.c.bf16 %v1558_v24, %v1554_v39  ;;  %2055 = vmatpush.bf16.msrb.mxu1 %v16081_v4  ;;  %17704 = vst [vmem:[#allocation122_spill] sm:$0xff] %v16089_v55  ;;  %v13695_v24 = vld [vmem:[#allocation25 + $0xd4] sm:$0xf]  ;;  %v10343_v39 = vld [vmem:[#allocation25 + $0xd8] sm:$0xf0]  ;;  %v16098_v59 = vor.u32 %v13701_v16, %v10367_v0 }
 0x440   :  { %17702 = vst [vmem:[#allocation120_spill] sm:$0xff] %v16083_v51  ;;  %2079 = vmatpush.bf16.msrb.mxu2 %v16083_v51  ;;  %v16093_v40 = vor.u32 %v13695_v24, %v10343_v39  ;;  %v13743_v25 = vld [vmem:[#allocation25 + $0x254] sm:$0xf]  ;;  %v10535_v22 = vld [vmem:[#allocation25 + $0x258] sm:$0xf0] }
 0x441   :  { %17703 = vst [vmem:[#allocation121_spill] sm:$0xff] %v16085_v12  ;;  %2024 = vmatmul.bf16.vlgmr.msra.gmra.mxu3 %v16078_v28  ;;  %2573 = vmatpush.bf16.msra.mxu0 %v16085_v12  ;;  %v16100_v56 = vor.u32 %v13743_v25, %v10535_v22  ;;  %v13794_v51 = vld [vmem:[#allocation25 + $0x3e4] sm:$0xf0]  ;;  %v13693_v36 = vld [vmem:[#allocation25 + $0xc4] sm:$0xf] }
 0x442   :  { %v1524_v17 = vpop.f32.mrf.mxu2  ;;  %17705 = vst [vmem:[#allocation123_spill] sm:$0xff] %v16093_v40  ;;  %2553 = vmatpush.bf16.msra.mxu3 %v16089_v55  ;;  %v16107_v39 = vor.u32 %v13794_v51, %v10733_v38  ;;  %v10677_v48 = vld [vmem:[#allocation25 + $0x370] sm:$0xf]  ;;  %v10527_v0 = vld [vmem:[#allocation25 + $0x248] sm:$0xf0] }
 0x443   :  { %v1557_v19 = vmax.f32 %v15970_v53, %v1524_v17  ;;  %17706 = vst [vmem:[#allocation124_spill] sm:$0xff] %v16098_v59  ;;  %2056 = vmatpush.bf16.msrb.mxu1 %v16093_v40  ;;  %v10335_v53 = vld [vmem:[#allocation25 + $0xc8] sm:$0xf0]  ;;  %v13741_v17 = vld [vmem:[#allocation25 + $0x244] sm:$0xf] }
 0x444   :  { %17707 = vst [vmem:[#allocation125_spill] sm:$0xff] %v16100_v56  ;;  %v1546_v21 = vpop.f32.mrf.mxu3  ;;  %2080 = vmatpush.bf16.msrb.mxu2 %v16098_v59  ;;  %v16113_v16 = vor.u32 %v13693_v36, %v10335_v53  ;;  %v16117_v38 = vor.u32 %v13741_v17, %v10527_v0  ;;  %v10725_v51 = vld [vmem:[#allocation25 + $0x3d0] sm:$0xf]  ;;  %v13792_v22 = vld [vmem:[#allocation25 + $0x3d4] sm:$0xf0] }
 0x445   :  { %v16102_v3 = vpack.c.bf16 %v1557_v19, %v1553_v2  ;;  %v16104_v24 = vpop.f32.mrf.mxu1  ;;  %17708 = vst [vmem:[#allocation126_spill] sm:$0xff] %v16107_v39  ;;  %2574 = vmatpush.bf16.msra.mxu0 %v16100_v56  ;;  %v13780_v19 = vld [vmem:[#allocation25 + $0x374] sm:$0xf0]  ;;  %v16120_v2 = vor.u32 %v13792_v22, %v10725_v51  ;;  %v13691_v36 = vld [vmem:[#allocation25 + $0xb4] sm:$0xf]  ;;  %v1562_v59 = vmax.f32 %v15977_v57, %v1546_v21 }
 0x446   :  { %2554 = vmatpush.bf16.msra.mxu3 %v16107_v39  ;;  %17709 = vst [vmem:[#allocation127_spill] sm:$0xff] %v16113_v16  ;;  %v16115_v25 = vor.u32 %v13780_v19, %v10677_v48  ;;  %v10327_v53 = vld [vmem:[#allocation25 + $0xb8] sm:$0xf0]  ;;  %v10669_v39 = vld [vmem:[#allocation25 + $0x360] sm:$0xf] }
 0x447   :  { %2005 = vmatmul.bf16.vlgmr.msra.gmra.mxu2 %v16102_v3  ;;  %17711 = vst [vmem:[#allocation129_spill] sm:$0xff] %v16117_v38  ;;  %2057 = vmatpush.bf16.msrb.mxu1 %v16113_v16  ;;  %v16126_v48 = vor.u32 %v13691_v36, %v10327_v53  ;;  %v13778_v19 = vld [vmem:[#allocation25 + $0x364] sm:$0xf0]  ;;  %v13739_v17 = vld [vmem:[#allocation25 + $0x234] sm:$0xf] }
 0x448   :  { %17710 = vst [vmem:[#allocation128_spill] sm:$0xff] %v16115_v25  ;;  %2534 = vmatpush.bf16.msra.mxu2 %v16115_v25  ;;  %v10519_v0 = vld [vmem:[#allocation25 + $0x238] sm:$0xf0]  ;;  %v16128_v51 = vor.u32 %v13778_v19, %v10669_v39  ;;  %v10717_v12 = vld [vmem:[#allocation25 + $0x3c0] sm:$0xf] }
 0x449   :  { %17712 = vst [vmem:[#allocation130_spill] sm:$0xff] %v16120_v2  ;;  %2575 = vmatpush.bf16.msra.mxu0 %v16117_v38  ;;  %v16130_v22 = vor.u32 %v13739_v17, %v10519_v0  ;;  %v13790_v25 = vld [vmem:[#allocation25 + $0x3c4] sm:$0xf0]  ;;  %v13689_v38 = vld [vmem:[#allocation25 + $0xa4] sm:$0xf] }
 0x44a   :  { %v1527_v55 = vpop.f32.mrf.mxu2  ;;  %2555 = vmatpush.bf16.msra.mxu3 %v16120_v2  ;;  %17713 = vst [vmem:[#allocation131_spill] sm:$0xff] %v16126_v48  ;;  %v16135_v36 = vor.u32 %v13790_v25, %v10717_v12  ;;  %v10319_v53 = vld [vmem:[#allocation25 + $0xa8] sm:$0xf0]  ;;  %v10661_v2 = vld [vmem:[#allocation25 + $0x350] sm:$0xf] }
 0x44b   :  { %17714 = vst [vmem:[#allocation132_spill] sm:$0xff] %v16128_v51  ;;  %2058 = vmatpush.bf16.msrb.mxu1 %v16126_v48  ;;  %v16139_v39 = vor.u32 %v13689_v38, %v10319_v53  ;;  %v16141_v19 = vor.u32 %v13776_v29, %v10661_v2  ;;  %v13737_v17 = vld [vmem:[#allocation25 + $0x224] sm:$0xf]  ;;  %v10511_v57 = vld [vmem:[#allocation25 + $0x228] sm:$0xf0] }
 0x44c   :  { %2048 = vmatmul.bf16.gmra.mxu0 %v15995_v26  ;;  %v1548_v56 = vpop.f32.mrf.mxu3  ;;  %17715 = vst [vmem:[#allocation133_spill] sm:$0xff] %v16130_v22  ;;  %2535 = vmatpush.bf16.msra.mxu2 %v16128_v51  ;;  %v10709_v12 = vld [vmem:[#allocation25 + $0x3b0] sm:$0xf]  ;;  %v13687_v38 = vld [vmem:[#allocation25 + $0x94] sm:$0xf] }
 0x44d   :  { %v1566_v37 = vmax.f32 %v16008_v49, %v1548_v56  ;;  %v1503_v46 = vpop.f32.mrf.mxu1  ;;  %17716 = vst [vmem:[#allocation134_spill] sm:$0xff] %v16135_v36  ;;  %2576 = vmatpush.bf16.msra.mxu0 %v16130_v22  ;;  %v16146_v49 = vor.u32 %v13737_v17, %v10511_v57  ;;  %v13788_v56 = vld [vmem:[#allocation25 + $0x3b4] sm:$0xf0]  ;;  %v10311_v0 = vld [vmem:[#allocation25 + $0x98] sm:$0xf0]  ;;  %v1561_v57 = vmax.f32 %v16000_v60, %v1527_v55 }
 0x44e   :  { %17717 = vst [vmem:[#allocation135_spill] sm:$0xff] %v16139_v39  ;;  %2556 = vmatpush.bf16.msra.mxu3 %v16135_v36  ;;  %v16150_v25 = vor.u32 %v13788_v56, %v10709_v12  ;;  %v10653_v29 = vld [vmem:[#allocation25 + $0x340] sm:$0xf]  ;;  %v13735_v53 = vld [vmem:[#allocation25 + $0x214] sm:$0xf] }
 0x44f   :  { %17718 = vst [vmem:[#allocation136_spill] sm:$0xff] %v16141_v19  ;;  %v16143_v21 = vpack.c.bf16 %v1566_v37, %v1562_v59  ;;  %2059 = vmatpush.bf16.msrb.mxu1 %v16139_v39  ;;  %v16154_v37 = vor.u32 %v13687_v38, %v10311_v0  ;;  %v13774_v59 = vld [vmem:[#allocation25 + $0x344] sm:$0xf0]  ;;  %v10503_v17 = vld [vmem:[#allocation25 + $0x218] sm:$0xf0]  ;;  %v1552_v0 = vmax.f32 %v16014_v43, %v1503_v46 }
 0x450   :  { %17719 = vst [vmem:[#allocation137_spill] sm:$0xff] %v16146_v49  ;;  %2536 = vmatpush.bf16.msra.mxu2 %v16141_v19  ;;  %v16159_v12 = vor.u32 %v13774_v59, %v10653_v29  ;;  %v16161_v56 = vor.u32 %v13735_v53, %v10503_v17  ;;  %v10701_v22 = vld [vmem:[#allocation25 + $0x3a0] sm:$0xf]  ;;  %v13786_v51 = vld [vmem:[#allocation25 + $0x3a4] sm:$0xf0] }
 0x451   :  { %2029 = vmatmul.bf16.gmra.mxu3 %v16143_v21  ;;  %17720 = vst [vmem:[#allocation138_spill] sm:$0xff] %v16150_v25  ;;  %2577 = vmatpush.bf16.msra.mxu0 %v16146_v49  ;;  %v16163_v19 = vor.u32 %v13786_v51, %v10701_v22  ;;  %v10303_v55 = vld [vmem:[#allocation25 + $0x88] sm:$0xf0]  ;;  %v10645_v29 = vld [vmem:[#allocation25 + $0x330] sm:$0xf] }
 0x452   :  { %v1529_v2 = vpop.f32.mrf.mxu2  ;;  %17721 = vst [vmem:[#allocation139_spill] sm:$0xff] %v16154_v37  ;;  %2557 = vmatpush.bf16.msra.mxu3 %v16150_v25  ;;  %v13772_v22 = vld [vmem:[#allocation25 + $0x334] sm:$0xf0]  ;;  %v10693_v43 = vld [vmem:[#allocation25 + $0x390] sm:$0xf] }
 0x453   :  { %v1565_v36 = vmax.f32 %v16031_v27, %v1529_v2  ;;  %17722 = vst [vmem:[#allocation140_spill] sm:$0xff] %v16159_v12  ;;  %2060 = vmatpush.bf16.msrb.mxu1 %v16154_v37  ;;  %v13685_v27 = vld [vmem:[#allocation25 + $0x84] sm:$0xf]  ;;  %v10495_v2 = vld [vmem:[#allocation25 + $0x208] sm:$0xf0]  ;;  %v16178_v46 = vor.u32 %v13772_v22, %v10645_v29 }
 0x454   :  { %17723 = vst [vmem:[#allocation141_spill] sm:$0xff] %v16161_v56  ;;  %2537 = vmatpush.bf16.msra.mxu2 %v16159_v12  ;;  %v16174_v51 = vor.u32 %v13685_v27, %v10303_v55  ;;  %v13784_v53 = vld [vmem:[#allocation25 + $0x394] sm:$0xf0]  ;;  %v10637_v27 = vld [vmem:[#allocation25 + $0x320] sm:$0xf] }
 0x455   :  { %17724 = vst [vmem:[#allocation142_spill] sm:$0xff] %v16163_v19  ;;  %v16165_v49 = vpack.c.bf16 %v1565_v36, %v1561_v57  ;;  %v1505_v38 = vpop.f32.mrf.mxu1  ;;  %2578 = vmatpush.bf16.msra.mxu0 %v16161_v56  ;;  %v13733_v36 = vld [vmem:[#allocation25 + $0x204] sm:$0xf]  ;;  %v16183_v17 = vor.u32 %v13784_v53, %v10693_v43  ;;  %v10613_v57 = vld [vmem:[#allocation25 + $0x2f0] sm:$0xf] }
 0x456   :  { %v1556_v60 = vmax.f32 %v16042_v8, %v1505_v38  ;;  %2558 = vmatpush.bf16.msra.mxu3 %v16163_v19  ;;  %17725 = vst [vmem:[#allocation143_spill] sm:$0xff] %v16174_v51  ;;  %v16180_v8 = vor.u32 %v13733_v36, %v10495_v2  ;;  %v13764_v38 = vld [vmem:[#allocation25 + $0x2f4] sm:$0xf0]  ;;  %v10685_v55 = vld [vmem:[#allocation25 + $0x380] sm:$0xf] }
 0x457   :  { %2010 = vmatmul.bf16.gmra.mxu2 %v16165_v49  ;;  %17726 = vst [vmem:[#allocation144_spill] sm:$0xff] %v16178_v46  ;;  %2061 = vmatpush.bf16.msrb.mxu1 %v16174_v51  ;;  %v13782_v29 = vld [vmem:[#allocation25 + $0x384] sm:$0xf0]  ;;  %v10605_v2 = vld [vmem:[#allocation25 + $0x2e0] sm:$0xf] }
 0x458   :  { %v16176_v59 = vpack.c.bf16 %v1556_v60, %v1552_v0  ;;  %17727 = vst [vmem:[#allocation145_spill] sm:$0xff] %v16180_v8  ;;  %2538 = vmatpush.bf16.msra.mxu2 %v16178_v46  ;;  %v16189_v0 = vor.u32 %v13764_v38, %v10613_v57  ;;  %v13770_v60 = vld [vmem:[#allocation25 + $0x324] sm:$0xf0]  ;;  %v16194_v36 = vor.u32 %v13782_v29, %v10685_v55  ;;  %v10629_v53 = vld [vmem:[#allocation25 + $0x310] sm:$0xf] }
 0x459   :  { %17728 = vst [vmem:[#allocation146_spill] sm:$0xff] %v16183_v17  ;;  %2579 = vmatpush.bf16.msra.mxu0 %v16180_v8  ;;  %v16192_v22 = vor.u32 %v13770_v60, %v10637_v27  ;;  %v13762_v43 = vld [vmem:[#allocation25 + $0x2e4] sm:$0xf0]  ;;  %v13795_v38 = vld [vmem:[#allocation25 + $0x3f4] sm:$0xf] }
 0x45a   :  { %1986 = vmatmul.bf16.vlgmr.msra.gmra.mxu1 %v16176_v59  ;;  %2559 = vmatpush.bf16.msra.mxu3 %v16183_v17  ;;  %17729 = vst [vmem:[#allocation147_spill] sm:$0xff] %v16189_v0  ;;  %v16197_v25 = vor.u32 %v13762_v43, %v10605_v2  ;;  %v13768_v17 = vld [vmem:[#allocation25 + $0x314] sm:$0xf0]  ;;  %v10743_v27 = vld [vmem:[#allocation25 + $0x3f8] sm:$0xf0] }
 0x45b   :  { %17730 = vst [vmem:[#allocation148_spill] sm:$0xff] %v16192_v22  ;;  %2515 = vmatpush.bf16.msra.mxu1 %v16189_v0  ;;  %v16200_v57 = vor.u32 %v13768_v17, %v10629_v53  ;;  %v16205_v60 = vor.u32 %v13795_v38, %v10743_v27  ;;  %v10597_v55 = vld [vmem:[#allocation25 + $0x2d0] sm:$0xf]  ;;  %v13760_v29 = vld [vmem:[#allocation25 + $0x2d4] sm:$0xf0] }
 0x45c   :  { %2504 = vmatmul.bf16.vlgmr.msrb.gmra.mxu0 %v15937_v30  ;;  %17731 = vst [vmem:[#allocation149_spill] sm:$0xff] %v16194_v36  ;;  %2539 = vmatpush.bf16.msra.mxu2 %v16192_v22  ;;  %v10621_v8 = vld [vmem:[#allocation25 + $0x300] sm:$0xf]  ;;  %v16208_v2 = vor.u32 %v13760_v29, %v10597_v55  ;;  %v13766_v43 = vld [vmem:[#allocation25 + $0x304] sm:$0xf0] }
 0x45d   :  { %v1508_v19 = vpop.f32.mrf.mxu1  ;;  %17732 = vst [vmem:[#allocation150_spill] sm:$0xff] %v16197_v25  ;;  %v13793_v17 = vld [vmem:[#allocation25 + $0x3e4] sm:$0xf]  ;;  %v10735_v53 = vld [vmem:[#allocation25 + $0x3e8] sm:$0xf0] }
 0x45e   :  { %17733 = vst [vmem:[#allocation151_spill] sm:$0xff] %v16200_v57  ;;  %2560 = vmatpush.bf16.msra.mxu3 %v16194_v36  ;;  %v16211_v36 = vor.u32 %v13766_v43, %v10621_v8  ;;  %v16213_v56 = vor.u32 %v13793_v17, %v10735_v53  ;;  %v1560_v38 = vmax.f32 %v16071_v50, %v1508_v19  ;;  %v10589_v55 = vld [vmem:[#allocation25 + $0x2c0] sm:$0xf]  ;;  %v13758_v29 = vld [vmem:[#allocation25 + $0x2c4] sm:$0xf0] }
 0x45f   :  { %2516 = vmatpush.bf16.msra.mxu1 %v16197_v25  ;;  %17734 = vst [vmem:[#allocation152_spill] sm:$0xff] %v16205_v60  ;;  %v16221_v8 = vor.u32 %v13758_v29, %v10589_v55  ;;  %v10679_v43 = vld [vmem:[#allocation25 + $0x378] sm:$0xf0]  ;;  %v13791_v17 = vld [vmem:[#allocation25 + $0x3d4] sm:$0xf] }
 0x460   :  { %2540 = vmatpush.bf16.msra.mxu2 %v16200_v57  ;;  %17735 = vst [vmem:[#allocation153_spill] sm:$0xff] %v16208_v2  ;;  %v13779_v57 = vld [vmem:[#allocation25 + $0x374] sm:$0xf]  ;;  %v10727_v53 = vld [vmem:[#allocation25 + $0x3d8] sm:$0xf0] }
 0x461   :  { %2100 = vmatmul.bf16.vlgmr.msrb.gmra.mxu3 %v16078_v28  ;;  %17736 = vst [vmem:[#allocation154_spill] sm:$0xff] %v16211_v36  ;;  %v16225_v46 = vor.u32 %v13779_v57, %v10679_v43  ;;  %v16227_v50 = vor.u32 %v13791_v17, %v10727_v53  ;;  %v13756_v19 = vld [vmem:[#allocation25 + $0x2b4] sm:$0xf0]  ;;  %v13789_v57 = vld [vmem:[#allocation25 + $0x3c4] sm:$0xf] }
 0x462   :  { %2629 = vmatpush.bf16.msrb.mxu3 %v16205_v60  ;;  %17737 = vst [vmem:[#allocation155_spill] sm:$0xff] %v16213_v56  ;;  %v10573_v17 = vld [vmem:[#allocation25 + $0x2a0] sm:$0xf]  ;;  %v13754_v53 = vld [vmem:[#allocation25 + $0x2a4] sm:$0xf0] }
 0x463   :  { %2517 = vmatpush.bf16.msra.mxu1 %v16208_v2  ;;  %17738 = vst [vmem:[#allocation156_spill] sm:$0xff] %v16221_v8  ;;  %v13771_v12 = vld [vmem:[#allocation25 + $0x334] sm:$0xf] }
 0x464   :  { %2541 = vmatpush.bf16.msra.mxu2 %v16211_v36  ;;  %17739 = vst [vmem:[#allocation157_spill] sm:$0xff] %v16225_v46  ;;  %v10663_v36 = vld [vmem:[#allocation25 + $0x358] sm:$0xf0] }
 0x465   :  { %v1510_v22 = vpop.f32.mrf.mxu1  ;;  %17740 = vst [vmem:[#allocation158_spill] sm:$0xff] %v16227_v50 }
 0x466   :  { %v1564_v27 = vmax.f32 %v16104_v24, %v1510_v22  ;;  %2630 = vmatpush.bf16.msrb.mxu3 %v16213_v56  ;;  %v10581_v24 = vld [vmem:[#allocation25 + $0x2b0] sm:$0xf]  ;;  %v13777_v22 = vld [vmem:[#allocation25 + $0x364] sm:$0xf]  ;;  %v13775_v56 = vld [vmem:[#allocation25 + $0x354] sm:$0xf] }
 0x467   :  { %2081 = vmatmul.bf16.vlgmr.msrb.gmra.mxu2 %v16102_v3  ;;  %2518 = vmatpush.bf16.msra.mxu1 %v16221_v8  ;;  %v16234_v55 = vor.u32 %v13756_v19, %v10581_v24  ;;  %v13787_v24 = vld [vmem:[#allocation25 + $0x3b4] sm:$0xf]  ;;  %v10711_v19 = vld [vmem:[#allocation25 + $0x3b8] sm:$0xf0] }
 0x468   :  { %v16223_v60 = vpack.c.bf16 %v1564_v27, %v1560_v38  ;;  %2610 = vmatpush.bf16.msrb.mxu2 %v16225_v46  ;;  %v10671_v38 = vld [vmem:[#allocation25 + $0x368] sm:$0xf0]  ;;  %v16241_v46 = vor.u32 %v13754_v53, %v10573_v17 }
 0x469   :  { %17741 = vst [vmem:[#allocation159_spill] sm:$0xff] %v16234_v55  ;;  %v10719_v27 = vld [vmem:[#allocation25 + $0x3c8] sm:$0xf0]  ;;  %v16236_v29 = vor.u32 %v13777_v22, %v10671_v38  ;;  %v16249_v22 = vor.u32 %v13787_v24, %v10711_v19  ;;  %v10565_v38 = vld [vmem:[#allocation25 + $0x290] sm:$0xf] }
 0x46a   :  { %1991 = vmatmul.bf16.gmra.mxu1 %v16223_v60  ;;  %2631 = vmatpush.bf16.msrb.mxu3 %v16227_v50  ;;  %v16238_v43 = vor.u32 %v13789_v57, %v10719_v27  ;;  %17744 = vst [vmem:[#allocation162_spill] sm:$0xff] %v16241_v46  ;;  %v16244_v50 = vor.u32 %v13775_v56, %v10663_v36  ;;  %v13752_v57 = vld [vmem:[#allocation25 + $0x294] sm:$0xf0]  ;;  %v13773_v27 = vld [vmem:[#allocation25 + $0x344] sm:$0xf] }
 0x46b   :  { %17742 = vst [vmem:[#allocation160_spill] sm:$0xff] %v16236_v29  ;;  %2519 = vmatpush.bf16.msra.mxu1 %v16234_v55  ;;  %v16252_v17 = vor.u32 %v13752_v57, %v10565_v38  ;;  %v10655_v53 = vld [vmem:[#allocation25 + $0x348] sm:$0xf0]  ;;  %v13785_v56 = vld [vmem:[#allocation25 + $0x3a4] sm:$0xf] }
 0x46c   :  { %2509 = vmatmul.bf16.gmra.mxu0 %v15995_v26  ;;  %17743 = vst [vmem:[#allocation161_spill] sm:$0xff] %v16238_v43  ;;  %2611 = vmatpush.bf16.msrb.mxu2 %v16236_v29  ;;  %v10703_v36 = vld [vmem:[#allocation25 + $0x3a8] sm:$0xf0]  ;;  %v10557_v24 = vld [vmem:[#allocation25 + $0x280] sm:$0xf] }
 0x46d   :  { %17745 = vst [vmem:[#allocation163_spill] sm:$0xff] %v16244_v50  ;;  %v16257_v29 = vor.u32 %v13785_v56, %v10703_v36  ;;  %v13750_v19 = vld [vmem:[#allocation25 + $0x284] sm:$0xf0]  ;;  %v10647_v57 = vld [vmem:[#allocation25 + $0x338] sm:$0xf0] }
 0x46e   :  { %2632 = vmatpush.bf16.msrb.mxu3 %v16238_v43  ;;  %17746 = vst [vmem:[#allocation164_spill] sm:$0xff] %v16249_v22  ;;  %v16255_v43 = vor.u32 %v13773_v27, %v10655_v53  ;;  %v16263_v38 = vor.u32 %v13750_v19, %v10557_v24  ;;  %v13783_v27 = vld [vmem:[#allocation25 + $0x394] sm:$0xf]  ;;  %v10695_v53 = vld [vmem:[#allocation25 + $0x398] sm:$0xf0] }
 0x46f   :  { %2520 = vmatpush.bf16.msra.mxu1 %v16241_v46  ;;  %17747 = vst [vmem:[#allocation165_spill] sm:$0xff] %v16252_v17  ;;  %v16268_v56 = vor.u32 %v13783_v27, %v10695_v53  ;;  %v13763_v36 = vld [vmem:[#allocation25 + $0x2f4] sm:$0xf]  ;;  %v13781_v19 = vld [vmem:[#allocation25 + $0x384] sm:$0xf] }
 0x470   :  { %2612 = vmatpush.bf16.msrb.mxu2 %v16244_v50  ;;  %17748 = vst [vmem:[#allocation166_spill] sm:$0xff] %v16255_v43  ;;  %v16265_v50 = vor.u32 %v13771_v12, %v10647_v57  ;;  %v10639_v12 = vld [vmem:[#allocation25 + $0x328] sm:$0xf0]  ;;  %v13761_v53 = vld [vmem:[#allocation25 + $0x2e4] sm:$0xf] }
 0x471   :  { %2105 = vmatmul.bf16.gmra.mxu3 %v16143_v21  ;;  %17749 = vst [vmem:[#allocation167_spill] sm:$0xff] %v16257_v29  ;;  %v10687_v57 = vld [vmem:[#allocation25 + $0x388] sm:$0xf0] }
 0x472   :  { %2633 = vmatpush.bf16.msrb.mxu3 %v16249_v22  ;;  %17750 = vst [vmem:[#allocation168_spill] sm:$0xff] %v16263_v38  ;;  %v10615_v22 = vld [vmem:[#allocation25 + $0x2f8] sm:$0xf0]  ;;  %v16278_v27 = vor.u32 %v13781_v19, %v10687_v57  ;;  %v13765_v19 = vld [vmem:[#allocation25 + $0x304] sm:$0xf] }
 0x473   :  { %2521 = vmatpush.bf16.msra.mxu1 %v16252_v17  ;;  %17751 = vst [vmem:[#allocation169_spill] sm:$0xff] %v16265_v50  ;;  %v16274_v24 = vor.u32 %v13763_v36, %v10615_v22  ;;  %v10631_v22 = vld [vmem:[#allocation25 + $0x318] sm:$0xf0] }
 0x474   :  { %2613 = vmatpush.bf16.msrb.mxu2 %v16255_v43  ;;  %17752 = vst [vmem:[#allocation170_spill] sm:$0xff] %v16268_v56  ;;  %v13769_v43 = vld [vmem:[#allocation25 + $0x324] sm:$0xf] }
 0x475   :  { %17753 = vst [vmem:[#allocation171_spill] sm:$0xff] %v16274_v24 }
 0x476   :  { %2634 = vmatpush.bf16.msrb.mxu3 %v16257_v29  ;;  %v16276_v29 = vor.u32 %v13769_v43, %v10639_v12  ;;  %17755 = vst [vmem:[#allocation173_spill] sm:$0xff] %v16278_v27  ;;  %v13759_v43 = vld [vmem:[#allocation25 + $0x2d4] sm:$0xf]  ;;  %v10599_v12 = vld [vmem:[#allocation25 + $0x2d8] sm:$0xf0] }
 0x477   :  { %2086 = vmatmul.bf16.gmra.mxu2 %v16165_v49  ;;  %2522 = vmatpush.bf16.msra.mxu1 %v16263_v38  ;;  %v13767_v38 = vld [vmem:[#allocation25 + $0x314] sm:$0xf]  ;;  %v16290_v57 = vor.u32 %v13759_v43, %v10599_v12  ;;  %v10583_v43 = vld [vmem:[#allocation25 + $0x2b8] sm:$0xf0]  ;;  %v13753_v12 = vld [vmem:[#allocation25 + $0x2a4] sm:$0xf] }
 0x478   :  { %2614 = vmatpush.bf16.msrb.mxu2 %v16265_v50  ;;  %17754 = vst [vmem:[#allocation172_spill] sm:$0xff] %v16276_v29  ;;  %v10607_v50 = vld [vmem:[#allocation25 + $0x2e8] sm:$0xf0]  ;;  %v16285_v36 = vor.u32 %v13767_v38, %v10631_v22  ;;  %v13755_v22 = vld [vmem:[#allocation25 + $0x2b4] sm:$0xf] }
 0x479   :  { %17758 = vst [vmem:[#allocation176_spill] sm:$0xff] %v16290_v57  ;;  %v10591_v38 = vld [vmem:[#allocation25 + $0x2c8] sm:$0xf0] }
 0x47a   :  { %2062 = vmatmul.bf16.vlgmr.msrb.gmra.mxu1 %v16176_v59  ;;  %2635 = vmatpush.bf16.msrb.mxu3 %v16268_v56  ;;  %17757 = vst [vmem:[#allocation175_spill] sm:$0xff] %v16285_v36  ;;  %v10623_v56 = vld [vmem:[#allocation25 + $0x308] sm:$0xf0] }
 0x47b   :  { %2591 = vmatpush.bf16.msrb.mxu1 %v16274_v24 }
 0x47c   :  { %2580 = vmatmul.bf16.vlgmr.msra.gmra.mxu0 %v15937_v30  ;;  %2615 = vmatpush.bf16.msrb.mxu2 %v16276_v29  ;;  %v16283_v30 = vor.u32 %v13761_v53, %v10607_v50  ;;  %v16292_v29 = vor.u32 %v13765_v19, %v10623_v56  ;;  %v13757_v50 = vld [vmem:[#allocation25 + $0x2c4] sm:$0xf]  ;;  %v16302_v56 = vor.u32 %v13755_v22, %v10583_v43  ;;  %v10575_v19 = vld [vmem:[#allocation25 + $0x2a8] sm:$0xf0] }
 0x47d   :  { %v16297_v53 = vor.u32 %v13757_v50, %v10591_v38  ;;  %v13751_v50 = vld [vmem:[#allocation25 + $0x294] sm:$0xf]  ;;  %v10567_v38 = vld [vmem:[#allocation25 + $0x298] sm:$0xf0] }
 0x47e   :  { %2636 = vmatpush.bf16.msrb.mxu3 %v16278_v27  ;;  %17756 = vst [vmem:[#allocation174_spill] sm:$0xff] %v16283_v30  ;;  %v16305_v27 = vor.u32 %v13753_v12, %v10575_v19 }
 0x47f   :  { %2592 = vmatpush.bf16.msrb.mxu1 %v16283_v30  ;;  %17759 = vst [vmem:[#allocation177_spill] sm:$0xff] %v16292_v29 }
 0x480   :  { %2616 = vmatpush.bf16.msrb.mxu2 %v16285_v36  ;;  %17760 = vst [vmem:[#allocation178_spill] sm:$0xff] %v16297_v53  ;;  %v13749_v36 = vld [vmem:[#allocation25 + $0x284] sm:$0xf] }
 0x481   :  { %2561 = vmatmul.bf16.vlgmr.msra.gmra.mxu3 %v16078_v28  ;;  %17761 = vst [vmem:[#allocation179_spill] sm:$0xff] %v16302_v56 }
 0x482   :  { %17762 = vst [vmem:[#allocation180_spill] sm:$0xff] %v16305_v27 }
 0x483   :  { %2593 = vmatpush.bf16.msrb.mxu1 %v16290_v57 }
 0x484   :  { %2617 = vmatpush.bf16.msrb.mxu2 %v16292_v29  ;;  %v16309_v29 = vor.u32 %v13751_v50, %v10567_v38 }
 0x486   :  { %17763 = vst [vmem:[#allocation181_spill] sm:$0xff] %v16309_v29 }
 0x487   :  { %2542 = vmatmul.bf16.vlgmr.msra.gmra.mxu2 %v16102_v3  ;;  %2594 = vmatpush.bf16.msrb.mxu1 %v16297_v53 }
 0x48a   :  { %2067 = vmatmul.bf16.gmra.mxu1 %v16223_v60 }
 0x48b   :  { %2595 = vmatpush.bf16.msrb.mxu1 %v16302_v56 }
 0x48c   :  { %2585 = vmatmul.bf16.gmra.mxu0 %v15995_v26  ;;  %v10559_v26 = vld [vmem:[#allocation25 + $0x288] sm:$0xf0] }
 0x48d   :  { %v16313_v22 = vor.u32 %v13749_v36, %v10559_v26 }
 0x48f   :  { %2596 = vmatpush.bf16.msrb.mxu1 %v16305_v27  ;;  %17764 = vst [vmem:[#allocation182_spill] sm:$0xff] %v16313_v22 }
 0x491   :  { %2566 = vmatmul.bf16.gmra.mxu3 %v16143_v21 }
 0x493   :  { %2597 = vmatpush.bf16.msrb.mxu1 %v16309_v29 }
 0x497   :  { %2547 = vmatmul.bf16.gmra.mxu2 %v16165_v49  ;;  %2598 = vmatpush.bf16.msrb.mxu1 %v16313_v22 }
 0x499   :  { %v1968_v43 = vpop.f32.mrf.mxu0 }
 0x49a   :  { %2523 = vmatmul.bf16.vlgmr.msra.gmra.mxu1 %v16176_v59 }
 0x4a1   :  { %2637 = vmatmul.bf16.vlgmr.msrb.gmra.mxu3 %v16078_v28  ;;  %v1970_v12 = vpop.f32.mrf.mxu0 }
 0x4a7   :  { %2618 = vmatmul.bf16.vlgmr.msrb.gmra.mxu2 %v16102_v3 }
 0x4a9   :  { %v1973_v38 = vpop.f32.mrf.mxu0 }
 0x4aa   :  { %2528 = vmatmul.bf16.gmra.mxu1 %v16223_v60 }
 0x4b1   :  { %2642 = vmatmul.bf16.gmra.mxu3 %v16143_v21  ;;  %v1975_v26 = vpop.f32.mrf.mxu0 }
 0x4b7   :  { %2623 = vmatmul.bf16.gmra.mxu2 %v16165_v49 }
 0x4b9   :  { %v2044_v53 = vpop.f32.mrf.mxu0 }
 0x4ba   :  { %2599 = vmatmul.bf16.vlgmr.msrb.gmra.mxu1 %v16176_v59 }
 0x4c1   :  { %v16330_v55 = vpop.f32.mrf.mxu0 }
 0x4c4   :  { %v2025_v36 = vpop.f32.mrf.mxu3 }
 0x4ca   :  { %v2006_v19 = vpop.f32.mrf.mxu2  ;;  %2604 = vmatmul.bf16.gmra.mxu1 %v16223_v60 }
 0x4cc   :  { %v16324_v50 = vpop.f32.mrf.mxu3 }
 0x4d2   :  { %v16326_v28 = vpop.f32.mrf.mxu2 }
 0x4d4   :  { %v2030_v3 = vpop.f32.mrf.mxu3 }
 0x4d7   :  { %v1987_v22 = vpop.f32.mrf.mxu1 }
 0x4d8   :  { %v1988_v29 = vadd.f32 %v1987_v22, %v1968_v43 }
 0x4da   :  { %v2007_v21 = vadd.f32 %v2006_v19, %v1988_v29  ;;  %v2011_v27 = vpop.f32.mrf.mxu2  ;;  %v2049_v29 = vpop.f32.mrf.mxu0 }
 0x4dc   :  { %v16328_v49 = vadd.f32 %v2025_v36, %v2007_v21  ;;  %v2032_v56 = vpop.f32.mrf.mxu3 }
 0x4df   :  { %v1989_v59 = vpop.f32.mrf.mxu1 }
 0x4e2   :  { %v2013_v57 = vpop.f32.mrf.mxu2  ;;  %v16338_v37 = vpop.f32.mrf.mxu0 }
 0x4e4   :  { %v2101_v30 = vpop.f32.mrf.mxu3 }
 0x4e7   :  { %v1992_v24 = vpop.f32.mrf.mxu1 }
 0x4e8   :  { %v1993_v60 = vadd.f32 %v1992_v24, %v1973_v38 }
 0x4ea   :  { %v2012_v17 = vadd.f32 %v2011_v27, %v1993_v60  ;;  %v2082_v46 = vpop.f32.mrf.mxu2  ;;  %v2505_v60 = vpop.f32.mrf.mxu0 }
 0x4ec   :  { %v2031_v8 = vadd.f32 %v2030_v3, %v2012_v17  ;;  %v16332_v2 = vpop.f32.mrf.mxu3 }
 0x4ef   :  { %v1994_v25 = vpop.f32.mrf.mxu1 }
 0x4f2   :  { %v16334_v22 = vpop.f32.mrf.mxu2 }
 0x4f4   :  { %v2106_v19 = vpop.f32.mrf.mxu3 }
 0x4f7   :  { %v2063_v43 = vpop.f32.mrf.mxu1 }
 0x4f8   :  { %v2064_v36 = vadd.f32 %v2063_v43, %v2044_v53  ;;  %v2507_v43 = vpop.f32.mrf.mxu0 }
 0x4fa   :  { %v2083_v21 = vadd.f32 %v2082_v46, %v2064_v36  ;;  %v2087_v0 = vpop.f32.mrf.mxu2 }
 0x4fc   :  { %v16336_v51 = vadd.f32 %v2101_v30, %v2083_v21  ;;  %v16344_v17 = vpop.f32.mrf.mxu3 }
 0x4ff   :  { %v16340_v24 = vpop.f32.mrf.mxu1 }
 0x500   :  { %v2510_v39 = vpop.f32.mrf.mxu0 }
 0x502   :  { %v16342_v27 = vpop.f32.mrf.mxu2 }
 0x504   :  { %v2562_v53 = vpop.f32.mrf.mxu3 }
 0x507   :  { %v2068_v38 = vpop.f32.mrf.mxu1 }
 0x508   :  { %v2069_v3 = vadd.f32 %v2068_v38, %v2049_v29  ;;  %v2512_v47 = vpop.f32.mrf.mxu0  ;;  %v1995_v38 = vadd.f32 %v1994_v25, %v1975_v26 }
 0x50a   :  { %v2088_v6 = vadd.f32 %v2087_v0, %v2069_v3  ;;  %v2543_v15 = vpop.f32.mrf.mxu2  ;;  %v1990_v3 = vadd.f32 %v1989_v59, %v1970_v12  ;;  %v2014_v40 = vadd.f32 %v2013_v57, %v1995_v38  ;;  %v13891_v38 = vld [vmem:[#allocation12 + $0x2cc] sm:$0xf0] }
 0x50c   :  { %v16346_v7 = vadd.f32 %v2106_v19, %v2088_v6  ;;  %v2564_v36 = vpop.f32.mrf.mxu3  ;;  %v2009_v4 = vadd.f32 %v16326_v28, %v1990_v3  ;;  %v2033_v45 = vadd.f32 %v2032_v56, %v2014_v40  ;;  %v16364_v56 = vld [vmem:[#allocation10 + $0x18] sm:$0xff] }
 0x50f   :  { %v2070_v46 = vpop.f32.mrf.mxu1 }
 0x510   :  { %v2581_v20 = vpop.f32.mrf.mxu0 }
 0x512   :  { %v2545_v30 = vpop.f32.mrf.mxu2 }
 0x514   :  { %v2567_v48 = vpop.f32.mrf.mxu3 }
 0x517   :  { %v2524_v21 = vpop.f32.mrf.mxu1 }
 0x518   :  { %v2525_v6 = vadd.f32 %v2524_v21, %v2505_v60 }
 0x51a   :  { %v2548_v11 = vpop.f32.mrf.mxu2  ;;  %v2544_v31 = vadd.f32 %v2543_v15, %v2525_v6  ;;  %v2583_v15 = vpop.f32.mrf.mxu0 }
 0x51c   :  { %v2569_v29 = vpop.f32.mrf.mxu3  ;;  %v2563_v25 = vadd.f32 %v2562_v53, %v2544_v31 }
 0x51f   :  { %v2526_v13 = vpop.f32.mrf.mxu1 }
 0x520   :  { %v2527_v0 = vadd.f32 %v2526_v13, %v2507_v43  ;;  %v2028_v13 = vadd.f32 %v16324_v50, %v2009_v4  ;;  %v2066_v50 = vadd.f32 %v16340_v24, %v16330_v55  ;;  %v10869_v24 = vld [vmem:[#allocation12 + $0x2c0] sm:$0xf] }
 0x522   :  { %v2550_v16 = vpop.f32.mrf.mxu2  ;;  %v2546_v42 = vadd.f32 %v2545_v30, %v2527_v0  ;;  %v2586_v31 = vpop.f32.mrf.mxu0 }
 0x524   :  { %v2565_v9 = vadd.f32 %v2564_v36, %v2546_v42  ;;  %v16371_v36 = vld [vmem:[#allocation10] sm:$0xff] }
 0x527   :  { %v2529_v63 = vpop.f32.mrf.mxu1 }
 0x528   :  { %v2530_v58 = vadd.f32 %v2529_v63, %v2510_v39  ;;  %v2638_v39 = vpop.f32.mrf.mxu3 }
 0x52a   :  { %v2549_v19 = vadd.f32 %v2548_v11, %v2530_v58  ;;  %v2619_v14 = vpop.f32.mrf.mxu2 }
 0x52c   :  { %v2568_v23 = vadd.f32 %v2567_v48, %v2549_v19  ;;  %v2071_v48 = vadd.f32 %v2070_v46, %v16338_v37  ;;  %v10885_v37 = vld [vmem:[#allocation12 + $0x2e0] sm:$0xf]  ;;  %v2085_v46 = vadd.f32 %v16334_v22, %v2066_v50 }
 0x52d   :  { %v10997_v50 = vld [vmem:[#allocation12 + $0x3c0] sm:$0xf] }
 0x52e   :  { %v2652_v12 = vmax.f32 %v2031_v8, %v2568_v23  ;;  %v2090_v60 = vadd.f32 %v16342_v27, %v2071_v48  ;;  %v2104_v22 = vadd.f32 %v16332_v2, %v2085_v46  ;;  %v10837_v2 = vld [vmem:[#allocation12 + $0x280] sm:$0xf]  ;;  %v13919_v46 = vld [vmem:[#allocation12 + $0x3ac] sm:$0xf0] }
 0x52f   :  { %v2531_v1 = vpop.f32.mrf.mxu1 }
 0x530   :  { %v2532_v35 = vadd.f32 %v2531_v1, %v2512_v47  ;;  %v2650_v1 = vmax.f32 %v2028_v13, %v2565_v9  ;;  %v2109_v3 = vadd.f32 %v16344_v17, %v2090_v60  ;;  %v13893_v13 = vld [vmem:[#allocation12 + $0x2e4] sm:$0xf]  ;;  %v13879_v60 = vld [vmem:[#allocation12 + $0x26c] sm:$0xf0] }
 0x532   :  { %v2551_v62 = vadd.f32 %v2550_v16, %v2532_v35  ;;  %v2648_v35 = vmax.f32 %v16328_v49, %v2563_v25  ;;  %v2621_v42 = vpop.f32.mrf.mxu2  ;;  %v2588_v49 = vpop.f32.mrf.mxu0 }
 0x534   :  { %v2570_v63 = vadd.f32 %v2569_v29, %v2551_v62  ;;  %v16355_v47 = vpack.c.bf16 %v2650_v1, %v2648_v35  ;;  %v16357_v62 = vld [vmem:[#allocation10 + $0x10] sm:$0xff]  ;;  %v10887_v1 = vld [vmem:[#allocation12 + $0x2f0] sm:$0xf0] }
 0x535   :  { %v10890_v35 = vor.u32 %v13893_v13, %v10887_v1  ;;  %v10893_v13 = vld [vmem:[#allocation12 + $0x2e8] sm:$0xf] }
 0x536   :  { %v2654_v58 = vmax.f32 %v2033_v45, %v2570_v63  ;;  %v2640_v45 = vpop.f32.mrf.mxu3  ;;  %v10870_v63 = vor.u32 %v13891_v38, %v10869_v24  ;;  %v13877_v24 = vld [vmem:[#allocation12 + $0x264] sm:$0xf]  ;;  %v10823_v38 = vld [vmem:[#allocation12 + $0x270] sm:$0xf0]  ;;  %v10861_v1 = vld [vmem:[#allocation12 + $0x2a8] sm:$0xf] }
 0x537   :  { %v2600_v11 = vpop.f32.mrf.mxu1 }
 0x538   :  { %v16350_v57 = vpack.c.bf16 %v2654_v58, %v2652_v12  ;;  %v2601_v28 = vadd.f32 %v2600_v11, %v2581_v20  ;;  %v13895_v20 = vld [vmem:[#allocation12 + $0x2ec] sm:$0xf0]  ;;  %v10853_v58 = vld [vmem:[#allocation12 + $0x2a0] sm:$0xf] }
 0x539   :  { %v10886_v27 = vor.u32 %v13895_v20, %v10885_v37  ;;  %v13887_v11 = vld [vmem:[#allocation12 + $0x2ac] sm:$0xf0]  ;;  %v10981_v37 = vld [vmem:[#allocation12 + $0x3a0] sm:$0xf] }
 0x53a   :  { %2686 = vmatpush.bf16.msrb.mxu0 %v16350_v57  ;;  %2813 = vmatpush.bf16.msra.mxu2 %v16350_v57  ;;  %v2624_v9 = vpop.f32.mrf.mxu2  ;;  %v2620_v21 = vadd.f32 %v2619_v14, %v2601_v28  ;;  %v13923_v28 = vld [vmem:[#allocation12 + $0x3cc] sm:$0xf0] }
 0x53b   :  { %v13875_v20 = vld [vmem:[#allocation12 + $0x24c] sm:$0xf0] }
 0x53c   :  { %v2639_v14 = vadd.f32 %v2638_v39, %v2620_v21  ;;  %v13927_v39 = vld [vmem:[#allocation12 + $0x3ec] sm:$0xf0] }
 0x53e   :  { %2687 = vmatpush.bf16.msrb.mxu0 %v16355_v47  ;;  %2814 = vmatpush.bf16.msra.mxu2 %v16355_v47  ;;  %v2643_v40 = vpop.f32.mrf.mxu3 }
 0x53f   :  { %v2602_v23 = vpop.f32.mrf.mxu1 }
 0x540   :  { %v2603_v8 = vadd.f32 %v2602_v23, %v2583_v15  ;;  %v13889_v15 = vld [vmem:[#allocation12 + $0x2c4] sm:$0xf] }
 0x541   :  { %10767 = vmatmul.msk.bf16.vlgmr.msra.gmra.mxu2 %vm688_vm1, %v16357_v62  ;;  %10755 = vmatmul.msk.bf16.vlgmr.msrb.gmra.mxu0 %vm688_vm1, %v16371_v36 }
 0x542   :  { %v2622_v53 = vadd.f32 %v2621_v42, %v2603_v8  ;;  %v2626_v30 = vpop.f32.mrf.mxu2  ;;  %3234 = vmatpush.bf16.msra.mxu0 %v10886_v27  ;;  %v10871_v42 = vld [vmem:[#allocation12 + $0x2d0] sm:$0xf0]  ;;  %3272 = vmatpush.bf16.msrb.mxu2 %v10890_v35  ;;  %v13888_v35 = vld [vmem:[#allocation12 + $0x2b4] sm:$0xf0] }
 0x544   :  { %v2641_v6 = vadd.f32 %v2640_v45, %v2622_v53  ;;  %v10854_v45 = vor.u32 %v13887_v11, %v10853_v58  ;;  %v13881_v53 = vld [vmem:[#allocation12 + $0x284] sm:$0xf]  ;;  %v13892_v58 = vld [vmem:[#allocation12 + $0x2d4] sm:$0xf0] }
 0x546   :  { %v2645_v0 = vpop.f32.mrf.mxu3  ;;  %v2651_v17 = vmax.f32 %v2104_v22, %v2641_v6  ;;  %3235 = vmatpush.bf16.msra.mxu0 %v10870_v63  ;;  %v13871_v6 = vld [vmem:[#allocation12 + $0x22c] sm:$0xf0]  ;;  %v13896_v22 = vld [vmem:[#allocation12 + $0x2f4] sm:$0xf0] }
 0x547   :  { %v2605_v4 = vpop.f32.mrf.mxu1  ;;  %v13867_v63 = vld [vmem:[#allocation12 + $0x20c] sm:$0xf0] }
 0x548   :  { %v2606_v16 = vadd.f32 %v2605_v4, %v2586_v31  ;;  %v10874_v31 = vor.u32 %v13889_v15, %v10871_v42  ;;  %v13883_v4 = vld [vmem:[#allocation12 + $0x28c] sm:$0xf0]  ;;  %v10862_v15 = vor.u32 %v13888_v35, %v10861_v1  ;;  %v13873_v42 = vld [vmem:[#allocation12 + $0x244] sm:$0xf] }
 0x54a   :  { %v2625_v26 = vadd.f32 %v2624_v9, %v2606_v16  ;;  %v11013_v9 = vld [vmem:[#allocation12 + $0x3e0] sm:$0xf]  ;;  %v10855_v16 = vld [vmem:[#allocation12 + $0x2b0] sm:$0xf0]  ;;  %3236 = vmatpush.bf16.msra.mxu0 %v10854_v45  ;;  %3273 = vmatpush.bf16.msrb.mxu2 %v10874_v31  ;;  %v10845_v45 = vld [vmem:[#allocation12 + $0x288] sm:$0xf] }
 0x54b   :  { %v11014_v48 = vor.u32 %v13927_v39, %v11013_v9  ;;  %v13884_v9 = vld [vmem:[#allocation12 + $0x294] sm:$0xf0] }
 0x54c   :  { %v2644_v29 = vadd.f32 %v2643_v40, %v2625_v26  ;;  %v13885_v40 = vld [vmem:[#allocation12 + $0x2a4] sm:$0xf]  ;;  %v13798_v26 = vld [vmem:[#allocation10 + $0x8] sm:$0xff]  ;;  %v10846_v39 = vor.u32 %v13884_v9, %v10845_v45  ;;  %v10983_v45 = vld [vmem:[#allocation12 + $0x3b0] sm:$0xf0] }
 0x54e   :  { %v2653_v25 = vmax.f32 %v16346_v7, %v2644_v29  ;;  %v2649_v7 = vmax.f32 %v16336_v51, %v2639_v14  ;;  %v10858_v51 = vor.u32 %v13885_v40, %v10855_v16  ;;  %v10805_v29 = vld [vmem:[#allocation12 + $0x240] sm:$0xf]  ;;  %v10791_v40 = vld [vmem:[#allocation12 + $0x230] sm:$0xf0]  ;;  %v10829_v16 = vld [vmem:[#allocation12 + $0x268] sm:$0xf] }
 0x54f   :  { %v2607_v59 = vpop.f32.mrf.mxu1  ;;  %v10806_v27 = vor.u32 %v13875_v20, %v10805_v29  ;;  %v11015_v20 = vld [vmem:[#allocation12 + $0x3f0] sm:$0xf0] }
 0x550   :  { %v2608_v43 = vadd.f32 %v2607_v59, %v2588_v49  ;;  %v16384_v8 = vpack.c.bf16 %v2651_v17, %v2649_v7  ;;  %v10838_v49 = vor.u32 %v13883_v4, %v10837_v2  ;;  %v10821_v59 = vld [vmem:[#allocation12 + $0x260] sm:$0xf]  ;;  %3274 = vmatpush.bf16.msrb.mxu2 %v10858_v51  ;;  %v10807_v17 = vld [vmem:[#allocation12 + $0x250] sm:$0xf0]  ;;  %v13915_v2 = vld [vmem:[#allocation12 + $0x38c] sm:$0xf0] }
 0x551   :  { %10768 = vmatmul.msk.bf16.gmra.mxu2 %vm688_vm1, %v16364_v56  ;;  %v10822_v21 = vor.u32 %v13879_v60, %v10821_v59  ;;  %10756 = vmatmul.msk.bf16.gmra.mxu0 %vm688_vm1, %v13798_v26  ;;  %v10810_v31 = vor.u32 %v13873_v42, %v10807_v17  ;;  %v10965_v7 = vld [vmem:[#allocation12 + $0x380] sm:$0xf]  ;;  %v13865_v51 = vld [vmem:[#allocation12 + $0x204] sm:$0xf]  ;;  %v10775_v60 = vld [vmem:[#allocation12 + $0x210] sm:$0xf0] }
 0x552   :  { %v2627_v55 = vadd.f32 %v2626_v30, %v2608_v43  ;;  %v10839_v43 = vld [vmem:[#allocation12 + $0x290] sm:$0xf0]  ;;  %v10998_v30 = vor.u32 %v13923_v28, %v10997_v50  ;;  %3237 = vmatpush.bf16.msra.mxu0 %v10838_v49  ;;  %v10966_v4 = vor.u32 %v13915_v2, %v10965_v7  ;;  %v13880_v50 = vld [vmem:[#allocation12 + $0x274] sm:$0xf0]  ;;  %v10949_v28 = vld [vmem:[#allocation12 + $0x360] sm:$0xf] }
 0x553   :  { %v10830_v49 = vor.u32 %v13880_v50, %v10829_v16  ;;  %v13899_v42 = vld [vmem:[#allocation12 + $0x30c] sm:$0xf0]  ;;  %v13917_v17 = vld [vmem:[#allocation12 + $0x3a4] sm:$0xf]  ;;  %v11021_v7 = vld [vmem:[#allocation12 + $0x3e8] sm:$0xf] }
 0x554   :  { %v2646_v19 = vadd.f32 %v2645_v0, %v2627_v55  ;;  %v10842_v55 = vor.u32 %v13881_v53, %v10839_v43  ;;  %v10982_v0 = vor.u32 %v13919_v46, %v10981_v37  ;;  %v10813_v53 = vld [vmem:[#allocation12 + $0x248] sm:$0xf]  ;;  %v10778_v43 = vor.u32 %v13865_v51, %v10775_v60  ;;  %v10933_v46 = vld [vmem:[#allocation12 + $0x340] sm:$0xf]  ;;  %v13928_v2 = vld [vmem:[#allocation12 + $0x3f4] sm:$0xf0] }
 0x555   :  { %v10986_v9 = vor.u32 %v13917_v17, %v10983_v45  ;;  %v13913_v16 = vld [vmem:[#allocation12 + $0x384] sm:$0xf]  ;;  %v11005_v50 = vld [vmem:[#allocation12 + $0x3c8] sm:$0xf]  ;;  %v10903_v45 = vld [vmem:[#allocation12 + $0x310] sm:$0xf0] }
 0x556   :  { %v2655_v12 = vmax.f32 %v2109_v3, %v2646_v19  ;;  %3238 = vmatpush.bf16.msra.mxu0 %v10822_v21  ;;  %3275 = vmatpush.bf16.msrb.mxu2 %v10842_v55  ;;  %v10826_v3 = vor.u32 %v13877_v24, %v10823_v38  ;;  %v10773_v19 = vld [vmem:[#allocation12 + $0x200] sm:$0xf]  ;;  %v13907_v21 = vld [vmem:[#allocation12 + $0x34c] sm:$0xf0]  ;;  %v13925_v55 = vld [vmem:[#allocation12 + $0x3e4] sm:$0xf] }
 0x557   :  { %v10774_v14 = vor.u32 %v13867_v63, %v10773_v19  ;;  %v10934_v29 = vor.u32 %v13907_v21, %v10933_v46  ;;  %v10797_v24 = vld [vmem:[#allocation12 + $0x228] sm:$0xf]  ;;  %v11018_v38 = vor.u32 %v13925_v55, %v11015_v20  ;;  %v13903_v19 = vld [vmem:[#allocation12 + $0x32c] sm:$0xf0]  ;;  %v13920_v46 = vld [vmem:[#allocation12 + $0x3b4] sm:$0xf0] }
 0x558   :  { %v16379_v23 = vpack.c.bf16 %v2655_v12, %v2653_v25  ;;  %v10894_v25 = vor.u32 %v13896_v22, %v10893_v13  ;;  %v10877_v12 = vld [vmem:[#allocation12 + $0x2c8] sm:$0xf]  ;;  %v13921_v13 = vld [vmem:[#allocation12 + $0x3c4] sm:$0xf]  ;;  %v10999_v22 = vld [vmem:[#allocation12 + $0x3d0] sm:$0xf0] }
 0x559   :  { %v10878_v11 = vor.u32 %v13892_v58, %v10877_v12  ;;  %v13868_v12 = vld [vmem:[#allocation12 + $0x214] sm:$0xf0]  ;;  %v13890_v58 = vld [vmem:[#allocation12 + $0x2cc] sm:$0xf]  ;;  %v13897_v17 = vld [vmem:[#allocation12 + $0x304] sm:$0xf] }
 0x55a   :  { %2705 = vmatpush.bf16.msra.mxu1 %v16379_v23  ;;  %2832 = vmatpush.bf16.msra.mxu3 %v16379_v23  ;;  %v13878_v21 = vld [vmem:[#allocation12 + $0x26c] sm:$0xf] }
 0x55b   :  { %3239 = vmatpush.bf16.msra.mxu0 %v10806_v27  ;;  %3276 = vmatpush.bf16.msrb.mxu2 %v10826_v3  ;;  %v13894_v27 = vld [vmem:[#allocation12 + $0x2ec] sm:$0xf]  ;;  %v10895_v3 = vld [vmem:[#allocation12 + $0x2f8] sm:$0xf0] }
 0x55e   :  { %2706 = vmatpush.bf16.msra.mxu1 %v16384_v8  ;;  %2833 = vmatpush.bf16.msra.mxu3 %v16384_v8 }
 0x55f   :  { %3277 = vmatpush.bf16.msrb.mxu2 %v10810_v31 }
 0x561   :  { %10769 = vmatmul.msk.bf16.vlgmr.msra.gmra.mxu3 %vm688_vm1, %v16357_v62  ;;  %10757 = vmatmul.msk.bf16.vlgmr.msra.gmra.mxu1 %vm688_vm1, %v16371_v36  ;;  %v10789_v62 = vld [vmem:[#allocation12 + $0x220] sm:$0xf] }
 0x562   :  { %3253 = vmatpush.bf16.msrb.mxu1 %v11014_v48  ;;  %v10790_v36 = vor.u32 %v13871_v6, %v10789_v62  ;;  %v10898_v6 = vor.u32 %v13894_v27, %v10895_v3  ;;  %3291 = vmatpush.bf16.msrb.mxu3 %v11018_v38  ;;  %v10935_v38 = vld [vmem:[#allocation12 + $0x350] sm:$0xf0] }
 0x564   :  { %3240 = vmatpush.bf16.msra.mxu0 %v10790_v36  ;;  %v10917_v36 = vld [vmem:[#allocation12 + $0x320] sm:$0xf] }
 0x565   :  { %v10918_v63 = vor.u32 %v13903_v19, %v10917_v36  ;;  %v10815_v36 = vld [vmem:[#allocation12 + $0x258] sm:$0xf0] }
 0x566   :  { %3254 = vmatpush.bf16.msrb.mxu1 %v10998_v30  ;;  %v13876_v30 = vld [vmem:[#allocation12 + $0x254] sm:$0xf0] }
 0x567   :  { %v10814_v37 = vor.u32 %v13876_v30, %v10813_v53  ;;  %v13909_v53 = vld [vmem:[#allocation12 + $0x364] sm:$0xf]  ;;  %v10989_v30 = vld [vmem:[#allocation12 + $0x3a8] sm:$0xf] }
 0x568   :  { %3241 = vmatpush.bf16.msra.mxu0 %v10774_v14  ;;  %v10781_v14 = vld [vmem:[#allocation12 + $0x208] sm:$0xf]  ;;  %v10990_v55 = vor.u32 %v13920_v46, %v10989_v30  ;;  %v11143_v30 = vld [vmem:[#allocation12 + $0xf0] sm:$0xf0]  ;;  %v13821_v46 = vld [vmem:[#allocation12 + $0xac] sm:$0xf0] }
 0x569   :  { %v10782_v1 = vor.u32 %v13868_v12, %v10781_v14  ;;  %v10957_v14 = vld [vmem:[#allocation12 + $0x368] sm:$0xf] }
 0x56a   :  { %3255 = vmatpush.bf16.msrb.mxu1 %v10982_v0  ;;  %v13872_v0 = vld [vmem:[#allocation12 + $0x234] sm:$0xf0] }
 0x56b   :  { %v10798_v62 = vor.u32 %v13872_v0, %v10797_v24  ;;  %v13905_v24 = vld [vmem:[#allocation12 + $0x344] sm:$0xf]  ;;  %v10973_v0 = vld [vmem:[#allocation12 + $0x388] sm:$0xf] }
 0x56c   :  { %3310 = vmatpush.bf16.msrb.mxu0 %v10894_v25  ;;  %v11002_v25 = vor.u32 %v13921_v13, %v10999_v22  ;;  %v10938_v3 = vor.u32 %v13905_v24, %v10935_v38  ;;  %v13901_v13 = vld [vmem:[#allocation12 + $0x324] sm:$0xf]  ;;  %v10919_v22 = vld [vmem:[#allocation12 + $0x330] sm:$0xf0]  ;;  %v13922_v24 = vld [vmem:[#allocation12 + $0x3cc] sm:$0xf] }
 0x56d   :  { %v10922_v12 = vor.u32 %v13901_v13, %v10919_v22  ;;  %v13918_v22 = vld [vmem:[#allocation12 + $0x3ac] sm:$0xf] }
 0x56e   :  { %3256 = vmatpush.bf16.msrb.mxu1 %v10966_v4  ;;  %3292 = vmatpush.bf16.msrb.mxu3 %v11002_v25  ;;  %v11022_v4 = vor.u32 %v13928_v2, %v11021_v7  ;;  %v13912_v25 = vld [vmem:[#allocation12 + $0x374] sm:$0xf0]  ;;  %v10906_v2 = vor.u32 %v13897_v17, %v10903_v45  ;;  %v10975_v17 = vld [vmem:[#allocation12 + $0x398] sm:$0xf0]  ;;  %v13815_v45 = vld [vmem:[#allocation12 + $0x84] sm:$0xf] }
 0x570   :  { %3311 = vmatpush.bf16.msrb.mxu0 %v10878_v11  ;;  %v10879_v11 = vld [vmem:[#allocation12 + $0x2d8] sm:$0xf0] }
 0x571   :  { %10770 = vmatmul.msk.bf16.gmra.mxu3 %vm688_vm1, %v16364_v56  ;;  %10758 = vmatmul.msk.bf16.gmra.mxu1 %vm688_vm1, %v13798_v26  ;;  %v13869_v56 = vld [vmem:[#allocation12 + $0x224] sm:$0xf]  ;;  %v13911_v26 = vld [vmem:[#allocation12 + $0x36c] sm:$0xf0]  ;;  %v10882_v35 = vor.u32 %v13890_v58, %v10879_v11  ;;  %v10958_v58 = vor.u32 %v13912_v25, %v10957_v14  ;;  %v13870_v11 = vld [vmem:[#allocation12 + $0x22c] sm:$0xf] }
 0x572   :  { %v10794_v48 = vor.u32 %v13869_v56, %v10791_v40  ;;  %v10950_v59 = vor.u32 %v13911_v26, %v10949_v28  ;;  %v10863_v56 = vld [vmem:[#allocation12 + $0x2b8] sm:$0xf0]  ;;  %3293 = vmatpush.bf16.msrb.mxu3 %v10986_v9  ;;  %v13924_v26 = vld [vmem:[#allocation12 + $0x3d4] sm:$0xf0] }
 0x573   :  { %v11006_v51 = vor.u32 %v13924_v26, %v11005_v50  ;;  %v10925_v26 = vld [vmem:[#allocation12 + $0x328] sm:$0xf]  ;;  %v10991_v14 = vld [vmem:[#allocation12 + $0x3b8] sm:$0xf0] }
 0x574   :  { %3312 = vmatpush.bf16.msrb.mxu0 %v10862_v15  ;;  %3278 = vmatpush.bf16.msrb.mxu2 %v10794_v48  ;;  %v10901_v15 = vld [vmem:[#allocation12 + $0x300] sm:$0xf]  ;;  %v10967_v48 = vld [vmem:[#allocation12 + $0x390] sm:$0xf0]  ;;  %v10994_v25 = vor.u32 %v13918_v22, %v10991_v14  ;;  %v13861_v14 = vld [vmem:[#allocation12 + $0x1ec] sm:$0xf0] }
 0x575   :  { %3257 = vmatpush.bf16.msrb.mxu1 %v10950_v59  ;;  %v10902_v31 = vor.u32 %v13899_v42, %v10901_v15  ;;  %v10970_v28 = vor.u32 %v13913_v16, %v10967_v48  ;;  %v10847_v59 = vld [vmem:[#allocation12 + $0x298] sm:$0xf0]  ;;  %v11141_v15 = vld [vmem:[#allocation12 + $0xe0] sm:$0xf]  ;;  %v13829_v42 = vld [vmem:[#allocation12 + $0xec] sm:$0xf0] }
 0x576   :  { %v11142_v7 = vor.u32 %v13829_v42, %v11141_v15  ;;  %v11125_v16 = vld [vmem:[#allocation12 + $0xc0] sm:$0xf]  ;;  %v13825_v48 = vld [vmem:[#allocation12 + $0xcc] sm:$0xf0]  ;;  %v13914_v42 = vld [vmem:[#allocation12 + $0x38c] sm:$0xf] }
 0x577   :  { %3294 = vmatpush.bf16.msrb.mxu3 %v10970_v28  ;;  %v13813_v15 = vld [vmem:[#allocation12 + $0x6c] sm:$0xf0]  ;;  %v11269_v22 = vld [vmem:[#allocation12 + $0x1e0] sm:$0xf] }
 0x578   :  { %3313 = vmatpush.bf16.msrb.mxu0 %v10846_v39  ;;  %3279 = vmatpush.bf16.msrb.mxu2 %v10778_v43  ;;  %v13886_v39 = vld [vmem:[#allocation12 + $0x2ac] sm:$0xf]  ;;  %v10951_v43 = vld [vmem:[#allocation12 + $0x370] sm:$0xf0] }
 0x579   :  { %3258 = vmatpush.bf16.msrb.mxu1 %v10934_v29  ;;  %v10866_v40 = vor.u32 %v13886_v39, %v10863_v56  ;;  %v10831_v29 = vld [vmem:[#allocation12 + $0x278] sm:$0xf0]  ;;  %v13908_v39 = vld [vmem:[#allocation12 + $0x354] sm:$0xf0] }
 0x57a   :  { %v10834_v20 = vor.u32 %v13878_v21, %v10831_v29  ;;  %v10783_v56 = vld [vmem:[#allocation12 + $0x218] sm:$0xf0] }
 0x57c   :  { %3314 = vmatpush.bf16.msrb.mxu0 %v10830_v49  ;;  %3348 = vmatpush.bf16.msra.mxu2 %v10898_v6  ;;  %v13882_v49 = vld [vmem:[#allocation12 + $0x28c] sm:$0xf] }
 0x57d   :  { %3259 = vmatpush.bf16.msrb.mxu1 %v10918_v63  ;;  %v10850_v60 = vor.u32 %v13882_v49, %v10847_v59  ;;  %v13874_v6 = vld [vmem:[#allocation12 + $0x24c] sm:$0xf]  ;;  %v13904_v49 = vld [vmem:[#allocation12 + $0x334] sm:$0xf0] }
 0x57e   :  { %v10818_v63 = vor.u32 %v13874_v6, %v10815_v36  ;;  %v13926_v59 = vld [vmem:[#allocation12 + $0x3ec] sm:$0xf]  ;;  %v11127_v6 = vld [vmem:[#allocation12 + $0xd0] sm:$0xf0]  ;;  %v11093_v36 = vld [vmem:[#allocation12 + $0x80] sm:$0xf] }
 0x580   :  { %3315 = vmatpush.bf16.msrb.mxu0 %v10814_v37  ;;  %3349 = vmatpush.bf16.msra.mxu2 %v10882_v35  ;;  %v10954_v37 = vor.u32 %v13909_v53, %v10951_v43  ;;  %v11023_v53 = vld [vmem:[#allocation12 + $0x3f8] sm:$0xf0]  ;;  %v13827_v43 = vld [vmem:[#allocation12 + $0xe4] sm:$0xf] }
 0x581   :  { %3260 = vmatpush.bf16.msrb.mxu1 %v10902_v31  ;;  %v10941_v31 = vld [vmem:[#allocation12 + $0x348] sm:$0xf]  ;;  %v11026_v21 = vor.u32 %v13926_v59, %v11023_v53  ;;  %v11146_v29 = vor.u32 %v13827_v43, %v11143_v30  ;;  %v11079_v59 = vld [vmem:[#allocation12 + $0x70] sm:$0xf0]  ;;  %v13906_v43 = vld [vmem:[#allocation12 + $0x34c] sm:$0xf] }
 0x582   :  { %3295 = vmatpush.bf16.msrb.mxu3 %v10954_v37  ;;  %v10942_v50 = vor.u32 %v13908_v39, %v10941_v31  ;;  %v11109_v37 = vld [vmem:[#allocation12 + $0xa0] sm:$0xf]  ;;  %v10943_v30 = vld [vmem:[#allocation12 + $0x358] sm:$0xf0] }
 0x584   :  { %3316 = vmatpush.bf16.msrb.mxu0 %v10798_v62  ;;  %3350 = vmatpush.bf16.msra.mxu2 %v10866_v40  ;;  %v13916_v62 = vld [vmem:[#allocation12 + $0x394] sm:$0xf0] }
 0x585   :  { %3329 = vmatpush.bf16.msra.mxu1 %v11022_v4  ;;  %v10974_v19 = vor.u32 %v13916_v62, %v10973_v0  ;;  %v13866_v4 = vld [vmem:[#allocation12 + $0x20c] sm:$0xf]  ;;  %v11110_v0 = vor.u32 %v13821_v46, %v11109_v37  ;;  %v13823_v62 = vld [vmem:[#allocation12 + $0xc4] sm:$0xf]  ;;  %v11063_v46 = vld [vmem:[#allocation12 + $0x50] sm:$0xf0] }
 0x586   :  { %3296 = vmatpush.bf16.msrb.mxu3 %v10938_v3  ;;  %v10786_v28 = vor.u32 %v13866_v4, %v10783_v56  ;;  %v11007_v3 = vld [vmem:[#allocation12 + $0x3d8] sm:$0xf0]  ;;  %v11130_v13 = vor.u32 %v13823_v62, %v11127_v6  ;;  %v11061_v4 = vld [vmem:[#allocation12 + $0x40] sm:$0xf]  ;;  %v13809_v56 = vld [vmem:[#allocation12 + $0x4c] sm:$0xf0] }
 0x587   :  { %v13807_v37 = vld [vmem:[#allocation12 + $0x44] sm:$0xf]  ;;  %v11047_v62 = vld [vmem:[#allocation12 + $0x30] sm:$0xf0] }
 0x588   :  { %3317 = vmatpush.bf16.msrb.mxu0 %v10782_v1  ;;  %3351 = vmatpush.bf16.msra.mxu2 %v10850_v60  ;;  %v10799_v1 = vld [vmem:[#allocation12 + $0x238] sm:$0xf0]  ;;  %v10926_v60 = vor.u32 %v13904_v49, %v10925_v26  ;;  %v11062_v26 = vor.u32 %v13809_v56, %v11061_v4  ;;  %v13859_v4 = vld [vmem:[#allocation12 + $0x1e4] sm:$0xf]  ;;  %v11271_v56 = vld [vmem:[#allocation12 + $0x1f0] sm:$0xf0] }
 0x589   :  { %3330 = vmatpush.bf16.msra.mxu1 %v11006_v51  ;;  %v10802_v35 = vor.u32 %v13870_v11, %v10799_v1  ;;  %v11126_v51 = vor.u32 %v13825_v48, %v11125_v16  ;;  %v13910_v48 = vld [vmem:[#allocation12 + $0x36c] sm:$0xf] }
 0x58a   :  { %3297 = vmatpush.bf16.msrb.mxu3 %v10922_v12  ;;  %v13819_v12 = vld [vmem:[#allocation12 + $0xa4] sm:$0xf] }
 0x58c   :  { %3352 = vmatpush.bf16.msra.mxu2 %v10834_v20  ;;  %v13900_v20 = vld [vmem:[#allocation12 + $0x314] sm:$0xf0] }
 0x58d   :  { %3331 = vmatpush.bf16.msra.mxu1 %v10990_v55  ;;  %v10909_v55 = vld [vmem:[#allocation12 + $0x308] sm:$0xf] }
 0x58e   :  { %3298 = vmatpush.bf16.msrb.mxu3 %v10906_v2  ;;  %v11095_v2 = vld [vmem:[#allocation12 + $0x90] sm:$0xf0] }
 0x58f   :  { %v11098_v16 = vor.u32 %v13815_v45, %v11095_v2  ;;  %v13826_v45 = vld [vmem:[#allocation12 + $0xd4] sm:$0xf0] }
 0x590   :  { %3353 = vmatpush.bf16.msra.mxu2 %v10818_v63  ;;  %v11010_v63 = vor.u32 %v13922_v24, %v11007_v3  ;;  %v13801_v24 = vld [vmem:[#allocation12 + $0xc] sm:$0xf0]  ;;  %v13803_v3 = vld [vmem:[#allocation12 + $0x24] sm:$0xf] }
 0x591   :  { %3332 = vmatpush.bf16.msra.mxu1 %v10974_v19  ;;  %v13817_v19 = vld [vmem:[#allocation12 + $0x8c] sm:$0xf0] }
 0x592   :  { %3367 = vmatpush.bf16.msra.mxu3 %v11026_v21  ;;  %v11094_v11 = vor.u32 %v13817_v19, %v11093_v36  ;;  %v11149_v19 = vld [vmem:[#allocation12 + $0xe8] sm:$0xf] }
 0x594   :  { %3354 = vmatpush.bf16.msra.mxu2 %v10802_v35  ;;  %v11077_v35 = vld [vmem:[#allocation12 + $0x60] sm:$0xf] }
 0x595   :  { %3333 = vmatpush.bf16.msra.mxu1 %v10958_v58  ;;  %v11111_v58 = vld [vmem:[#allocation12 + $0xb0] sm:$0xf0] }
 0x596   :  { %3368 = vmatpush.bf16.msra.mxu3 %v11010_v63  ;;  %v11114_v1 = vor.u32 %v13819_v12, %v11111_v58  ;;  %v13830_v63 = vld [vmem:[#allocation12 + $0xf4] sm:$0xf0]  ;;  %v10911_v12 = vld [vmem:[#allocation12 + $0x318] sm:$0xf0]  ;;  %v13799_v58 = vld [vmem:[#allocation12 + $0x4] sm:$0xf] }
 0x598   :  { %3355 = vmatpush.bf16.msra.mxu2 %v10786_v28  ;;  %v13811_v28 = vld [vmem:[#allocation12 + $0x64] sm:$0xf] }
 0x599   :  { %3334 = vmatpush.bf16.msra.mxu1 %v10942_v50  ;;  %v10959_v50 = vld [vmem:[#allocation12 + $0x378] sm:$0xf0]  ;;  %v11082_v53 = vor.u32 %v13811_v28, %v11079_v59 }
 0x59a   :  { %3369 = vmatpush.bf16.msra.mxu3 %v10994_v25  ;;  %v10962_v49 = vor.u32 %v13910_v48, %v10959_v50  ;;  %v13898_v25 = vld [vmem:[#allocation12 + $0x30c] sm:$0xf]  ;;  %v11274_v48 = vor.u32 %v13859_v4, %v11271_v56  ;;  %v11151_v50 = vld [vmem:[#allocation12 + $0xf8] sm:$0xf0]  ;;  %v13810_v4 = vld [vmem:[#allocation12 + $0x54] sm:$0xf0] }
 0x59b   :  { %v11189_v56 = vld [vmem:[#allocation12 + $0x140] sm:$0xf] }
 0x59d   :  { %3335 = vmatpush.bf16.msra.mxu1 %v10926_v60  ;;  %v13805_v60 = vld [vmem:[#allocation12 + $0x2c] sm:$0xf0] }
 0x5c4   :  { %v2816_v27 = vpop.f32.mrf.mxu2 }
 0x5cc   :  { %v2818_v9 = vpop.f32.mrf.mxu2 }
 0x5cd   :  { %v16396_v40 = vpack.c.bf16 %v2818_v9, %v2816_v27  ;;  %v10910_v27 = vor.u32 %v13900_v20, %v10909_v55  ;;  %v11078_v9 = vor.u32 %v13813_v15, %v11077_v35  ;;  %v11029_v55 = vld [vmem:[#allocation12] sm:$0xf]  ;;  %v10946_v20 = vor.u32 %v13906_v43, %v10943_v30  ;;  %v13855_v43 = vld [vmem:[#allocation12 + $0x1c4] sm:$0xf]  ;;  %v11255_v30 = vld [vmem:[#allocation12 + $0x1d0] sm:$0xf0] }
 0x5ce   :  { %v11030_v6 = vor.u32 %v13801_v24, %v11029_v55  ;;  %v11150_v15 = vor.u32 %v13830_v63, %v11149_v19  ;;  %v11135_v55 = vld [vmem:[#allocation12 + $0xd8] sm:$0xf0] }
 0x5cf   :  { %3242 = vmatmul.bf16.vlgmr.msra.gmra.mxu0 %v16396_v40  ;;  %3280 = vmatmul.bf16.vlgmr.msrb.gmra.mxu2 %v16396_v40 }
 0x5d0   :  { %3706 = vmatpush.bf16.msra.mxu0 %v11142_v7  ;;  %3744 = vmatpush.bf16.msrb.mxu2 %v11146_v29  ;;  %v10978_v7 = vor.u32 %v13914_v42, %v10975_v17  ;;  %v11270_v42 = vor.u32 %v13861_v14, %v11269_v22  ;;  %v11133_v17 = vld [vmem:[#allocation12 + $0xc8] sm:$0xf] }
 0x5d1   :  { %3336 = vmatpush.bf16.msra.mxu1 %v10910_v27  ;;  %v10927_v27 = vld [vmem:[#allocation12 + $0x338] sm:$0xf0]  ;;  %v11134_v28 = vor.u32 %v13826_v45, %v11133_v17  ;;  %v11085_v14 = vld [vmem:[#allocation12 + $0x68] sm:$0xf] }
 0x5d2   :  { %3370 = vmatpush.bf16.msra.mxu3 %v10978_v7  ;;  %v10914_v7 = vor.u32 %v13898_v25, %v10911_v12  ;;  %v13814_v25 = vld [vmem:[#allocation12 + $0x74] sm:$0xf0]  ;;  %v11205_v12 = vld [vmem:[#allocation12 + $0x160] sm:$0xf]  ;;  %v11103_v17 = vld [vmem:[#allocation12 + $0x98] sm:$0xf0] }
 0x5d4   :  { %v2821_v38 = vpop.f32.mrf.mxu2  ;;  %3707 = vmatpush.bf16.msra.mxu0 %v11126_v51  ;;  %3745 = vmatpush.bf16.msrb.mxu2 %v11130_v13  ;;  %v11045_v51 = vld [vmem:[#allocation12 + $0x20] sm:$0xf]  ;;  %v11050_v13 = vor.u32 %v13803_v3, %v11047_v62  ;;  %v13851_v3 = vld [vmem:[#allocation12 + $0x1a4] sm:$0xf]  ;;  %v11239_v62 = vld [vmem:[#allocation12 + $0x1b0] sm:$0xf0] }
 0x5d5   :  { %v11046_v29 = vor.u32 %v13805_v60, %v11045_v51  ;;  %v13822_v51 = vld [vmem:[#allocation12 + $0xb4] sm:$0xf0]  ;;  %v11237_v60 = vld [vmem:[#allocation12 + $0x1a0] sm:$0xf]  ;;  %v11242_v19 = vor.u32 %v13851_v3, %v11239_v62  ;;  %v13833_v62 = vld [vmem:[#allocation12 + $0x10c] sm:$0xf0] }
 0x5d6   :  { %3371 = vmatpush.bf16.msra.mxu3 %v10962_v49  ;;  %v11117_v49 = vld [vmem:[#allocation12 + $0xa8] sm:$0xf]  ;;  %v11157_v3 = vld [vmem:[#allocation12 + $0x100] sm:$0xf] }
 0x5d8   :  { %3708 = vmatpush.bf16.msra.mxu0 %v11110_v0  ;;  %3746 = vmatpush.bf16.msrb.mxu2 %v11114_v1  ;;  %v13902_v0 = vld [vmem:[#allocation12 + $0x32c] sm:$0xf] }
 0x5d9   :  { %v10930_v36 = vor.u32 %v13902_v0, %v10927_v27  ;;  %v13849_v0 = vld [vmem:[#allocation12 + $0x18c] sm:$0xf0] }
 0x5da   :  { %3372 = vmatpush.bf16.msra.mxu3 %v10946_v20  ;;  %v11118_v20 = vor.u32 %v13822_v51, %v11117_v49  ;;  %v13812_v49 = vld [vmem:[#allocation12 + $0x6c] sm:$0xf] }
 0x5dc   :  { %v2823_v31 = vpop.f32.mrf.mxu2  ;;  %3709 = vmatpush.bf16.msra.mxu0 %v11094_v11  ;;  %3747 = vmatpush.bf16.msrb.mxu2 %v11098_v16  ;;  %v11031_v11 = vld [vmem:[#allocation12 + $0x10] sm:$0xf0]  ;;  %v13828_v16 = vld [vmem:[#allocation12 + $0xec] sm:$0xf] }
 0x5dd   :  { %v16400_v39 = vpack.c.bf16 %v2823_v31, %v2821_v38  ;;  %v11066_v38 = vor.u32 %v13807_v37, %v11063_v46  ;;  %v11253_v31 = vld [vmem:[#allocation12 + $0x1c0] sm:$0xf]  ;;  %v11034_v2 = vor.u32 %v13799_v58, %v11031_v11  ;;  %v11154_v59 = vor.u32 %v13828_v16, %v11151_v50  ;;  %v13824_v37 = vld [vmem:[#allocation12 + $0xcc] sm:$0xf]  ;;  %v13845_v58 = vld [vmem:[#allocation12 + $0x16c] sm:$0xf0] }
 0x5de   :  { %3373 = vmatpush.bf16.msra.mxu3 %v10930_v36  ;;  %v11138_v27 = vor.u32 %v13824_v37, %v11135_v55  ;;  %v11119_v36 = vld [vmem:[#allocation12 + $0xb8] sm:$0xf0]  ;;  %v13847_v11 = vld [vmem:[#allocation12 + $0x184] sm:$0xf]  ;;  %v13841_v16 = vld [vmem:[#allocation12 + $0x14c] sm:$0xf0] }
 0x5df   :  { %3247 = vmatmul.bf16.gmra.mxu0 %v16400_v39  ;;  %3285 = vmatmul.bf16.gmra.mxu2 %v16400_v39  ;;  %v13837_v37 = vld [vmem:[#allocation12 + $0x12c] sm:$0xf0]  ;;  %v13808_v55 = vld [vmem:[#allocation12 + $0x4c] sm:$0xf] }
 0x5e0   :  { %3710 = vmatpush.bf16.msra.mxu0 %v11078_v9  ;;  %3748 = vmatpush.bf16.msrb.mxu2 %v11082_v53  ;;  %v13857_v9 = vld [vmem:[#allocation12 + $0x1cc] sm:$0xf0] }
 0x5e1   :  { %v13853_v53 = vld [vmem:[#allocation12 + $0x1ac] sm:$0xf0] }
 0x5e2   :  { %3374 = vmatpush.bf16.msra.mxu3 %v10914_v7  ;;  %v11238_v24 = vor.u32 %v13853_v53, %v11237_v60  ;;  %v11206_v7 = vor.u32 %v13845_v58, %v11205_v12  ;;  %v11190_v60 = vor.u32 %v13841_v16, %v11189_v56  ;;  %v11053_v53 = vld [vmem:[#allocation12 + $0x28] sm:$0xf]  ;;  %v13862_v58 = vld [vmem:[#allocation12 + $0x1f4] sm:$0xf0] }
 0x5e3   :  { %v11277_v12 = vld [vmem:[#allocation12 + $0x1e8] sm:$0xf]  ;;  %v13858_v56 = vld [vmem:[#allocation12 + $0x1d4] sm:$0xf0] }
 0x5e4   :  { %v2835_v21 = vpop.f32.mrf.mxu3  ;;  %3711 = vmatpush.bf16.msra.mxu0 %v11062_v26  ;;  %3749 = vmatpush.bf16.msrb.mxu2 %v11066_v38  ;;  %v11254_v26 = vor.u32 %v13857_v9, %v11253_v31  ;;  %v11221_v38 = vld [vmem:[#allocation12 + $0x180] sm:$0xf]  ;;  %v11086_v9 = vor.u32 %v13814_v25, %v11085_v14  ;;  %v11158_v25 = vor.u32 %v13833_v62, %v11157_v3  ;;  %v11197_v3 = vld [vmem:[#allocation12 + $0x148] sm:$0xf]  ;;  %v13842_v62 = vld [vmem:[#allocation12 + $0x154] sm:$0xf0] }
 0x5e5   :  { %v11222_v22 = vor.u32 %v13849_v0, %v11221_v38  ;;  %v11037_v0 = vld [vmem:[#allocation12 + $0x8] sm:$0xf] }
 0x5e8   :  { %3712 = vmatpush.bf16.msra.mxu0 %v11046_v29  ;;  %3750 = vmatpush.bf16.msrb.mxu2 %v11050_v13  ;;  %v11258_v29 = vor.u32 %v13855_v43, %v11255_v30  ;;  %v13806_v43 = vld [vmem:[#allocation12 + $0x34] sm:$0xf0]  ;;  %v11173_v30 = vld [vmem:[#allocation12 + $0x120] sm:$0xf] }
 0x5e9   :  { %v11174_v38 = vor.u32 %v13837_v37, %v11173_v30  ;;  %v13852_v30 = vld [vmem:[#allocation12 + $0x1ac] sm:$0xf]  ;;  %v11247_v37 = vld [vmem:[#allocation12 + $0x1b8] sm:$0xf0] }
 0x5ec   :  { %v2837_v1 = vpop.f32.mrf.mxu3  ;;  %3713 = vmatpush.bf16.msra.mxu0 %v11030_v6  ;;  %3751 = vmatpush.bf16.msrb.mxu2 %v11034_v2  ;;  %v13820_v6 = vld [vmem:[#allocation12 + $0xac] sm:$0xf]  ;;  %v11069_v2 = vld [vmem:[#allocation12 + $0x48] sm:$0xf] }
 0x5ed   :  { %v16404_v35 = vpack.c.bf16 %v2837_v1, %v2835_v21  ;;  %v13818_v21 = vld [vmem:[#allocation12 + $0x94] sm:$0xf0]  ;;  %v11122_v63 = vor.u32 %v13820_v6, %v11119_v36  ;;  %v16410_v1 = vpop.f32.mrf.mxu0  ;;  %v11070_v51 = vor.u32 %v13810_v4, %v11069_v2  ;;  %v11278_v2 = vor.u32 %v13862_v58, %v11277_v12  ;;  %v11261_v4 = vld [vmem:[#allocation12 + $0x1c8] sm:$0xf] }
 0x5ee   :  { %v11165_v58 = vld [vmem:[#allocation12 + $0x108] sm:$0xf] }
 0x5ef   :  { %3261 = vmatmul.bf16.vlgmr.msrb.gmra.mxu1 %v16404_v35  ;;  %3299 = vmatmul.bf16.vlgmr.msrb.gmra.mxu3 %v16404_v35 }
 0x5f0   :  { %3318 = vmatmul.bf16.vlgmr.msrb.gmra.mxu0 %v16396_v40  ;;  %3356 = vmatmul.bf16.vlgmr.msra.gmra.mxu2 %v16396_v40  ;;  %v11101_v40 = vld [vmem:[#allocation12 + $0x88] sm:$0xf] }
 0x5f1   :  { %3782 = vmatpush.bf16.msrb.mxu0 %v11150_v15  ;;  %3725 = vmatpush.bf16.msrb.mxu1 %v11270_v42  ;;  %v11102_v13 = vor.u32 %v13818_v21, %v11101_v40  ;;  %v11223_v15 = vld [vmem:[#allocation12 + $0x190] sm:$0xf0]  ;;  %v13816_v42 = vld [vmem:[#allocation12 + $0x8c] sm:$0xf]  ;;  %v13839_v21 = vld [vmem:[#allocation12 + $0x144] sm:$0xf] }
 0x5f2   :  { %3763 = vmatpush.bf16.msrb.mxu3 %v11274_v48  ;;  %3820 = vmatpush.bf16.msra.mxu2 %v11154_v59  ;;  %v11226_v48 = vor.u32 %v13847_v11, %v11223_v15  ;;  %v11106_v50 = vor.u32 %v13816_v42, %v11103_v17  ;;  %v11087_v59 = vld [vmem:[#allocation12 + $0x78] sm:$0xf0]  ;;  %v13831_v42 = vld [vmem:[#allocation12 + $0x104] sm:$0xf]  ;;  %v11159_v17 = vld [vmem:[#allocation12 + $0x110] sm:$0xf0] }
 0x5f3   :  { %v11090_v40 = vor.u32 %v13812_v49, %v11087_v59  ;;  %v11162_v16 = vor.u32 %v13831_v42, %v11159_v17  ;;  %v11262_v49 = vor.u32 %v13858_v56, %v11261_v4  ;;  %v11245_v59 = vld [vmem:[#allocation12 + $0x1a8] sm:$0xf]  ;;  %v13834_v42 = vld [vmem:[#allocation12 + $0x114] sm:$0xf0]  ;;  %v11183_v17 = vld [vmem:[#allocation12 + $0x138] sm:$0xf0] }
 0x5f4   :  { %v2840_v46 = vpop.f32.mrf.mxu3  ;;  %v11167_v4 = vld [vmem:[#allocation12 + $0x118] sm:$0xf0] }
 0x5f5   :  { %3783 = vmatpush.bf16.msrb.mxu0 %v11134_v28  ;;  %3726 = vmatpush.bf16.msrb.mxu1 %v11254_v26  ;;  %v13843_v28 = vld [vmem:[#allocation12 + $0x164] sm:$0xf]  ;;  %v11207_v26 = vld [vmem:[#allocation12 + $0x170] sm:$0xf0] }
 0x5f6   :  { %3764 = vmatpush.bf16.msrb.mxu3 %v11258_v29  ;;  %3821 = vmatpush.bf16.msra.mxu2 %v11138_v27  ;;  %v11191_v29 = vld [vmem:[#allocation12 + $0x150] sm:$0xf0]  ;;  %v13802_v27 = vld [vmem:[#allocation12 + $0x14] sm:$0xf0] }
 0x5f7   :  { %v11194_v6 = vor.u32 %v13839_v21, %v11191_v29  ;;  %v11038_v14 = vor.u32 %v13802_v27, %v11037_v0  ;;  %v2708_v0 = vpop.f32.mrf.mxu1 }
 0x5f9   :  { %3784 = vmatpush.bf16.msrb.mxu0 %v11118_v20  ;;  %3727 = vmatpush.bf16.msrb.mxu1 %v11238_v24  ;;  %v11071_v20 = vld [vmem:[#allocation12 + $0x58] sm:$0xf0]  ;;  %v2691_v24 = vpop.f32.mrf.mxu0 }
 0x5fa   :  { %3765 = vmatpush.bf16.msrb.mxu3 %v11242_v19  ;;  %3822 = vmatpush.bf16.msra.mxu2 %v11122_v63  ;;  %v11074_v36 = vor.u32 %v13808_v55, %v11071_v20  ;;  %v13835_v19 = vld [vmem:[#allocation12 + $0x124] sm:$0xf]  ;;  %v11175_v63 = vld [vmem:[#allocation12 + $0x130] sm:$0xf0]  ;;  %v11213_v55 = vld [vmem:[#allocation12 + $0x168] sm:$0xf] }
 0x5fb   :  { %v11178_v11 = vor.u32 %v13835_v19, %v11175_v63  ;;  %v13846_v20 = vld [vmem:[#allocation12 + $0x174] sm:$0xf0]  ;;  %v11198_v19 = vor.u32 %v13842_v62, %v11197_v3  ;;  %v11181_v63 = vld [vmem:[#allocation12 + $0x128] sm:$0xf] }
 0x5fc   :  { %v2842_v45 = vpop.f32.mrf.mxu3 }
 0x5fd   :  { %v16412_v31 = vpack.c.bf16 %v2842_v45, %v2840_v46  ;;  %3785 = vmatpush.bf16.msrb.mxu0 %v11102_v13  ;;  %3728 = vmatpush.bf16.msrb.mxu1 %v11222_v22  ;;  %v11210_v46 = vor.u32 %v13843_v28, %v11207_v26  ;;  %v13804_v13 = vld [vmem:[#allocation12 + $0x2c] sm:$0xf]  ;;  %v11055_v22 = vld [vmem:[#allocation12 + $0x38] sm:$0xf0] }
 0x5fe   :  { %3766 = vmatpush.bf16.msrb.mxu3 %v11226_v48  ;;  %3823 = vmatpush.bf16.msra.mxu2 %v11106_v50  ;;  %v11058_v15 = vor.u32 %v13804_v13, %v11055_v22  ;;  %v13800_v45 = vld [vmem:[#allocation12 + $0xc] sm:$0xf]  ;;  %v11279_v26 = vld [vmem:[#allocation12 + $0x1f8] sm:$0xf0]  ;;  %v13838_v22 = vld [vmem:[#allocation12 + $0x134] sm:$0xf0] }
 0x5ff   :  { %3266 = vmatmul.bf16.gmra.mxu1 %v16412_v31  ;;  %3304 = vmatmul.bf16.gmra.mxu3 %v16412_v31  ;;  %v13860_v28 = vld [vmem:[#allocation12 + $0x1ec] sm:$0xf]  ;;  %v11182_v12 = vor.u32 %v13838_v22, %v11181_v63 }
 0x600   :  { %3323 = vmatmul.bf16.gmra.mxu0 %v16400_v39  ;;  %3361 = vmatmul.bf16.gmra.mxu2 %v16400_v39  ;;  %v11054_v39 = vor.u32 %v13806_v43, %v11053_v53  ;;  %v11263_v53 = vld [vmem:[#allocation12 + $0x1d8] sm:$0xf0] }
 0x601   :  { %3786 = vmatpush.bf16.msrb.mxu0 %v11086_v9  ;;  %3729 = vmatpush.bf16.msrb.mxu1 %v11206_v7  ;;  %v11039_v9 = vld [vmem:[#allocation12 + $0x18] sm:$0xf0]  ;;  %v16419_v7 = vpack.c.bf16 %v2691_v24, %v16410_v1  ;;  %v2694_v50 = vpop.f32.mrf.mxu0  ;;  %v11282_v1 = vor.u32 %v13860_v28, %v11279_v26 }
 0x602   :  { %3767 = vmatpush.bf16.msrb.mxu3 %v11210_v46  ;;  %3824 = vmatpush.bf16.msra.mxu2 %v11090_v40  ;;  %v11042_v48 = vor.u32 %v13800_v45, %v11039_v9  ;;  %v11229_v46 = vld [vmem:[#allocation12 + $0x188] sm:$0xf]  ;;  %v13850_v40 = vld [vmem:[#allocation12 + $0x194] sm:$0xf0]  ;;  %v11231_v24 = vld [vmem:[#allocation12 + $0x198] sm:$0xf0]  ;;  %v11166_v45 = vor.u32 %v13834_v42, %v11165_v58 }
 0x603   :  { %v11230_v29 = vor.u32 %v13850_v40, %v11229_v46  ;;  %v13961_v42 = vld [vmem:[#allocation12 + $0x4ec] sm:$0xf0] }
 0x605   :  { %3787 = vmatpush.bf16.msrb.mxu0 %v11070_v51  ;;  %3730 = vmatpush.bf16.msrb.mxu1 %v11190_v60  ;;  %v13854_v51 = vld [vmem:[#allocation12 + $0x1b4] sm:$0xf0]  ;;  %v13856_v60 = vld [vmem:[#allocation12 + $0x1cc] sm:$0xf] }
 0x606   :  { %3768 = vmatpush.bf16.msrb.mxu3 %v11194_v6  ;;  %3825 = vmatpush.bf16.msra.mxu2 %v11074_v36  ;;  %v11246_v43 = vor.u32 %v13854_v51, %v11245_v59  ;;  %v13844_v6 = vld [vmem:[#allocation12 + $0x16c] sm:$0xf]  ;;  %v11215_v36 = vld [vmem:[#allocation12 + $0x178] sm:$0xf0] }
 0x607   :  { %v11218_v13 = vor.u32 %v13844_v6, %v11215_v36  ;;  %v13930_v51 = vld [vmem:[#allocation10 + $0x28] sm:$0xff] }
 0x609   :  { %3788 = vmatpush.bf16.msrb.mxu0 %v11054_v39  ;;  %3731 = vmatpush.bf16.msrb.mxu1 %v11174_v38  ;;  %v2696_v21 = vpop.f32.mrf.mxu0  ;;  %v13848_v39 = vld [vmem:[#allocation12 + $0x18c] sm:$0xf] }
 0x60a   :  { %3769 = vmatpush.bf16.msrb.mxu3 %v11178_v11  ;;  %3826 = vmatpush.bf16.msra.mxu2 %v11058_v15  ;;  %v2720_v38 = vpack.c.bf16 %v2696_v21, %v2694_v50  ;;  %v11234_v27 = vor.u32 %v13848_v39, %v11231_v24  ;;  %v2710_v15 = vpop.f32.mrf.mxu1 }
 0x60b   :  { %v2719_v56 = vpack.c.bf16 %v2710_v15, %v2708_v0  ;;  %v11409_v15 = vld [vmem:[#allocation12 + $0x4e0] sm:$0xf] }
 0x60d   :  { %3789 = vmatpush.bf16.msrb.mxu0 %v11038_v14  ;;  %3732 = vmatpush.bf16.msrb.mxu1 %v11158_v25  ;;  %v13840_v14 = vld [vmem:[#allocation12 + $0x14c] sm:$0xf]  ;;  %v11199_v25 = vld [vmem:[#allocation12 + $0x158] sm:$0xf0] }
 0x60e   :  { %3770 = vmatpush.bf16.msrb.mxu3 %v11162_v16  ;;  %3827 = vmatpush.bf16.msra.mxu2 %v11042_v48  ;;  %v11202_v11 = vor.u32 %v13840_v14, %v11199_v25 }
 0x60f   :  { %3337 = vmatmul.bf16.vlgmr.msra.gmra.mxu1 %v16404_v35  ;;  %3375 = vmatmul.bf16.vlgmr.msra.gmra.mxu3 %v16404_v35  ;;  %v11266_v35 = vor.u32 %v13856_v60, %v11263_v53 }
 0x610   :  { %3714 = vmatmul.bf16.vlgmr.msra.gmra.mxu0 %v16419_v7  ;;  %3752 = vmatmul.bf16.vlgmr.msrb.gmra.mxu2 %v16419_v7 }
 0x611   :  { %3885 = vmatpush.bf16.msra.mxu0 %v16350_v57  ;;  %3801 = vmatpush.bf16.msra.mxu1 %v11278_v2  ;;  %v11250_v57 = vor.u32 %v13852_v30, %v11247_v37  ;;  %v13832_v2 = vld [vmem:[#allocation12 + $0x10c] sm:$0xf] }
 0x612   :  { %3839 = vmatpush.bf16.msra.mxu3 %v11282_v1  ;;  %v11170_v16 = vor.u32 %v13832_v2, %v11167_v4  ;;  %v2713_v48 = vpop.f32.mrf.mxu1  ;;  %v13929_v1 = vld [vmem:[#allocation10 + $0x20] sm:$0xff] }
 0x615   :  { %3886 = vmatpush.bf16.msra.mxu0 %v16355_v47  ;;  %3802 = vmatpush.bf16.msra.mxu1 %v11262_v49  ;;  %v11214_v47 = vor.u32 %v13846_v20, %v11213_v55 }
 0x616   :  { %3840 = vmatpush.bf16.msra.mxu3 %v11266_v35 }
 0x619   :  { %3803 = vmatpush.bf16.msra.mxu1 %v11246_v43 }
 0x61a   :  { %3841 = vmatpush.bf16.msra.mxu3 %v11250_v57  ;;  %v2715_v50 = vpop.f32.mrf.mxu1 }
 0x61b   :  { %v2721_v28 = vpack.c.bf16 %v2715_v50, %v2713_v48  ;;  %v13955_v48 = vld [vmem:[#allocation12 + $0x4c4] sm:$0xf] }
 0x61d   :  { %3804 = vmatpush.bf16.msra.mxu1 %v11230_v29 }
 0x61e   :  { %3842 = vmatpush.bf16.msra.mxu3 %v11234_v27 }
 0x61f   :  { %3342 = vmatmul.bf16.gmra.mxu1 %v16412_v31  ;;  %3380 = vmatmul.bf16.gmra.mxu3 %v16412_v31  ;;  %v13836_v31 = vld [vmem:[#allocation12 + $0x12c] sm:$0xf] }
 0x620   :  { %3719 = vmatmul.bf16.gmra.mxu0 %v2720_v38  ;;  %3757 = vmatmul.bf16.gmra.mxu2 %v2720_v38  ;;  %v11186_v9 = vor.u32 %v13836_v31, %v11183_v17  ;;  %v13959_v31 = vld [vmem:[#allocation12 + $0x4e4] sm:$0xf]  ;;  %v11410_v17 = vor.u32 %v13961_v42, %v11409_v15  ;;  %v11363_v15 = vld [vmem:[#allocation12 + $0x490] sm:$0xf0] }
 0x621   :  { %3805 = vmatpush.bf16.msra.mxu1 %v11214_v47 }
 0x622   :  { %3843 = vmatpush.bf16.msra.mxu3 %v11218_v13  ;;  %4306 = vmatpush.bf16.msrb.mxu2 %v11410_v17  ;;  %v11345_v17 = vld [vmem:[#allocation12 + $0x460] sm:$0xf] }
 0x625   :  { %3806 = vmatpush.bf16.msra.mxu1 %v11198_v19 }
 0x626   :  { %3844 = vmatpush.bf16.msra.mxu3 %v11202_v11 }
 0x629   :  { %3807 = vmatpush.bf16.msra.mxu1 %v11182_v12 }
 0x62a   :  { %3845 = vmatpush.bf16.msra.mxu3 %v11186_v9 }
 0x62d   :  { %3808 = vmatpush.bf16.msra.mxu1 %v11166_v45  ;;  %v11411_v45 = vld [vmem:[#allocation12 + $0x4f0] sm:$0xf0] }
 0x62e   :  { %3846 = vmatpush.bf16.msra.mxu3 %v11170_v16  ;;  %v11414_v9 = vor.u32 %v13959_v31, %v11411_v45  ;;  %v13957_v16 = vld [vmem:[#allocation12 + $0x4cc] sm:$0xf0] }
 0x62f   :  { %3733 = vmatmul.bf16.vlgmr.msrb.gmra.mxu1 %v2719_v56  ;;  %3771 = vmatmul.bf16.vlgmr.msrb.gmra.mxu3 %v2719_v56  ;;  %v13945_v45 = vld [vmem:[#allocation12 + $0x46c] sm:$0xf0] }
 0x630   :  { %3790 = vmatmul.bf16.vlgmr.msrb.gmra.mxu0 %v16419_v7  ;;  %3828 = vmatmul.bf16.vlgmr.msra.gmra.mxu2 %v16419_v7 }
 0x631   :  { %3904 = vmatpush.bf16.msrb.mxu1 %v16379_v23  ;;  %4344 = vmatpush.bf16.msrb.mxu0 %v11414_v9  ;;  %v13943_v9 = vld [vmem:[#allocation12 + $0x464] sm:$0xf] }
 0x635   :  { %3905 = vmatpush.bf16.msrb.mxu1 %v16384_v8 }
 0x63f   :  { %3738 = vmatmul.bf16.gmra.mxu1 %v2721_v28  ;;  %3776 = vmatmul.bf16.gmra.mxu3 %v2721_v28 }
 0x640   :  { %3795 = vmatmul.bf16.gmra.mxu0 %v2720_v38  ;;  %3833 = vmatmul.bf16.gmra.mxu2 %v2720_v38 }
 0x64c   :  { %v3243_v26 = vpop.f32.mrf.mxu0 }
 0x64f   :  { %3809 = vmatmul.bf16.vlgmr.msra.gmra.mxu1 %v2719_v56  ;;  %3847 = vmatmul.bf16.vlgmr.msra.gmra.mxu3 %v2719_v56  ;;  %v11393_v56 = vld [vmem:[#allocation12 + $0x4c0] sm:$0xf] }
 0x650   :  { %11291 = vmatmul.msk.bf16.vlgmr.msra.gmra.mxu0 %vm688_vm1, %v13929_v1 }
 0x652   :  { %v3281_v49 = vpop.f32.mrf.mxu2 }
 0x654   :  { %v16434_v59 = vpop.f32.mrf.mxu0 }
 0x65a   :  { %v16436_v7 = vpop.f32.mrf.mxu2 }
 0x65c   :  { %v3248_v23 = vpop.f32.mrf.mxu0 }
 0x65f   :  { %3814 = vmatmul.bf16.gmra.mxu1 %v2721_v28  ;;  %3852 = vmatmul.bf16.gmra.mxu3 %v2721_v28  ;;  %v11394_v28 = vor.u32 %v13957_v16, %v11393_v56  ;;  %v11347_v56 = vld [vmem:[#allocation12 + $0x470] sm:$0xf0] }
 0x660   :  { %11292 = vmatmul.msk.bf16.gmra.mxu0 %vm688_vm1, %v13930_v51  ;;  %v11350_v16 = vor.u32 %v13943_v9, %v11347_v56  ;;  %v11299_v56 = vld [vmem:[#allocation12 + $0x410] sm:$0xf0] }
 0x661   :  { %4307 = vmatpush.bf16.msrb.mxu2 %v11394_v28  ;;  %v13941_v28 = vld [vmem:[#allocation12 + $0x44c] sm:$0xf0] }
 0x662   :  { %v3286_v8 = vpop.f32.mrf.mxu2 }
 0x664   :  { %v16439_v60 = vpop.f32.mrf.mxu0 }
 0x66a   :  { %v16441_v53 = vpop.f32.mrf.mxu2 }
 0x66c   :  { %v3262_v35 = vpop.f32.mrf.mxu1 }
 0x66d   :  { %v3263_v43 = vadd.f32 %v3262_v35, %v3243_v26  ;;  %v3319_v30 = vpop.f32.mrf.mxu0  ;;  %v11395_v26 = vld [vmem:[#allocation12 + $0x4d0] sm:$0xf0]  ;;  %v13953_v35 = vld [vmem:[#allocation12 + $0x4ac] sm:$0xf0] }
 0x66f   :  { %11293 = vmatmul.msk.bf16.vlgmr.msrb.gmra.mxu1 %vm688_vm1, %v13929_v1 }
 0x672   :  { %v3300_v37 = vpop.f32.mrf.mxu3 }
 0x673   :  { %v3301_v46 = vadd.f32 %v3300_v37, %v3281_v49  ;;  %v3357_v40 = vpop.f32.mrf.mxu2  ;;  %v11379_v37 = vld [vmem:[#allocation12 + $0x4b0] sm:$0xf0] }
 0x674   :  { %v16444_v57 = vpop.f32.mrf.mxu1 }
 0x675   :  { %v16446_v21 = vpop.f32.mrf.mxu0 }
 0x67a   :  { %v16448_v29 = vpop.f32.mrf.mxu3 }
 0x67b   :  { %v16450_v55 = vpop.f32.mrf.mxu2 }
 0x67c   :  { %v3267_v20 = vpop.f32.mrf.mxu1 }
 0x67d   :  { %v3268_v39 = vadd.f32 %v3267_v20, %v3248_v23  ;;  %v3324_v24 = vpop.f32.mrf.mxu0  ;;  %v11398_v23 = vor.u32 %v13955_v48, %v11395_v26  ;;  %v13939_v26 = vld [vmem:[#allocation12 + $0x444] sm:$0xf] }
 0x67f   :  { %11294 = vmatmul.msk.bf16.gmra.mxu1 %vm688_vm1, %v13930_v51  ;;  %4345 = vmatpush.bf16.msrb.mxu0 %v11398_v23 }
 0x682   :  { %v3305_v38 = vpop.f32.mrf.mxu3 }
 0x683   :  { %v3306_v0 = vadd.f32 %v3305_v38, %v3286_v8  ;;  %v3362_v47 = vpop.f32.mrf.mxu2  ;;  %v11377_v8 = vld [vmem:[#allocation12 + $0x4a0] sm:$0xf] }
 0x684   :  { %v16453_v27 = vpop.f32.mrf.mxu1 }
 0x685   :  { %v16455_v3 = vpop.f32.mrf.mxu0 }
 0x68a   :  { %v16457_v62 = vpop.f32.mrf.mxu3 }
 0x68b   :  { %v16459_v6 = vpop.f32.mrf.mxu2 }
 0x68c   :  { %v3338_v36 = vpop.f32.mrf.mxu1 }
 0x68d   :  { %v16461_v19 = vadd.f32 %v3338_v36, %v3319_v30  ;;  %v3715_v63 = vpop.f32.mrf.mxu0  ;;  %v11378_v30 = vor.u32 %v13953_v35, %v11377_v8  ;;  %v13949_v36 = vld [vmem:[#allocation12 + $0x48c] sm:$0xf0]  ;;  %v11331_v8 = vld [vmem:[#allocation12 + $0x450] sm:$0xf0] }
 0x68e   :  { %v16463_v13 = vadd.f32 %v3715_v63, %v3263_v43  ;;  %v13951_v43 = vld [vmem:[#allocation12 + $0x4a4] sm:$0xf] }
 0x68f   :  { %4308 = vmatpush.bf16.msrb.mxu2 %v11378_v30  ;;  %v13947_v63 = vld [vmem:[#allocation12 + $0x484] sm:$0xf]  ;;  %v11334_v30 = vor.u32 %v13939_v26, %v11331_v8  ;;  %v11417_v8 = vld [vmem:[#allocation12 + $0x4e8] sm:$0xf] }
 0x690   :  { %v11366_v31 = vor.u32 %v13947_v63, %v11363_v15  ;;  %v13991_v26 = vld [vmem:[#allocation12 + $0x5e4] sm:$0xf] }
 0x692   :  { %v3376_v22 = vpop.f32.mrf.mxu3 }
 0x693   :  { %v16465_v14 = vadd.f32 %v3376_v22, %v3357_v40  ;;  %v3753_v25 = vpop.f32.mrf.mxu2 }
 0x694   :  { %v16467_v12 = vadd.f32 %v3753_v25, %v3301_v46  ;;  %v16469_v58 = vpop.f32.mrf.mxu1  ;;  %v11382_v46 = vor.u32 %v13951_v43, %v11379_v37  ;;  %v11313_v37 = vld [vmem:[#allocation12 + $0x420] sm:$0xf] }
 0x695   :  { %v16471_v11 = vpop.f32.mrf.mxu0 }
 0x696   :  { %4346 = vmatpush.bf16.msrb.mxu0 %v11382_v46  ;;  %v13937_v46 = vld [vmem:[#allocation12 + $0x42c] sm:$0xf0] }
 0x69a   :  { %v16473_v2 = vpop.f32.mrf.mxu3  ;;  %4347 = vmatpush.bf16.msrb.mxu0 %v11366_v31  ;;  %v11297_v31 = vld [vmem:[#allocation12 + $0x400] sm:$0xf] }
 0x69b   :  { %17765 = vst [vmem:[#allocation183_spill] sm:$0xff] %v16473_v2  ;;  %v16475_v4 = vpop.f32.mrf.mxu2 }
 0x69c   :  { %v3343_v50 = vpop.f32.mrf.mxu1 }
 0x69d   :  { %v16477_v1 = vadd.f32 %v3343_v50, %v3324_v24  ;;  %v3720_v49 = vpop.f32.mrf.mxu0  ;;  %v11361_v24 = vld [vmem:[#allocation12 + $0x480] sm:$0xf] }
 0x69e   :  { %v16479_v51 = vadd.f32 %v3720_v49, %v3268_v39  ;;  %v11362_v25 = vor.u32 %v13949_v36, %v11361_v24  ;;  %4348 = vmatpush.bf16.msrb.mxu0 %v11350_v16  ;;  %v11329_v50 = vld [vmem:[#allocation12 + $0x440] sm:$0xf]  ;;  %v11314_v24 = vor.u32 %v13937_v46, %v11313_v37  ;;  %v11315_v36 = vld [vmem:[#allocation12 + $0x430] sm:$0xf0]  ;;  %v11419_v46 = vld [vmem:[#allocation12 + $0x4f8] sm:$0xf0] }
 0x69f   :  { %v11330_v23 = vor.u32 %v13941_v28, %v11329_v50  ;;  %v11537_v28 = vld [vmem:[#allocation12 + $0x5e0] sm:$0xf] }
 0x6a0   :  { %4309 = vmatpush.bf16.msrb.mxu2 %v11362_v25 }
 0x6a2   :  { %v3381_v40 = vpop.f32.mrf.mxu3  ;;  %4349 = vmatpush.bf16.msrb.mxu0 %v11334_v30 }
 0x6a3   :  { %v16481_v20 = vadd.f32 %v3381_v40, %v3362_v47  ;;  %v3758_v38 = vpop.f32.mrf.mxu2  ;;  %v11346_v47 = vor.u32 %v13945_v45, %v11345_v17  ;;  %v13935_v40 = vld [vmem:[#allocation12 + $0x424] sm:$0xf]  ;;  %v13933_v17 = vld [vmem:[#allocation12 + $0x40c] sm:$0xf0] }
 0x6a4   :  { %v16483_v22 = vadd.f32 %v3758_v38, %v3306_v0  ;;  %v16485_v39 = vpop.f32.mrf.mxu1  ;;  %v11318_v63 = vor.u32 %v13935_v40, %v11315_v36  ;;  %v13931_v45 = vld [vmem:[#allocation12 + $0x404] sm:$0xf] }
 0x6a5   :  { %v16487_v42 = vpop.f32.mrf.mxu0  ;;  %4310 = vmatpush.bf16.msrb.mxu2 %v11346_v47  ;;  %v11298_v47 = vor.u32 %v13933_v17, %v11297_v31  ;;  %v11302_v50 = vor.u32 %v13931_v45, %v11299_v56  ;;  %v11523_v45 = vld [vmem:[#allocation12 + $0x5d0] sm:$0xf0]  ;;  %v13958_v56 = vld [vmem:[#allocation12 + $0x4d4] sm:$0xf0] }
 0x6a6   :  { %4350 = vmatpush.bf16.msrb.mxu0 %v11318_v63  ;;  %v11521_v63 = vld [vmem:[#allocation12 + $0x5c0] sm:$0xf] }
 0x6a9   :  { %4311 = vmatpush.bf16.msrb.mxu2 %v11330_v23  ;;  %v11539_v23 = vld [vmem:[#allocation12 + $0x5f0] sm:$0xf0] }
 0x6aa   :  { %v16489_v48 = vpop.f32.mrf.mxu3  ;;  %4351 = vmatpush.bf16.msrb.mxu0 %v11302_v50  ;;  %v11542_v30 = vor.u32 %v13991_v26, %v11539_v23  ;;  %v11403_v23 = vld [vmem:[#allocation12 + $0x4d8] sm:$0xf0] }
 0x6ab   :  { %v16491_v0 = vpop.f32.mrf.mxu2 }
 0x6ac   :  { %v3734_v49 = vpop.f32.mrf.mxu1  ;;  %4363 = vmatpush.bf16.msra.mxu1 %v11542_v30 }
 0x6ad   :  { %v16494_v35 = vadd.f32 %v3734_v49, %v16463_v13  ;;  %v3791_v43 = vpop.f32.mrf.mxu0  ;;  %4312 = vmatpush.bf16.msrb.mxu2 %v11314_v24 }
 0x6ae   :  { %v16497_v38 = vadd.f32 %v3791_v43, %v16461_v19  ;;  %v13962_v43 = vld [vmem:[#allocation12 + $0x4f4] sm:$0xf0] }
 0x6af   :  { %v11418_v37 = vor.u32 %v13962_v43, %v11417_v8  ;;  %v11505_v8 = vld [vmem:[#allocation12 + $0x5a0] sm:$0xf] }
 0x6b1   :  { %4313 = vmatpush.bf16.msrb.mxu2 %v11298_v47  ;;  %v11401_v47 = vld [vmem:[#allocation12 + $0x4c8] sm:$0xf] }
 0x6b2   :  { %v3772_v25 = vpop.f32.mrf.mxu3  ;;  %v11402_v26 = vor.u32 %v13958_v56, %v11401_v47 }
 0x6b3   :  { %v16500_v15 = vadd.f32 %v3772_v25, %v16467_v12  ;;  %v3829_v13 = vpop.f32.mrf.mxu2  ;;  %v13993_v12 = vld [vmem:[#allocation12 + $0x5ec] sm:$0xf0] }
 0x6b4   :  { %v16503_v9 = vadd.f32 %v3829_v13, %v16465_v14  ;;  %v16505_v19 = vpop.f32.mrf.mxu1  ;;  %v11538_v49 = vor.u32 %v13993_v12, %v11537_v28  ;;  %v13960_v14 = vld [vmem:[#allocation12 + $0x4ec] sm:$0xf]  ;;  %v13989_v25 = vld [vmem:[#allocation12 + $0x5cc] sm:$0xf0]  ;;  %v13987_v13 = vld [vmem:[#allocation12 + $0x5c4] sm:$0xf] }
 0x6b5   :  { %v16507_v16 = vpop.f32.mrf.mxu0  ;;  %v11422_v24 = vor.u32 %v13960_v14, %v11419_v46  ;;  %4382 = vmatpush.bf16.msra.mxu2 %v11418_v37  ;;  %v11522_v17 = vor.u32 %v13989_v25, %v11521_v63  ;;  %v11526_v12 = vor.u32 %v13987_v13, %v11523_v45  ;;  %v13985_v37 = vld [vmem:[#allocation12 + $0x5ac] sm:$0xf0]  ;;  %v13983_v14 = vld [vmem:[#allocation12 + $0x5a4] sm:$0xf]  ;;  %v11507_v46 = vld [vmem:[#allocation12 + $0x5b0] sm:$0xf0] }
 0x6b6   :  { %4325 = vmatpush.bf16.msrb.mxu3 %v11538_v49  ;;  %v13956_v49 = vld [vmem:[#allocation12 + $0x4cc] sm:$0xf]  ;;  %v11510_v63 = vor.u32 %v13983_v14, %v11507_v46  ;;  %v13954_v25 = vld [vmem:[#allocation12 + $0x4b4] sm:$0xf0]  ;;  %v11387_v45 = vld [vmem:[#allocation12 + $0x4b8] sm:$0xf0] }
 0x6b7   :  { %4420 = vmatpush.bf16.msra.mxu0 %v11422_v24  ;;  %v11406_v30 = vor.u32 %v13956_v49, %v11403_v23  ;;  %4364 = vmatpush.bf16.msra.mxu1 %v11526_v12  ;;  %v11506_v24 = vor.u32 %v13985_v37, %v11505_v8  ;;  %v13981_v12 = vld [vmem:[#allocation12 + $0x58c] sm:$0xf0]  ;;  %v11369_v37 = vld [vmem:[#allocation12 + $0x488] sm:$0xf]  ;;  %v13950_v14 = vld [vmem:[#allocation12 + $0x494] sm:$0xf0] }
 0x6b9   :  { %4383 = vmatpush.bf16.msra.mxu2 %v11402_v26  ;;  %v13979_v26 = vld [vmem:[#allocation12 + $0x584] sm:$0xf] }
 0x6ba   :  { %v16509_v40 = vpop.f32.mrf.mxu3  ;;  %4326 = vmatpush.bf16.msrb.mxu3 %v11522_v17 }
 0x6bb   :  { %v16511_v36 = vpop.f32.mrf.mxu2  ;;  %4421 = vmatpush.bf16.msra.mxu0 %v11406_v30  ;;  %4365 = vmatpush.bf16.msra.mxu1 %v11510_v63  ;;  %v11491_v30 = vld [vmem:[#allocation12 + $0x590] sm:$0xf0]  ;;  %v11371_v63 = vld [vmem:[#allocation12 + $0x498] sm:$0xf0] }
 0x6bc   :  { %17766 = vst [vmem:[#allocation184_spill] sm:$0xff] %v16511_v36  ;;  %v3739_v31 = vpop.f32.mrf.mxu1  ;;  %v13938_v36 = vld [vmem:[#allocation12 + $0x434] sm:$0xf0] }
 0x6bd   :  { %v16514_v50 = vadd.f32 %v3739_v31, %v16479_v51  ;;  %v3796_v28 = vpop.f32.mrf.mxu0  ;;  %v11385_v51 = vld [vmem:[#allocation12 + $0x4a8] sm:$0xf]  ;;  %v13952_v31 = vld [vmem:[#allocation12 + $0x4ac] sm:$0xf] }
 0x6be   :  { %v16517_v43 = vadd.f32 %v3796_v28, %v16477_v1  ;;  %v11386_v13 = vor.u32 %v13954_v25, %v11385_v51  ;;  %v11390_v47 = vor.u32 %v13952_v31, %v11387_v45  ;;  %4327 = vmatpush.bf16.msrb.mxu3 %v11506_v24  ;;  %v11489_v28 = vld [vmem:[#allocation12 + $0x580] sm:$0xf]  ;;  %v11370_v24 = vor.u32 %v13950_v14, %v11369_v37  ;;  %v13948_v51 = vld [vmem:[#allocation12 + $0x48c] sm:$0xf]  ;;  %v13973_v37 = vld [vmem:[#allocation12 + $0x54c] sm:$0xf0] }
 0x6bf   :  { %v11490_v8 = vor.u32 %v13981_v12, %v11489_v28  ;;  %v11374_v25 = vor.u32 %v13948_v51, %v11371_v63  ;;  %v11473_v31 = vld [vmem:[#allocation12 + $0x560] sm:$0xf]  ;;  %v13971_v14 = vld [vmem:[#allocation12 + $0x544] sm:$0xf]  ;;  %v11459_v51 = vld [vmem:[#allocation12 + $0x550] sm:$0xf0] }
 0x6c0   :  { %4384 = vmatpush.bf16.msra.mxu2 %v11386_v13  ;;  %4422 = vmatpush.bf16.msra.mxu0 %v11390_v47  ;;  %v13975_v13 = vld [vmem:[#allocation12 + $0x564] sm:$0xf]  ;;  %v11475_v47 = vld [vmem:[#allocation12 + $0x570] sm:$0xf0]  ;;  %v11337_v63 = vld [vmem:[#allocation12 + $0x448] sm:$0xf] }
 0x6c1   :  { %v11478_v28 = vor.u32 %v13975_v13, %v11475_v47  ;;  %v11462_v13 = vor.u32 %v13971_v14, %v11459_v51 }
 0x6c2   :  { %v3777_v56 = vpop.f32.mrf.mxu3  ;;  %4328 = vmatpush.bf16.msrb.mxu3 %v11490_v8  ;;  %v11457_v8 = vld [vmem:[#allocation12 + $0x540] sm:$0xf] }
 0x6c3   :  { %v16520_v1 = vadd.f32 %v3777_v56, %v16483_v22  ;;  %v3834_v17 = vpop.f32.mrf.mxu2  ;;  %v11494_v22 = vor.u32 %v13979_v26, %v11491_v30  ;;  %v11353_v56 = vld [vmem:[#allocation12 + $0x468] sm:$0xf]  ;;  %v11358_v30 = vor.u32 %v13944_v32, %v11355_v33  ;;  %v11441_v32 = vld [vmem:[#allocation12 + $0x520] sm:$0xf] }
 0x6c4   :  { %v16523_v49 = vadd.f32 %v3834_v17, %v16481_v20  ;;  %v16525_v23 = vpop.f32.mrf.mxu1  ;;  %4385 = vmatpush.bf16.msra.mxu2 %v11370_v24  ;;  %v13977_v20 = vld [vmem:[#allocation12 + $0x56c] sm:$0xf0]  ;;  %4423 = vmatpush.bf16.msra.mxu0 %v11374_v25  ;;  %v13946_v17 = vld [vmem:[#allocation12 + $0x474] sm:$0xf0]  ;;  %v11458_v24 = vor.u32 %v13973_v37, %v11457_v8  ;;  %v11321_v37 = vld [vmem:[#allocation12 + $0x428] sm:$0xf] }
 0x6c5   :  { %v16527_v46 = vpop.f32.mrf.mxu0  ;;  %4366 = vmatpush.bf16.msra.mxu1 %v11494_v22  ;;  %v11474_v45 = vor.u32 %v13977_v20, %v11473_v31  ;;  %v11354_v12 = vor.u32 %v13946_v17, %v11353_v56  ;;  %v13942_v25 = vld [vmem:[#allocation12 + $0x454] sm:$0xf0]  ;;  %v13940_v56 = vld [vmem:[#allocation12 + $0x44c] sm:$0xf]  ;;  %v13969_v17 = vld [vmem:[#allocation12 + $0x52c] sm:$0xf0] }
 0x6c6   :  { %v11338_v47 = vor.u32 %v13942_v25, %v11337_v63  ;;  %v13965_v25 = vld [vmem:[#allocation12 + $0x50c] sm:$0xf0] }
 0x6c7   :  { %4329 = vmatpush.bf16.msrb.mxu3 %v11474_v45  ;;  %v11339_v45 = vld [vmem:[#allocation12 + $0x458] sm:$0xf0] }
 0x6c8   :  { %4386 = vmatpush.bf16.msra.mxu2 %v11354_v12  ;;  %4424 = vmatpush.bf16.msra.mxu0 %v11358_v30  ;;  %v11342_v33 = vor.u32 %v13940_v56, %v11339_v45  ;;  %v11443_v12 = vld [vmem:[#allocation12 + $0x530] sm:$0xf0]  ;;  %v11442_v30 = vor.u32 %v13969_v17, %v11441_v32  ;;  %v11305_v32 = vld [vmem:[#allocation12 + $0x408] sm:$0xf] }
 0x6c9   :  { %4367 = vmatpush.bf16.msra.mxu1 %v11478_v28  ;;  %v13967_v28 = vld [vmem:[#allocation12 + $0x524] sm:$0xf]  ;;  %v11427_v45 = vld [vmem:[#allocation12 + $0x510] sm:$0xf0] }
 0x6ca   :  { %v16529_v26 = vpop.f32.mrf.mxu3  ;;  %v11446_v8 = vor.u32 %v13967_v28, %v11443_v12  ;;  %v13932_v28 = vld [vmem:[#allocation12 + $0x40c] sm:$0xf]  ;;  %v11307_v12 = vld [vmem:[#allocation12 + $0x418] sm:$0xf0] }
 0x6cb   :  { %4330 = vmatpush.bf16.msrb.mxu3 %v11458_v24  ;;  %v11425_v24 = vld [vmem:[#allocation12 + $0x500] sm:$0xf] }
 0x6cc   :  { %v3810_v22 = vpop.f32.mrf.mxu1  ;;  %4387 = vmatpush.bf16.msra.mxu2 %v11338_v47  ;;  %4425 = vmatpush.bf16.msra.mxu0 %v11342_v33  ;;  %v11426_v56 = vor.u32 %v13965_v25, %v11425_v24  ;;  %v13934_v33 = vld [vmem:[#allocation12 + $0x414] sm:$0xf0] }
 0x6cd   :  { %v16532_v31 = vadd.f32 %v3810_v22, %v16497_v38  ;;  %v3888_v20 = vpop.f32.mrf.mxu0  ;;  %4368 = vmatpush.bf16.msra.mxu1 %v11462_v13  ;;  %v11322_v38 = vor.u32 %v13938_v36, %v11321_v37  ;;  %v11323_v22 = vld [vmem:[#allocation12 + $0x438] sm:$0xf0]  ;;  %v13963_v13 = vld [vmem:[#allocation12 + $0x504] sm:$0xf]  ;;  %v13994_v37 = vld [vmem:[#allocation12 + $0x5f4] sm:$0xf0] }
 0x6ce   :  { %v11326_v14 = vor.u32 %v13936_v41, %v11323_v22  ;;  %v11430_v17 = vor.u32 %v13963_v13, %v11427_v45  ;;  %v11306_v41 = vor.u32 %v13934_v33, %v11305_v32  ;;  %v13990_v25 = vld [vmem:[#allocation12 + $0x5d4] sm:$0xf0]  ;;  %v13988_v13 = vld [vmem:[#allocation12 + $0x5cc] sm:$0xf]  ;;  %v11531_v32 = vld [vmem:[#allocation12 + $0x5d8] sm:$0xf0] }
 0x6cf   :  { %17767 = vst [vmem:[#allocation185_spill] sm:$0xff] %v16532_v31  ;;  %4331 = vmatpush.bf16.msrb.mxu3 %v11442_v30  ;;  %v11513_v33 = vld [vmem:[#allocation12 + $0x5a8] sm:$0xf]  ;;  %v16565_v31 = vld [vmem:[#allocation13] sm:$0xf] }
 0x6d0   :  { %4388 = vmatpush.bf16.msra.mxu2 %v11322_v38  ;;  %4426 = vmatpush.bf16.msra.mxu0 %v11326_v14  ;;  %v13992_v38 = vld [vmem:[#allocation12 + $0x5ec] sm:$0xf]  ;;  %v11547_v14 = vld [vmem:[#allocation12 + $0x5f8] sm:$0xf0] }
 0x6d1   :  { %4369 = vmatpush.bf16.msra.mxu1 %v11446_v8  ;;  %v11545_v8 = vld [vmem:[#allocation12 + $0x5e8] sm:$0xf] }
 0x6d2   :  { %v3848_v51 = vpop.f32.mrf.mxu3  ;;  %v11546_v22 = vor.u32 %v13994_v37, %v11545_v8 }
 0x6d3   :  { %v16535_v63 = vadd.f32 %v3848_v51, %v16503_v9  ;;  %4332 = vmatpush.bf16.msrb.mxu3 %v11426_v56  ;;  %v11310_v9 = vor.u32 %v13932_v28, %v11307_v12  ;;  %v11550_v51 = vor.u32 %v13992_v38, %v11547_v14  ;;  %v11534_v28 = vor.u32 %v13988_v13, %v11531_v32  ;;  %v13984_v12 = vld [vmem:[#allocation12 + $0x5ac] sm:$0xf]  ;;  %v11497_v14 = vld [vmem:[#allocation12 + $0x588] sm:$0xf] }
 0x6d4   :  { %v16537_v47 = vpop.f32.mrf.mxu1  ;;  %4389 = vmatpush.bf16.msra.mxu2 %v11306_v41 }
 0x6d5   :  { %17768 = vst [vmem:[#allocation186_spill] sm:$0xff] %v16535_v63  ;;  %v3890_v36 = vpop.f32.mrf.mxu0  ;;  %4370 = vmatpush.bf16.msra.mxu1 %v11430_v17  ;;  %4427 = vmatpush.bf16.msra.mxu0 %v11310_v9  ;;  %v11515_v9 = vld [vmem:[#allocation12 + $0x5b8] sm:$0xf0] }
 0x6d6   :  { %v16539_v30 = vpack.c.bf16 %v3890_v36, %v3888_v20  ;;  %v11529_v20 = vld [vmem:[#allocation12 + $0x5c8] sm:$0xf]  ;;  %v13986_v36 = vld [vmem:[#allocation12 + $0x5b4] sm:$0xf0]  ;;  %v11518_v37 = vor.u32 %v13984_v12, %v11515_v9 }
 0x6d7   :  { %4401 = vmatpush.bf16.msra.mxu3 %v11546_v22  ;;  %v11530_v45 = vor.u32 %v13990_v25, %v11529_v20  ;;  %v11514_v8 = vor.u32 %v13986_v36, %v11513_v33  ;;  %v13980_v20 = vld [vmem:[#allocation12 + $0x58c] sm:$0xf]  ;;  %v13978_v33 = vld [vmem:[#allocation12 + $0x574] sm:$0xf0]  ;;  %v11465_v12 = vld [vmem:[#allocation12 + $0x548] sm:$0xf] }
 0x6d8   :  { %4314 = vmatmul.bf16.vlgmr.msrb.gmra.mxu2 %v16539_v30  ;;  %4352 = vmatmul.bf16.vlgmr.msrb.gmra.mxu0 %v16539_v30  ;;  %v13976_v36 = vld [vmem:[#allocation12 + $0x56c] sm:$0xf]  ;;  %v13974_v9 = vld [vmem:[#allocation12 + $0x554] sm:$0xf0] }
 0x6d9   :  { %4439 = vmatpush.bf16.msrb.mxu1 %v11550_v51  ;;  %v13982_v51 = vld [vmem:[#allocation12 + $0x594] sm:$0xf0] }
 0x6da   :  { %v16543_v24 = vpop.f32.mrf.mxu3 }
 0x6db   :  { %17769 = vst [vmem:[#allocation187_spill] sm:$0xff] %v16543_v24  ;;  %4402 = vmatpush.bf16.msra.mxu3 %v11530_v45  ;;  %v11481_v45 = vld [vmem:[#allocation12 + $0x568] sm:$0xf] }
 0x6dc   :  { %v3815_v56 = vpop.f32.mrf.mxu1 }
 0x6dd   :  { %v16546_v17 = vadd.f32 %v3815_v56, %v16517_v43  ;;  %v3893_v41 = vpop.f32.mrf.mxu0  ;;  %4440 = vmatpush.bf16.msrb.mxu1 %v11534_v28  ;;  %v11498_v43 = vor.u32 %v13982_v51, %v11497_v14  ;;  %v11499_v56 = vld [vmem:[#allocation12 + $0x598] sm:$0xf0]  ;;  %v11466_v14 = vor.u32 %v13974_v9, %v11465_v12 }
 0x6de   :  { %v11502_v32 = vor.u32 %v13980_v20, %v11499_v56  ;;  %v11483_v28 = vld [vmem:[#allocation12 + $0x578] sm:$0xf0]  ;;  %v11449_v20 = vld [vmem:[#allocation12 + $0x528] sm:$0xf]  ;;  %v13968_v56 = vld [vmem:[#allocation12 + $0x52c] sm:$0xf] }
 0x6df   :  { %4403 = vmatpush.bf16.msra.mxu3 %v11514_v8  ;;  %v11486_v8 = vor.u32 %v13976_v36, %v11483_v28  ;;  %v13964_v36 = vld [vmem:[#allocation12 + $0x50c] sm:$0xf]  ;;  %v11435_v28 = vld [vmem:[#allocation12 + $0x518] sm:$0xf0] }
 0x6e0   :  { %v11438_v9 = vor.u32 %v13964_v36, %v11435_v28 }
 0x6e1   :  { %4441 = vmatpush.bf16.msrb.mxu1 %v11518_v37  ;;  %v13972_v37 = vld [vmem:[#allocation12 + $0x54c] sm:$0xf] }
 0x6e2   :  { %v3853_v38 = vpop.f32.mrf.mxu3 }
 0x6e3   :  { %v16549_v22 = vadd.f32 %v3853_v38, %v16523_v49  ;;  %4404 = vmatpush.bf16.msra.mxu3 %v11498_v43  ;;  %v11482_v49 = vor.u32 %v13978_v33, %v11481_v45  ;;  %v11467_v38 = vld [vmem:[#allocation12 + $0x558] sm:$0xf0]  ;;  %v11433_v45 = vld [vmem:[#allocation12 + $0x508] sm:$0xf]  ;;  %v13966_v33 = vld [vmem:[#allocation12 + $0x514] sm:$0xf0] }
 0x6e4   :  { %v16551_v25 = vpop.f32.mrf.mxu1  ;;  %v11470_v51 = vor.u32 %v13972_v37, %v11467_v38  ;;  %v11434_v24 = vor.u32 %v13966_v33, %v11433_v45 }
 0x6e5   :  { %17770 = vst [vmem:[#allocation188_spill] sm:$0xff] %v16549_v22  ;;  %v3895_v13 = vpop.f32.mrf.mxu0  ;;  %4442 = vmatpush.bf16.msrb.mxu1 %v11502_v32 }
 0x6e6   :  { %17771 = vst [vmem:[#allocation189_spill] sm:$0xff] %v16551_v25  ;;  %v3919_v63 = vpack.c.bf16 %v3895_v13, %v3893_v41  ;;  %v13970_v41 = vld [vmem:[#allocation12 + $0x534] sm:$0xf0]  ;;  %v11451_v13 = vld [vmem:[#allocation12 + $0x538] sm:$0xf0] }
 0x6e7   :  { %4405 = vmatpush.bf16.msra.mxu3 %v11482_v49  ;;  %v11450_v32 = vor.u32 %v13970_v41, %v11449_v20  ;;  %v11454_v22 = vor.u32 %v13968_v56, %v11451_v13 }
 0x6e8   :  { %4319 = vmatmul.bf16.gmra.mxu2 %v3919_v63  ;;  %4357 = vmatmul.bf16.gmra.mxu0 %v3919_v63 }
 0x6e9   :  { %4443 = vmatpush.bf16.msrb.mxu1 %v11486_v8 }
 0x6eb   :  { %4406 = vmatpush.bf16.msra.mxu3 %v11466_v14 }
 0x6ec   :  { %v3907_v43 = vpop.f32.mrf.mxu1 }
 0x6ed   :  { %4444 = vmatpush.bf16.msrb.mxu1 %v11470_v51  ;;  %v16557_v51 = vpop.f32.mrf.mxu3 }
 0x6ee   :  { %17772 = vst [vmem:[#allocation190_spill] sm:$0xff] %v16557_v51 }
 0x6ef   :  { %4407 = vmatpush.bf16.msra.mxu3 %v11450_v32 }
 0x6f1   :  { %4445 = vmatpush.bf16.msrb.mxu1 %v11454_v22  ;;  %v16555_v22 = vpop.f32.mrf.mxu2 }
 0x6f3   :  { %4408 = vmatpush.bf16.msra.mxu3 %v11434_v24 }
 0x6f4   :  { %v3909_v49 = vpop.f32.mrf.mxu1 }
 0x6f5   :  { %v3918_v12 = vpack.c.bf16 %v3909_v49, %v3907_v43  ;;  %4446 = vmatpush.bf16.msrb.mxu1 %v11438_v9  ;;  %v3308_v49 = vadd.f32 %v16457_v62, %v16441_v53  ;;  %v4477_v62 = vperm.slane %v16565_v31, 1 }
 0x6f7   :  { %4333 = vmatmul.bf16.vlgmr.msrb.gmra.mxu3 %v3918_v12  ;;  %4371 = vmatmul.bf16.vlgmr.msra.gmra.mxu1 %v3918_v12 }
 0x6f8   :  { %4390 = vmatmul.bf16.vlgmr.msra.gmra.mxu2 %v16539_v30  ;;  %4428 = vmatmul.bf16.vlgmr.msra.gmra.mxu0 %v16539_v30 }
 0x6fc   :  { %v3912_v8 = vpop.f32.mrf.mxu1 }
 0x704   :  { %v3914_v37 = vpop.f32.mrf.mxu1 }
 0x705   :  { %v3920_v38 = vpack.c.bf16 %v3914_v37, %v3912_v8  ;;  %v3761_v8 = vadd.f32 %v16491_v0, %v3308_v49 }
 0x707   :  { %4338 = vmatmul.bf16.gmra.mxu3 %v3920_v38  ;;  %4376 = vmatmul.bf16.gmra.mxu1 %v3920_v38 }
 0x708   :  { %4395 = vmatmul.bf16.gmra.mxu2 %v3919_v63  ;;  %4433 = vmatmul.bf16.gmra.mxu0 %v3919_v63  ;;  %v3303_v63 = vadd.f32 %v16448_v29, %v16436_v7  ;;  %v3265_v7 = vadd.f32 %v16444_v57, %v16434_v59  ;;  %v3780_v29 = vadd.f32 %v16529_v26, %v3761_v8 }
 0x717   :  { %4409 = vmatmul.bf16.vlgmr.msra.gmra.mxu3 %v3918_v12  ;;  %4447 = vmatmul.bf16.vlgmr.msrb.gmra.mxu1 %v3918_v12  ;;  %v3756_v12 = vadd.f32 %v16475_v4, %v3303_v63 }
 0x719   :  { %v3775_v51 = vadd.f32 %v16509_v40, %v3756_v12  ;;  %v3718_v40 = vadd.f32 %v16471_v11, %v3265_v7 }
 0x71b   :  { %v3737_v26 = vadd.f32 %v16505_v19, %v3718_v40 }
 0x727   :  { %4414 = vmatmul.bf16.gmra.mxu3 %v3920_v38  ;;  %4452 = vmatmul.bf16.gmra.mxu1 %v3920_v38 }
 0x755   :  { %v4353_v24 = vpop.f32.mrf.mxu0 }
 0x75b   :  { %v4315_v14 = vpop.f32.mrf.mxu2 }
 0x75d   :  { %v4355_v20 = vpop.f32.mrf.mxu0 }
 0x763   :  { %v4317_v41 = vpop.f32.mrf.mxu2 }
 0x765   :  { %v4358_v13 = vpop.f32.mrf.mxu0 }
 0x76b   :  { %v4320_v32 = vpop.f32.mrf.mxu2 }
 0x76d   :  { %v4360_v36 = vpop.f32.mrf.mxu0 }
 0x773   :  { %v4322_v37 = vpop.f32.mrf.mxu2 }
 0x774   :  { %v4372_v30 = vpop.f32.mrf.mxu1 }
 0x775   :  { %v4373_v38 = vadd.f32 %v4372_v30, %v4353_v24  ;;  %v3270_v24 = vadd.f32 %v16453_v27, %v16439_v60 }
 0x777   :  { %v4459_v30 = vadd.f32 %v4373_v38, %v16500_v15  ;;  %v3723_v59 = vadd.f32 %v16487_v42, %v3270_v24  ;;  %v4476_v15 = vperm.slane %v16565_v31, 0 }
 0x779   :  { %v3742_v60 = vadd.f32 %v16525_v23, %v3723_v59  ;;  %v4485_v27 = vadd.f32 %v4477_v62, %v4459_v30  ;;  %v16597_v59 = vld [vmem:[#allocation15 + $0x8] sm:$0xff] }
 0x77a   :  { %v4334_v43 = vpop.f32.mrf.mxu3 }
 0x77b   :  { %v4335_v57 = vadd.f32 %v4334_v43, %v4315_v14  ;;  %v4391_v14 = vpop.f32.mrf.mxu2  ;;  %v4501_v49 = vmax.f32 %v4485_v27, 0.0 }
 0x77c   :  { %v4374_v56 = vpop.f32.mrf.mxu1 }
 0x77d   :  { %v4375_v9 = vadd.f32 %v4374_v56, %v4355_v20  ;;  %v4458_v42 = vadd.f32 %v4335_v57, %v16494_v35  ;;  %v3341_v57 = vadd.f32 %v16469_v58, %v16446_v21 }
 0x77f   :  { %v4463_v4 = vadd.f32 %v4375_v9, %v3775_v51  ;;  %v4484_v9 = vadd.f32 %v4476_v15, %v4458_v42 }
 0x781   :  { %v4489_v51 = vadd.f32 %v4477_v62, %v4463_v4 }
 0x782   :  { %v4336_v45 = vpop.f32.mrf.mxu3 }
 0x783   :  { %v4337_v56 = vadd.f32 %v4336_v45, %v4317_v41 }
 0x784   :  { %v4377_v33 = vpop.f32.mrf.mxu1 }
 0x785   :  { %v4378_v28 = vadd.f32 %v4377_v33, %v4358_v13  ;;  %v16579_v33 = vpop.f32.mrf.mxu0  ;;  %v4462_v41 = vadd.f32 %v4337_v56, %v3737_v26 }
 0x787   :  { %v4467_v2 = vadd.f32 %v4378_v28, %v16520_v1  ;;  %v4488_v12 = vadd.f32 %v4476_v15, %v4462_v41 }
 0x789   :  { %v4493_v1 = vadd.f32 %v4477_v62, %v4467_v2 }
 0x78a   :  { %v4339_v25 = vpop.f32.mrf.mxu3 }
 0x78b   :  { %v4340_v20 = vadd.f32 %v4339_v25, %v4320_v32  ;;  %v4509_v2 = vmax.f32 %v4493_v1, 0.0 }
 0x78c   :  { %v4379_v53 = vpop.f32.mrf.mxu1 }
 0x78d   :  { %v4380_v0 = vadd.f32 %v4379_v53, %v4360_v36  ;;  %v4466_v25 = vadd.f32 %v4340_v20, %v16514_v50  ;;  %v4505_v50 = vmax.f32 %v4489_v51, 0.0  ;;  %v16587_v53 = vld [vmem:[#allocation15] sm:$0xff]  ;;  %v4500_v20 = vmax.f32 %v4484_v9, 0.0 }
 0x78f   :  { %v4471_v13 = vadd.f32 %v4380_v0, %v3780_v29  ;;  %v4492_v43 = vadd.f32 %v4476_v15, %v4466_v25  ;;  %v4517_v7 = vpack.c.bf16 %v4505_v50, %v4501_v49  ;;  %v4393_v0 = vpop.f32.mrf.mxu2  ;;  %v3384_v25 = vadd.f32 %v16489_v48, %v16459_v6 }
 0x791   :  { %v4497_v32 = vadd.f32 %v4477_v62, %v4471_v13  ;;  %v4508_v8 = vmax.f32 %v4492_v43, 0.0  ;;  %v4504_v62 = vmax.f32 %v4488_v12, 0.0  ;;  %v3837_v21 = vadd.f32 %v16555_v22, %v3384_v25  ;;  %v17775_v43 = vld [vmem:[#allocation189_spill] sm:$0xff] }
 0x792   :  { %v4341_v11 = vpop.f32.mrf.mxu3 }
 0x793   :  { %v4513_v45 = vmax.f32 %v4497_v32, 0.0  ;;  %v4342_v63 = vadd.f32 %v4341_v11, %v4322_v37  ;;  %v4431_v37 = vpop.f32.mrf.mxu0  ;;  %v4516_v24 = vpack.c.bf16 %v4504_v62, %v4500_v20  ;;  %v3346_v32 = vadd.f32 %v16485_v39, %v16455_v3  ;;  %v17773_v3 = vld [vmem:[#allocation183_spill] sm:$0xff]  ;;  %v17781_v62 = vld [vmem:[#allocation188_spill] sm:$0xff] }
 0x794   :  { %v16585_v19 = vpop.f32.mrf.mxu1  ;;  %v3379_v39 = vadd.f32 %v17773_v3, %v16450_v55  ;;  %v17778_v55 = vld [vmem:[#allocation185_spill] sm:$0xff] }
 0x795   :  { %v4470_v36 = vadd.f32 %v4342_v63, %v3742_v60  ;;  %v4521_v28 = vpack.c.bf16 %v4513_v45, %v4509_v2  ;;  %v3794_v60 = vadd.f32 %v16507_v16, %v3341_v57  ;;  %v3799_v11 = vadd.f32 %v16527_v46, %v3346_v32  ;;  %v17774_v16 = vld [vmem:[#allocation190_spill] sm:$0xff] }
 0x796   :  { %v3856_v2 = vadd.f32 %v17774_v16, %v3837_v21  ;;  %v17784_v57 = vld [vmem:[#allocation186_spill] sm:$0xff]  ;;  %v17786_v21 = vld [vmem:[#allocation111_spill] sm:$0xff] }
 0x797   :  { %v4496_v23 = vadd.f32 %v4476_v15, %v4470_v36  ;;  %4554 = vmatpush.bf16.msrb.mxu3 %v4521_v28  ;;  %v4396_v1 = vpop.f32.mrf.mxu2  ;;  %v3813_v41 = vadd.f32 %v16537_v47, %v3794_v60  ;;  %v3818_v22 = vadd.f32 %v17775_v43, %v3799_v11  ;;  %v4478_v36 = vperm.slane %v16565_v31, 2  ;;  %v17776_v47 = vld [vmem:[#allocation63_spill] sm:$0xff] }
 0x798   :  { %v17787_v11 = vld [vmem:[#allocation115_spill] sm:$0xff] }
 0x799   :  { %v4512_v38 = vmax.f32 %v4496_v23, 0.0  ;;  %v17790_v16 = vld [vmem:[#allocation119_spill] sm:$0xff] }
 0x79a   :  { %v4410_v29 = vpop.f32.mrf.mxu3  ;;  %v17794_v43 = vld [vmem:[#allocation123_spill] sm:$0xff] }
 0x79b   :  { %4555 = vmatpush.bf16.msrb.mxu3 %v4517_v7  ;;  %v4520_v35 = vpack.c.bf16 %v4512_v38, %v4508_v8  ;;  %v4434_v56 = vpop.f32.mrf.mxu0  ;;  %v4411_v6 = vadd.f32 %v4410_v29, %v4391_v14  ;;  %v17777_v14 = vld [vmem:[#allocation184_spill] sm:$0xff]  ;;  %v17779_v8 = vld [vmem:[#allocation103_spill] sm:$0xff]  ;;  %v4449_v29 = vadd.f32 %v16585_v19, %v16579_v33  ;;  %v17785_v19 = vld [vmem:[#allocation65_spill] sm:$0xff] }
 0x79c   :  { %v4450_v4 = vpop.f32.mrf.mxu1  ;;  %v17780_v38 = vld [vmem:[#allocation187_spill] sm:$0xff] }
 0x79d   :  { %4540 = vmatpush.bf16.msrb.mxu2 %v4520_v35  ;;  %v4451_v50 = vadd.f32 %v4450_v4, %v4431_v37  ;;  %v4460_v12 = vadd.f32 %v4411_v6, %v17778_v55  ;;  %v17803_v55 = vld [vmem:[#allocation135_spill] sm:$0xff] }
 0x79e   :  { %11556 = vmatmul.msk.bf16.vlgmr.msrb.gmra.mxu3 %vm688_vm1, %v16587_v53 }
 0x79f   :  { %4621 = vmatpush.bf16.msra.mxu3 %v4521_v28  ;;  %v4398_v45 = vpop.f32.mrf.mxu2 }
 0x7a1   :  { %4541 = vmatpush.bf16.msrb.mxu2 %v4516_v24 }
 0x7a2   :  { %v4412_v30 = vpop.f32.mrf.mxu3 }
 0x7a3   :  { %4622 = vmatpush.bf16.msra.mxu3 %v4517_v7  ;;  %v4436_v27 = vpop.f32.mrf.mxu0  ;;  %v4413_v15 = vadd.f32 %v4412_v30, %v4393_v0  ;;  %v17782_v0 = vld [vmem:[#allocation64_spill] sm:$0xff] }
 0x7a4   :  { %v4453_v40 = vpop.f32.mrf.mxu1  ;;  %11555 = vmatmul.msk.bf16.vlgmr.msrb.gmra.mxu2 %vm688_vm1, %v16587_v53 }
 0x7a5   :  { %4607 = vmatpush.bf16.msra.mxu2 %v4520_v35  ;;  %v4454_v63 = vadd.f32 %v4453_v40, %v4434_v56  ;;  %v4464_v46 = vadd.f32 %v4413_v15, %v3813_v41  ;;  %v4479_v35 = vperm.slane %v16565_v31, 3  ;;  %v4486_v40 = vadd.f32 %v4478_v36, %v4460_v12  ;;  %v17788_v41 = vld [vmem:[#allocation66_spill] sm:$0xff] }
 0x7a6   :  { %v17804_v12 = vld [vmem:[#allocation70_spill] sm:$0xff] }
 0x7a7   :  { %4683 = vmatpush.bf16.msrb.mxu3 %v15947_v61  ;;  %v4469_v20 = vadd.f32 %v4454_v63, %v17781_v62  ;;  %v4490_v37 = vadd.f32 %v4478_v36, %v4464_v46  ;;  %v4502_v60 = vmax.f32 %v4486_v40, 0.0  ;;  %v17792_v63 = vld [vmem:[#allocation68_spill] sm:$0xff]  ;;  %v17797_v46 = vld [vmem:[#allocation127_spill] sm:$0xff] }
 0x7a8   :  { %v17811_v62 = vld [vmem:[#allocation143_spill] sm:$0xff]  ;;  %v17818_v40 = vld [vmem:[#allocation100_spill] sm:$0xff] }
 0x7a9   :  { %4608 = vmatpush.bf16.msra.mxu2 %v4516_v24  ;;  %v4506_v33 = vmax.f32 %v4490_v37, 0.0  ;;  %v17813_v37 = vld [vmem:[#allocation83_spill] sm:$0xff] }
 0x7aa   :  { %v4415_v13 = vpop.f32.mrf.mxu3 }
 0x7ab   :  { %4684 = vmatpush.bf16.msrb.mxu3 %v15961_v5  ;;  %v4416_v26 = vadd.f32 %v4415_v13, %v4396_v1  ;;  %v17783_v13 = vld [vmem:[#allocation107_spill] sm:$0xff] }
 0x7ac   :  { %v4455_v51 = vpop.f32.mrf.mxu1 }
 0x7ad   :  { %4669 = vmatpush.bf16.msrb.mxu2 %v15853_v34  ;;  %v4456_v58 = vadd.f32 %v4455_v51, %v4436_v27  ;;  %v4468_v48 = vadd.f32 %v4416_v26, %v16546_v17  ;;  %v3832_v17 = vadd.f32 %v17777_v14, %v3379_v39  ;;  %v4461_v26 = vadd.f32 %v4449_v29, %v17784_v57  ;;  %v17789_v39 = vld [vmem:[#allocation73_spill] sm:$0xff]  ;;  %v17799_v14 = vld [vmem:[#allocation82_spill] sm:$0xff]  ;;  %v17809_v29 = vld [vmem:[#allocation80_spill] sm:$0xff] }
 0x7ae   :  { %11564 = vmatmul.msk.bf16.vlgmr.msra.gmra.mxu3 %vm688_vm1, %v16597_v59  ;;  %v4495_v51 = vadd.f32 %v4479_v35, %v4469_v20  ;;  %v17812_v20 = vld [vmem:[#allocation75_spill] sm:$0xff]  ;;  %v17821_v57 = vld [vmem:[#allocation84_spill] sm:$0xff] }
 0x7af   :  { %4685 = vmatpush.bf16.msrb.mxu3 %v15975_v52  ;;  %v4473_v49 = vadd.f32 %v4456_v58, %v3856_v2  ;;  %v4494_v23 = vadd.f32 %v4478_v36, %v4468_v48  ;;  %v3851_v7 = vadd.f32 %v17780_v38, %v3832_v17  ;;  %v4487_v27 = vadd.f32 %v4479_v35, %v4461_v26  ;;  %v17791_v2 = vld [vmem:[#allocation67_spill] sm:$0xff]  ;;  %v17822_v26 = vld [vmem:[#allocation108_spill] sm:$0xff] }
 0x7b0   :  { %v4511_v15 = vmax.f32 %v4495_v51, 0.0  ;;  %v4518_v58 = vpack.c.bf16 %v4506_v33, %v4502_v60  ;;  %v17800_v17 = vld [vmem:[#allocation131_spill] sm:$0xff]  ;;  %v17825_v33 = vld [vmem:[#allocation90_spill] sm:$0xff]  ;;  %v17828_v60 = vld [vmem:[#allocation96_spill] sm:$0xff] }
 0x7b1   :  { %4670 = vmatpush.bf16.msrb.mxu2 %v15856_v44  ;;  %v4465_v24 = vadd.f32 %v4451_v50, %v3851_v7  ;;  %v4499_v30 = vadd.f32 %v4479_v35, %v4473_v49  ;;  %v4510_v56 = vmax.f32 %v4494_v23, 0.0  ;;  %v4503_v3 = vmax.f32 %v4487_v27, 0.0  ;;  %v17801_v50 = vld [vmem:[#allocation74_spill] sm:$0xff]  ;;  %v17802_v49 = vld [vmem:[#allocation85_spill] sm:$0xff]  ;;  %v17807_v38 = vld [vmem:[#allocation139_spill] sm:$0xff] }
 0x7b2   :  { %v4417_v42 = vpop.f32.mrf.mxu3  ;;  %v17805_v23 = vld [vmem:[#allocation77_spill] sm:$0xff]  ;;  %v17808_v7 = vld [vmem:[#allocation72_spill] sm:$0xff]  ;;  %v17823_v51 = vld [vmem:[#allocation87_spill] sm:$0xff] }
 0x7b3   :  { %4686 = vmatpush.bf16.msrb.mxu3 %v15989_v18  ;;  %v4418_v28 = vadd.f32 %v4417_v42, %v4398_v45  ;;  %v4491_v31 = vadd.f32 %v4479_v35, %v4465_v24  ;;  %v4515_v32 = vmax.f32 %v4499_v30, 0.0  ;;  %v17793_v42 = vld [vmem:[#allocation76_spill] sm:$0xff]  ;;  %v17810_v35 = vld [vmem:[#allocation91_spill] sm:$0xff]  ;;  %v17816_v24 = vld [vmem:[#allocation78_spill] sm:$0xff] }
 0x7b4   :  { %11563 = vmatmul.msk.bf16.vlgmr.msra.gmra.mxu2 %vm688_vm1, %v16597_v59  ;;  %v17817_v30 = vld [vmem:[#allocation86_spill] sm:$0xff]  ;;  %v17830_v27 = vld [vmem:[#allocation99_spill] sm:$0xff] }
 0x7b5   :  { %4671 = vmatpush.bf16.msrb.mxu2 %v15860_v54  ;;  %v4472_v9 = vadd.f32 %v4418_v28, %v3818_v22  ;;  %v4523_v6 = vpack.c.bf16 %v4515_v32, %v4511_v15  ;;  %v4507_v48 = vmax.f32 %v4491_v31, 0.0  ;;  %v17795_v22 = vld [vmem:[#allocation69_spill] sm:$0xff]  ;;  %v17798_v28 = vld [vmem:[#allocation71_spill] sm:$0xff]  ;;  %v17827_v32 = vld [vmem:[#allocation116_spill] sm:$0xff] }
 0x7b6   :  { %v17826_v31 = vld [vmem:[#allocation93_spill] sm:$0xff]  ;;  %v17831_v15 = vld [vmem:[#allocation124_spill] sm:$0xff] }
 0x7b7   :  { %4687 = vmatpush.bf16.msrb.mxu3 %v16006_v10  ;;  %v4498_v4 = vadd.f32 %v4478_v36, %v4472_v9  ;;  %v4519_v45 = vpack.c.bf16 %v4507_v48, %v4503_v3  ;;  %v17796_v36 = vld [vmem:[#allocation79_spill] sm:$0xff]  ;;  %v17806_v9 = vld [vmem:[#allocation88_spill] sm:$0xff]  ;;  %v17834_v48 = vld [vmem:[#allocation110_spill] sm:$0xff] }
 0x7b8   :  { %v17835_v3 = vld [vmem:[#allocation114_spill] sm:$0xff] }
 0x7b9   :  { %4672 = vmatpush.bf16.msrb.mxu2 %v17776_v47  ;;  %v4514_v1 = vmax.f32 %v4498_v4, 0.0  ;;  %v17815_v4 = vld [vmem:[#allocation97_spill] sm:$0xff] }
 0x7bb   :  { %4688 = vmatpush.bf16.msrb.mxu3 %v17779_v8  ;;  %v4522_v25 = vpack.c.bf16 %v4514_v1, %v4510_v56  ;;  %v17819_v56 = vld [vmem:[#allocation81_spill] sm:$0xff]  ;;  %v17820_v1 = vld [vmem:[#allocation104_spill] sm:$0xff] }
 0x7bd   :  { %4673 = vmatpush.bf16.msrb.mxu2 %v17782_v0  ;;  %4568 = vmatpush.bf16.msra.mxu1 %v4522_v25 }
 0x7be   :  { %4635 = vmatpush.bf16.msrb.mxu0 %v4522_v25  ;;  %v17824_v25 = vld [vmem:[#allocation112_spill] sm:$0xff] }
 0x7bf   :  { %4689 = vmatpush.bf16.msrb.mxu3 %v17783_v13 }
 0x7c1   :  { %4674 = vmatpush.bf16.msrb.mxu2 %v17785_v19  ;;  %4569 = vmatpush.bf16.msra.mxu1 %v4518_v58 }
 0x7c2   :  { %4636 = vmatpush.bf16.msrb.mxu0 %v4518_v58  ;;  %v17832_v58 = vld [vmem:[#allocation102_spill] sm:$0xff] }
 0x7c3   :  { %4690 = vmatpush.bf16.msrb.mxu3 %v17786_v21 }
 0x7c4   :  { %11557 = vmatmul.msk.bf16.vlgmr.msra.gmra.mxu1 %vm688_vm1, %v16587_v53 }
 0x7c5   :  { %4675 = vmatpush.bf16.msrb.mxu2 %v17788_v41  ;;  %4582 = vmatpush.bf16.msrb.mxu1 %v4523_v6 }
 0x7c6   :  { %4697 = vmatpush.bf16.msra.mxu0 %v17789_v39 }
 0x7c7   :  { %4739 = vmatpush.bf16.msra.mxu3 %v17787_v11  ;;  %11565 = vmatmul.msk.bf16.vlgmr.msrb.gmra.mxu0 %vm688_vm1, %v16597_v59 }
 0x7c9   :  { %4676 = vmatpush.bf16.msrb.mxu2 %v17791_v2  ;;  %4583 = vmatpush.bf16.msrb.mxu1 %v4519_v45 }
 0x7ca   :  { %4698 = vmatpush.bf16.msra.mxu0 %v17793_v42 }
 0x7cb   :  { %4740 = vmatpush.bf16.msra.mxu3 %v17790_v16 }
 0x7cd   :  { %4725 = vmatpush.bf16.msra.mxu2 %v17792_v63  ;;  %4649 = vmatpush.bf16.msra.mxu1 %v4523_v6  ;;  %v17833_v6 = vld [vmem:[#allocation106_spill] sm:$0xff] }
 0x7ce   :  { %4699 = vmatpush.bf16.msra.mxu0 %v17796_v36 }
 0x7cf   :  { %4741 = vmatpush.bf16.msra.mxu3 %v17794_v43 }
 0x7d1   :  { %4726 = vmatpush.bf16.msra.mxu2 %v17795_v22  ;;  %4650 = vmatpush.bf16.msra.mxu1 %v4519_v45  ;;  %v17836_v45 = vld [vmem:[#allocation118_spill] sm:$0xff] }
 0x7d2   :  { %4700 = vmatpush.bf16.msra.mxu0 %v17799_v14 }
 0x7d3   :  { %4742 = vmatpush.bf16.msra.mxu3 %v17797_v46 }
 0x7d4   :  { %11558 = vmatmul.msk.bf16.vlgmr.msrb.gmra.mxu1 %vm688_vm1, %v16587_v53  ;;  %v17814_v53 = vld [vmem:[#allocation94_spill] sm:$0xff] }
 0x7d5   :  { %4727 = vmatpush.bf16.msra.mxu2 %v17798_v28  ;;  %4711 = vmatpush.bf16.msrb.mxu1 %v17804_v12 }
 0x7d6   :  { %4701 = vmatpush.bf16.msra.mxu0 %v17802_v49 }
 0x7d7   :  { %4743 = vmatpush.bf16.msra.mxu3 %v17800_v17 }
 0x7d9   :  { %4728 = vmatpush.bf16.msra.mxu2 %v17801_v50  ;;  %4712 = vmatpush.bf16.msrb.mxu1 %v17808_v7 }
 0x7da   :  { %4702 = vmatpush.bf16.msra.mxu0 %v17806_v9 }
 0x7db   :  { %4744 = vmatpush.bf16.msra.mxu3 %v17803_v55 }
 0x7dd   :  { %4729 = vmatpush.bf16.msra.mxu2 %v17805_v23  ;;  %4713 = vmatpush.bf16.msrb.mxu1 %v17812_v20 }
 0x7de   :  { %4703 = vmatpush.bf16.msra.mxu0 %v17810_v35 }
 0x7df   :  { %4745 = vmatpush.bf16.msra.mxu3 %v17807_v38 }
 0x7e1   :  { %4730 = vmatpush.bf16.msra.mxu2 %v17809_v29  ;;  %4714 = vmatpush.bf16.msrb.mxu1 %v17816_v24 }
 0x7e2   :  { %4704 = vmatpush.bf16.msra.mxu0 %v17814_v53 }
 0x7e3   :  { %4746 = vmatpush.bf16.msra.mxu3 %v17811_v62 }
 0x7e4   :  { %11566 = vmatmul.msk.bf16.vlgmr.msra.gmra.mxu1 %vm688_vm1, %v16597_v59  ;;  %v17829_v59 = vld [vmem:[#allocation120_spill] sm:$0xff] }
 0x7e5   :  { %4731 = vmatpush.bf16.msra.mxu2 %v17813_v37  ;;  %4715 = vmatpush.bf16.msrb.mxu1 %v17819_v56  ;;  %v17838_v37 = vld [vmem:[#allocation150_spill] sm:$0xff] }
 0x7e6   :  { %4753 = vmatpush.bf16.msrb.mxu0 %v17815_v4 }
 0x7e9   :  { %4732 = vmatpush.bf16.msra.mxu2 %v17817_v30  ;;  %4716 = vmatpush.bf16.msrb.mxu1 %v17821_v57 }
 0x7ea   :  { %4754 = vmatpush.bf16.msrb.mxu0 %v17818_v40 }
 0x7ed   :  { %4717 = vmatpush.bf16.msrb.mxu1 %v17823_v51 }
 0x7ee   :  { %4755 = vmatpush.bf16.msrb.mxu0 %v17820_v1 }
 0x7f1   :  { %4718 = vmatpush.bf16.msrb.mxu1 %v17825_v33 }
 0x7f2   :  { %4756 = vmatpush.bf16.msrb.mxu0 %v17822_v26 }
 0x7f5   :  { %4767 = vmatpush.bf16.msra.mxu1 %v17826_v31 }
 0x7f6   :  { %4757 = vmatpush.bf16.msrb.mxu0 %v17824_v25 }
 0x7f9   :  { %4768 = vmatpush.bf16.msra.mxu1 %v17828_v60 }
 0x7fa   :  { %4758 = vmatpush.bf16.msrb.mxu0 %v17827_v32 }
 0x7fd   :  { %4769 = vmatpush.bf16.msra.mxu1 %v17830_v27 }
 0x7fe   :  { %4759 = vmatpush.bf16.msrb.mxu0 %v17829_v59 }
 0x801   :  { %4770 = vmatpush.bf16.msra.mxu1 %v17832_v58 }
 0x802   :  { %4760 = vmatpush.bf16.msrb.mxu0 %v17831_v15 }
 0x805   :  { %4771 = vmatpush.bf16.msra.mxu1 %v17833_v6  ;;  %v17837_v6 = vld [vmem:[#allocation147_spill] sm:$0xff] }
 0x809   :  { %4772 = vmatpush.bf16.msra.mxu1 %v17834_v48 }
 0x80d   :  { %4773 = vmatpush.bf16.msra.mxu1 %v17835_v3 }
 0x811   :  { %4774 = vmatpush.bf16.msra.mxu1 %v17836_v45 }
 0x821   :  { %v4557_v62 = vpop.f32.mrf.mxu3 }
 0x827   :  { %v4543_v32 = vpop.f32.mrf.mxu2 }
 0x829   :  { %v4559_v25 = vpop.f32.mrf.mxu3 }
 0x82f   :  { %v4545_v38 = vpop.f32.mrf.mxu2 }
 0x831   :  { %v4624_v26 = vpop.f32.mrf.mxu3 }
 0x832   :  { %v4658_v30 = vmax.f32 %v4557_v62, %v4624_v26  ;;  %v17839_v62 = vld [vmem:[#allocation89_spill] sm:$0xff] }
 0x833   :  { %v17840_v26 = vld [vmem:[#allocation153_spill] sm:$0xff] }
 0x837   :  { %v4610_v59 = vpop.f32.mrf.mxu2 }
 0x838   :  { %v4657_v58 = vmax.f32 %v4543_v32, %v4610_v59 }
 0x839   :  { %v4626_v27 = vpop.f32.mrf.mxu3 }
 0x83a   :  { %v4662_v60 = vmax.f32 %v4559_v25, %v4626_v27  ;;  %v17842_v27 = vld [vmem:[#allocation156_spill] sm:$0xff] }
 0x83c   :  { %v16695_v15 = vpack.c.bf16 %v4662_v60, %v4658_v30  ;;  %v17841_v30 = vld [vmem:[#allocation92_spill] sm:$0xff] }
 0x83e   :  { %4691 = vmatmul.bf16.vlgmr.msrb.gmra.mxu3 %v16695_v15 }
 0x83f   :  { %4795 = vmatpush.bf16.msrb.mxu3 %v17837_v6  ;;  %v4612_v48 = vpop.f32.mrf.mxu2  ;;  %v17847_v6 = vld [vmem:[#allocation162_spill] sm:$0xff] }
 0x840   :  { %v4661_v3 = vmax.f32 %v4545_v38, %v4612_v48  ;;  %v17844_v48 = vld [vmem:[#allocation159_spill] sm:$0xff] }
 0x841   :  { %v4571_v55 = vpop.f32.mrf.mxu1 }
 0x842   :  { %v16699_v1 = vpack.c.bf16 %v4661_v3, %v4657_v58  ;;  %v17843_v58 = vld [vmem:[#allocation95_spill] sm:$0xff]  ;;  %v17845_v3 = vld [vmem:[#allocation128_spill] sm:$0xff] }
 0x843   :  { %4796 = vmatpush.bf16.msrb.mxu3 %v17838_v37 }
 0x844   :  { %v4638_v45 = vpop.f32.mrf.mxu0  ;;  %4677 = vmatmul.bf16.vlgmr.msrb.gmra.mxu2 %v16699_v1 }
 0x845   :  { %4781 = vmatpush.bf16.msrb.mxu2 %v17839_v62  ;;  %v4659_v60 = vmax.f32 %v4571_v55, %v4638_v45  ;;  %v17848_v55 = vld [vmem:[#allocation132_spill] sm:$0xff]  ;;  %v17849_v45 = vld [vmem:[#allocation101_spill] sm:$0xff]  ;;  %v17868_v62 = vld [vmem:[#allocation179_spill] sm:$0xff] }
 0x847   :  { %4797 = vmatpush.bf16.msrb.mxu3 %v17840_v26  ;;  %v17846_v26 = vld [vmem:[#allocation98_spill] sm:$0xff] }
 0x849   :  { %4782 = vmatpush.bf16.msrb.mxu2 %v17841_v30  ;;  %v4573_v25 = vpop.f32.mrf.mxu1  ;;  %v17866_v30 = vld [vmem:[#allocation125_spill] sm:$0xff] }
 0x84b   :  { %4798 = vmatpush.bf16.msrb.mxu3 %v17842_v27  ;;  %v17855_v27 = vld [vmem:[#allocation171_spill] sm:$0xff] }
 0x84c   :  { %v4640_v32 = vpop.f32.mrf.mxu0 }
 0x84d   :  { %v4663_v59 = vmax.f32 %v4573_v25, %v4640_v32  ;;  %4783 = vmatpush.bf16.msrb.mxu2 %v17843_v58  ;;  %v17850_v25 = vld [vmem:[#allocation165_spill] sm:$0xff]  ;;  %v17851_v32 = vld [vmem:[#allocation136_spill] sm:$0xff] }
 0x84e   :  { %4747 = vmatmul.bf16.vlgmr.msra.gmra.mxu3 %v16695_v15 }
 0x84f   :  { %v16707_v38 = vpack.c.bf16 %v4663_v59, %v4659_v60  ;;  %4799 = vmatpush.bf16.msrb.mxu3 %v17844_v48  ;;  %v17852_v60 = vld [vmem:[#allocation105_spill] sm:$0xff]  ;;  %v17853_v48 = vld [vmem:[#allocation168_spill] sm:$0xff] }
 0x851   :  { %4705 = vmatmul.bf16.vlgmr.msra.gmra.mxu0 %v16707_v38  ;;  %4784 = vmatpush.bf16.msrb.mxu2 %v17846_v26  ;;  %v4585_v37 = vpop.f32.mrf.mxu1  ;;  %v17865_v26 = vld [vmem:[#allocation178_spill] sm:$0xff] }
 0x852   :  { %4809 = vmatpush.bf16.msra.mxu0 %v17845_v3  ;;  %v17854_v3 = vld [vmem:[#allocation140_spill] sm:$0xff] }
 0x853   :  { %4800 = vmatpush.bf16.msrb.mxu3 %v17847_v6  ;;  %v17856_v6 = vld [vmem:[#allocation109_spill] sm:$0xff] }
 0x854   :  { %4733 = vmatmul.bf16.vlgmr.msra.gmra.mxu2 %v16699_v1 }
 0x855   :  { %4785 = vmatpush.bf16.msrb.mxu2 %v17849_v45  ;;  %v17860_v45 = vld [vmem:[#allocation117_spill] sm:$0xff] }
 0x856   :  { %4810 = vmatpush.bf16.msra.mxu0 %v17848_v55  ;;  %v17857_v55 = vld [vmem:[#allocation144_spill] sm:$0xff] }
 0x857   :  { %4801 = vmatpush.bf16.msrb.mxu3 %v17850_v25  ;;  %v17858_v25 = vld [vmem:[#allocation174_spill] sm:$0xff] }
 0x859   :  { %4786 = vmatpush.bf16.msrb.mxu2 %v17852_v60  ;;  %v4587_v59 = vpop.f32.mrf.mxu1 }
 0x85a   :  { %4811 = vmatpush.bf16.msra.mxu0 %v17851_v32  ;;  %v17859_v32 = vld [vmem:[#allocation113_spill] sm:$0xff] }
 0x85b   :  { %4802 = vmatpush.bf16.msrb.mxu3 %v17853_v48  ;;  %v17861_v48 = vld [vmem:[#allocation148_spill] sm:$0xff] }
 0x85d   :  { %4787 = vmatpush.bf16.msrb.mxu2 %v17856_v6  ;;  %v17864_v6 = vld [vmem:[#allocation151_spill] sm:$0xff] }
 0x85e   :  { %4812 = vmatpush.bf16.msra.mxu0 %v17854_v3  ;;  %4803 = vmatmul.bf16.vlgmr.msrb.gmra.mxu3 %v16695_v15  ;;  %v17862_v3 = vld [vmem:[#allocation176_spill] sm:$0xff] }
 0x85f   :  { %4851 = vmatpush.bf16.msra.mxu3 %v17855_v27  ;;  %v17863_v27 = vld [vmem:[#allocation121_spill] sm:$0xff] }
 0x861   :  { %4761 = vmatmul.bf16.vlgmr.msrb.gmra.mxu0 %v16707_v38  ;;  %4788 = vmatpush.bf16.msrb.mxu2 %v17859_v32  ;;  %v4652_v60 = vpop.f32.mrf.mxu1  ;;  %v17867_v32 = vld [vmem:[#allocation154_spill] sm:$0xff] }
 0x862   :  { %4813 = vmatpush.bf16.msra.mxu0 %v17857_v55  ;;  %v4660_v58 = vmax.f32 %v4585_v37, %v4652_v60  ;;  %v17873_v37 = vld [vmem:[#allocation160_spill] sm:$0xff]  ;;  %v17875_v60 = vld [vmem:[#allocation126_spill] sm:$0xff] }
 0x863   :  { %4852 = vmatpush.bf16.msra.mxu3 %v17858_v25 }
 0x864   :  { %4789 = vmatmul.bf16.vlgmr.msrb.gmra.mxu2 %v16699_v1 }
 0x865   :  { %4837 = vmatpush.bf16.msra.mxu2 %v17860_v45 }
 0x866   :  { %4814 = vmatpush.bf16.msra.mxu0 %v17861_v48  ;;  %v17869_v48 = vld [vmem:[#allocation157_spill] sm:$0xff] }
 0x867   :  { %4853 = vmatpush.bf16.msra.mxu3 %v17862_v3  ;;  %v17870_v3 = vld [vmem:[#allocation129_spill] sm:$0xff] }
 0x869   :  { %4838 = vmatpush.bf16.msra.mxu2 %v17863_v27  ;;  %v4654_v55 = vpop.f32.mrf.mxu1 }
 0x86a   :  { %4815 = vmatpush.bf16.msra.mxu0 %v17864_v6  ;;  %v4664_v25 = vmax.f32 %v4587_v59, %v4654_v55  ;;  %v17871_v6 = vld [vmem:[#allocation122_spill] sm:$0xff]  ;;  %v17874_v55 = vld [vmem:[#allocation133_spill] sm:$0xff] }
 0x86b   :  { %4854 = vmatpush.bf16.msra.mxu3 %v17865_v26  ;;  %v17872_v26 = vld [vmem:[#allocation180_spill] sm:$0xff]  ;;  %v17878_v59 = vld [vmem:[#allocation137_spill] sm:$0xff] }
 0x86c   :  { %v4668_v45 = vpack.c.bf16 %v4664_v25, %v4660_v58  ;;  %v17876_v58 = vld [vmem:[#allocation181_spill] sm:$0xff]  ;;  %v17877_v25 = vld [vmem:[#allocation163_spill] sm:$0xff] }
 0x86d   :  { %4839 = vmatpush.bf16.msra.mxu2 %v17866_v30 }
 0x86e   :  { %4816 = vmatpush.bf16.msra.mxu0 %v17867_v32  ;;  %4719 = vmatmul.bf16.vlgmr.msrb.gmra.mxu1 %v4668_v45  ;;  %v17881_v32 = vld [vmem:[#allocation166_spill] sm:$0xff] }
 0x86f   :  { %4855 = vmatpush.bf16.msra.mxu3 %v17868_v62  ;;  %4823 = vmatpush.bf16.msrb.mxu1 %v17871_v6  ;;  %v17880_v62 = vld [vmem:[#allocation182_spill] sm:$0xff] }
 0x871   :  { %4840 = vmatpush.bf16.msra.mxu2 %v17870_v3  ;;  %4817 = vmatmul.bf16.vlgmr.msra.gmra.mxu0 %v16707_v38  ;;  %v17882_v3 = vld [vmem:[#allocation141_spill] sm:$0xff] }
 0x872   :  { %4865 = vmatpush.bf16.msrb.mxu0 %v17869_v48  ;;  %v17879_v48 = vld [vmem:[#allocation130_spill] sm:$0xff] }
 0x873   :  { %4856 = vmatpush.bf16.msra.mxu3 %v17872_v26  ;;  %4824 = vmatpush.bf16.msrb.mxu1 %v17875_v60  ;;  %v17883_v26 = vld [vmem:[#allocation134_spill] sm:$0xff] }
 0x875   :  { %4841 = vmatpush.bf16.msra.mxu2 %v17874_v55  ;;  %v17885_v55 = vld [vmem:[#allocation145_spill] sm:$0xff] }
 0x876   :  { %4866 = vmatpush.bf16.msrb.mxu0 %v17873_v37  ;;  %v17884_v37 = vld [vmem:[#allocation169_spill] sm:$0xff] }
 0x877   :  { %4857 = vmatpush.bf16.msra.mxu3 %v17876_v58  ;;  %4825 = vmatpush.bf16.msrb.mxu1 %v17879_v48  ;;  %v17887_v58 = vld [vmem:[#allocation172_spill] sm:$0xff] }
 0x879   :  { %4842 = vmatpush.bf16.msra.mxu2 %v17878_v59  ;;  %v17891_v59 = vld [vmem:[#allocation177_spill] sm:$0xff] }
 0x87a   :  { %4867 = vmatpush.bf16.msrb.mxu0 %v17877_v25  ;;  %v17886_v25 = vld [vmem:[#allocation138_spill] sm:$0xff] }
 0x87b   :  { %4858 = vmatpush.bf16.msra.mxu3 %v17880_v62  ;;  %4826 = vmatpush.bf16.msrb.mxu1 %v17883_v26  ;;  %v17888_v62 = vld [vmem:[#allocation142_spill] sm:$0xff] }
 0x87d   :  { %4843 = vmatpush.bf16.msra.mxu2 %v17882_v3  ;;  %v17890_v3 = vld [vmem:[#allocation146_spill] sm:$0xff] }
 0x87e   :  { %4868 = vmatpush.bf16.msrb.mxu0 %v17881_v32  ;;  %4859 = vmatmul.bf16.vlgmr.msra.gmra.mxu3 %v16695_v15  ;;  %v17889_v32 = vld [vmem:[#allocation175_spill] sm:$0xff]  ;;  %v17892_v15 = vld [vmem:[#allocation149_spill] sm:$0xff] }
 0x87f   :  { %4775 = vmatmul.bf16.vlgmr.msra.gmra.mxu1 %v4668_v45 }
 0x880   :  { %4827 = vmatpush.bf16.msrb.mxu1 %v17886_v25 }
 0x881   :  { %4844 = vmatpush.bf16.msra.mxu2 %v17885_v55  ;;  %v17894_v55 = vld [vmem:[#allocation155_spill] sm:$0xff] }
 0x882   :  { %4869 = vmatpush.bf16.msrb.mxu0 %v17884_v37  ;;  %v17893_v37 = vld [vmem:[#allocation152_spill] sm:$0xff] }
 0x884   :  { %4845 = vmatmul.bf16.vlgmr.msra.gmra.mxu2 %v16699_v1  ;;  %4828 = vmatpush.bf16.msrb.mxu1 %v17888_v62  ;;  %v17896_v1 = vld [vmem:[#allocation161_spill] sm:$0xff]  ;;  %v17897_v62 = vld [vmem:[#allocation164_spill] sm:$0xff] }
 0x886   :  { %4870 = vmatpush.bf16.msrb.mxu0 %v17887_v58  ;;  %v17895_v58 = vld [vmem:[#allocation158_spill] sm:$0xff] }
 0x888   :  { %4829 = vmatpush.bf16.msrb.mxu1 %v17890_v3  ;;  %v17899_v3 = vld [vmem:[#allocation170_spill] sm:$0xff] }
 0x88a   :  { %4871 = vmatpush.bf16.msrb.mxu0 %v17889_v32  ;;  %v17898_v32 = vld [vmem:[#allocation167_spill] sm:$0xff] }
 0x88c   :  { %4830 = vmatpush.bf16.msrb.mxu1 %v17892_v15 }
 0x88e   :  { %4872 = vmatpush.bf16.msrb.mxu0 %v17891_v59  ;;  %v17900_v59 = vld [vmem:[#allocation173_spill] sm:$0xff] }
 0x88f   :  { %4831 = vmatmul.bf16.vlgmr.msrb.gmra.mxu1 %v4668_v45 }
 0x890   :  { %4879 = vmatpush.bf16.msra.mxu1 %v17893_v37 }
 0x891   :  { %4873 = vmatmul.bf16.vlgmr.msrb.gmra.mxu0 %v16707_v38 }
 0x894   :  { %4880 = vmatpush.bf16.msra.mxu1 %v17894_v55 }
 0x898   :  { %4881 = vmatpush.bf16.msra.mxu1 %v17895_v58 }
 0x89c   :  { %4882 = vmatpush.bf16.msra.mxu1 %v17896_v1 }
 0x8a0   :  { %4883 = vmatpush.bf16.msra.mxu1 %v17897_v62 }
 0x8a4   :  { %4884 = vmatpush.bf16.msra.mxu1 %v17898_v32 }
 0x8a8   :  { %4885 = vmatpush.bf16.msra.mxu1 %v17899_v3 }
 0x8ac   :  { %4886 = vmatpush.bf16.msra.mxu1 %v17900_v59 }
 0x8af   :  { %4887 = vmatmul.bf16.vlgmr.msra.gmra.mxu1 %v4668_v45 }
 0x8c1   :  { %v4692_v38 = vpop.f32.mrf.mxu3 }
 0x8c7   :  { %v4678_v15 = vpop.f32.mrf.mxu2 }
 0x8c8   :  { %v4693_v40 = vadd.f32 %v4692_v38, %v4678_v15  ;;  %v16795_v15 = vld [vmem:[#allocation16 + $0x8] sm:$0xff]  ;;  %v11629_v38 = vld [vmem:[#allocation18 + $0x260] sm:$0xf] }
 0x8c9   :  { %v4694_v26 = vpop.f32.mrf.mxu3 }
 0x8ce   :  { %v4706_v25 = vpop.f32.mrf.mxu0 }
 0x8cf   :  { %v4680_v37 = vpop.f32.mrf.mxu2  ;;  %v4707_v43 = vadd.f32 %v4706_v25, %v4693_v40  ;;  %v14083_v40 = vld [vmem:[#allocation18 + $0x2a4] sm:$0xf] }
 0x8d0   :  { %v4695_v4 = vadd.f32 %v4694_v26, %v4680_v37  ;;  %v11645_v26 = vld [vmem:[#allocation18 + $0x280] sm:$0xf]  ;;  %v11647_v37 = vld [vmem:[#allocation18 + $0x290] sm:$0xf0] }
 0x8d1   :  { %v16779_v58 = vpop.f32.mrf.mxu3 }
 0x8d6   :  { %v4708_v30 = vpop.f32.mrf.mxu0 }
 0x8d7   :  { %v16777_v48 = vpop.f32.mrf.mxu2  ;;  %v4709_v57 = vadd.f32 %v4708_v30, %v4695_v4  ;;  %v11661_v4 = vld [vmem:[#allocation18 + $0x2a0] sm:$0xf]  ;;  %v14081_v30 = vld [vmem:[#allocation18 + $0x28c] sm:$0xf0] }
 0x8d9   :  { %v16785_v3 = vpop.f32.mrf.mxu3 }
 0x8de   :  { %v16781_v1 = vpop.f32.mrf.mxu0 }
 0x8df   :  { %v16783_v32 = vpop.f32.mrf.mxu2 }
 0x8e1   :  { %v4804_v6 = vpop.f32.mrf.mxu3 }
 0x8e6   :  { %v16787_v59 = vpop.f32.mrf.mxu0 }
 0x8e7   :  { %v4790_v27 = vpop.f32.mrf.mxu2 }
 0x8e8   :  { %v4805_v29 = vadd.f32 %v4804_v6, %v4790_v27  ;;  %v16797_v6 = vld [vmem:[#allocation16] sm:$0xff]  ;;  %v14079_v27 = vld [vmem:[#allocation18 + $0x284] sm:$0xf] }
 0x8e9   :  { %v4806_v46 = vpop.f32.mrf.mxu3  ;;  %v11650_v25 = vor.u32 %v14079_v27, %v11647_v37  ;;  %v11597_v27 = vld [vmem:[#allocation18 + $0x220] sm:$0xf] }
 0x8eb   :  { %v4720_v55 = vpop.f32.mrf.mxu1 }
 0x8ec   :  { %v4721_v56 = vadd.f32 %v4720_v55, %v4707_v43  ;;  %v11695_v43 = vld [vmem:[#allocation18 + $0x2f0] sm:$0xf0]  ;;  %v11646_v55 = vor.u32 %v14081_v30, %v11645_v26 }
 0x8ee   :  { %v4818_v31 = vpop.f32.mrf.mxu0 }
 0x8ef   :  { %v4792_v33 = vpop.f32.mrf.mxu2  ;;  %v4819_v23 = vadd.f32 %v4818_v31, %v4805_v29  ;;  %v14093_v29 = vld [vmem:[#allocation18 + $0x2ec] sm:$0xf0] }
 0x8f0   :  { %v4807_v53 = vadd.f32 %v4806_v46, %v4792_v33  ;;  %v11693_v46 = vld [vmem:[#allocation18 + $0x2e0] sm:$0xf] }
 0x8f3   :  { %v4722_v62 = vpop.f32.mrf.mxu1 }
 0x8f4   :  { %v4723_v28 = vadd.f32 %v4722_v62, %v4709_v57 }
 0x8f6   :  { %v4820_v51 = vpop.f32.mrf.mxu0 }
 0x8f7   :  { %v4821_v50 = vadd.f32 %v4820_v51, %v4807_v53  ;;  %v11677_v53 = vld [vmem:[#allocation18 + $0x2c0] sm:$0xf] }
 0x8fc   :  { %v16789_v45 = vpop.f32.mrf.mxu1 }
 0x901   :  { %v4860_v51 = vpop.f32.mrf.mxu3 }
 0x904   :  { %v16791_v60 = vpop.f32.mrf.mxu1 }
 0x907   :  { %v4846_v57 = vpop.f32.mrf.mxu2 }
 0x90c   :  { %v4832_v17 = vpop.f32.mrf.mxu1 }
 0x90d   :  { %v4833_v35 = vadd.f32 %v4832_v17, %v4819_v23  ;;  %v14091_v17 = vld [vmem:[#allocation18 + $0x2e4] sm:$0xf]  ;;  %v11694_v23 = vor.u32 %v14093_v29, %v11693_v46  ;;  %v14077_v46 = vld [vmem:[#allocation18 + $0x26c] sm:$0xf0] }
 0x90e   :  { %v4874_v33 = vpop.f32.mrf.mxu0  ;;  %v14075_v29 = vld [vmem:[#allocation18 + $0x264] sm:$0xf] }
 0x90f   :  { %v4893_v11 = vmax.f32 %v4721_v56, %v4833_v35  ;;  %v11663_v56 = vld [vmem:[#allocation18 + $0x2b0] sm:$0xf0] }
 0x910   :  { %v11666_v62 = vor.u32 %v14083_v40, %v11663_v56  ;;  %v4749_v40 = vadd.f32 %v16779_v58, %v16777_v48  ;;  %v4751_v56 = vadd.f32 %v16785_v3, %v16783_v32  ;;  %v11821_v58 = vld [vmem:[#allocation18 + $0x3e0] sm:$0xf] }
 0x914   :  { %v4834_v16 = vpop.f32.mrf.mxu1 }
 0x915   :  { %v4835_v9 = vadd.f32 %v4834_v16, %v4821_v50  ;;  %v14089_v16 = vld [vmem:[#allocation18 + $0x2cc] sm:$0xf0]  ;;  %v11698_v50 = vor.u32 %v14091_v17, %v11695_v43  ;;  %v11631_v17 = vld [vmem:[#allocation18 + $0x270] sm:$0xf0]  ;;  %v4848_v43 = vpop.f32.mrf.mxu2 }
 0x917   :  { %v4895_v24 = vmax.f32 %v4723_v28, %v4835_v9  ;;  %v14087_v28 = vld [vmem:[#allocation18 + $0x2c4] sm:$0xf]  ;;  %v11678_v9 = vor.u32 %v14089_v16, %v11677_v53  ;;  %v11630_v53 = vor.u32 %v14077_v46, %v11629_v38  ;;  %v11634_v16 = vor.u32 %v14075_v29, %v11631_v17  ;;  %v11599_v46 = vld [vmem:[#allocation18 + $0x230] sm:$0xf0]  ;;  %v14125_v29 = vld [vmem:[#allocation18 + $0x3ec] sm:$0xf0] }
 0x918   :  { %v14067_v38 = vld [vmem:[#allocation18 + $0x224] sm:$0xf] }
 0x919   :  { %v16793_v21 = vpack.c.bf16 %v4895_v24, %v4893_v11  ;;  %v11679_v11 = vld [vmem:[#allocation18 + $0x2d0] sm:$0xf0]  ;;  %v14085_v24 = vld [vmem:[#allocation18 + $0x2ac] sm:$0xf0]  ;;  %v14123_v17 = vld [vmem:[#allocation18 + $0x3e4] sm:$0xf] }
 0x91a   :  { %v11682_v35 = vor.u32 %v14087_v28, %v11679_v11  ;;  %v11662_v31 = vor.u32 %v14085_v24, %v11661_v4  ;;  %v4861_v28 = vadd.f32 %v4860_v51, %v4846_v57  ;;  %v14073_v11 = vld [vmem:[#allocation18 + $0x24c] sm:$0xf0]  ;;  %v4862_v4 = vpop.f32.mrf.mxu3  ;;  %v4876_v24 = vpop.f32.mrf.mxu0  ;;  %v4763_v57 = vadd.f32 %v16781_v1, %v4749_v40  ;;  %v11703_v40 = vld [vmem:[#allocation18 + $0x2f8] sm:$0xf0] }
 0x91b   :  { %4917 = vmatpush.bf16.msrb.mxu2 %v16793_v21  ;;  %5022 = vmatpush.bf16.msra.mxu0 %v16793_v21  ;;  %v4765_v51 = vadd.f32 %v16787_v59, %v4751_v56  ;;  %v11805_v56 = vld [vmem:[#allocation18 + $0x3c0] sm:$0xf] }
 0x91c   :  { %v4777_v3 = vadd.f32 %v16789_v45, %v4763_v57  ;;  %v14094_v45 = vld [vmem:[#allocation18 + $0x2f4] sm:$0xf0] }
 0x91d   :  { %v4779_v32 = vadd.f32 %v16791_v60, %v4765_v51  ;;  %v14092_v60 = vld [vmem:[#allocation18 + $0x2ec] sm:$0xf] }
 0x91e   :  { %11577 = vmatmul.msk.bf16.vlgmr.msra.gmra.mxu0 %vm4906_vm2, %v16795_v15  ;;  %11571 = vmatmul.msk.bf16.vlgmr.msrb.gmra.mxu2 %vm4906_vm2, %v16797_v6  ;;  %v11706_v51 = vor.u32 %v14092_v60, %v11703_v40  ;;  %v14080_v40 = vld [vmem:[#allocation18 + $0x28c] sm:$0xf] }
 0x91f   :  { %5430 = vmatpush.bf16.msra.mxu2 %v11694_v23  ;;  %5458 = vmatpush.bf16.msrb.mxu0 %v11698_v50  ;;  %v11613_v50 = vld [vmem:[#allocation18 + $0x240] sm:$0xf] }
 0x920   :  { %v11614_v26 = vor.u32 %v14073_v11, %v11613_v50  ;;  %v14065_v50 = vld [vmem:[#allocation18 + $0x20c] sm:$0xf0]  ;;  %v11822_v11 = vor.u32 %v14125_v29, %v11821_v58  ;;  %v11789_v58 = vld [vmem:[#allocation18 + $0x3a0] sm:$0xf] }
 0x923   :  { %5431 = vmatpush.bf16.msra.mxu2 %v11678_v9  ;;  %5459 = vmatpush.bf16.msrb.mxu0 %v11682_v35  ;;  %v14071_v9 = vld [vmem:[#allocation18 + $0x244] sm:$0xf]  ;;  %v11615_v35 = vld [vmem:[#allocation18 + $0x250] sm:$0xf0] }
 0x924   :  { %v11618_v30 = vor.u32 %v14071_v9, %v11615_v35  ;;  %v11583_v9 = vld [vmem:[#allocation18 + $0x210] sm:$0xf0] }
 0x927   :  { %5432 = vmatpush.bf16.msra.mxu2 %v11662_v31  ;;  %5460 = vmatpush.bf16.msrb.mxu0 %v11666_v62  ;;  %v4875_v31 = vadd.f32 %v4874_v33, %v4861_v28  ;;  %v4863_v62 = vadd.f32 %v4862_v4, %v4848_v43  ;;  %v11823_v43 = vld [vmem:[#allocation18 + $0x3f0] sm:$0xf0]  ;;  %v14063_v28 = vld [vmem:[#allocation18 + $0x204] sm:$0xf]  ;;  %v11701_v4 = vld [vmem:[#allocation18 + $0x2e8] sm:$0xf] }
 0x928   :  { %v11826_v35 = vor.u32 %v14123_v17, %v11823_v43  ;;  %v11702_v57 = vor.u32 %v14094_v45, %v11701_v4  ;;  %v11669_v43 = vld [vmem:[#allocation18 + $0x2a8] sm:$0xf]  ;;  %v14082_v4 = vld [vmem:[#allocation18 + $0x294] sm:$0xf0] }
 0x929   :  { %v4877_v37 = vadd.f32 %v4876_v24, %v4863_v62  ;;  %v14119_v62 = vld [vmem:[#allocation18 + $0x3c4] sm:$0xf] }
 0x92b   :  { %5433 = vmatpush.bf16.msra.mxu2 %v11646_v55  ;;  %5461 = vmatpush.bf16.msrb.mxu0 %v11650_v25  ;;  %v14069_v25 = vld [vmem:[#allocation18 + $0x22c] sm:$0xf0] }
 0x92c   :  { %v4888_v23 = vpop.f32.mrf.mxu1  ;;  %v11598_v1 = vor.u32 %v14069_v25, %v11597_v27  ;;  %v11586_v27 = vor.u32 %v14063_v28, %v11583_v9  ;;  %v11775_v28 = vld [vmem:[#allocation18 + $0x390] sm:$0xf0] }
 0x92d   :  { %v4889_v55 = vadd.f32 %v4888_v23, %v4875_v31  ;;  %v11581_v23 = vld [vmem:[#allocation18 + $0x200] sm:$0xf]  ;;  %v14121_v31 = vld [vmem:[#allocation18 + $0x3cc] sm:$0xf0] }
 0x92e   :  { %v11806_v25 = vor.u32 %v14121_v31, %v11805_v56  ;;  %v11655_v56 = vld [vmem:[#allocation18 + $0x298] sm:$0xf0]  ;;  %v11757_v31 = vld [vmem:[#allocation18 + $0x360] sm:$0xf] }
 0x92f   :  { %5434 = vmatpush.bf16.msra.mxu2 %v11630_v53  ;;  %5462 = vmatpush.bf16.msrb.mxu0 %v11634_v16  ;;  %v11602_v53 = vor.u32 %v14067_v38, %v11599_v46  ;;  %v4894_v59 = vmax.f32 %v4777_v3, %v4889_v55  ;;  %v14090_v55 = vld [vmem:[#allocation18 + $0x2d4] sm:$0xf0]  ;;  %v14088_v46 = vld [vmem:[#allocation18 + $0x2cc] sm:$0xf]  ;;  %v14117_v3 = vld [vmem:[#allocation18 + $0x3ac] sm:$0xf0] }
 0x933   :  { %5435 = vmatpush.bf16.msra.mxu2 %v11614_v26  ;;  %5463 = vmatpush.bf16.msrb.mxu0 %v11618_v30  ;;  %v11807_v26 = vld [vmem:[#allocation18 + $0x3d0] sm:$0xf0]  ;;  %v11582_v30 = vor.u32 %v14065_v50, %v11581_v23  ;;  %v11773_v23 = vld [vmem:[#allocation18 + $0x380] sm:$0xf]  ;;  %v14113_v50 = vld [vmem:[#allocation18 + $0x38c] sm:$0xf0] }
 0x934   :  { %v4890_v48 = vpop.f32.mrf.mxu1  ;;  %v11810_v38 = vor.u32 %v14119_v62, %v11807_v26  ;;  %v11774_v45 = vor.u32 %v14113_v50, %v11773_v23  ;;  %v14109_v62 = vld [vmem:[#allocation18 + $0x36c] sm:$0xf0]  ;;  %v14107_v26 = vld [vmem:[#allocation18 + $0x364] sm:$0xf]  ;;  %v11725_v23 = vld [vmem:[#allocation18 + $0x320] sm:$0xf] }
 0x935   :  { %v4891_v33 = vadd.f32 %v4890_v48, %v4877_v37  ;;  %v11685_v37 = vld [vmem:[#allocation18 + $0x2c8] sm:$0xf]  ;;  %v11687_v48 = vld [vmem:[#allocation18 + $0x2d8] sm:$0xf0] }
 0x936   :  { %v11686_v29 = vor.u32 %v14090_v55, %v11685_v37  ;;  %v11690_v17 = vor.u32 %v14088_v46, %v11687_v48  ;;  %v11758_v37 = vor.u32 %v14109_v62, %v11757_v31  ;;  %v11639_v46 = vld [vmem:[#allocation18 + $0x278] sm:$0xf0]  ;;  %v11709_v62 = vld [vmem:[#allocation18 + $0x300] sm:$0xf] }
 0x937   :  { %v4896_v16 = vmax.f32 %v4779_v32, %v4891_v33  ;;  %5436 = vmatpush.bf16.msra.mxu2 %v11598_v1  ;;  %5464 = vmatpush.bf16.msrb.mxu0 %v11602_v53  ;;  %v14115_v32 = vld [vmem:[#allocation18 + $0x3a4] sm:$0xf]  ;;  %v11791_v33 = vld [vmem:[#allocation18 + $0x3b0] sm:$0xf0]  ;;  %v14086_v1 = vld [vmem:[#allocation18 + $0x2b4] sm:$0xf0]  ;;  %v11790_v53 = vor.u32 %v14117_v3, %v11789_v58 }
 0x938   :  { %v11741_v3 = vld [vmem:[#allocation18 + $0x340] sm:$0xf] }
 0x939   :  { %v16813_v24 = vpack.c.bf16 %v4896_v16, %v4894_v59  ;;  %v11794_v59 = vor.u32 %v14115_v32, %v11791_v33  ;;  %v14084_v16 = vld [vmem:[#allocation18 + $0x2ac] sm:$0xf]  ;;  %v14105_v32 = vld [vmem:[#allocation18 + $0x34c] sm:$0xf0]  ;;  %v14103_v33 = vld [vmem:[#allocation18 + $0x344] sm:$0xf] }
 0x93b   :  { %4931 = vmatpush.bf16.msrb.mxu3 %v16813_v24  ;;  %5036 = vmatpush.bf16.msrb.mxu1 %v16813_v24 }
 0x93c   :  { %5437 = vmatpush.bf16.msra.mxu2 %v11582_v30  ;;  %5465 = vmatpush.bf16.msrb.mxu0 %v11586_v27  ;;  %v11759_v30 = vld [vmem:[#allocation18 + $0x370] sm:$0xf0] }
 0x93d   :  { %v11762_v55 = vor.u32 %v14107_v26, %v11759_v30  ;;  %v14097_v26 = vld [vmem:[#allocation18 + $0x30c] sm:$0xf0]  ;;  %v14095_v30 = vld [vmem:[#allocation18 + $0x304] sm:$0xf] }
 0x93e   :  { %11578 = vmatmul.msk.bf16.vlgmr.msrb.gmra.mxu1 %vm4906_vm2, %v16795_v15  ;;  %11572 = vmatmul.msk.bf16.vlgmr.msrb.gmra.mxu3 %vm4906_vm2, %v16797_v6  ;;  %v11671_v15 = vld [vmem:[#allocation18 + $0x2b8] sm:$0xf0]  ;;  %v14111_v6 = vld [vmem:[#allocation18 + $0x384] sm:$0xf] }
 0x93f   :  { %5444 = vmatpush.bf16.msra.mxu3 %v11822_v11  ;;  %5472 = vmatpush.bf16.msra.mxu1 %v11826_v35  ;;  %v11670_v11 = vor.u32 %v14086_v1, %v11669_v43  ;;  %v11674_v9 = vor.u32 %v14084_v16, %v11671_v15  ;;  %v11653_v35 = vld [vmem:[#allocation18 + $0x288] sm:$0xf]  ;;  %v11778_v60 = vor.u32 %v14111_v6, %v11775_v28  ;;  %v14074_v1 = vld [vmem:[#allocation18 + $0x254] sm:$0xf0]  ;;  %v14072_v16 = vld [vmem:[#allocation18 + $0x24c] sm:$0xf] }
 0x940   :  { %5486 = vmatpush.bf16.msrb.mxu2 %v11702_v57  ;;  %5514 = vmatpush.bf16.msra.mxu0 %v11706_v51  ;;  %v11654_v27 = vor.u32 %v14082_v4, %v11653_v35  ;;  %v11658_v57 = vor.u32 %v14080_v40, %v11655_v56  ;;  %v11637_v51 = vld [vmem:[#allocation18 + $0x268] sm:$0xf]  ;;  %v11623_v15 = vld [vmem:[#allocation18 + $0x258] sm:$0xf0]  ;;  %v14101_v6 = vld [vmem:[#allocation18 + $0x32c] sm:$0xf0] }
 0x941   :  { %v11621_v43 = vld [vmem:[#allocation18 + $0x248] sm:$0xf]  ;;  %v11626_v50 = vor.u32 %v14072_v16, %v11623_v15  ;;  %v14099_v28 = vld [vmem:[#allocation18 + $0x324] sm:$0xf]  ;;  %v11607_v56 = vld [vmem:[#allocation18 + $0x238] sm:$0xf0] }
 0x942   :  { %v11605_v4 = vld [vmem:[#allocation18 + $0x228] sm:$0xf]  ;;  %v11815_v16 = vld [vmem:[#allocation18 + $0x3d8] sm:$0xf0] }
 0x943   :  { %5445 = vmatpush.bf16.msra.mxu3 %v11806_v25  ;;  %5473 = vmatpush.bf16.msra.mxu1 %v11810_v38  ;;  %v14078_v25 = vld [vmem:[#allocation18 + $0x274] sm:$0xf0]  ;;  %v14076_v38 = vld [vmem:[#allocation18 + $0x26c] sm:$0xf] }
 0x944   :  { %5487 = vmatpush.bf16.msrb.mxu2 %v11686_v29  ;;  %5515 = vmatpush.bf16.msra.mxu0 %v11690_v17  ;;  %v11638_v48 = vor.u32 %v14078_v25, %v11637_v51  ;;  %v11642_v58 = vor.u32 %v14076_v38, %v11639_v46  ;;  %v11742_v29 = vor.u32 %v14105_v32, %v11741_v3  ;;  %v11743_v17 = vld [vmem:[#allocation18 + $0x350] sm:$0xf0]  ;;  %v11589_v51 = vld [vmem:[#allocation18 + $0x208] sm:$0xf]  ;;  %v14126_v46 = vld [vmem:[#allocation18 + $0x3f4] sm:$0xf0] }
 0x945   :  { %v11829_v38 = vld [vmem:[#allocation18 + $0x3e8] sm:$0xf]  ;;  %v11591_v3 = vld [vmem:[#allocation18 + $0x218] sm:$0xf0]  ;;  %v14124_v32 = vld [vmem:[#allocation18 + $0x3ec] sm:$0xf] }
 0x947   :  { %5446 = vmatpush.bf16.msra.mxu3 %v11790_v53  ;;  %5474 = vmatpush.bf16.msra.mxu1 %v11794_v59  ;;  %v11746_v53 = vor.u32 %v14103_v33, %v11743_v17  ;;  %v11622_v59 = vor.u32 %v14074_v1, %v11621_v43  ;;  %v11831_v33 = vld [vmem:[#allocation18 + $0x3f8] sm:$0xf0]  ;;  %v11813_v43 = vld [vmem:[#allocation18 + $0x3c8] sm:$0xf]  ;;  %v14122_v1 = vld [vmem:[#allocation18 + $0x3d4] sm:$0xf0] }
 0x948   :  { %5488 = vmatpush.bf16.msrb.mxu2 %v11670_v11  ;;  %5516 = vmatpush.bf16.msra.mxu0 %v11674_v9  ;;  %v11727_v11 = vld [vmem:[#allocation18 + $0x330] sm:$0xf0]  ;;  %v11726_v9 = vor.u32 %v14101_v6, %v11725_v23  ;;  %v11834_v17 = vor.u32 %v14124_v32, %v11831_v33  ;;  %v11797_v23 = vld [vmem:[#allocation18 + $0x3a8] sm:$0xf]  ;;  %v14116_v6 = vld [vmem:[#allocation18 + $0x3ac] sm:$0xf] }
 0x949   :  { %v11730_v35 = vor.u32 %v14099_v28, %v11727_v11  ;;  %v11799_v11 = vld [vmem:[#allocation18 + $0x3b8] sm:$0xf0]  ;;  %v14100_v32 = vld [vmem:[#allocation18 + $0x32c] sm:$0xf] }
 0x94b   :  { %5447 = vmatpush.bf16.msra.mxu3 %v11774_v45  ;;  %5475 = vmatpush.bf16.msra.mxu1 %v11778_v60  ;;  %v14070_v45 = vld [vmem:[#allocation18 + $0x234] sm:$0xf0]  ;;  %v14068_v60 = vld [vmem:[#allocation18 + $0x22c] sm:$0xf] }
 0x94c   :  { %5489 = vmatpush.bf16.msrb.mxu2 %v11654_v27  ;;  %5517 = vmatpush.bf16.msra.mxu0 %v11658_v57  ;;  %v11606_v40 = vor.u32 %v14070_v45, %v11605_v4  ;;  %v11610_v31 = vor.u32 %v14068_v60, %v11607_v56  ;;  %v11710_v27 = vor.u32 %v14097_v26, %v11709_v62  ;;  %v11711_v57 = vld [vmem:[#allocation18 + $0x310] sm:$0xf0]  ;;  %v14114_v4 = vld [vmem:[#allocation18 + $0x394] sm:$0xf0]  ;;  %v14112_v45 = vld [vmem:[#allocation18 + $0x38c] sm:$0xf] }
 0x94d   :  { %v14110_v62 = vld [vmem:[#allocation18 + $0x374] sm:$0xf0]  ;;  %v14108_v26 = vld [vmem:[#allocation18 + $0x36c] sm:$0xf] }
 0x94f   :  { %5448 = vmatpush.bf16.msra.mxu3 %v11758_v37  ;;  %5476 = vmatpush.bf16.msra.mxu1 %v11762_v55  ;;  %v14066_v37 = vld [vmem:[#allocation18 + $0x214] sm:$0xf0]  ;;  %v11714_v55 = vor.u32 %v14095_v30, %v11711_v57 }
 0x950   :  { %5490 = vmatpush.bf16.msrb.mxu2 %v11638_v48  ;;  %5518 = vmatpush.bf16.msra.mxu0 %v11642_v58  ;;  %v11590_v25 = vor.u32 %v14066_v37, %v11589_v51  ;;  %v14064_v48 = vld [vmem:[#allocation18 + $0x20c] sm:$0xf]  ;;  %v11830_v58 = vor.u32 %v14126_v46, %v11829_v38  ;;  %v11749_v51 = vld [vmem:[#allocation18 + $0x348] sm:$0xf]  ;;  %v14106_v37 = vld [vmem:[#allocation18 + $0x354] sm:$0xf0] }
 0x951   :  { %v11751_v38 = vld [vmem:[#allocation18 + $0x358] sm:$0xf0] }
 0x953   :  { %5449 = vmatpush.bf16.msra.mxu3 %v11742_v29  ;;  %5477 = vmatpush.bf16.msra.mxu1 %v11746_v53  ;;  %v11594_v29 = vor.u32 %v14064_v48, %v11591_v3  ;;  %v11814_v53 = vor.u32 %v14122_v1, %v11813_v43  ;;  %v14102_v3 = vld [vmem:[#allocation18 + $0x334] sm:$0xf0]  ;;  %v11949_v43 = vld [vmem:[#allocation18 + $0xe0] sm:$0xf]  ;;  %v14028_v1 = vld [vmem:[#allocation18 + $0xec] sm:$0xf0] }
 0x954   :  { %5491 = vmatpush.bf16.msrb.mxu2 %v11622_v59  ;;  %5519 = vmatpush.bf16.msra.mxu0 %v11626_v50  ;;  %v14120_v59 = vld [vmem:[#allocation18 + $0x3cc] sm:$0xf]  ;;  %v14118_v50 = vld [vmem:[#allocation18 + $0x3b4] sm:$0xf0] }
 0x955   :  { %v11818_v15 = vor.u32 %v14120_v59, %v11815_v16  ;;  %v11798_v28 = vor.u32 %v14118_v50, %v11797_v23  ;;  %v11951_v59 = vld [vmem:[#allocation18 + $0xf0] sm:$0xf0]  ;;  %v11717_v16 = vld [vmem:[#allocation18 + $0x308] sm:$0xf]  ;;  %v14096_v23 = vld [vmem:[#allocation18 + $0x30c] sm:$0xf] }
 0x957   :  { %5450 = vmatpush.bf16.msra.mxu3 %v11726_v9  ;;  %5478 = vmatpush.bf16.msra.mxu1 %v11730_v35  ;;  %v11802_v9 = vor.u32 %v14116_v6, %v11799_v11  ;;  %v11781_v35 = vld [vmem:[#allocation18 + $0x388] sm:$0xf]  ;;  %v11719_v6 = vld [vmem:[#allocation18 + $0x318] sm:$0xf0] }
 0x958   :  { %5492 = vmatpush.bf16.msrb.mxu2 %v11606_v40  ;;  %5520 = vmatpush.bf16.msra.mxu0 %v11610_v31  ;;  %v11782_v60 = vor.u32 %v14114_v4, %v11781_v35  ;;  %v11783_v40 = vld [vmem:[#allocation18 + $0x398] sm:$0xf0]  ;;  %v11765_v31 = vld [vmem:[#allocation18 + $0x368] sm:$0xf]  ;;  %v11933_v4 = vld [vmem:[#allocation18 + $0xc0] sm:$0xf] }
 0x959   :  { %v11786_v56 = vor.u32 %v14112_v45, %v11783_v40  ;;  %v11766_v30 = vor.u32 %v14110_v62, %v11765_v31  ;;  %v14022_v40 = vld [vmem:[#allocation18 + $0xc4] sm:$0xf] }
 0x95b   :  { %5451 = vmatpush.bf16.msra.mxu3 %v11710_v27  ;;  %5479 = vmatpush.bf16.msra.mxu1 %v11714_v55  ;;  %v11767_v27 = vld [vmem:[#allocation18 + $0x378] sm:$0xf0]  ;;  %v14104_v55 = vld [vmem:[#allocation18 + $0x34c] sm:$0xf] }
 0x95c   :  { %5493 = vmatpush.bf16.msrb.mxu2 %v11590_v25  ;;  %5521 = vmatpush.bf16.msra.mxu0 %v11594_v29  ;;  %v11770_v57 = vor.u32 %v14108_v26, %v11767_v27  ;;  %v11750_v25 = vor.u32 %v14106_v37, %v11749_v51  ;;  %v11754_v46 = vor.u32 %v14104_v55, %v11751_v38  ;;  %v11735_v29 = vld [vmem:[#allocation18 + $0x338] sm:$0xf0]  ;;  %v11917_v26 = vld [vmem:[#allocation18 + $0xa0] sm:$0xf]  ;;  %v14018_v27 = vld [vmem:[#allocation18 + $0xa4] sm:$0xf] }
 0x95d   :  { %v11901_v55 = vld [vmem:[#allocation18 + $0x80] sm:$0xf]  ;;  %v14014_v38 = vld [vmem:[#allocation18 + $0x84] sm:$0xf] }
 0x95f   :  { %5500 = vmatpush.bf16.msrb.mxu3 %v11830_v58  ;;  %5528 = vmatpush.bf16.msrb.mxu1 %v11834_v17  ;;  %v11733_v58 = vld [vmem:[#allocation18 + $0x328] sm:$0xf]  ;;  %v11738_v17 = vor.u32 %v14100_v32, %v11735_v29  ;;  %v14012_v32 = vld [vmem:[#allocation18 + $0x6c] sm:$0xf0]  ;;  %v11887_v29 = vld [vmem:[#allocation18 + $0x70] sm:$0xf0] }
 0x960   :  { %v11734_v33 = vor.u32 %v14102_v3, %v11733_v58  ;;  %v11885_v3 = vld [vmem:[#allocation18 + $0x60] sm:$0xf] }
 0x963   :  { %5501 = vmatpush.bf16.msrb.mxu3 %v11814_v53  ;;  %5529 = vmatpush.bf16.msrb.mxu1 %v11818_v15  ;;  %v14026_v53 = vld [vmem:[#allocation18 + $0xe4] sm:$0xf]  ;;  %v14098_v15 = vld [vmem:[#allocation18 + $0x314] sm:$0xf0] }
 0x964   :  { %v11718_v50 = vor.u32 %v14098_v15, %v11717_v16  ;;  %v11954_v35 = vor.u32 %v14026_v53, %v11951_v59  ;;  %v14008_v53 = vld [vmem:[#allocation18 + $0x4c] sm:$0xf0]  ;;  %v14006_v59 = vld [vmem:[#allocation18 + $0x44] sm:$0xf]  ;;  %v11871_v16 = vld [vmem:[#allocation18 + $0x50] sm:$0xf0] }
 0x967   :  { %5502 = vmatpush.bf16.msrb.mxu3 %v11798_v28  ;;  %5530 = vmatpush.bf16.msrb.mxu1 %v11802_v9  ;;  %v11722_v28 = vor.u32 %v14096_v23, %v11719_v6  ;;  %v11950_v9 = vor.u32 %v14028_v1, %v11949_v43  ;;  %v11869_v1 = vld [vmem:[#allocation18 + $0x40] sm:$0xf] }
 0x968   :  { %v11870_v23 = vor.u32 %v14008_v53, %v11869_v1  ;;  %v11853_v6 = vld [vmem:[#allocation18 + $0x20] sm:$0xf]  ;;  %v14054_v1 = vld [vmem:[#allocation18 + $0x1c4] sm:$0xf]  ;;  %v12063_v53 = vld [vmem:[#allocation18 + $0x1d0] sm:$0xf0] }
 0x96b   :  { %5503 = vmatpush.bf16.msrb.mxu3 %v11782_v60  ;;  %5531 = vmatpush.bf16.msrb.mxu1 %v11786_v56  ;;  %v14024_v60 = vld [vmem:[#allocation18 + $0xcc] sm:$0xf0]  ;;  %v11935_v56 = vld [vmem:[#allocation18 + $0xd0] sm:$0xf0] }
 0x96c   :  { %v11934_v31 = vor.u32 %v14024_v60, %v11933_v4  ;;  %v11938_v62 = vor.u32 %v14022_v40, %v11935_v56  ;;  %v11837_v40 = vld [vmem:[#allocation18] sm:$0xf]  ;;  %v14000_v56 = vld [vmem:[#allocation18 + $0xc] sm:$0xf0] }
 0x96f   :  { %5504 = vmatpush.bf16.msrb.mxu3 %v11766_v30  ;;  %5532 = vmatpush.bf16.msrb.mxu1 %v11770_v57  ;;  %v14020_v30 = vld [vmem:[#allocation18 + $0xac] sm:$0xf0]  ;;  %v11919_v57 = vld [vmem:[#allocation18 + $0xb0] sm:$0xf0] }
 0x970   :  { %v11918_v51 = vor.u32 %v14020_v30, %v11917_v26  ;;  %v11922_v37 = vor.u32 %v14018_v27, %v11919_v57  ;;  %v13998_v26 = vld [vmem:[#allocation18 + $0x4] sm:$0xf]  ;;  %v12079_v27 = vld [vmem:[#allocation18 + $0x1f0] sm:$0xf0]  ;;  %v11957_v57 = vld [vmem:[#allocation18 + $0xe8] sm:$0xf] }
 0x971   :  { %v14058_v30 = vld [vmem:[#allocation18 + $0x1e4] sm:$0xf] }
 0x973   :  { %5505 = vmatpush.bf16.msrb.mxu3 %v11750_v25  ;;  %5533 = vmatpush.bf16.msrb.mxu1 %v11754_v46  ;;  %v14016_v25 = vld [vmem:[#allocation18 + $0x8c] sm:$0xf0]  ;;  %v11903_v46 = vld [vmem:[#allocation18 + $0x90] sm:$0xf0] }
 0x974   :  { %v11906_v58 = vor.u32 %v14014_v38, %v11903_v46  ;;  %v11838_v38 = vor.u32 %v14000_v56, %v11837_v40  ;;  %v14050_v40 = vld [vmem:[#allocation18 + $0x1a4] sm:$0xf]  ;;  %v12047_v56 = vld [vmem:[#allocation18 + $0x1b0] sm:$0xf0] }
 0x977   :  { %5506 = vmatpush.bf16.msrb.mxu3 %v11734_v33  ;;  %5534 = vmatpush.bf16.msrb.mxu1 %v11738_v17  ;;  %v14010_v33 = vld [vmem:[#allocation18 + $0x64] sm:$0xf]  ;;  %v11886_v17 = vor.u32 %v14012_v32, %v11885_v3  ;;  %v12082_v32 = vor.u32 %v14058_v30, %v12079_v27  ;;  %v12050_v30 = vor.u32 %v14050_v40, %v12047_v56  ;;  %v12029_v27 = vld [vmem:[#allocation18 + $0x180] sm:$0xf] }
 0x978   :  { %v11890_v43 = vor.u32 %v14010_v33, %v11887_v29  ;;  %v12061_v33 = vld [vmem:[#allocation18 + $0x1c0] sm:$0xf]  ;;  %v14056_v29 = vld [vmem:[#allocation18 + $0x1cc] sm:$0xf0]  ;;  %v14038_v56 = vld [vmem:[#allocation18 + $0x144] sm:$0xf] }
 0x97b   :  { %5507 = vmatpush.bf16.msrb.mxu3 %v11718_v50  ;;  %5535 = vmatpush.bf16.msrb.mxu1 %v11722_v28  ;;  %v11874_v50 = vor.u32 %v14006_v59, %v11871_v16  ;;  %v11941_v59 = vld [vmem:[#allocation18 + $0xc8] sm:$0xf] }
 0x99b   :  { %v5024_v48 = vpop.f32.mrf.mxu0 }
 0x9a1   :  { %v4919_v15 = vpop.f32.mrf.mxu2 }
 0x9a3   :  { %v5026_v11 = vpop.f32.mrf.mxu0 }
 0x9a4   :  { %v5043_v45 = vpack.c.bf16 %v5026_v11, %v5024_v48  ;;  %v11902_v48 = vor.u32 %v14016_v25, %v11901_v55  ;;  %v14004_v11 = vld [vmem:[#allocation18 + $0x2c] sm:$0xf0]  ;;  %v11959_v55 = vld [vmem:[#allocation18 + $0xf8] sm:$0xf0] }
 0x9a5   :  { %v11854_v4 = vor.u32 %v14004_v11, %v11853_v6  ;;  %v11943_v6 = vld [vmem:[#allocation18 + $0xd8] sm:$0xf0]  ;;  %v12066_v11 = vor.u32 %v14054_v1, %v12063_v53  ;;  %v14042_v53 = vld [vmem:[#allocation18 + $0x164] sm:$0xf] }
 0x9a6   :  { %5438 = vmatmul.bf16.vlgmr.msra.gmra.mxu2 %v5043_v45  ;;  %5466 = vmatmul.bf16.vlgmr.msrb.gmra.mxu0 %v5043_v45 }
 0x9a7   :  { %5862 = vmatpush.bf16.msra.mxu2 %v11950_v9  ;;  %5890 = vmatpush.bf16.msrb.mxu0 %v11954_v35  ;;  %v14002_v9 = vld [vmem:[#allocation18 + $0x24] sm:$0xf]  ;;  %v11855_v35 = vld [vmem:[#allocation18 + $0x30] sm:$0xf0] }
 0x9a8   :  { %v11858_v60 = vor.u32 %v14002_v9, %v11855_v35  ;;  %v12045_v9 = vld [vmem:[#allocation18 + $0x1a0] sm:$0xf]  ;;  %v14052_v35 = vld [vmem:[#allocation18 + $0x1ac] sm:$0xf0] }
 0x9ab   :  { %5863 = vmatpush.bf16.msra.mxu2 %v11934_v31  ;;  %5891 = vmatpush.bf16.msrb.mxu0 %v11938_v62  ;;  %v12077_v31 = vld [vmem:[#allocation18 + $0x1e0] sm:$0xf]  ;;  %v14060_v62 = vld [vmem:[#allocation18 + $0x1ec] sm:$0xf0] }
 0x9ac   :  { %v12078_v46 = vor.u32 %v14060_v62, %v12077_v31  ;;  %v11925_v31 = vld [vmem:[#allocation18 + $0xa8] sm:$0xf]  ;;  %v14019_v62 = vld [vmem:[#allocation18 + $0xac] sm:$0xf] }
 0x9af   :  { %5864 = vmatpush.bf16.msra.mxu2 %v11918_v51  ;;  %5892 = vmatpush.bf16.msrb.mxu0 %v11922_v37  ;;  %v14029_v51 = vld [vmem:[#allocation18 + $0xf4] sm:$0xf0]  ;;  %v14027_v37 = vld [vmem:[#allocation18 + $0xec] sm:$0xf] }
 0x9b3   :  { %5865 = vmatpush.bf16.msra.mxu2 %v11902_v48  ;;  %5893 = vmatpush.bf16.msrb.mxu0 %v11906_v58  ;;  %v4921_v48 = vpop.f32.mrf.mxu2 }
 0x9b4   :  { %v16825_v16 = vpack.c.bf16 %v4921_v48, %v4919_v15  ;;  %v14021_v15 = vld [vmem:[#allocation18 + $0xb4] sm:$0xf0]  ;;  %v14015_v48 = vld [vmem:[#allocation18 + $0x8c] sm:$0xf] }
 0x9b6   :  { %5494 = vmatmul.bf16.vlgmr.msrb.gmra.mxu2 %v5043_v45  ;;  %5522 = vmatmul.bf16.vlgmr.msra.gmra.mxu0 %v5043_v45  ;;  %v11839_v45 = vld [vmem:[#allocation18 + $0x10] sm:$0xf0] }
 0x9b7   :  { %5866 = vmatpush.bf16.msra.mxu2 %v11886_v17  ;;  %5894 = vmatpush.bf16.msrb.mxu0 %v11890_v43  ;;  %v11842_v3 = vor.u32 %v13998_v26, %v11839_v45  ;;  %v11958_v17 = vor.u32 %v14029_v51, %v11957_v57  ;;  %v11962_v43 = vor.u32 %v14027_v37, %v11959_v55  ;;  %v11927_v26 = vld [vmem:[#allocation18 + $0xb8] sm:$0xf0]  ;;  %v14048_v57 = vld [vmem:[#allocation18 + $0x18c] sm:$0xf0]  ;;  %v14046_v55 = vld [vmem:[#allocation18 + $0x184] sm:$0xf] }
 0x9b8   :  { %v12046_v45 = vor.u32 %v14052_v35, %v12045_v9  ;;  %v11926_v51 = vor.u32 %v14021_v15, %v11925_v31  ;;  %v11930_v37 = vor.u32 %v14019_v62, %v11927_v26  ;;  %v11997_v35 = vld [vmem:[#allocation18 + $0x140] sm:$0xf]  ;;  %v11999_v31 = vld [vmem:[#allocation18 + $0x150] sm:$0xf0]  ;;  %v11877_v15 = vld [vmem:[#allocation18 + $0x48] sm:$0xf] }
 0x9b9   :  { %v14009_v26 = vld [vmem:[#allocation18 + $0x54] sm:$0xf0] }
 0x9bb   :  { %v5038_v28 = vpop.f32.mrf.mxu1  ;;  %5867 = vmatpush.bf16.msra.mxu2 %v11870_v23  ;;  %5895 = vmatpush.bf16.msrb.mxu0 %v11874_v50  ;;  %v14025_v23 = vld [vmem:[#allocation18 + $0xd4] sm:$0xf0]  ;;  %v14023_v50 = vld [vmem:[#allocation18 + $0xcc] sm:$0xf] }
 0x9bf   :  { %5868 = vmatpush.bf16.msra.mxu2 %v11854_v4  ;;  %5896 = vmatpush.bf16.msrb.mxu0 %v11858_v60  ;;  %v11942_v4 = vor.u32 %v14025_v23, %v11941_v59  ;;  %v11946_v60 = vor.u32 %v14023_v50, %v11943_v6  ;;  %v12015_v59 = vld [vmem:[#allocation18 + $0x170] sm:$0xf0]  ;;  %v11893_v23 = vld [vmem:[#allocation18 + $0x68] sm:$0xf]  ;;  %v14013_v50 = vld [vmem:[#allocation18 + $0x74] sm:$0xf0] }
 0x9c0   :  { %v14011_v6 = vld [vmem:[#allocation18 + $0x6c] sm:$0xf]  ;;  %v12018_v9 = vor.u32 %v14042_v53, %v12015_v59  ;;  %v11967_v53 = vld [vmem:[#allocation18 + $0x110] sm:$0xf0] }
 0x9c1   :  { %v4933_v62 = vpop.f32.mrf.mxu3 }
 0x9c3   :  { %v5040_v25 = vpop.f32.mrf.mxu1  ;;  %5869 = vmatpush.bf16.msra.mxu2 %v11838_v38  ;;  %5897 = vmatpush.bf16.msrb.mxu0 %v11842_v3  ;;  %v11909_v38 = vld [vmem:[#allocation18 + $0x88] sm:$0xf]  ;;  %v11911_v3 = vld [vmem:[#allocation18 + $0x98] sm:$0xf0] }
 0x9c4   :  { %v16821_v58 = vpack.c.bf16 %v5040_v25, %v5038_v28  ;;  %v12062_v28 = vor.u32 %v14056_v29, %v12061_v33  ;;  %v12031_v25 = vld [vmem:[#allocation18 + $0x190] sm:$0xf0]  ;;  %v12013_v29 = vld [vmem:[#allocation18 + $0x160] sm:$0xf]  ;;  %v11914_v1 = vor.u32 %v14015_v48, %v11911_v3  ;;  %v11861_v48 = vld [vmem:[#allocation18 + $0x28] sm:$0xf] }
 0x9c5   :  { %v12034_v33 = vor.u32 %v14046_v55, %v12031_v25  ;;  %v11878_v55 = vor.u32 %v14009_v26, %v11877_v15  ;;  %v14005_v3 = vld [vmem:[#allocation18 + $0x34] sm:$0xf0] }
 0x9c6   :  { %5452 = vmatmul.bf16.vlgmr.msra.gmra.mxu3 %v16821_v58  ;;  %5480 = vmatmul.bf16.vlgmr.msra.gmra.mxu1 %v16821_v58  ;;  %v11862_v59 = vor.u32 %v14005_v3, %v11861_v48  ;;  %v14053_v48 = vld [vmem:[#allocation18 + $0x1b4] sm:$0xf0]  ;;  %v14051_v3 = vld [vmem:[#allocation18 + $0x1ac] sm:$0xf] }
 0x9c7   :  { %5876 = vmatpush.bf16.msra.mxu3 %v12078_v46  ;;  %5904 = vmatpush.bf16.msra.mxu1 %v12082_v32  ;;  %v14017_v46 = vld [vmem:[#allocation18 + $0x94] sm:$0xf0]  ;;  %v12030_v32 = vor.u32 %v14048_v57, %v12029_v27  ;;  %v12002_v57 = vor.u32 %v14038_v56, %v11999_v31 }
 0x9c8   :  { %5918 = vmatpush.bf16.msrb.mxu2 %v11958_v17  ;;  %5946 = vmatpush.bf16.msra.mxu0 %v11962_v43  ;;  %v14044_v17 = vld [vmem:[#allocation18 + $0x16c] sm:$0xf0]  ;;  %v11910_v43 = vor.u32 %v14017_v46, %v11909_v38  ;;  %v14034_v38 = vld [vmem:[#allocation18 + $0x124] sm:$0xf]  ;;  %v11983_v46 = vld [vmem:[#allocation18 + $0x130] sm:$0xf0] }
 0x9c9   :  { %5870 = vmatmul.bf16.vlgmr.msra.gmra.mxu2 %v16825_v16  ;;  %5898 = vmatmul.bf16.vlgmr.msrb.gmra.mxu0 %v16825_v16  ;;  %v4935_v31 = vpop.f32.mrf.mxu3 }
 0x9cb   :  { %5877 = vmatpush.bf16.msra.mxu3 %v12062_v28  ;;  %5905 = vmatpush.bf16.msra.mxu1 %v12066_v11  ;;  %v11895_v28 = vld [vmem:[#allocation18 + $0x78] sm:$0xf0]  ;;  %v12014_v11 = vor.u32 %v14044_v17, %v12013_v29  ;;  %v11965_v29 = vld [vmem:[#allocation18 + $0x100] sm:$0xf]  ;;  %v11986_v17 = vor.u32 %v14034_v38, %v11983_v46  ;;  %v12053_v46 = vld [vmem:[#allocation18 + $0x1a8] sm:$0xf] }
 0x9cc   :  { %5919 = vmatpush.bf16.msrb.mxu2 %v11942_v4  ;;  %5947 = vmatpush.bf16.msra.mxu0 %v11946_v60  ;;  %v14040_v4 = vld [vmem:[#allocation18 + $0x14c] sm:$0xf0]  ;;  %v11894_v60 = vor.u32 %v14013_v50, %v11893_v23  ;;  %v11898_v40 = vor.u32 %v14011_v6, %v11895_v28  ;;  %v11845_v50 = vld [vmem:[#allocation18 + $0x8] sm:$0xf]  ;;  %v14061_v28 = vld [vmem:[#allocation18 + $0x1f4] sm:$0xf0] }
 0x9cd   :  { %v11998_v27 = vor.u32 %v14040_v4, %v11997_v35  ;;  %v12085_v6 = vld [vmem:[#allocation18 + $0x1e8] sm:$0xf]  ;;  %v11847_v35 = vld [vmem:[#allocation18 + $0x18] sm:$0xf0] }
 0x9ce   :  { %v12086_v15 = vor.u32 %v14061_v28, %v12085_v6  ;;  %v12005_v28 = vld [vmem:[#allocation18 + $0x148] sm:$0xf] }
 0x9cf   :  { %5878 = vmatpush.bf16.msra.mxu3 %v12046_v45  ;;  %5906 = vmatpush.bf16.msra.mxu1 %v12050_v30  ;;  %v14007_v45 = vld [vmem:[#allocation18 + $0x4c] sm:$0xf]  ;;  %v11879_v30 = vld [vmem:[#allocation18 + $0x58] sm:$0xf0] }
 0x9d0   :  { %5920 = vmatpush.bf16.msrb.mxu2 %v11926_v51  ;;  %5948 = vmatpush.bf16.msra.mxu0 %v11930_v37  ;;  %v11981_v51 = vld [vmem:[#allocation18 + $0x120] sm:$0xf]  ;;  %v14036_v37 = vld [vmem:[#allocation18 + $0x12c] sm:$0xf0]  ;;  %v11882_v25 = vor.u32 %v14007_v45, %v11879_v30 }
 0x9d3   :  { %5879 = vmatpush.bf16.msra.mxu3 %v12030_v32  ;;  %5907 = vmatpush.bf16.msra.mxu1 %v12034_v33  ;;  %v14003_v32 = vld [vmem:[#allocation18 + $0x2c] sm:$0xf]  ;;  %v11982_v33 = vor.u32 %v14036_v37, %v11981_v51  ;;  %v16831_v51 = vpack.c.bf16 %v4935_v31, %v4933_v62  ;;  %v12055_v62 = vld [vmem:[#allocation18 + $0x1b8] sm:$0xf0]  ;;  %v14037_v31 = vld [vmem:[#allocation18 + $0x134] sm:$0xf0] }
 0x9d4   :  { %5921 = vmatpush.bf16.msrb.mxu2 %v11910_v43  ;;  %5949 = vmatpush.bf16.msra.mxu0 %v11914_v1  ;;  %v14032_v43 = vld [vmem:[#allocation18 + $0x10c] sm:$0xf0]  ;;  %v14030_v1 = vld [vmem:[#allocation18 + $0x104] sm:$0xf]  ;;  %v14055_v37 = vld [vmem:[#allocation18 + $0x1cc] sm:$0xf] }
 0x9d5   :  { %v11966_v4 = vor.u32 %v14032_v43, %v11965_v29  ;;  %v11970_v56 = vor.u32 %v14030_v1, %v11967_v53  ;;  %v14049_v29 = vld [vmem:[#allocation18 + $0x194] sm:$0xf0]  ;;  %v12021_v53 = vld [vmem:[#allocation18 + $0x168] sm:$0xf] }
 0x9d6   :  { %5508 = vmatmul.bf16.vlgmr.msrb.gmra.mxu3 %v16821_v58  ;;  %5536 = vmatmul.bf16.vlgmr.msrb.gmra.mxu1 %v16821_v58  ;;  %v11863_v58 = vld [vmem:[#allocation18 + $0x38] sm:$0xf0] }
 0x9d7   :  { %5880 = vmatpush.bf16.msra.mxu3 %v12014_v11  ;;  %5908 = vmatpush.bf16.msra.mxu1 %v12018_v9  ;;  %v11866_v23 = vor.u32 %v14003_v32, %v11863_v58  ;;  %v14001_v11 = vld [vmem:[#allocation18 + $0x14] sm:$0xf0]  ;;  %v13999_v9 = vld [vmem:[#allocation18 + $0xc] sm:$0xf]  ;;  %v12054_v32 = vor.u32 %v14053_v48, %v12053_v46  ;;  %v12058_v58 = vor.u32 %v14051_v3, %v12055_v62  ;;  %v12211_v3 = vld [vmem:[#allocation18 + $0x4e0] sm:$0xf] }
 0x9d8   :  { %5922 = vmatpush.bf16.msrb.mxu2 %v11894_v60  ;;  %5950 = vmatpush.bf16.msra.mxu0 %v11898_v40  ;;  %v14059_v60 = vld [vmem:[#allocation18 + $0x1ec] sm:$0xf]  ;;  %v12087_v40 = vld [vmem:[#allocation18 + $0x1f8] sm:$0xf0]  ;;  %v11846_v26 = vor.u32 %v14001_v11, %v11845_v50  ;;  %v11850_v45 = vor.u32 %v13999_v9, %v11847_v35  ;;  %v14041_v11 = vld [vmem:[#allocation18 + $0x154] sm:$0xf0] }
 0x9d9   :  { %v12090_v30 = vor.u32 %v14059_v60, %v12087_v40  ;;  %v12023_v50 = vld [vmem:[#allocation18 + $0x178] sm:$0xf0]  ;;  %v14039_v9 = vld [vmem:[#allocation18 + $0x14c] sm:$0xf]  ;;  %v12006_v60 = vor.u32 %v14041_v11, %v12005_v28  ;;  %v14158_v62 = vld [vmem:[#allocation18 + $0x4ec] sm:$0xf0] }
 0x9da   :  { %v12007_v35 = vld [vmem:[#allocation18 + $0x158] sm:$0xf0] }
 0x9db   :  { %5881 = vmatpush.bf16.msra.mxu3 %v11998_v27  ;;  %5909 = vmatpush.bf16.msra.mxu1 %v12002_v57  ;;  %v12069_v27 = vld [vmem:[#allocation18 + $0x1c8] sm:$0xf]  ;;  %v14057_v57 = vld [vmem:[#allocation18 + $0x1d4] sm:$0xf0]  ;;  %v12010_v40 = vor.u32 %v14039_v9, %v12007_v35 }
 0x9dc   :  { %5923 = vmatpush.bf16.msrb.mxu2 %v11878_v55  ;;  %5951 = vmatpush.bf16.msra.mxu0 %v11882_v25  ;;  %v12071_v55 = vld [vmem:[#allocation18 + $0x1d8] sm:$0xf0]  ;;  %v12070_v25 = vor.u32 %v14057_v57, %v12069_v27  ;;  %v11973_v27 = vld [vmem:[#allocation18 + $0x108] sm:$0xf]  ;;  %v14033_v57 = vld [vmem:[#allocation18 + $0x114] sm:$0xf0] }
 0x9dd   :  { %v12074_v38 = vor.u32 %v14055_v37, %v12071_v55  ;;  %v14031_v37 = vld [vmem:[#allocation18 + $0x10c] sm:$0xf]  ;;  %v11975_v55 = vld [vmem:[#allocation18 + $0x118] sm:$0xf0] }
 0x9df   :  { %5882 = vmatpush.bf16.msra.mxu3 %v11982_v33  ;;  %5910 = vmatpush.bf16.msra.mxu1 %v11986_v17  ;;  %v12037_v33 = vld [vmem:[#allocation18 + $0x188] sm:$0xf]  ;;  %v12039_v17 = vld [vmem:[#allocation18 + $0x198] sm:$0xf0] }
 0x9e0   :  { %5924 = vmatpush.bf16.msrb.mxu2 %v11862_v59  ;;  %5952 = vmatpush.bf16.msra.mxu0 %v11866_v23  ;;  %v12038_v43 = vor.u32 %v14049_v29, %v12037_v33  ;;  %v14045_v59 = vld [vmem:[#allocation18 + $0x174] sm:$0xf0]  ;;  %v14043_v23 = vld [vmem:[#allocation18 + $0x16c] sm:$0xf]  ;;  %v12213_v33 = vld [vmem:[#allocation18 + $0x4f0] sm:$0xf0] }
 0x9e1   :  { %v12022_v6 = vor.u32 %v14045_v59, %v12021_v53  ;;  %v12179_v53 = vld [vmem:[#allocation18 + $0x4a0] sm:$0xf]  ;;  %v14150_v59 = vld [vmem:[#allocation18 + $0x4ac] sm:$0xf0] }
 0x9e2   :  { %v12180_v28 = vor.u32 %v14150_v59, %v12179_v53  ;;  %v14134_v53 = vld [vmem:[#allocation18 + $0x42c] sm:$0xf0]  ;;  %v14132_v59 = vld [vmem:[#allocation18 + $0x424] sm:$0xf] }
 0x9e3   :  { %5883 = vmatpush.bf16.msra.mxu3 %v11966_v4  ;;  %5911 = vmatpush.bf16.msra.mxu1 %v11970_v56  ;;  %v14127_v4 = vld [vmem:[#allocation16 + $0x10] sm:$0xff]  ;;  %v11989_v56 = vld [vmem:[#allocation18 + $0x128] sm:$0xf] }
 0x9e4   :  { %5925 = vmatpush.bf16.msrb.mxu2 %v11846_v26  ;;  %5953 = vmatpush.bf16.msra.mxu0 %v11850_v45  ;;  %v11991_v26 = vld [vmem:[#allocation18 + $0x138] sm:$0xf0]  ;;  %v11990_v45 = vor.u32 %v14037_v31, %v11989_v56  ;;  %v14144_v56 = vld [vmem:[#allocation18 + $0x484] sm:$0xf] }
 0x9e6   :  { %5884 = vmatmul.bf16.vlgmr.msra.gmra.mxu3 %v16831_v51  ;;  %5912 = vmatmul.bf16.vlgmr.msra.gmra.mxu1 %v16831_v51 }
 0x9e7   :  { %5932 = vmatpush.bf16.msrb.mxu3 %v12086_v15  ;;  %5960 = vmatpush.bf16.msrb.mxu1 %v12090_v30  ;;  %v14035_v15 = vld [vmem:[#allocation18 + $0x12c] sm:$0xf] }
 0x9e8   :  { %5992 = vmatpush.bf16.msra.mxu2 %v16793_v21  ;;  %5954 = vmatmul.bf16.vlgmr.msra.gmra.mxu0 %v16825_v16  ;;  %v14047_v21 = vld [vmem:[#allocation18 + $0x18c] sm:$0xf]  ;;  %v11994_v30 = vor.u32 %v14035_v15, %v11991_v26  ;;  %v12165_v15 = vld [vmem:[#allocation18 + $0x490] sm:$0xf0] }
 0x9e9   :  { %5926 = vmatmul.bf16.vlgmr.msrb.gmra.mxu2 %v16825_v16  ;;  %v12042_v1 = vor.u32 %v14047_v21, %v12039_v17  ;;  %v12026_v16 = vor.u32 %v14043_v23, %v12023_v50  ;;  %v14154_v17 = vld [vmem:[#allocation18 + $0x4cc] sm:$0xf0]  ;;  %v14148_v50 = vld [vmem:[#allocation18 + $0x4a4] sm:$0xf]  ;;  %v12168_v26 = vor.u32 %v14144_v56, %v12165_v15 }
 0x9ea   :  { %v14128_v15 = vld [vmem:[#allocation18 + $0x404] sm:$0xf] }
 0x9eb   :  { %5933 = vmatpush.bf16.msrb.mxu3 %v12070_v25  ;;  %5961 = vmatpush.bf16.msrb.mxu1 %v12074_v38  ;;  %v11974_v25 = vor.u32 %v14033_v57, %v11973_v27  ;;  %v11978_v38 = vor.u32 %v14031_v37, %v11975_v55  ;;  %v14140_v27 = vld [vmem:[#allocation18 + $0x464] sm:$0xf]  ;;  %v12149_v37 = vld [vmem:[#allocation18 + $0x470] sm:$0xf0] }
 0x9ec   :  { %v12152_v55 = vor.u32 %v14140_v27, %v12149_v37  ;;  %v14188_v27 = vld [vmem:[#allocation18 + $0x5e4] sm:$0xf]  ;;  %v12219_v37 = vld [vmem:[#allocation18 + $0x4e8] sm:$0xf] }
 0x9ef   :  { %5934 = vmatpush.bf16.msrb.mxu3 %v12054_v32  ;;  %5962 = vmatpush.bf16.msrb.mxu1 %v12058_v58  ;;  %v14156_v32 = vld [vmem:[#allocation18 + $0x4e4] sm:$0xf]  ;;  %v12212_v58 = vor.u32 %v14158_v62, %v12211_v3 }
 0x9f0   :  { %v12216_v29 = vor.u32 %v14156_v32, %v12213_v33  ;;  %v12131_v32 = vld [vmem:[#allocation18 + $0x440] sm:$0xf]  ;;  %v14136_v33 = vld [vmem:[#allocation18 + $0x444] sm:$0xf] }
 0x9f1   :  { %6400 = vmatpush.bf16.msrb.mxu0 %v12212_v58  ;;  %v14138_v58 = vld [vmem:[#allocation18 + $0x44c] sm:$0xf0] }
 0x9f2   :  { %6428 = vmatpush.bf16.msrb.mxu2 %v12216_v29 }
 0x9f3   :  { %5935 = vmatpush.bf16.msrb.mxu3 %v12038_v43  ;;  %5963 = vmatpush.bf16.msrb.mxu1 %v12042_v1  ;;  %v14152_v43 = vld [vmem:[#allocation18 + $0x4c4] sm:$0xf] }
 0x9f7   :  { %5936 = vmatpush.bf16.msrb.mxu3 %v12022_v6  ;;  %5964 = vmatpush.bf16.msrb.mxu1 %v12026_v16  ;;  %v12181_v6 = vld [vmem:[#allocation18 + $0x4b0] sm:$0xf0] }
 0x9f8   :  { %v12184_v11 = vor.u32 %v14148_v50, %v12181_v6  ;;  %v12117_v50 = vld [vmem:[#allocation18 + $0x430] sm:$0xf0] }
 0x9f9   :  { %12095 = vmatmul.msk.bf16.vlgmr.msra.gmra.mxu2 %vm4906_vm2, %v14127_v4 }
 0x9fb   :  { %5937 = vmatpush.bf16.msrb.mxu3 %v12006_v60  ;;  %5965 = vmatpush.bf16.msrb.mxu1 %v12010_v40  ;;  %v12163_v60 = vld [vmem:[#allocation18 + $0x480] sm:$0xf]  ;;  %v14146_v40 = vld [vmem:[#allocation18 + $0x48c] sm:$0xf0] }
 0x9fc   :  { %v12164_v31 = vor.u32 %v14146_v40, %v12163_v60  ;;  %v14130_v60 = vld [vmem:[#allocation18 + $0x40c] sm:$0xf0]  ;;  %v12339_v40 = vld [vmem:[#allocation18 + $0x5e0] sm:$0xf] }
 0x9ff   :  { %5938 = vmatpush.bf16.msrb.mxu3 %v11990_v45  ;;  %5966 = vmatpush.bf16.msrb.mxu1 %v11994_v30  ;;  %v12147_v45 = vld [vmem:[#allocation18 + $0x460] sm:$0xf]  ;;  %v14142_v30 = vld [vmem:[#allocation18 + $0x46c] sm:$0xf0] }
 0xa00   :  { %v12148_v57 = vor.u32 %v14142_v30, %v12147_v45 }
 0xa03   :  { %5939 = vmatpush.bf16.msrb.mxu3 %v11974_v25  ;;  %5967 = vmatpush.bf16.msrb.mxu1 %v11978_v38 }
 0xa06   :  { %5940 = vmatmul.bf16.vlgmr.msrb.gmra.mxu3 %v16831_v51  ;;  %5968 = vmatmul.bf16.vlgmr.msrb.gmra.mxu1 %v16831_v51  ;;  %v12197_v51 = vld [vmem:[#allocation18 + $0x4d0] sm:$0xf0] }
 0xa07   :  { %6006 = vmatpush.bf16.msra.mxu3 %v16813_v24  ;;  %v12195_v24 = vld [vmem:[#allocation18 + $0x4c0] sm:$0xf]  ;;  %v12200_v23 = vor.u32 %v14152_v43, %v12197_v51 }
 0xa08   :  { %v12196_v1 = vor.u32 %v14154_v17, %v12195_v24  ;;  %v12132_v24 = vor.u32 %v14138_v58, %v12131_v32  ;;  %v12133_v17 = vld [vmem:[#allocation18 + $0x450] sm:$0xf0]  ;;  %v12115_v51 = vld [vmem:[#allocation18 + $0x420] sm:$0xf]  ;;  %v12221_v32 = vld [vmem:[#allocation18 + $0x4f8] sm:$0xf0] }
 0xa09   :  { %6429 = vmatpush.bf16.msrb.mxu2 %v12200_v23  ;;  %v12116_v23 = vor.u32 %v14134_v53, %v12115_v51  ;;  %v12325_v53 = vld [vmem:[#allocation18 + $0x5d0] sm:$0xf0] }
 0xa0a   :  { %6401 = vmatpush.bf16.msrb.mxu0 %v12196_v1  ;;  %v12136_v1 = vor.u32 %v14136_v33, %v12133_v17  ;;  %v14184_v17 = vld [vmem:[#allocation18 + $0x5c4] sm:$0xf] }
 0xa0d   :  { %6430 = vmatpush.bf16.msrb.mxu2 %v12184_v11 }
 0xa0e   :  { %6402 = vmatpush.bf16.msrb.mxu0 %v12180_v28 }
 0xa11   :  { %6431 = vmatpush.bf16.msrb.mxu2 %v12168_v26  ;;  %v12101_v26 = vld [vmem:[#allocation18 + $0x410] sm:$0xf0] }
 0xa12   :  { %6403 = vmatpush.bf16.msrb.mxu0 %v12164_v31  ;;  %v14190_v31 = vld [vmem:[#allocation18 + $0x5ec] sm:$0xf0]  ;;  %v12104_v30 = vor.u32 %v14128_v15, %v12101_v26  ;;  %v12309_v26 = vld [vmem:[#allocation18 + $0x5b0] sm:$0xf0] }
 0xa13   :  { %v12340_v45 = vor.u32 %v14190_v31, %v12339_v40  ;;  %v12307_v40 = vld [vmem:[#allocation18 + $0x5a0] sm:$0xf]  ;;  %v14180_v31 = vld [vmem:[#allocation18 + $0x5a4] sm:$0xf] }
 0xa15   :  { %6432 = vmatpush.bf16.msrb.mxu2 %v12152_v55  ;;  %6414 = vmatpush.bf16.msra.mxu1 %v12340_v45  ;;  %v12187_v45 = vld [vmem:[#allocation18 + $0x4a8] sm:$0xf] }
 0xa16   :  { %12096 = vmatmul.msk.bf16.vlgmr.msra.gmra.mxu3 %vm4906_vm2, %v14127_v4  ;;  %6404 = vmatpush.bf16.msrb.mxu0 %v12148_v57  ;;  %v12341_v57 = vld [vmem:[#allocation18 + $0x5f0] sm:$0xf0] }
 0xa17   :  { %v12344_v55 = vor.u32 %v14188_v27, %v12341_v57  ;;  %v12312_v27 = vor.u32 %v14180_v31, %v12309_v26  ;;  %v14149_v57 = vld [vmem:[#allocation18 + $0x4ac] sm:$0xf]  ;;  %v14143_v31 = vld [vmem:[#allocation18 + $0x474] sm:$0xf0] }
 0xa19   :  { %6433 = vmatpush.bf16.msrb.mxu2 %v12136_v1  ;;  %6442 = vmatpush.bf16.msrb.mxu3 %v12344_v55 }
 0xa1a   :  { %6405 = vmatpush.bf16.msrb.mxu0 %v12132_v24  ;;  %v14186_v24 = vld [vmem:[#allocation18 + $0x5cc] sm:$0xf0] }
 0xa1e   :  { %6406 = vmatpush.bf16.msrb.mxu0 %v12116_v23  ;;  %v14155_v23 = vld [vmem:[#allocation18 + $0x4d4] sm:$0xf0] }
 0xa23   :  { %v5467_v16 = vpop.f32.mrf.mxu0 }
 0xa29   :  { %v5439_v46 = vpop.f32.mrf.mxu2 }
 0xa2b   :  { %v16851_v25 = vpop.f32.mrf.mxu0 }
 0xa31   :  { %v16843_v48 = vpop.f32.mrf.mxu2 }
 0xa39   :  { %v16845_v21 = vpop.f32.mrf.mxu2 }
 0xa41   :  { %v16849_v4 = vpop.f32.mrf.mxu2 }
 0xa43   :  { %v5481_v9 = vpop.f32.mrf.mxu1 }
 0xa44   :  { %v16847_v35 = vadd.f32 %v5481_v9, %v5467_v16  ;;  %v5523_v16 = vpop.f32.mrf.mxu0  ;;  %v12099_v9 = vld [vmem:[#allocation18 + $0x400] sm:$0xf] }
 0xa45   :  { %v12100_v56 = vor.u32 %v14130_v60, %v12099_v9  ;;  %v12205_v9 = vld [vmem:[#allocation18 + $0x4d8] sm:$0xf0] }
 0xa47   :  { %6407 = vmatpush.bf16.msrb.mxu0 %v12100_v56  ;;  %v14182_v56 = vld [vmem:[#allocation18 + $0x5ac] sm:$0xf0] }
 0xa48   :  { %v12308_v15 = vor.u32 %v14182_v56, %v12307_v40  ;;  %v12277_v40 = vld [vmem:[#allocation18 + $0x570] sm:$0xf0]  ;;  %v12155_v56 = vld [vmem:[#allocation18 + $0x468] sm:$0xf] }
 0xa49   :  { %v5453_v38 = vpop.f32.mrf.mxu3  ;;  %v12156_v26 = vor.u32 %v14143_v31, %v12155_v56  ;;  %v12123_v31 = vld [vmem:[#allocation18 + $0x428] sm:$0xf] }
 0xa4a   :  { %v5454_v3 = vadd.f32 %v5453_v38, %v5439_v46  ;;  %v12120_v46 = vor.u32 %v14132_v59, %v12117_v50  ;;  %v14159_v38 = vld [vmem:[#allocation18 + $0x4f4] sm:$0xf0]  ;;  %v12203_v59 = vld [vmem:[#allocation18 + $0x4c8] sm:$0xf] }
 0xa4b   :  { %v16853_v62 = vpop.f32.mrf.mxu1  ;;  %v12220_v58 = vor.u32 %v14159_v38, %v12219_v37  ;;  %v12291_v38 = vld [vmem:[#allocation18 + $0x580] sm:$0xf] }
 0xa4c   :  { %v5871_v29 = vpop.f32.mrf.mxu2  ;;  %6434 = vmatpush.bf16.msrb.mxu2 %v12120_v46  ;;  %v12328_v46 = vor.u32 %v14184_v17, %v12325_v53  ;;  %v14147_v17 = vld [vmem:[#allocation18 + $0x494] sm:$0xf0]  ;;  %v14145_v53 = vld [vmem:[#allocation18 + $0x48c] sm:$0xf]  ;;  %v5484_v22 = vadd.f32 %v16853_v62, %v16851_v25 }
 0xa4d   :  { %v16855_v43 = vadd.f32 %v5871_v29, %v5454_v3  ;;  %v14157_v3 = vld [vmem:[#allocation18 + $0x4ec] sm:$0xf]  ;;  %v12323_v29 = vld [vmem:[#allocation18 + $0x5c0] sm:$0xf]  ;;  %6456 = vmatpush.bf16.msra.mxu0 %v12220_v58 }
 0xa4e   :  { %v12224_v33 = vor.u32 %v14157_v3, %v12221_v32  ;;  %v12324_v51 = vor.u32 %v14186_v24, %v12323_v29  ;;  %6443 = vmatpush.bf16.msrb.mxu3 %v12328_v46  ;;  %v14178_v3 = vld [vmem:[#allocation18 + $0x58c] sm:$0xf0]  ;;  %v14176_v32 = vld [vmem:[#allocation18 + $0x584] sm:$0xf]  ;;  %v12293_v29 = vld [vmem:[#allocation18 + $0x590] sm:$0xf0] }
 0xa4f   :  { %v12171_v24 = vld [vmem:[#allocation18 + $0x488] sm:$0xf] }
 0xa50   :  { %6435 = vmatpush.bf16.msrb.mxu2 %v12104_v30  ;;  %6415 = vmatpush.bf16.msra.mxu1 %v12324_v51  ;;  %v14151_v30 = vld [vmem:[#allocation18 + $0x4b4] sm:$0xf0]  ;;  %v12172_v51 = vor.u32 %v14147_v17, %v12171_v24  ;;  %v14137_v17 = vld [vmem:[#allocation18 + $0x44c] sm:$0xf] }
 0xa51   :  { %v16857_v6 = vpop.f32.mrf.mxu3  ;;  %v12188_v37 = vor.u32 %v14151_v30, %v12187_v45  ;;  %v14141_v45 = vld [vmem:[#allocation18 + $0x46c] sm:$0xf]  ;;  %v12157_v30 = vld [vmem:[#allocation18 + $0x478] sm:$0xf0] }
 0xa52   :  { %6444 = vmatpush.bf16.msrb.mxu3 %v12312_v27  ;;  %v12160_v27 = vor.u32 %v14141_v45, %v12157_v30  ;;  %v12125_v45 = vld [vmem:[#allocation18 + $0x438] sm:$0xf0] }
 0xa53   :  { %v5537_v28 = vpop.f32.mrf.mxu1 }
 0xa54   :  { %v16859_v11 = vadd.f32 %v5537_v28, %v5523_v16  ;;  %6484 = vmatpush.bf16.msra.mxu2 %v12224_v33  ;;  %v12204_v16 = vor.u32 %v14155_v23, %v12203_v59  ;;  %v14153_v28 = vld [vmem:[#allocation18 + $0x4cc] sm:$0xf]  ;;  %6416 = vmatpush.bf16.msra.mxu1 %v12308_v15  ;;  %v12292_v33 = vor.u32 %v14178_v3, %v12291_v38  ;;  %v12173_v59 = vld [vmem:[#allocation18 + $0x498] sm:$0xf0]  ;;  %v16866_v23 = vpop.f32.mrf.mxu2  ;;  %v12261_v38 = vld [vmem:[#allocation18 + $0x550] sm:$0xf0] }
 0xa55   :  { %v12208_v60 = vor.u32 %v14153_v28, %v12205_v9  ;;  %v12176_v46 = vor.u32 %v14145_v53, %v12173_v59  ;;  %v14174_v28 = vld [vmem:[#allocation18 + $0x56c] sm:$0xf0]  ;;  %v14172_v9 = vld [vmem:[#allocation18 + $0x564] sm:$0xf]  ;;  %v12139_v3 = vld [vmem:[#allocation18 + $0x448] sm:$0xf] }
 0xa56   :  { %6457 = vmatpush.bf16.msra.mxu0 %v12204_v16  ;;  %v12275_v16 = vld [vmem:[#allocation18 + $0x560] sm:$0xf]  ;;  %v12280_v15 = vor.u32 %v14172_v9, %v12277_v40  ;;  %v12245_v40 = vld [vmem:[#allocation18 + $0x530] sm:$0xf0] }
 0xa58   :  { %6485 = vmatpush.bf16.msra.mxu2 %v12208_v60  ;;  %6417 = vmatpush.bf16.msra.mxu1 %v12292_v33  ;;  %v12276_v60 = vor.u32 %v14174_v28, %v12275_v16  ;;  %v14166_v16 = vld [vmem:[#allocation18 + $0x52c] sm:$0xf0]  ;;  %v14164_v28 = vld [vmem:[#allocation18 + $0x524] sm:$0xf] }
 0xa59   :  { %v5509_v1 = vpop.f32.mrf.mxu3  ;;  %v12248_v56 = vor.u32 %v14164_v28, %v12245_v40  ;;  %v14187_v40 = vld [vmem:[#allocation18 + $0x5d4] sm:$0xf0] }
 0xa5a   :  { %v16862_v50 = vadd.f32 %v5509_v1, %v16845_v21  ;;  %v12189_v21 = vld [vmem:[#allocation18 + $0x4b8] sm:$0xf0]  ;;  %6458 = vmatpush.bf16.msra.mxu0 %v12188_v37  ;;  %v12296_v1 = vor.u32 %v14176_v32, %v12293_v29  ;;  %v14168_v37 = vld [vmem:[#allocation18 + $0x544] sm:$0xf]  ;;  %v14139_v32 = vld [vmem:[#allocation18 + $0x454] sm:$0xf0] }
 0xa5b   :  { %v12192_v55 = vor.u32 %v14149_v57, %v12189_v21  ;;  %v12259_v57 = vld [vmem:[#allocation18 + $0x540] sm:$0xf]  ;;  %v14170_v21 = vld [vmem:[#allocation18 + $0x54c] sm:$0xf0]  ;;  %v12264_v29 = vor.u32 %v14168_v37, %v12261_v38  ;;  %v12140_v24 = vor.u32 %v14139_v32, %v12139_v3  ;;  %v12229_v37 = vld [vmem:[#allocation18 + $0x510] sm:$0xf0] }
 0xa5c   :  { %6445 = vmatpush.bf16.msrb.mxu3 %v12296_v1  ;;  %6418 = vmatpush.bf16.msra.mxu1 %v12276_v60  ;;  %v12141_v1 = vld [vmem:[#allocation18 + $0x458] sm:$0xf0]  ;;  %v14131_v38 = vld [vmem:[#allocation18 + $0x414] sm:$0xf0] }
 0xa5d   :  { %6486 = vmatpush.bf16.msra.mxu2 %v12192_v55  ;;  %v12260_v55 = vor.u32 %v14170_v21, %v12259_v57  ;;  %v12144_v59 = vor.u32 %v14137_v17, %v12141_v1  ;;  %v14162_v57 = vld [vmem:[#allocation18 + $0x50c] sm:$0xf0]  ;;  %v14160_v21 = vld [vmem:[#allocation18 + $0x504] sm:$0xf] }
 0xa5e   :  { %6459 = vmatpush.bf16.msra.mxu0 %v12172_v51  ;;  %v12232_v3 = vor.u32 %v14160_v21, %v12229_v37  ;;  %v12299_v37 = vld [vmem:[#allocation18 + $0x588] sm:$0xf] }
 0xa60   :  { %6446 = vmatpush.bf16.msrb.mxu3 %v12280_v15  ;;  %6419 = vmatpush.bf16.msra.mxu1 %v12260_v55  ;;  %v14135_v15 = vld [vmem:[#allocation18 + $0x434] sm:$0xf0]  ;;  %v12107_v55 = vld [vmem:[#allocation18 + $0x408] sm:$0xf] }
 0xa61   :  { %v16864_v58 = vpop.f32.mrf.mxu3  ;;  %6487 = vmatpush.bf16.msra.mxu2 %v12176_v46  ;;  %v12243_v46 = vld [vmem:[#allocation18 + $0x520] sm:$0xf]  ;;  %v12108_v32 = vor.u32 %v14131_v38, %v12107_v55  ;;  %v14179_v55 = vld [vmem:[#allocation18 + $0x594] sm:$0xf0]  ;;  %v14177_v38 = vld [vmem:[#allocation18 + $0x58c] sm:$0xf] }
 0xa62   :  { %6460 = vmatpush.bf16.msra.mxu0 %v12156_v26  ;;  %v12244_v60 = vor.u32 %v14166_v16, %v12243_v46  ;;  %v14133_v26 = vld [vmem:[#allocation18 + $0x42c] sm:$0xf]  ;;  %v12349_v46 = vld [vmem:[#allocation18 + $0x5f8] sm:$0xf0] }
 0xa63   :  { %v12128_v30 = vor.u32 %v14133_v26, %v12125_v45  ;;  %v14183_v45 = vld [vmem:[#allocation18 + $0x5b4] sm:$0xf0] }
 0xa64   :  { %6447 = vmatpush.bf16.msrb.mxu3 %v12264_v29  ;;  %6420 = vmatpush.bf16.msra.mxu1 %v12244_v60  ;;  %v14191_v29 = vld [vmem:[#allocation18 + $0x5f4] sm:$0xf0]  ;;  %v12331_v60 = vld [vmem:[#allocation18 + $0x5c8] sm:$0xf] }
 0xa65   :  { %6488 = vmatpush.bf16.msra.mxu2 %v12160_v27  ;;  %v12227_v27 = vld [vmem:[#allocation18 + $0x500] sm:$0xf] }
 0xa66   :  { %6461 = vmatpush.bf16.msra.mxu0 %v12140_v24  ;;  %v14129_v24 = vld [vmem:[#allocation18 + $0x40c] sm:$0xf] }
 0xa68   :  { %6448 = vmatpush.bf16.msrb.mxu3 %v12248_v56  ;;  %v14185_v56 = vld [vmem:[#allocation18 + $0x5cc] sm:$0xf] }
 0xa69   :  { %v5885_v33 = vpop.f32.mrf.mxu3  ;;  %6489 = vmatpush.bf16.msra.mxu2 %v12144_v59  ;;  %v14189_v59 = vld [vmem:[#allocation18 + $0x5ec] sm:$0xf] }
 0xa6a   :  { %v16869_v51 = vadd.f32 %v5885_v33, %v16855_v43  ;;  %v12124_v43 = vor.u32 %v14135_v15, %v12123_v31  ;;  %v12347_v33 = vld [vmem:[#allocation18 + $0x5e8] sm:$0xf]  ;;  %v12352_v28 = vor.u32 %v14189_v59, %v12349_v46  ;;  %v12332_v31 = vor.u32 %v14187_v40, %v12331_v60  ;;  %v12333_v15 = vld [vmem:[#allocation18 + $0x5d8] sm:$0xf0] }
 0xa6b   :  { %v12348_v1 = vor.u32 %v14191_v29, %v12347_v33  ;;  %v12336_v26 = vor.u32 %v14185_v56, %v12333_v15  ;;  %v12285_v46 = vld [vmem:[#allocation18 + $0x578] sm:$0xf0] }
 0xa6c   :  { %v5927_v53 = vpop.f32.mrf.mxu2  ;;  %6462 = vmatpush.bf16.msra.mxu0 %v12124_v43  ;;  %6449 = vmatpush.bf16.msrb.mxu3 %v12232_v3  ;;  %v12315_v43 = vld [vmem:[#allocation18 + $0x5a8] sm:$0xf]  ;;  %v12300_v3 = vor.u32 %v14179_v55, %v12299_v37  ;;  %v12269_v15 = vld [vmem:[#allocation18 + $0x558] sm:$0xf0] }
 0xa6d   :  { %v16872_v9 = vadd.f32 %v5927_v53, %v16862_v50  ;;  %v12228_v50 = vor.u32 %v14162_v57, %v12227_v27  ;;  %6490 = vmatpush.bf16.msra.mxu2 %v12128_v30  ;;  %v12109_v53 = vld [vmem:[#allocation18 + $0x418] sm:$0xf0]  ;;  %v14181_v30 = vld [vmem:[#allocation18 + $0x5ac] sm:$0xf]  ;;  %v12316_v57 = vor.u32 %v14183_v45, %v12315_v43  ;;  %v12251_v43 = vld [vmem:[#allocation18 + $0x528] sm:$0xf] }
 0xa6e   :  { %v12112_v16 = vor.u32 %v14129_v24, %v12109_v53  ;;  %v12317_v27 = vld [vmem:[#allocation18 + $0x5b8] sm:$0xf0]  ;;  %v12283_v24 = vld [vmem:[#allocation18 + $0x568] sm:$0xf]  ;;  %v14173_v53 = vld [vmem:[#allocation18 + $0x56c] sm:$0xf] }
 0xa6f   :  { %6421 = vmatpush.bf16.msra.mxu1 %v12228_v50  ;;  %v12320_v50 = vor.u32 %v14181_v30, %v12317_v27  ;;  %v12288_v40 = vor.u32 %v14173_v53, %v12285_v46  ;;  %v14167_v45 = vld [vmem:[#allocation18 + $0x534] sm:$0xf0]  ;;  %v12253_v37 = vld [vmem:[#allocation18 + $0x538] sm:$0xf0] }
 0xa70   :  { %6463 = vmatpush.bf16.msra.mxu0 %v12108_v32  ;;  %6498 = vmatpush.bf16.msra.mxu3 %v12352_v28  ;;  %v12301_v32 = vld [vmem:[#allocation18 + $0x598] sm:$0xf0]  ;;  %v14171_v28 = vld [vmem:[#allocation18 + $0x554] sm:$0xf0]  ;;  %v12252_v55 = vor.u32 %v14167_v45, %v12251_v43 }
 0xa71   :  { %6491 = vmatpush.bf16.msra.mxu2 %v12112_v16  ;;  %v16876_v33 = vpop.f32.mrf.mxu3  ;;  %v12304_v29 = vor.u32 %v14177_v38, %v12301_v32  ;;  %v12267_v16 = vld [vmem:[#allocation18 + $0x548] sm:$0xf]  ;;  %v14161_v32 = vld [vmem:[#allocation18 + $0x50c] sm:$0xf] }
 0xa72   :  { %v12235_v38 = vld [vmem:[#allocation18 + $0x508] sm:$0xf] }
 0xa73   :  { %6470 = vmatpush.bf16.msrb.mxu1 %v12348_v1  ;;  %v14175_v1 = vld [vmem:[#allocation18 + $0x574] sm:$0xf0] }
 0xa74   :  { %v16874_v17 = vpop.f32.mrf.mxu2  ;;  %6499 = vmatpush.bf16.msra.mxu3 %v12336_v26  ;;  %v12284_v59 = vor.u32 %v14175_v1, %v12283_v24  ;;  %v12268_v26 = vor.u32 %v14171_v28, %v12267_v16  ;;  %v16883_v16 = vpop.f32.mrf.mxu0 }
 0xa75   :  { %v16885_v28 = vpop.f32.mrf.mxu1 }
 0xa77   :  { %6471 = vmatpush.bf16.msrb.mxu1 %v12332_v31  ;;  %v14169_v31 = vld [vmem:[#allocation18 + $0x54c] sm:$0xf] }
 0xa78   :  { %6500 = vmatpush.bf16.msra.mxu3 %v12320_v50  ;;  %v12272_v27 = vor.u32 %v14169_v31, %v12269_v15  ;;  %v14165_v50 = vld [vmem:[#allocation18 + $0x52c] sm:$0xf] }
 0xa7b   :  { %6472 = vmatpush.bf16.msrb.mxu1 %v12316_v57 }
 0xa7c   :  { %v5994_v21 = vpop.f32.mrf.mxu2  ;;  %6501 = vmatpush.bf16.msra.mxu3 %v12304_v29  ;;  %v12237_v29 = vld [vmem:[#allocation18 + $0x518] sm:$0xf0] }
 0xa7d   :  { %v12240_v53 = vor.u32 %v14161_v32, %v12237_v29 }
 0xa7f   :  { %6473 = vmatpush.bf16.msrb.mxu1 %v12300_v3  ;;  %v12256_v3 = vor.u32 %v14165_v50, %v12253_v37 }
 0xa80   :  { %6502 = vmatpush.bf16.msra.mxu3 %v12288_v40  ;;  %v5913_v40 = vpop.f32.mrf.mxu1 }
 0xa83   :  { %6474 = vmatpush.bf16.msrb.mxu1 %v12284_v59 }
 0xa84   :  { %v5996_v60 = vpop.f32.mrf.mxu2  ;;  %6503 = vmatpush.bf16.msra.mxu3 %v12272_v27 }
 0xa85   :  { %v6013_v56 = vpack.c.bf16 %v5996_v60, %v5994_v21  ;;  %v14163_v21 = vld [vmem:[#allocation18 + $0x514] sm:$0xf0]  ;;  %v5899_v60 = vpop.f32.mrf.mxu0 }
 0xa86   :  { %v12236_v24 = vor.u32 %v14163_v21, %v12235_v38  ;;  %v16893_v38 = vld [vmem:[#allocation19] sm:$0xf]  ;;  %v5456_v21 = vadd.f32 %v16857_v6, %v16843_v48 }
 0xa87   :  { %6408 = vmatmul.bf16.vlgmr.msrb.gmra.mxu0 %v6013_v56  ;;  %6436 = vmatmul.bf16.vlgmr.msrb.gmra.mxu2 %v6013_v56 }
 0xa88   :  { %6475 = vmatpush.bf16.msrb.mxu1 %v12268_v26  ;;  %6504 = vmatpush.bf16.msra.mxu3 %v12256_v3  ;;  %v5915_v15 = vpop.f32.mrf.mxu1  ;;  %v5874_v32 = vadd.f32 %v16866_v23, %v5456_v21 }
 0xa89   :  { %v5941_v30 = vpop.f32.mrf.mxu3 }
 0xa8a   :  { %v16879_v57 = vadd.f32 %v5941_v30, %v16872_v9 }
 0xa8c   :  { %6476 = vmatpush.bf16.msrb.mxu1 %v12252_v55  ;;  %6505 = vmatpush.bf16.msra.mxu3 %v12240_v53 }
 0xa8d   :  { %v5901_v31 = vpop.f32.mrf.mxu0 }
 0xa8e   :  { %v5902_v20 = vadd.f32 %v5901_v31, %v5484_v22 }
 0xa90   :  { %6477 = vmatpush.bf16.msrb.mxu1 %v12236_v24  ;;  %v16887_v43 = vpop.f32.mrf.mxu1  ;;  %v6522_v24 = vperm.slane %v16893_v38, 0 }
 0xa91   :  { %v16881_v1 = vpop.f32.mrf.mxu3 }
 0xa95   :  { %v5955_v26 = vpop.f32.mrf.mxu0 }
 0xa97   :  { %6464 = vmatmul.bf16.vlgmr.msra.gmra.mxu0 %v6013_v56  ;;  %6492 = vmatmul.bf16.vlgmr.msra.gmra.mxu2 %v6013_v56 }
 0xa98   :  { %v16891_v56 = vpop.f32.mrf.mxu1 }
 0xa99   :  { %v6008_v9 = vpop.f32.mrf.mxu3 }
 0xa9d   :  { %v16889_v45 = vpop.f32.mrf.mxu0 }
 0xaa1   :  { %v6010_v59 = vpop.f32.mrf.mxu3 }
 0xaa2   :  { %v6014_v46 = vpack.c.bf16 %v6010_v59, %v6008_v9  ;;  %v5900_v9 = vadd.f32 %v5899_v60, %v16847_v35  ;;  %v5888_v59 = vadd.f32 %v16876_v33, %v5874_v32  ;;  %v5916_v35 = vadd.f32 %v5915_v15, %v5902_v20 }
 0xaa3   :  { %v6524_v15 = vperm.slane %v16893_v38, 2 }
 0xaa4   :  { %6422 = vmatmul.bf16.vlgmr.msra.gmra.mxu1 %v6014_v46  ;;  %6450 = vmatmul.bf16.vlgmr.msrb.gmra.mxu3 %v6014_v46  ;;  %v5914_v49 = vadd.f32 %v5913_v40, %v5900_v9  ;;  %v6550_v40 = vld [vmem:[%s17901_s14] sm:$0xf] }
 0xab4   :  { %6478 = vmatmul.bf16.vlgmr.msrb.gmra.mxu1 %v6014_v46  ;;  %6506 = vmatmul.bf16.vlgmr.msra.gmra.mxu3 %v6014_v46 }
 0xb04   :  { %v6409_v30 = vpop.f32.mrf.mxu0 }
 0xb0a   :  { %v6437_v27 = vpop.f32.mrf.mxu2 }
 0xb0c   :  { %v6411_v55 = vpop.f32.mrf.mxu0 }
 0xb14   :  { %v6465_v21 = vpop.f32.mrf.mxu0 }
 0xb21   :  { %v6423_v50 = vpop.f32.mrf.mxu1 }
 0xb22   :  { %v6424_v37 = vadd.f32 %v6423_v50, %v6409_v30  ;;  %v6439_v50 = vpop.f32.mrf.mxu2 }
 0xb24   :  { %v6512_v29 = vadd.f32 %v6424_v37, %v16869_v51  ;;  %v6523_v51 = vperm.slane %v16893_v38, 1 }
 0xb26   :  { %v6530_v48 = vadd.f32 %v6522_v24, %v6512_v29 }
 0xb27   :  { %v6451_v3 = vpop.f32.mrf.mxu3 }
 0xb28   :  { %v6452_v46 = vadd.f32 %v6451_v3, %v6437_v27  ;;  %v6538_v60 = vmax.f32 %v6530_v48, 0.0 }
 0xb29   :  { %v6425_v53 = vpop.f32.mrf.mxu1 }
 0xb2a   :  { %v6426_v30 = vadd.f32 %v6425_v53, %v6411_v55  ;;  %v6513_v23 = vadd.f32 %v6452_v46, %v5914_v49  ;;  %v6493_v22 = vpop.f32.mrf.mxu2  ;;  %v5512_v49 = vadd.f32 %v16864_v58, %v16849_v4 }
 0xb2c   :  { %v6516_v6 = vadd.f32 %v6426_v30, %v5888_v59  ;;  %v6531_v3 = vadd.f32 %v6523_v51, %v6513_v23  ;;  %v6467_v59 = vpop.f32.mrf.mxu0  ;;  %v5956_v30 = vadd.f32 %v5955_v26, %v16859_v11 }
 0xb2e   :  { %v6534_v37 = vadd.f32 %v6522_v24, %v6516_v6  ;;  %v6539_v31 = vmax.f32 %v6531_v3, 0.0  ;;  %v17902_v3 = vld [vmem:[#allocation107_spill] sm:$0xff] }
 0xb2f   :  { %v6453_v13 = vpop.f32.mrf.mxu3 }
 0xb30   :  { %v6542_v33 = vmax.f32 %v6534_v37, 0.0  ;;  %v6454_v27 = vadd.f32 %v6453_v13, %v6439_v50  ;;  %v5930_v13 = vadd.f32 %v16874_v17, %v5512_v49  ;;  %v5540_v17 = vadd.f32 %v16885_v28, %v16883_v16  ;;  %v17909_v49 = vld [vmem:[#allocation88_spill] sm:$0xff] }
 0xb31   :  { %v6479_v55 = vpop.f32.mrf.mxu1 }
 0xb32   :  { %v6517_v32 = vadd.f32 %v6454_v27, %v5916_v35  ;;  %v6546_v53 = vpack.c.bf16 %v6542_v33, %v6538_v60  ;;  %v6480_v62 = vadd.f32 %v6479_v55, %v6465_v21  ;;  %v5944_v4 = vadd.f32 %v16881_v1, %v5930_v13  ;;  %v17913_v13 = vld [vmem:[#allocation91_spill] sm:$0xff] }
 0xb33   :  { %v5958_v23 = vadd.f32 %v16889_v45, %v5540_v17  ;;  %v6525_v1 = vperm.slane %v16893_v38, 3  ;;  %v12357_v38 = vld [vmem:[%s17901_s14 + $0x4] sm:$0xf]  ;;  %v17923_v17 = vld [vmem:[#allocation100_spill] sm:$0xff] }
 0xb34   :  { %v6535_v25 = vadd.f32 %v6523_v51, %v6517_v32  ;;  %6561 = vmatpush.bf16.msrb.mxu0 %v6546_v53  ;;  %v6514_v20 = vadd.f32 %v6480_v62, %v16879_v57  ;;  %v5970_v57 = vadd.f32 %v16887_v43, %v5956_v30  ;;  %v6495_v51 = vpop.f32.mrf.mxu2  ;;  %v17903_v32 = vld [vmem:[#allocation75_spill] sm:$0xff]  ;;  %v17919_v30 = vld [vmem:[#allocation97_spill] sm:$0xff] }
 0xb35   :  { %v5972_v16 = vadd.f32 %v16891_v56, %v5958_v23  ;;  %v17906_v62 = vld [vmem:[#allocation111_spill] sm:$0xff] }
 0xb36   :  { %v6543_v29 = vmax.f32 %v6535_v25, 0.0  ;;  %v6532_v48 = vadd.f32 %v6524_v15, %v6514_v20  ;;  %v17905_v25 = vld [vmem:[#allocation69_spill] sm:$0xff]  ;;  %v17914_v20 = vld [vmem:[#allocation74_spill] sm:$0xff]  ;;  %v17927_v23 = vld [vmem:[#allocation83_spill] sm:$0xff] }
 0xb37   :  { %v6507_v24 = vpop.f32.mrf.mxu3  ;;  %12353 = vmatmul.msk.bf16.vlgmr.msrb.gmra.mxu0 %vm4906_vm2, %v6550_v40 }
 0xb38   :  { %6618 = vmatpush.bf16.msra.mxu0 %v6546_v53  ;;  %v6547_v9 = vpack.c.bf16 %v6543_v29, %v6539_v31  ;;  %v6508_v58 = vadd.f32 %v6507_v24, %v6493_v22  ;;  %v6540_v28 = vmax.f32 %v6532_v48, 0.0  ;;  %v17904_v53 = vld [vmem:[#allocation85_spill] sm:$0xff]  ;;  %v17908_v22 = vld [vmem:[#allocation115_spill] sm:$0xff] }
 0xb39   :  { %v6481_v46 = vpop.f32.mrf.mxu1  ;;  %v17910_v31 = vld [vmem:[#allocation71_spill] sm:$0xff]  ;;  %v17911_v29 = vld [vmem:[#allocation81_spill] sm:$0xff] }
 0xb3a   :  { %v6482_v50 = vadd.f32 %v6481_v46, %v6467_v59  ;;  %6574 = vmatpush.bf16.msra.mxu1 %v6547_v9  ;;  %v6515_v11 = vadd.f32 %v6508_v58, %v5970_v57  ;;  %v17912_v24 = vld [vmem:[#allocation119_spill] sm:$0xff]  ;;  %v17917_v59 = vld [vmem:[#allocation94_spill] sm:$0xff]  ;;  %v17918_v46 = vld [vmem:[#allocation77_spill] sm:$0xff] }
 0xb3b   :  { %v17921_v58 = vld [vmem:[#allocation127_spill] sm:$0xff]  ;;  %v17924_v57 = vld [vmem:[#allocation90_spill] sm:$0xff] }
 0xb3c   :  { %6671 = vmatpush.bf16.msrb.mxu0 %v15853_v34  ;;  %v6518_v6 = vadd.f32 %v6482_v50, %v5944_v4  ;;  %v6533_v35 = vadd.f32 %v6525_v1, %v6515_v11  ;;  %v17920_v4 = vld [vmem:[#allocation87_spill] sm:$0xff]  ;;  %v17922_v50 = vld [vmem:[#allocation80_spill] sm:$0xff] }
 0xb3d   :  { %12354 = vmatmul.msk.bf16.vlgmr.msra.gmra.mxu1 %vm4906_vm2, %v6550_v40  ;;  %v17925_v48 = vld [vmem:[#allocation131_spill] sm:$0xff]  ;;  %v17928_v11 = vld [vmem:[#allocation104_spill] sm:$0xff] }
 0xb3e   :  { %6631 = vmatpush.bf16.msrb.mxu1 %v6547_v9  ;;  %v6536_v26 = vadd.f32 %v6524_v15, %v6518_v6  ;;  %v6541_v27 = vmax.f32 %v6533_v35, 0.0  ;;  %v17915_v15 = vld [vmem:[#allocation84_spill] sm:$0xff]  ;;  %v17916_v9 = vld [vmem:[#allocation123_spill] sm:$0xff]  ;;  %v17926_v6 = vld [vmem:[#allocation93_spill] sm:$0xff] }
 0xb3f   :  { %v6509_v37 = vpop.f32.mrf.mxu3  ;;  %v17937_v35 = vld [vmem:[#allocation102_spill] sm:$0xff] }
 0xb40   :  { %6672 = vmatpush.bf16.msrb.mxu0 %v15856_v44  ;;  %v6544_v43 = vmax.f32 %v6536_v26, 0.0  ;;  %v6510_v21 = vadd.f32 %v6509_v37, %v6495_v51  ;;  %v17930_v26 = vld [vmem:[#allocation96_spill] sm:$0xff]  ;;  %v17931_v51 = vld [vmem:[#allocation86_spill] sm:$0xff] }
 0xb41   :  { %v17932_v37 = vld [vmem:[#allocation108_spill] sm:$0xff] }
 0xb42   :  { %6684 = vmatpush.bf16.msra.mxu1 %v15947_v61  ;;  %v6519_v60 = vadd.f32 %v6510_v21, %v5972_v16  ;;  %v6548_v33 = vpack.c.bf16 %v6544_v43, %v6540_v28  ;;  %v17933_v16 = vld [vmem:[#allocation139_spill] sm:$0xff]  ;;  %v17935_v43 = vld [vmem:[#allocation112_spill] sm:$0xff] }
 0xb43   :  { %v17934_v28 = vld [vmem:[#allocation99_spill] sm:$0xff] }
 0xb44   :  { %6673 = vmatpush.bf16.msrb.mxu0 %v15860_v54  ;;  %v6537_v45 = vadd.f32 %v6525_v1, %v6519_v60  ;;  %6587 = vmatpush.bf16.msrb.mxu2 %v6548_v33  ;;  %v17929_v1 = vld [vmem:[#allocation135_spill] sm:$0xff]  ;;  %v17938_v60 = vld [vmem:[#allocation116_spill] sm:$0xff] }
 0xb45   :  { %v17936_v21 = vld [vmem:[#allocation143_spill] sm:$0xff] }
 0xb46   :  { %6685 = vmatpush.bf16.msra.mxu1 %v15961_v5  ;;  %v6545_v55 = vmax.f32 %v6537_v45, 0.0  ;;  %v17940_v45 = vld [vmem:[#allocation120_spill] sm:$0xff] }
 0xb47   :  { %12355 = vmatmul.msk.bf16.vlgmr.msrb.gmra.mxu2 %vm4906_vm2, %v6550_v40  ;;  %12358 = vmatmul.msk.bf16.vlgmr.msra.gmra.mxu0 %vm4906_vm2, %v12357_v38 }
 0xb48   :  { %6674 = vmatpush.bf16.msrb.mxu0 %v17776_v47  ;;  %6644 = vmatpush.bf16.msra.mxu2 %v6548_v33  ;;  %v6549_v56 = vpack.c.bf16 %v6545_v55, %v6541_v27  ;;  %v17939_v33 = vld [vmem:[#allocation106_spill] sm:$0xff]  ;;  %v17942_v27 = vld [vmem:[#allocation124_spill] sm:$0xff] }
 0xb49   :  { %v17943_v55 = vld [vmem:[#allocation114_spill] sm:$0xff] }
 0xb4a   :  { %6686 = vmatpush.bf16.msra.mxu1 %v15975_v52  ;;  %6600 = vmatpush.bf16.msrb.mxu3 %v6549_v56 }
 0xb4c   :  { %6675 = vmatpush.bf16.msrb.mxu0 %v17782_v0  ;;  %6697 = vmatpush.bf16.msrb.mxu2 %v17789_v39 }
 0xb4d   :  { %12356 = vmatmul.msk.bf16.vlgmr.msrb.gmra.mxu3 %vm4906_vm2, %v6550_v40  ;;  %12359 = vmatmul.msk.bf16.vlgmr.msrb.gmra.mxu1 %vm4906_vm2, %v12357_v38  ;;  %v17907_v40 = vld [vmem:[#allocation78_spill] sm:$0xff] }
 0xb4e   :  { %6687 = vmatpush.bf16.msra.mxu1 %v15989_v18  ;;  %6657 = vmatpush.bf16.msra.mxu3 %v6549_v56  ;;  %v17944_v56 = vld [vmem:[#allocation118_spill] sm:$0xff] }
 0xb50   :  { %6676 = vmatpush.bf16.msrb.mxu0 %v17785_v19  ;;  %6698 = vmatpush.bf16.msrb.mxu2 %v17793_v42 }
 0xb52   :  { %6688 = vmatpush.bf16.msra.mxu1 %v16006_v10  ;;  %6710 = vmatpush.bf16.msrb.mxu3 %v17804_v12 }
 0xb54   :  { %6677 = vmatpush.bf16.msrb.mxu0 %v17788_v41  ;;  %6699 = vmatpush.bf16.msrb.mxu2 %v17796_v36 }
 0xb56   :  { %6689 = vmatpush.bf16.msra.mxu1 %v17779_v8  ;;  %6711 = vmatpush.bf16.msrb.mxu3 %v17808_v7 }
 0xb57   :  { %12360 = vmatmul.msk.bf16.vlgmr.msra.gmra.mxu2 %vm4906_vm2, %v12357_v38 }
 0xb58   :  { %6678 = vmatpush.bf16.msrb.mxu0 %v17791_v2  ;;  %6700 = vmatpush.bf16.msrb.mxu2 %v17799_v14 }
 0xb5a   :  { %6690 = vmatpush.bf16.msra.mxu1 %v17902_v3  ;;  %6712 = vmatpush.bf16.msrb.mxu3 %v17903_v32 }
 0xb5c   :  { %6723 = vmatpush.bf16.msra.mxu0 %v17792_v63  ;;  %6701 = vmatpush.bf16.msrb.mxu2 %v17904_v53 }
 0xb5d   :  { %12361 = vmatmul.msk.bf16.vlgmr.msra.gmra.mxu3 %vm4906_vm2, %v12357_v38  ;;  %v17941_v38 = vld [vmem:[#allocation110_spill] sm:$0xff] }
 0xb5e   :  { %6691 = vmatpush.bf16.msra.mxu1 %v17906_v62  ;;  %6713 = vmatpush.bf16.msrb.mxu3 %v17907_v40 }
 0xb60   :  { %6724 = vmatpush.bf16.msra.mxu0 %v17905_v25  ;;  %6702 = vmatpush.bf16.msrb.mxu2 %v17909_v49  ;;  %v14316_v49 = vld [vmem:[#allocation22 + $0x3e4] sm:$0xf] }
 0xb62   :  { %6736 = vmatpush.bf16.msrb.mxu1 %v17908_v22  ;;  %6714 = vmatpush.bf16.msrb.mxu3 %v17911_v29 }
 0xb64   :  { %6725 = vmatpush.bf16.msra.mxu0 %v17910_v31  ;;  %6703 = vmatpush.bf16.msrb.mxu2 %v17913_v13  ;;  %v14318_v31 = vld [vmem:[#allocation22 + $0x3ec] sm:$0xf0] }
 0xb66   :  { %6737 = vmatpush.bf16.msrb.mxu1 %v17912_v24  ;;  %6715 = vmatpush.bf16.msrb.mxu3 %v17915_v15 }
 0xb68   :  { %6726 = vmatpush.bf16.msra.mxu0 %v17914_v20  ;;  %6704 = vmatpush.bf16.msrb.mxu2 %v17917_v59 }
 0xb6a   :  { %6738 = vmatpush.bf16.msrb.mxu1 %v17916_v9  ;;  %6716 = vmatpush.bf16.msrb.mxu3 %v17920_v4 }
 0xb6c   :  { %6727 = vmatpush.bf16.msra.mxu0 %v17918_v46  ;;  %6749 = vmatpush.bf16.msra.mxu2 %v17919_v30 }
 0xb6e   :  { %6739 = vmatpush.bf16.msrb.mxu1 %v17921_v58  ;;  %6717 = vmatpush.bf16.msrb.mxu3 %v17924_v57  ;;  %v12610_v58 = vld [vmem:[#allocation22 + $0x3f0] sm:$0xf0] }
 0xb70   :  { %6728 = vmatpush.bf16.msra.mxu0 %v17922_v50  ;;  %6750 = vmatpush.bf16.msra.mxu2 %v17923_v17  ;;  %v17951_v17 = vld [vmem:[#allocation153_spill] sm:$0xff] }
 0xb72   :  { %6740 = vmatpush.bf16.msrb.mxu1 %v17925_v48  ;;  %6762 = vmatpush.bf16.msra.mxu3 %v17926_v6  ;;  %v17082_v48 = vld [vmem:[#allocation21 + $0x4] sm:$0xf] }
 0xb74   :  { %6729 = vmatpush.bf16.msra.mxu0 %v17927_v23  ;;  %6751 = vmatpush.bf16.msra.mxu2 %v17928_v11 }
 0xb76   :  { %6741 = vmatpush.bf16.msrb.mxu1 %v17929_v1  ;;  %6763 = vmatpush.bf16.msra.mxu3 %v17930_v26 }
 0xb78   :  { %6730 = vmatpush.bf16.msra.mxu0 %v17931_v51  ;;  %6752 = vmatpush.bf16.msra.mxu2 %v17932_v37 }
 0xb7a   :  { %6742 = vmatpush.bf16.msrb.mxu1 %v17933_v16  ;;  %6764 = vmatpush.bf16.msra.mxu3 %v17934_v28 }
 0xb7c   :  { %6753 = vmatpush.bf16.msra.mxu2 %v17935_v43 }
 0xb7e   :  { %6743 = vmatpush.bf16.msrb.mxu1 %v17936_v21  ;;  %6765 = vmatpush.bf16.msra.mxu3 %v17937_v35 }
 0xb80   :  { %6754 = vmatpush.bf16.msra.mxu2 %v17938_v60  ;;  %v17945_v60 = vld [vmem:[#allocation89_spill] sm:$0xff] }
 0xb82   :  { %6766 = vmatpush.bf16.msra.mxu3 %v17939_v33 }
 0xb84   :  { %6755 = vmatpush.bf16.msra.mxu2 %v17940_v45 }
 0xb86   :  { %6767 = vmatpush.bf16.msra.mxu3 %v17941_v38 }
 0xb88   :  { %6756 = vmatpush.bf16.msra.mxu2 %v17942_v27 }
 0xb8a   :  { %6768 = vmatpush.bf16.msra.mxu3 %v17943_v55  ;;  %v17946_v55 = vld [vmem:[#allocation92_spill] sm:$0xff] }
 0xb8e   :  { %6769 = vmatpush.bf16.msra.mxu3 %v17944_v56  ;;  %v17949_v56 = vld [vmem:[#allocation150_spill] sm:$0xff] }
 0xbb4   :  { %v6563_v51 = vpop.f32.mrf.mxu0 }
 0xbba   :  { %v6576_v43 = vpop.f32.mrf.mxu1 }
 0xbbc   :  { %v6565_v37 = vpop.f32.mrf.mxu0 }
 0xbbd   :  { %v17947_v37 = vld [vmem:[#allocation147_spill] sm:$0xff] }
 0xbc2   :  { %v6578_v23 = vpop.f32.mrf.mxu1 }
 0xbc4   :  { %v6620_v11 = vpop.f32.mrf.mxu0 }
 0xbc5   :  { %v6663_v21 = vmax.f32 %v6563_v51, %v6620_v11  ;;  %v17948_v11 = vld [vmem:[#allocation95_spill] sm:$0xff] }
 0xbc7   :  { %v16992_v35 = vpack.c.bf16 %v6663_v21, %v6663_v21 }
 0xbc9   :  { %6679 = vmatmul.bf16.vlgmr.msrb.gmra.mxu0 %v16992_v35 }
 0xbca   :  { %6775 = vmatpush.bf16.msrb.mxu0 %v17945_v60  ;;  %v6589_v45 = vpop.f32.mrf.mxu2  ;;  %v6633_v38 = vpop.f32.mrf.mxu1  ;;  %v17950_v60 = vld [vmem:[#allocation98_spill] sm:$0xff] }
 0xbcb   :  { %v6664_v33 = vmax.f32 %v6576_v43, %v6633_v38 }
 0xbcc   :  { %v6622_v27 = vpop.f32.mrf.mxu0 }
 0xbcd   :  { %v16996_v50 = vpack.c.bf16 %v6664_v33, %v6664_v33  ;;  %v17952_v33 = vld [vmem:[#allocation101_spill] sm:$0xff] }
 0xbce   :  { %6776 = vmatpush.bf16.msrb.mxu0 %v17946_v55  ;;  %v17953_v55 = vld [vmem:[#allocation156_spill] sm:$0xff] }
 0xbcf   :  { %6692 = vmatmul.bf16.vlgmr.msra.gmra.mxu1 %v16996_v50 }
 0xbd0   :  { %6788 = vmatpush.bf16.msra.mxu1 %v17947_v37  ;;  %v6602_v23 = vpop.f32.mrf.mxu3 }
 0xbd2   :  { %6777 = vmatpush.bf16.msrb.mxu0 %v17948_v11  ;;  %v6591_v51 = vpop.f32.mrf.mxu2  ;;  %v6635_v21 = vpop.f32.mrf.mxu1  ;;  %v17954_v11 = vld [vmem:[#allocation105_spill] sm:$0xff] }
 0xbd3   :  { %v17955_v51 = vld [vmem:[#allocation159_spill] sm:$0xff]  ;;  %v17956_v21 = vld [vmem:[#allocation128_spill] sm:$0xff] }
 0xbd4   :  { %6789 = vmatpush.bf16.msra.mxu1 %v17949_v56  ;;  %v17962_v56 = vld [vmem:[#allocation117_spill] sm:$0xff] }
 0xbd6   :  { %6778 = vmatpush.bf16.msrb.mxu0 %v17950_v60 }
 0xbd8   :  { %6790 = vmatpush.bf16.msra.mxu1 %v17951_v17  ;;  %v6604_v43 = vpop.f32.mrf.mxu3  ;;  %v17957_v17 = vld [vmem:[#allocation109_spill] sm:$0xff] }
 0xbd9   :  { %6731 = vmatmul.bf16.vlgmr.msra.gmra.mxu0 %v16992_v35 }
 0xbda   :  { %6779 = vmatpush.bf16.msrb.mxu0 %v17952_v33  ;;  %v6646_v38 = vpop.f32.mrf.mxu2 }
 0xbdb   :  { %v6665_v27 = vmax.f32 %v6589_v45, %v6646_v38  ;;  %v17958_v38 = vld [vmem:[#allocation162_spill] sm:$0xff] }
 0xbdc   :  { %6791 = vmatpush.bf16.msra.mxu1 %v17953_v55  ;;  %v17961_v55 = vld [vmem:[#allocation122_spill] sm:$0xff] }
 0xbdd   :  { %v17008_v37 = vpack.c.bf16 %v6665_v27, %v6665_v27  ;;  %v17959_v27 = vld [vmem:[#allocation132_spill] sm:$0xff] }
 0xbde   :  { %6780 = vmatpush.bf16.msrb.mxu0 %v17954_v11  ;;  %v17960_v11 = vld [vmem:[#allocation113_spill] sm:$0xff] }
 0xbdf   :  { %6705 = vmatmul.bf16.vlgmr.msrb.gmra.mxu2 %v17008_v37  ;;  %6744 = vmatmul.bf16.vlgmr.msrb.gmra.mxu1 %v16996_v50 }
 0xbe0   :  { %6792 = vmatpush.bf16.msra.mxu1 %v17955_v51  ;;  %6801 = vmatpush.bf16.msrb.mxu2 %v17956_v21  ;;  %v6659_v43 = vpop.f32.mrf.mxu3  ;;  %v17963_v51 = vld [vmem:[#allocation165_spill] sm:$0xff]  ;;  %v17964_v21 = vld [vmem:[#allocation136_spill] sm:$0xff] }
 0xbe1   :  { %v6666_v60 = vmax.f32 %v6602_v23, %v6659_v43  ;;  %v17967_v43 = vld [vmem:[#allocation168_spill] sm:$0xff] }
 0xbe2   :  { %6781 = vmatpush.bf16.msrb.mxu0 %v17957_v17  ;;  %v6648_v33 = vpop.f32.mrf.mxu2  ;;  %v17968_v17 = vld [vmem:[#allocation140_spill] sm:$0xff] }
 0xbe3   :  { %v6670_v45 = vpack.c.bf16 %v6666_v60, %v6666_v60  ;;  %v17965_v33 = vld [vmem:[#allocation126_spill] sm:$0xff]  ;;  %v17966_v60 = vld [vmem:[#allocation121_spill] sm:$0xff] }
 0xbe4   :  { %6793 = vmatpush.bf16.msra.mxu1 %v17958_v38  ;;  %6802 = vmatpush.bf16.msrb.mxu2 %v17959_v27  ;;  %v17970_v27 = vld [vmem:[#allocation130_spill] sm:$0xff]  ;;  %v17980_v38 = vld [vmem:[#allocation151_spill] sm:$0xff] }
 0xbe5   :  { %6718 = vmatmul.bf16.vlgmr.msrb.gmra.mxu3 %v6670_v45 }
 0xbe6   :  { %6782 = vmatpush.bf16.msrb.mxu0 %v17960_v11  ;;  %6814 = vmatpush.bf16.msrb.mxu3 %v17961_v55  ;;  %v17969_v11 = vld [vmem:[#allocation171_spill] sm:$0xff] }
 0xbe8   :  { %6794 = vmatpush.bf16.msra.mxu1 %v17963_v51  ;;  %6803 = vmatpush.bf16.msrb.mxu2 %v17964_v21  ;;  %v6661_v23 = vpop.f32.mrf.mxu3  ;;  %v17973_v21 = vld [vmem:[#allocation174_spill] sm:$0xff] }
 0xbe9   :  { %6783 = vmatmul.bf16.vlgmr.msrb.gmra.mxu0 %v16992_v35  ;;  %v17972_v23 = vld [vmem:[#allocation144_spill] sm:$0xff]  ;;  %v17974_v51 = vld [vmem:[#allocation134_spill] sm:$0xff] }
 0xbea   :  { %6827 = vmatpush.bf16.msra.mxu0 %v17962_v56  ;;  %6815 = vmatpush.bf16.msrb.mxu3 %v17965_v33  ;;  %v17971_v56 = vld [vmem:[#allocation125_spill] sm:$0xff] }
 0xbeb   :  { %v17988_v33 = vld [vmem:[#allocation141_spill] sm:$0xff] }
 0xbec   :  { %6795 = vmatpush.bf16.msra.mxu1 %v17967_v43  ;;  %6804 = vmatpush.bf16.msrb.mxu2 %v17968_v17  ;;  %v17976_v43 = vld [vmem:[#allocation148_spill] sm:$0xff] }
 0xbed   :  { %v17977_v17 = vld [vmem:[#allocation176_spill] sm:$0xff] }
 0xbee   :  { %6828 = vmatpush.bf16.msra.mxu0 %v17966_v60  ;;  %6816 = vmatpush.bf16.msrb.mxu3 %v17970_v27  ;;  %v17975_v60 = vld [vmem:[#allocation129_spill] sm:$0xff]  ;;  %v17981_v27 = vld [vmem:[#allocation178_spill] sm:$0xff] }
 0xbef   :  { %6757 = vmatmul.bf16.vlgmr.msra.gmra.mxu2 %v17008_v37  ;;  %6796 = vmatmul.bf16.vlgmr.msra.gmra.mxu1 %v16996_v50 }
 0xbf0   :  { %6840 = vmatpush.bf16.msrb.mxu1 %v17969_v11  ;;  %6805 = vmatpush.bf16.msrb.mxu2 %v17972_v23  ;;  %v17978_v11 = vld [vmem:[#allocation138_spill] sm:$0xff] }
 0xbf1   :  { %v17982_v23 = vld [vmem:[#allocation142_spill] sm:$0xff] }
 0xbf2   :  { %6829 = vmatpush.bf16.msra.mxu0 %v17971_v56  ;;  %6817 = vmatpush.bf16.msrb.mxu3 %v17974_v51  ;;  %v17979_v56 = vld [vmem:[#allocation133_spill] sm:$0xff]  ;;  %v17984_v51 = vld [vmem:[#allocation154_spill] sm:$0xff] }
 0xbf4   :  { %6841 = vmatpush.bf16.msrb.mxu1 %v17973_v21  ;;  %6806 = vmatpush.bf16.msrb.mxu2 %v17976_v43  ;;  %v17983_v21 = vld [vmem:[#allocation137_spill] sm:$0xff] }
 0xbf5   :  { %6770 = vmatmul.bf16.vlgmr.msra.gmra.mxu3 %v6670_v45  ;;  %v17986_v43 = vld [vmem:[#allocation157_spill] sm:$0xff] }
 0xbf6   :  { %6830 = vmatpush.bf16.msra.mxu0 %v17975_v60  ;;  %6818 = vmatpush.bf16.msrb.mxu3 %v17978_v11  ;;  %v17985_v60 = vld [vmem:[#allocation179_spill] sm:$0xff] }
 0xbf8   :  { %6842 = vmatpush.bf16.msrb.mxu1 %v17977_v17  ;;  %6807 = vmatpush.bf16.msrb.mxu2 %v17980_v38  ;;  %v17987_v17 = vld [vmem:[#allocation146_spill] sm:$0xff]  ;;  %v17990_v38 = vld [vmem:[#allocation160_spill] sm:$0xff] }
 0xbfa   :  { %6831 = vmatpush.bf16.msra.mxu0 %v17979_v56  ;;  %6819 = vmatpush.bf16.msrb.mxu3 %v17982_v23  ;;  %v17989_v56 = vld [vmem:[#allocation180_spill] sm:$0xff]  ;;  %v17992_v23 = vld [vmem:[#allocation145_spill] sm:$0xff] }
 0xbfc   :  { %6843 = vmatpush.bf16.msrb.mxu1 %v17981_v27  ;;  %6808 = vmatpush.bf16.msrb.mxu2 %v17984_v51  ;;  %v17991_v27 = vld [vmem:[#allocation149_spill] sm:$0xff] }
 0xbfd   :  { %v17994_v51 = vld [vmem:[#allocation181_spill] sm:$0xff] }
 0xbfe   :  { %6832 = vmatpush.bf16.msra.mxu0 %v17983_v21  ;;  %6820 = vmatpush.bf16.msrb.mxu3 %v17987_v17  ;;  %v17993_v21 = vld [vmem:[#allocation152_spill] sm:$0xff] }
 0xbff   :  { %6809 = vmatmul.bf16.vlgmr.msrb.gmra.mxu2 %v17008_v37 }
 0xc00   :  { %6844 = vmatpush.bf16.msrb.mxu1 %v17985_v60  ;;  %6853 = vmatpush.bf16.msra.mxu2 %v17986_v43  ;;  %v17995_v60 = vld [vmem:[#allocation163_spill] sm:$0xff]  ;;  %v17997_v43 = vld [vmem:[#allocation182_spill] sm:$0xff] }
 0xc02   :  { %6833 = vmatpush.bf16.msra.mxu0 %v17988_v33  ;;  %6821 = vmatpush.bf16.msrb.mxu3 %v17991_v27  ;;  %v17996_v33 = vld [vmem:[#allocation155_spill] sm:$0xff] }
 0xc03   :  { %v18004_v27 = vld [vmem:[#allocation175_spill] sm:$0xff] }
 0xc04   :  { %6845 = vmatpush.bf16.msrb.mxu1 %v17989_v56  ;;  %6854 = vmatpush.bf16.msra.mxu2 %v17990_v38  ;;  %v17998_v56 = vld [vmem:[#allocation166_spill] sm:$0xff] }
 0xc05   :  { %6822 = vmatmul.bf16.vlgmr.msrb.gmra.mxu3 %v6670_v45  ;;  %v17999_v38 = vld [vmem:[#allocation158_spill] sm:$0xff] }
 0xc06   :  { %6834 = vmatpush.bf16.msra.mxu0 %v17992_v23  ;;  %6866 = vmatpush.bf16.msra.mxu3 %v17993_v21  ;;  %v18000_v23 = vld [vmem:[#allocation169_spill] sm:$0xff] }
 0xc07   :  { %v18001_v21 = vld [vmem:[#allocation161_spill] sm:$0xff] }
 0xc08   :  { %6846 = vmatpush.bf16.msrb.mxu1 %v17994_v51  ;;  %6855 = vmatpush.bf16.msra.mxu2 %v17995_v60  ;;  %v18002_v51 = vld [vmem:[#allocation172_spill] sm:$0xff] }
 0xc09   :  { %6835 = vmatmul.bf16.vlgmr.msra.gmra.mxu0 %v16992_v35  ;;  %v18003_v60 = vld [vmem:[#allocation164_spill] sm:$0xff]  ;;  %v18005_v35 = vld [vmem:[#allocation167_spill] sm:$0xff] }
 0xc0a   :  { %6867 = vmatpush.bf16.msra.mxu3 %v17996_v33  ;;  %v18006_v33 = vld [vmem:[#allocation177_spill] sm:$0xff] }
 0xc0c   :  { %6847 = vmatpush.bf16.msrb.mxu1 %v17997_v43  ;;  %6856 = vmatpush.bf16.msra.mxu2 %v17998_v56  ;;  %v18007_v43 = vld [vmem:[#allocation170_spill] sm:$0xff]  ;;  %v18008_v56 = vld [vmem:[#allocation173_spill] sm:$0xff] }
 0xc0e   :  { %6868 = vmatpush.bf16.msra.mxu3 %v17999_v38 }
 0xc0f   :  { %6848 = vmatmul.bf16.vlgmr.msrb.gmra.mxu1 %v16996_v50 }
 0xc10   :  { %6857 = vmatpush.bf16.msra.mxu2 %v18000_v23 }
 0xc12   :  { %6869 = vmatpush.bf16.msra.mxu3 %v18001_v21 }
 0xc14   :  { %6858 = vmatpush.bf16.msra.mxu2 %v18002_v51 }
 0xc16   :  { %6870 = vmatpush.bf16.msra.mxu3 %v18003_v60 }
 0xc18   :  { %6859 = vmatpush.bf16.msra.mxu2 %v18004_v27 }
 0xc1a   :  { %6871 = vmatpush.bf16.msra.mxu3 %v18005_v35 }
 0xc1c   :  { %6860 = vmatpush.bf16.msra.mxu2 %v18006_v33 }
 0xc1e   :  { %6872 = vmatpush.bf16.msra.mxu3 %v18007_v43 }
 0xc1f   :  { %6861 = vmatmul.bf16.vlgmr.msra.gmra.mxu2 %v17008_v37 }
 0xc22   :  { %6873 = vmatpush.bf16.msra.mxu3 %v18008_v56 }
 0xc25   :  { %6874 = vmatmul.bf16.vlgmr.msra.gmra.mxu3 %v6670_v45 }
 0xc46   :  { %v6680_v50 = vpop.f32.mrf.mxu0 }
 0xc4c   :  { %v6693_v23 = vpop.f32.mrf.mxu1 }
 0xc4e   :  { %v6682_v21 = vpop.f32.mrf.mxu0 }
 0xc54   :  { %v6695_v38 = vpop.f32.mrf.mxu1 }
 0xc56   :  { %v6732_v51 = vpop.f32.mrf.mxu0 }
 0xc5c   :  { %v6745_v17 = vpop.f32.mrf.mxu1 }
 0xc5d   :  { %v17074_v60 = vadd.f32 %v6745_v17, %v6732_v51  ;;  %v6694_v17 = vadd.f32 %v6693_v23, %v6680_v50  ;;  %v12464_v23 = vld [vmem:[#allocation22 + $0x2c0] sm:$0xf]  ;;  %v14282_v50 = vld [vmem:[#allocation22 + $0x2cc] sm:$0xf0] }
 0xc5e   :  { %v6734_v27 = vpop.f32.mrf.mxu0 }
 0xc62   :  { %v6706_v11 = vpop.f32.mrf.mxu2 }
 0xc63   :  { %v6707_v27 = vadd.f32 %v6706_v11, %v6694_v17  ;;  %v14280_v17 = vld [vmem:[#allocation22 + $0x2c4] sm:$0xf] }
 0xc64   :  { %v6747_v35 = vpop.f32.mrf.mxu1 }
 0xc66   :  { %v6784_v55 = vpop.f32.mrf.mxu0 }
 0xc68   :  { %v6719_v33 = vpop.f32.mrf.mxu3 }
 0xc6a   :  { %v6708_v16 = vpop.f32.mrf.mxu2 }
 0xc6b   :  { %v6720_v16 = vadd.f32 %v6719_v33, %v6707_v27  ;;  %v14284_v33 = vld [vmem:[#allocation22 + $0x2e4] sm:$0xf]  ;;  %v12465_v27 = vor.u32 %v14282_v50, %v12464_v23  ;;  %v12418_v50 = vld [vmem:[#allocation22 + $0x270] sm:$0xf0] }
 0xc6c   :  { %v6797_v43 = vpop.f32.mrf.mxu1  ;;  %v14268_v23 = vld [vmem:[#allocation22 + $0x264] sm:$0xf] }
 0xc6d   :  { %v6798_v51 = vadd.f32 %v6797_v43, %v6784_v55  ;;  %v12480_v55 = vld [vmem:[#allocation22 + $0x2e0] sm:$0xf] }
 0xc6e   :  { %v6786_v28 = vpop.f32.mrf.mxu0 }
 0xc70   :  { %v6721_v37 = vpop.f32.mrf.mxu3 }
 0xc72   :  { %v17076_v46 = vpop.f32.mrf.mxu2 }
 0xc74   :  { %v6799_v45 = vpop.f32.mrf.mxu1 }
 0xc78   :  { %v17078_v56 = vpop.f32.mrf.mxu3 }
 0xc7a   :  { %v6760_v21 = vpop.f32.mrf.mxu2 }
 0xc80   :  { %v6773_v38 = vpop.f32.mrf.mxu3 }
 0xc81   :  { %v17087_v38 = vld [vmem:[#allocation21] sm:$0xf] }
 0xc82   :  { %v6810_v30 = vpop.f32.mrf.mxu2 }
 0xc83   :  { %v6811_v35 = vadd.f32 %v6810_v30, %v6798_v51  ;;  %v12466_v51 = vld [vmem:[#allocation22 + $0x2d0] sm:$0xf0] }
 0xc86   :  { %v17080_v59 = vpop.f32.mrf.mxu0 }
 0xc88   :  { %v6823_v1 = vpop.f32.mrf.mxu3 }
 0xc89   :  { %v6824_v20 = vadd.f32 %v6823_v1, %v6811_v35  ;;  %v14286_v1 = vld [vmem:[#allocation22 + $0x2ec] sm:$0xf0]  ;;  %v12469_v35 = vor.u32 %v14280_v17, %v12466_v51 }
 0xc8a   :  { %v6812_v28 = vpop.f32.mrf.mxu2  ;;  %v12481_v43 = vor.u32 %v14286_v1, %v12480_v55  ;;  %v14274_v1 = vld [vmem:[#allocation22 + $0x28c] sm:$0xf0] }
 0xc8b   :  { %v6879_v13 = vmax.f32 %v6720_v16, %v6824_v20  ;;  %v12482_v20 = vld [vmem:[#allocation22 + $0x2f0] sm:$0xf0]  ;;  %v12448_v16 = vld [vmem:[#allocation22 + $0x2a0] sm:$0xf]  ;;  %v14278_v28 = vld [vmem:[#allocation22 + $0x2ac] sm:$0xf0] }
 0xc8c   :  { %v6849_v26 = vpop.f32.mrf.mxu1  ;;  %v12449_v55 = vor.u32 %v14278_v28, %v12448_v16  ;;  %v14266_v28 = vld [vmem:[#allocation22 + $0x24c] sm:$0xf0] }
 0xc8d   :  { %v6881_v45 = vpack.c.bf16 %v6879_v13, %v6879_v13  ;;  %v12485_v13 = vor.u32 %v14284_v33, %v12482_v20  ;;  %v14272_v33 = vld [vmem:[#allocation22 + $0x284] sm:$0xf]  ;;  %v12434_v20 = vld [vmem:[#allocation22 + $0x290] sm:$0xf0]  ;;  %v6850_v16 = vadd.f32 %v6849_v26, %v17080_v59  ;;  %v12608_v26 = vld [vmem:[#allocation22 + $0x3e0] sm:$0xf] }
 0xc8e   :  { %v6838_v37 = vpop.f32.mrf.mxu0  ;;  %v12437_v57 = vor.u32 %v14272_v33, %v12434_v20  ;;  %v12384_v20 = vld [vmem:[#allocation22 + $0x220] sm:$0xf]  ;;  %v12386_v59 = vld [vmem:[#allocation22 + $0x230] sm:$0xf0] }
 0xc8f   :  { %v17085_v21 = vsel %vm6888_vm3, %v6881_v45, 0  ;;  %v14276_v37 = vld [vmem:[#allocation22 + $0x2a4] sm:$0xf]  ;;  %v12450_v45 = vld [vmem:[#allocation22 + $0x2b0] sm:$0xf0] }
 0xc90   :  { %v6825_v11 = vpop.f32.mrf.mxu3  ;;  %6902 = vmatpush.bf16.msrb.mxu0 %v17085_v21  ;;  %6999 = vmatpush.bf16.msrb.mxu2 %v17085_v21 }
 0xc91   :  { %v12453_v11 = vor.u32 %v14276_v37, %v12450_v45  ;;  %v14264_v37 = vld [vmem:[#allocation22 + $0x244] sm:$0xf]  ;;  %v12402_v45 = vld [vmem:[#allocation22 + $0x250] sm:$0xf0] }
 0xc92   :  { %v12405_v33 = vor.u32 %v14264_v37, %v12402_v45  ;;  %v12488_v37 = vld [vmem:[#allocation22 + $0x2e8] sm:$0xf]  ;;  %v14287_v45 = vld [vmem:[#allocation22 + $0x2f4] sm:$0xf0] }
 0xc93   :  { %12364 = vmatmul.msk.bf16.vlgmr.msrb.gmra.mxu2 %vm6884_vm4, %v17082_v48  ;;  %12362 = vmatmul.msk.bf16.vlgmr.msrb.gmra.mxu0 %vm6884_vm4, %v17087_v38 }
 0xc94   :  { %v6851_v30 = vpop.f32.mrf.mxu1  ;;  %7405 = vmatpush.bf16.msra.mxu0 %v12481_v43  ;;  %7431 = vmatpush.bf16.msra.mxu2 %v12485_v13  ;;  %v12416_v43 = vld [vmem:[#allocation22 + $0x260] sm:$0xf]  ;;  %v14270_v13 = vld [vmem:[#allocation22 + $0x26c] sm:$0xf0] }
 0xc95   :  { %v12432_v30 = vld [vmem:[#allocation22 + $0x280] sm:$0xf]  ;;  %v12417_v51 = vor.u32 %v14270_v13, %v12416_v43  ;;  %v14262_v43 = vld [vmem:[#allocation22 + $0x22c] sm:$0xf0] }
 0xc96   :  { %v12433_v6 = vor.u32 %v14274_v1, %v12432_v30 }
 0xc98   :  { %7406 = vmatpush.bf16.msra.mxu0 %v12465_v27  ;;  %7432 = vmatpush.bf16.msra.mxu2 %v12469_v35  ;;  %v12421_v27 = vor.u32 %v14268_v23, %v12418_v50  ;;  %v12400_v35 = vld [vmem:[#allocation22 + $0x240] sm:$0xf]  ;;  %v14260_v23 = vld [vmem:[#allocation22 + $0x224] sm:$0xf] }
 0xc99   :  { %v12401_v1 = vor.u32 %v14266_v28, %v12400_v35  ;;  %v14256_v35 = vld [vmem:[#allocation22 + $0x204] sm:$0xf]  ;;  %v12613_v28 = vor.u32 %v14316_v49, %v12610_v58  ;;  %v12489_v58 = vor.u32 %v14287_v45, %v12488_v37  ;;  %v14277_v37 = vld [vmem:[#allocation22 + $0x2ac] sm:$0xf]  ;;  %v12458_v45 = vld [vmem:[#allocation22 + $0x2b8] sm:$0xf0] }
 0xc9c   :  { %7407 = vmatpush.bf16.msra.mxu0 %v12449_v55  ;;  %7433 = vmatpush.bf16.msra.mxu2 %v12453_v11  ;;  %v6759_v55 = vadd.f32 %v17076_v46, %v17074_v60  ;;  %v12368_v46 = vld [vmem:[#allocation22 + $0x200] sm:$0xf] }
 0xca0   :  { %7408 = vmatpush.bf16.msra.mxu0 %v12433_v6  ;;  %7434 = vmatpush.bf16.msra.mxu2 %v12437_v57  ;;  %v6772_v6 = vadd.f32 %v17078_v56, %v6759_v55  ;;  %v12370_v56 = vld [vmem:[#allocation22 + $0x210] sm:$0xf0]  ;;  %v14285_v55 = vld [vmem:[#allocation22 + $0x2ec] sm:$0xf] }
 0xca1   :  { %v12373_v49 = vor.u32 %v14256_v35, %v12370_v56 }
 0xca2   :  { %v6862_v17 = vpop.f32.mrf.mxu2 }
 0xca3   :  { %v6863_v11 = vadd.f32 %v6862_v17, %v6850_v16  ;;  %v12385_v17 = vor.u32 %v14262_v43, %v12384_v20  ;;  %v12609_v16 = vor.u32 %v14318_v31, %v12608_v26  ;;  %v12594_v20 = vld [vmem:[#allocation22 + $0x3d0] sm:$0xf0] }
 0xca4   :  { %7409 = vmatpush.bf16.msra.mxu0 %v12417_v51  ;;  %7435 = vmatpush.bf16.msra.mxu2 %v12421_v27  ;;  %v12389_v51 = vor.u32 %v14260_v23, %v12386_v59  ;;  %v14258_v27 = vld [vmem:[#allocation22 + $0x20c] sm:$0xf0]  ;;  %v14283_v23 = vld [vmem:[#allocation22 + $0x2d4] sm:$0xf0] }
 0xca5   :  { %v12369_v31 = vor.u32 %v14258_v27, %v12368_v46  ;;  %v14308_v46 = vld [vmem:[#allocation22 + $0x3a4] sm:$0xf]  ;;  %v12578_v27 = vld [vmem:[#allocation22 + $0x3b0] sm:$0xf0] }
 0xca8   :  { %v6875_v30 = vpop.f32.mrf.mxu3  ;;  %7410 = vmatpush.bf16.msra.mxu0 %v12401_v1  ;;  %7436 = vmatpush.bf16.msra.mxu2 %v12405_v33  ;;  %v14314_v1 = vld [vmem:[#allocation22 + $0x3cc] sm:$0xf0]  ;;  %v14312_v33 = vld [vmem:[#allocation22 + $0x3c4] sm:$0xf] }
 0xca9   :  { %v6876_v57 = vadd.f32 %v6875_v30, %v6863_v11  ;;  %v12490_v30 = vld [vmem:[#allocation22 + $0x2f8] sm:$0xf0]  ;;  %v12597_v26 = vor.u32 %v14312_v33, %v12594_v20  ;;  %v12461_v33 = vor.u32 %v14277_v37, %v12458_v45  ;;  %v12440_v20 = vld [vmem:[#allocation22 + $0x288] sm:$0xf]  ;;  %v12530_v37 = vld [vmem:[#allocation22 + $0x350] sm:$0xf0] }
 0xcaa   :  { %v6864_v13 = vpop.f32.mrf.mxu2  ;;  %v12493_v43 = vor.u32 %v14285_v55, %v12490_v30  ;;  %v12560_v55 = vld [vmem:[#allocation22 + $0x380] sm:$0xf]  ;;  %v14306_v30 = vld [vmem:[#allocation22 + $0x38c] sm:$0xf0] }
 0xcab   :  { %v6880_v50 = vmax.f32 %v6772_v6, %v6876_v57  ;;  %v12592_v6 = vld [vmem:[#allocation22 + $0x3c0] sm:$0xf]  ;;  %v12472_v13 = vld [vmem:[#allocation22 + $0x2c8] sm:$0xf] }
 0xcac   :  { %7411 = vmatpush.bf16.msra.mxu0 %v12385_v17  ;;  %7437 = vmatpush.bf16.msra.mxu2 %v12389_v51  ;;  %v12593_v59 = vor.u32 %v14314_v1, %v12592_v6  ;;  %v12576_v17 = vld [vmem:[#allocation22 + $0x3a0] sm:$0xf]  ;;  %v14310_v51 = vld [vmem:[#allocation22 + $0x3ac] sm:$0xf0]  ;;  %v12473_v35 = vor.u32 %v14283_v23, %v12472_v13  ;;  %v14304_v6 = vld [vmem:[#allocation22 + $0x384] sm:$0xf] }
 0xcad   :  { %v6882_v60 = vpack.c.bf16 %v6880_v50, %v6880_v50  ;;  %v14281_v50 = vld [vmem:[#allocation22 + $0x2cc] sm:$0xf]  ;;  %v12442_v13 = vld [vmem:[#allocation22 + $0x298] sm:$0xf0]  ;;  %v12544_v23 = vld [vmem:[#allocation22 + $0x360] sm:$0xf] }
 0xcaf   :  { %v17100_v11 = vsel %vm6888_vm3, %v6882_v60, 0  ;;  %v12474_v60 = vld [vmem:[#allocation22 + $0x2d8] sm:$0xf0] }
 0xcb0   :  { %v6877_v57 = vpop.f32.mrf.mxu3  ;;  %6915 = vmatpush.bf16.msra.mxu1 %v17100_v11  ;;  %7012 = vmatpush.bf16.msrb.mxu3 %v17100_v11  ;;  %v12477_v56 = vor.u32 %v14281_v50, %v12474_v60  ;;  %v12546_v50 = vld [vmem:[#allocation22 + $0x370] sm:$0xf0] }
 0xcb1   :  { %7412 = vmatpush.bf16.msra.mxu0 %v12369_v31  ;;  %7438 = vmatpush.bf16.msra.mxu2 %v12373_v49  ;;  %v12562_v57 = vld [vmem:[#allocation22 + $0x390] sm:$0xf0]  ;;  %v14275_v31 = vld [vmem:[#allocation22 + $0x294] sm:$0xf0]  ;;  %v12561_v49 = vor.u32 %v14306_v30, %v12560_v55  ;;  %v12408_v30 = vld [vmem:[#allocation22 + $0x248] sm:$0xf] }
 0xcb2   :  { %v12441_v60 = vor.u32 %v14275_v31, %v12440_v20  ;;  %v12410_v20 = vld [vmem:[#allocation22 + $0x258] sm:$0xf0]  ;;  %v12512_v31 = vld [vmem:[#allocation22 + $0x320] sm:$0xf] }
 0xcb3   :  { %12365 = vmatmul.msk.bf16.vlgmr.msrb.gmra.mxu3 %vm6884_vm4, %v17082_v48  ;;  %12363 = vmatmul.msk.bf16.vlgmr.msra.gmra.mxu1 %vm6884_vm4, %v17087_v38  ;;  %v12577_v48 = vor.u32 %v14310_v51, %v12576_v17  ;;  %v12581_v38 = vor.u32 %v14308_v46, %v12578_v27  ;;  %v12424_v51 = vld [vmem:[#allocation22 + $0x268] sm:$0xf]  ;;  %v14271_v46 = vld [vmem:[#allocation22 + $0x274] sm:$0xf0] }
 0xcb4   :  { %7418 = vmatpush.bf16.msrb.mxu1 %v12609_v16  ;;  %7444 = vmatpush.bf16.msra.mxu3 %v12613_v28  ;;  %v12456_v16 = vld [vmem:[#allocation22 + $0x2a8] sm:$0xf]  ;;  %v14279_v28 = vld [vmem:[#allocation22 + $0x2b4] sm:$0xf0]  ;;  %v12425_v45 = vor.u32 %v14271_v46, %v12424_v51  ;;  %v12394_v51 = vld [vmem:[#allocation22 + $0x238] sm:$0xf0] }
 0xcb5   :  { %7457 = vmatpush.bf16.msrb.mxu0 %v12489_v58  ;;  %7483 = vmatpush.bf16.msrb.mxu2 %v12493_v43  ;;  %v12457_v1 = vor.u32 %v14279_v28, %v12456_v16  ;;  %v12565_v58 = vor.u32 %v14304_v6, %v12562_v57  ;;  %v14273_v43 = vld [vmem:[#allocation22 + $0x28c] sm:$0xf]  ;;  %v12426_v16 = vld [vmem:[#allocation22 + $0x278] sm:$0xf0]  ;;  %v12528_v28 = vld [vmem:[#allocation22 + $0x340] sm:$0xf] }
 0xcb6   :  { %v12445_v17 = vor.u32 %v14273_v43, %v12442_v13  ;;  %v14267_v6 = vld [vmem:[#allocation22 + $0x254] sm:$0xf0]  ;;  %v12514_v43 = vld [vmem:[#allocation22 + $0x330] sm:$0xf0] }
 0xcb7   :  { %v12409_v13 = vor.u32 %v14267_v6, %v12408_v30  ;;  %v12616_v30 = vld [vmem:[#allocation22 + $0x3e8] sm:$0xf]  ;;  %v14319_v6 = vld [vmem:[#allocation22 + $0x3f4] sm:$0xf0] }
 0xcb8   :  { %7419 = vmatpush.bf16.msrb.mxu1 %v12593_v59  ;;  %7445 = vmatpush.bf16.msra.mxu3 %v12597_v26  ;;  %v14302_v59 = vld [vmem:[#allocation22 + $0x36c] sm:$0xf0]  ;;  %v14300_v26 = vld [vmem:[#allocation22 + $0x364] sm:$0xf] }
 0xcb9   :  { %7458 = vmatpush.bf16.msrb.mxu0 %v12473_v35  ;;  %7484 = vmatpush.bf16.msrb.mxu2 %v12477_v56  ;;  %v12545_v27 = vor.u32 %v14302_v59, %v12544_v23  ;;  %v12549_v35 = vor.u32 %v14300_v26, %v12546_v50  ;;  %v14269_v56 = vld [vmem:[#allocation22 + $0x26c] sm:$0xf]  ;;  %v12392_v59 = vld [vmem:[#allocation22 + $0x228] sm:$0xf] }
 0xcba   :  { %v12429_v55 = vor.u32 %v14269_v56, %v12426_v16  ;;  %v14290_v56 = vld [vmem:[#allocation22 + $0x30c] sm:$0xf0]  ;;  %v14288_v16 = vld [vmem:[#allocation22 + $0x304] sm:$0xf] }
 0xcbc   :  { %7420 = vmatpush.bf16.msrb.mxu1 %v12577_v48  ;;  %7446 = vmatpush.bf16.msra.mxu3 %v12581_v38  ;;  %v14298_v48 = vld [vmem:[#allocation22 + $0x34c] sm:$0xf0]  ;;  %v14296_v38 = vld [vmem:[#allocation22 + $0x344] sm:$0xf] }
 0xcbd   :  { %7459 = vmatpush.bf16.msrb.mxu0 %v12457_v1  ;;  %7485 = vmatpush.bf16.msrb.mxu2 %v12461_v33  ;;  %v12529_v57 = vor.u32 %v14298_v48, %v12528_v28  ;;  %v12533_v1 = vor.u32 %v14296_v38, %v12530_v37  ;;  %v14265_v33 = vld [vmem:[#allocation22 + $0x24c] sm:$0xf]  ;;  %v12498_v48 = vld [vmem:[#allocation22 + $0x310] sm:$0xf0]  ;;  %v12376_v38 = vld [vmem:[#allocation22 + $0x208] sm:$0xf] }
 0xcbe   :  { %v12413_v23 = vor.u32 %v14265_v33, %v12410_v20  ;;  %v14259_v37 = vld [vmem:[#allocation22 + $0x214] sm:$0xf0]  ;;  %v12378_v33 = vld [vmem:[#allocation22 + $0x218] sm:$0xf0]  ;;  %v14317_v20 = vld [vmem:[#allocation22 + $0x3ec] sm:$0xf] }
 0xcc0   :  { %7421 = vmatpush.bf16.msrb.mxu1 %v12561_v49  ;;  %7447 = vmatpush.bf16.msra.mxu3 %v12565_v58  ;;  %v14294_v49 = vld [vmem:[#allocation22 + $0x32c] sm:$0xf0]  ;;  %v14292_v58 = vld [vmem:[#allocation22 + $0x324] sm:$0xf] }
 0xcc1   :  { %7460 = vmatpush.bf16.msrb.mxu0 %v12441_v60  ;;  %7486 = vmatpush.bf16.msrb.mxu2 %v12445_v17  ;;  %v12513_v26 = vor.u32 %v14294_v49, %v12512_v31  ;;  %v12517_v50 = vor.u32 %v14292_v58, %v12514_v43  ;;  %v14263_v60 = vld [vmem:[#allocation22 + $0x234] sm:$0xf0]  ;;  %v14261_v17 = vld [vmem:[#allocation22 + $0x22c] sm:$0xf]  ;;  %v12618_v31 = vld [vmem:[#allocation22 + $0x3f8] sm:$0xf0] }
 0xcc2   :  { %v12393_v46 = vor.u32 %v14263_v60, %v12392_v59  ;;  %v12621_v58 = vor.u32 %v14317_v20, %v12618_v31  ;;  %v12600_v43 = vld [vmem:[#allocation22 + $0x3c8] sm:$0xf]  ;;  %v14299_v20 = vld [vmem:[#allocation22 + $0x354] sm:$0xf0]  ;;  %v14297_v31 = vld [vmem:[#allocation22 + $0x34c] sm:$0xf] }
 0xcc3   :  { %v12584_v60 = vld [vmem:[#allocation22 + $0x3a8] sm:$0xf] }
 0xcc4   :  { %7422 = vmatpush.bf16.msrb.mxu1 %v12545_v27  ;;  %7448 = vmatpush.bf16.msra.mxu3 %v12549_v35  ;;  %v12397_v27 = vor.u32 %v14261_v17, %v12394_v51  ;;  %v12496_v35 = vld [vmem:[#allocation22 + $0x300] sm:$0xf]  ;;  %v14311_v17 = vld [vmem:[#allocation22 + $0x3b4] sm:$0xf0]  ;;  %v14309_v51 = vld [vmem:[#allocation22 + $0x3ac] sm:$0xf] }
 0xcc5   :  { %7461 = vmatpush.bf16.msrb.mxu0 %v12425_v45  ;;  %7487 = vmatpush.bf16.msrb.mxu2 %v12429_v55  ;;  %v12497_v28 = vor.u32 %v14290_v56, %v12496_v35  ;;  %v12501_v45 = vor.u32 %v14288_v16, %v12498_v48  ;;  %v12377_v55 = vor.u32 %v14259_v37, %v12376_v38  ;;  %v12568_v56 = vld [vmem:[#allocation22 + $0x388] sm:$0xf]  ;;  %v14307_v16 = vld [vmem:[#allocation22 + $0x394] sm:$0xf0]  ;;  %v12570_v38 = vld [vmem:[#allocation22 + $0x398] sm:$0xf0] }
 0xcc6   :  { %v12569_v48 = vor.u32 %v14307_v16, %v12568_v56  ;;  %v14220_v56 = vld [vmem:[#allocation22 + $0xe4] sm:$0xf]  ;;  %v12738_v16 = vld [vmem:[#allocation22 + $0xf0] sm:$0xf0] }
 0xcc8   :  { %7423 = vmatpush.bf16.msrb.mxu1 %v12529_v57  ;;  %7449 = vmatpush.bf16.msra.mxu3 %v12533_v1  ;;  %v14257_v57 = vld [vmem:[#allocation22 + $0x20c] sm:$0xf]  ;;  %v12617_v1 = vor.u32 %v14319_v6, %v12616_v30 }
 0xcc9   :  { %7462 = vmatpush.bf16.msrb.mxu0 %v12409_v13  ;;  %7488 = vmatpush.bf16.msrb.mxu2 %v12413_v23  ;;  %v12381_v49 = vor.u32 %v14257_v57, %v12378_v33  ;;  %v14315_v13 = vld [vmem:[#allocation22 + $0x3d4] sm:$0xf0]  ;;  %v14313_v23 = vld [vmem:[#allocation22 + $0x3cc] sm:$0xf]  ;;  %v12554_v57 = vld [vmem:[#allocation22 + $0x378] sm:$0xf0] }
 0xcca   :  { %v12601_v59 = vor.u32 %v14315_v13, %v12600_v43  ;;  %v14301_v30 = vld [vmem:[#allocation22 + $0x36c] sm:$0xf]  ;;  %v12536_v33 = vld [vmem:[#allocation22 + $0x348] sm:$0xf] }
 0xccb   :  { %v12520_v13 = vld [vmem:[#allocation22 + $0x328] sm:$0xf] }
 0xccc   :  { %7424 = vmatpush.bf16.msrb.mxu1 %v12513_v26  ;;  %7450 = vmatpush.bf16.msra.mxu3 %v12517_v50  ;;  %v12602_v26 = vld [vmem:[#allocation22 + $0x3d8] sm:$0xf0] }
 0xccd   :  { %7463 = vmatpush.bf16.msrb.mxu0 %v12393_v46  ;;  %7489 = vmatpush.bf16.msrb.mxu2 %v12397_v27  ;;  %v12605_v50 = vor.u32 %v14313_v23, %v12602_v26  ;;  %v12585_v46 = vor.u32 %v14311_v17, %v12584_v60  ;;  %v12586_v27 = vld [vmem:[#allocation22 + $0x3b8] sm:$0xf0]  ;;  %v14295_v23 = vld [vmem:[#allocation22 + $0x334] sm:$0xf0]  ;;  %v12736_v17 = vld [vmem:[#allocation22 + $0xe0] sm:$0xf] }
 0xcce   :  { %v12589_v35 = vor.u32 %v14309_v51, %v12586_v27  ;;  %v12521_v26 = vor.u32 %v14295_v23, %v12520_v13  ;;  %v14222_v51 = vld [vmem:[#allocation22 + $0xec] sm:$0xf0]  ;;  %v14291_v27 = vld [vmem:[#allocation22 + $0x314] sm:$0xf0]  ;;  %v14212_v13 = vld [vmem:[#allocation22 + $0xa4] sm:$0xf] }
 0xccf   :  { %v12706_v23 = vld [vmem:[#allocation22 + $0xb0] sm:$0xf0] }
 0xcd0   :  { %7425 = vmatpush.bf16.msrb.mxu1 %v12497_v28  ;;  %7451 = vmatpush.bf16.msra.mxu3 %v12501_v45  ;;  %v14305_v28 = vld [vmem:[#allocation22 + $0x38c] sm:$0xf]  ;;  %v12552_v45 = vld [vmem:[#allocation22 + $0x368] sm:$0xf] }
 0xcd1   :  { %7464 = vmatpush.bf16.msrb.mxu0 %v12377_v55  ;;  %7490 = vmatpush.bf16.msrb.mxu2 %v12381_v49  ;;  %v12573_v37 = vor.u32 %v14305_v28, %v12570_v38  ;;  %v14303_v55 = vld [vmem:[#allocation22 + $0x374] sm:$0xf0]  ;;  %v12537_v49 = vor.u32 %v14299_v20, %v12536_v33  ;;  %v12722_v33 = vld [vmem:[#allocation22 + $0xd0] sm:$0xf0] }
 0xcd2   :  { %v12553_v6 = vor.u32 %v14303_v55, %v12552_v45  ;;  %v12737_v45 = vor.u32 %v14222_v51, %v12736_v17  ;;  %v12741_v55 = vor.u32 %v14220_v56, %v12738_v16  ;;  %v14210_v17 = vld [vmem:[#allocation22 + $0x8c] sm:$0xf0]  ;;  %v14208_v51 = vld [vmem:[#allocation22 + $0x84] sm:$0xf]  ;;  %v12672_v16 = vld [vmem:[#allocation22 + $0x60] sm:$0xf] }
 0xcd4   :  { %7470 = vmatpush.bf16.msra.mxu1 %v12617_v1  ;;  %7496 = vmatpush.bf16.msrb.mxu3 %v12621_v58  ;;  %v12557_v1 = vor.u32 %v14301_v30, %v12554_v57  ;;  %v12538_v58 = vld [vmem:[#allocation22 + $0x358] sm:$0xf0]  ;;  %v12720_v30 = vld [vmem:[#allocation22 + $0xc0] sm:$0xf]  ;;  %v14218_v57 = vld [vmem:[#allocation22 + $0xcc] sm:$0xf0] }
 0xcd5   :  { %v12541_v43 = vor.u32 %v14297_v31, %v12538_v58  ;;  %v12721_v31 = vor.u32 %v14218_v57, %v12720_v30  ;;  %v12704_v58 = vld [vmem:[#allocation22 + $0xa0] sm:$0xf]  ;;  %v14202_v30 = vld [vmem:[#allocation22 + $0x4c] sm:$0xf0]  ;;  %v14200_v57 = vld [vmem:[#allocation22 + $0x44] sm:$0xf] }
 0xcd8   :  { %7471 = vmatpush.bf16.msra.mxu1 %v12601_v59  ;;  %7497 = vmatpush.bf16.msrb.mxu3 %v12605_v50  ;;  %v14293_v59 = vld [vmem:[#allocation22 + $0x32c] sm:$0xf]  ;;  %v12522_v50 = vld [vmem:[#allocation22 + $0x338] sm:$0xf0] }
 0xcd9   :  { %v12525_v60 = vor.u32 %v14293_v59, %v12522_v50  ;;  %v12688_v50 = vld [vmem:[#allocation22 + $0x80] sm:$0xf] }
 0xcdc   :  { %7472 = vmatpush.bf16.msra.mxu1 %v12585_v46  ;;  %7498 = vmatpush.bf16.msrb.mxu3 %v12589_v35  ;;  %v12504_v46 = vld [vmem:[#allocation22 + $0x308] sm:$0xf]  ;;  %v14289_v35 = vld [vmem:[#allocation22 + $0x30c] sm:$0xf] }
 0xcdd   :  { %v12505_v28 = vor.u32 %v14291_v27, %v12504_v46  ;;  %v12690_v46 = vld [vmem:[#allocation22 + $0x90] sm:$0xf0] }
 0xcde   :  { %v12693_v56 = vor.u32 %v14208_v51, %v12690_v46  ;;  %v14192_v51 = vld [vmem:[#allocation22 + $0x4] sm:$0xf]  ;;  %v12626_v46 = vld [vmem:[#allocation22 + $0x10] sm:$0xf0] }
 0xce0   :  { %7473 = vmatpush.bf16.msra.mxu1 %v12569_v48  ;;  %7499 = vmatpush.bf16.msrb.mxu3 %v12573_v37  ;;  %v12506_v48 = vld [vmem:[#allocation22 + $0x318] sm:$0xf0] }
 0xce1   :  { %v12509_v38 = vor.u32 %v14289_v35, %v12506_v48  ;;  %v12689_v35 = vor.u32 %v14210_v17, %v12688_v50  ;;  %v14204_v48 = vld [vmem:[#allocation22 + $0x64] sm:$0xf]  ;;  %v14194_v50 = vld [vmem:[#allocation22 + $0xc] sm:$0xf0] }
 0xce2   :  { %v14254_v17 = vld [vmem:[#allocation22 + $0x1ec] sm:$0xf0] }
 0xce4   :  { %7474 = vmatpush.bf16.msra.mxu1 %v12553_v6  ;;  %7500 = vmatpush.bf16.msrb.mxu3 %v12557_v1  ;;  %v14216_v1 = vld [vmem:[#allocation22 + $0xc4] sm:$0xf] }
 0xce8   :  { %7475 = vmatpush.bf16.msra.mxu1 %v12537_v49  ;;  %7501 = vmatpush.bf16.msrb.mxu3 %v12541_v43  ;;  %v12725_v49 = vor.u32 %v14216_v1, %v12722_v33  ;;  %v14214_v43 = vld [vmem:[#allocation22 + $0xac] sm:$0xf0]  ;;  %v12658_v1 = vld [vmem:[#allocation22 + $0x50] sm:$0xf0] }
 0xce9   :  { %v12705_v59 = vor.u32 %v14214_v43, %v12704_v58  ;;  %v14198_v58 = vld [vmem:[#allocation22 + $0x2c] sm:$0xf0]  ;;  %v14196_v43 = vld [vmem:[#allocation22 + $0x24] sm:$0xf] }
 0xcec   :  { %7476 = vmatpush.bf16.msra.mxu1 %v12521_v26  ;;  %7502 = vmatpush.bf16.msrb.mxu3 %v12525_v60  ;;  %v12709_v26 = vor.u32 %v14212_v13, %v12706_v23  ;;  %v12642_v13 = vld [vmem:[#allocation22 + $0x30] sm:$0xf0] }
 0xcf0   :  { %7477 = vmatpush.bf16.msra.mxu1 %v12505_v28  ;;  %7503 = vmatpush.bf16.msrb.mxu3 %v12509_v38  ;;  %v14206_v28 = vld [vmem:[#allocation22 + $0x6c] sm:$0xf0]  ;;  %v12674_v38 = vld [vmem:[#allocation22 + $0x70] sm:$0xf0] }
 0xd10   :  { %v17108_v20 = vpop.f32.mrf.mxu0 }
 0xd16   :  { %v7001_v37 = vpop.f32.mrf.mxu2 }
 0xd17   :  { %v7018_v6 = vpack.c.bf16 %v7001_v37, %v7001_v37  ;;  %v12673_v37 = vor.u32 %v14206_v28, %v12672_v16  ;;  %v14221_v16 = vld [vmem:[#allocation22 + $0xec] sm:$0xf]  ;;  %v12746_v28 = vld [vmem:[#allocation22 + $0xf8] sm:$0xf0] }
 0xd18   :  { %v6906_v27 = vpop.f32.mrf.mxu0 }
 0xd19   :  { %7413 = vmatmul.bf16.vlgmr.msra.gmra.mxu0 %v7018_v6  ;;  %7439 = vmatmul.bf16.vlgmr.msra.gmra.mxu2 %v7018_v6  ;;  %v14252_v27 = vld [vmem:[#allocation22 + $0x1e4] sm:$0xf] }
 0xd1a   :  { %7829 = vmatpush.bf16.msra.mxu0 %v12737_v45  ;;  %7855 = vmatpush.bf16.msra.mxu2 %v12741_v55  ;;  %v12677_v45 = vor.u32 %v14204_v48, %v12674_v38  ;;  %v12656_v55 = vld [vmem:[#allocation22 + $0x40] sm:$0xf] }
 0xd1b   :  { %v12657_v33 = vor.u32 %v14202_v30, %v12656_v55  ;;  %v12629_v55 = vor.u32 %v14192_v51, %v12626_v46  ;;  %v12832_v51 = vld [vmem:[#allocation22 + $0x1a0] sm:$0xf]  ;;  %v14246_v46 = vld [vmem:[#allocation22 + $0x1ac] sm:$0xf0] }
 0xd1e   :  { %7830 = vmatpush.bf16.msra.mxu0 %v12721_v31  ;;  %7856 = vmatpush.bf16.msra.mxu2 %v12725_v49  ;;  %v7003_v60 = vpop.f32.mrf.mxu2  ;;  %v12661_v31 = vor.u32 %v14200_v57, %v12658_v1  ;;  %v12640_v49 = vld [vmem:[#allocation22 + $0x20] sm:$0xf]  ;;  %v14250_v1 = vld [vmem:[#allocation22 + $0x1cc] sm:$0xf0] }
 0xd1f   :  { %v12641_v23 = vor.u32 %v14198_v58, %v12640_v49  ;;  %v12864_v60 = vld [vmem:[#allocation22 + $0x1e0] sm:$0xf]  ;;  %v12749_v49 = vor.u32 %v14221_v16, %v12746_v28  ;;  %v14248_v58 = vld [vmem:[#allocation22 + $0x1c4] sm:$0xf]  ;;  %v12712_v16 = vld [vmem:[#allocation22 + $0xa8] sm:$0xf] }
 0xd20   :  { %v12848_v57 = vld [vmem:[#allocation22 + $0x1c0] sm:$0xf]  ;;  %v14213_v28 = vld [vmem:[#allocation22 + $0xac] sm:$0xf] }
 0xd22   :  { %7831 = vmatpush.bf16.msra.mxu0 %v12705_v59  ;;  %7857 = vmatpush.bf16.msra.mxu2 %v12709_v26  ;;  %v12645_v59 = vor.u32 %v14196_v43, %v12642_v13  ;;  %v12624_v26 = vld [vmem:[#allocation22] sm:$0xf]  ;;  %v12850_v43 = vld [vmem:[#allocation22 + $0x1d0] sm:$0xf0]  ;;  %v12728_v13 = vld [vmem:[#allocation22 + $0xc8] sm:$0xf] }
 0xd23   :  { %v12625_v38 = vor.u32 %v14194_v50, %v12624_v26  ;;  %v14217_v26 = vld [vmem:[#allocation22 + $0xcc] sm:$0xf]  ;;  %v12730_v50 = vld [vmem:[#allocation22 + $0xd8] sm:$0xf0] }
 0xd26   :  { %7832 = vmatpush.bf16.msra.mxu0 %v12689_v35  ;;  %7858 = vmatpush.bf16.msra.mxu2 %v12693_v56  ;;  %v12744_v35 = vld [vmem:[#allocation22 + $0xe8] sm:$0xf]  ;;  %v14223_v56 = vld [vmem:[#allocation22 + $0xf4] sm:$0xf0] }
 0xd29   :  { %7465 = vmatmul.bf16.vlgmr.msrb.gmra.mxu0 %v7018_v6  ;;  %7491 = vmatmul.bf16.vlgmr.msrb.gmra.mxu2 %v7018_v6  ;;  %v12866_v6 = vld [vmem:[#allocation22 + $0x1f0] sm:$0xf0] }
 0xd2a   :  { %7833 = vmatpush.bf16.msra.mxu0 %v12673_v37  ;;  %7859 = vmatpush.bf16.msra.mxu2 %v12677_v45  ;;  %v12865_v37 = vor.u32 %v14254_v17, %v12864_v60  ;;  %v12869_v30 = vor.u32 %v14252_v27, %v12866_v6  ;;  %v12849_v60 = vor.u32 %v14250_v1, %v12848_v57  ;;  %v14242_v57 = vld [vmem:[#allocation22 + $0x18c] sm:$0xf0] }
 0xd2b   :  { %v12853_v17 = vor.u32 %v14248_v58, %v12850_v43  ;;  %v12733_v6 = vor.u32 %v14217_v26, %v12730_v50  ;;  %v14240_v58 = vld [vmem:[#allocation22 + $0x184] sm:$0xf]  ;;  %v12818_v43 = vld [vmem:[#allocation22 + $0x190] sm:$0xf0]  ;;  %v14209_v26 = vld [vmem:[#allocation22 + $0x8c] sm:$0xf] }
 0xd2c   :  { %v12698_v50 = vld [vmem:[#allocation22 + $0x98] sm:$0xf0] }
 0xd2e   :  { %7834 = vmatpush.bf16.msra.mxu0 %v12657_v33  ;;  %7860 = vmatpush.bf16.msra.mxu2 %v12661_v31  ;;  %v12745_v31 = vor.u32 %v14223_v56, %v12744_v35  ;;  %v14244_v35 = vld [vmem:[#allocation22 + $0x1a4] sm:$0xf]  ;;  %v12834_v56 = vld [vmem:[#allocation22 + $0x1b0] sm:$0xf0] }
 0xd30   :  { %v17112_v33 = vpop.f32.mrf.mxu1 }
 0xd32   :  { %7835 = vmatpush.bf16.msra.mxu0 %v12641_v23  ;;  %7861 = vmatpush.bf16.msra.mxu2 %v12645_v59  ;;  %v17118_v23 = vpack.c.bf16 %v17108_v20, %v17108_v20  ;;  %v14219_v59 = vld [vmem:[#allocation22 + $0xd4] sm:$0xf0] }
 0xd33   :  { %v12729_v27 = vor.u32 %v14219_v59, %v12728_v13  ;;  %v14215_v20 = vld [vmem:[#allocation22 + $0xb4] sm:$0xf0]  ;;  %v12696_v13 = vld [vmem:[#allocation22 + $0x88] sm:$0xf] }
 0xd34   :  { %v14211_v59 = vld [vmem:[#allocation22 + $0x94] sm:$0xf0] }
 0xd36   :  { %v7014_v48 = vpop.f32.mrf.mxu3  ;;  %7836 = vmatpush.bf16.msra.mxu0 %v12625_v38  ;;  %7862 = vmatpush.bf16.msra.mxu2 %v12629_v55  ;;  %v12837_v55 = vor.u32 %v14244_v35, %v12834_v56  ;;  %v12701_v35 = vor.u32 %v14209_v26, %v12698_v50  ;;  %v12680_v56 = vld [vmem:[#allocation22 + $0x68] sm:$0xf] }
 0xd37   :  { %v17110_v45 = vpack.c.bf16 %v7014_v48, %v7014_v48  ;;  %v12714_v48 = vld [vmem:[#allocation22 + $0xb8] sm:$0xf0] }
 0xd38   :  { %v6919_v1 = vpop.f32.mrf.mxu1 }
 0xd39   :  { %7426 = vmatmul.bf16.vlgmr.msrb.gmra.mxu1 %v17110_v45  ;;  %7452 = vmatmul.bf16.vlgmr.msra.gmra.mxu3 %v17110_v45 }
 0xd3a   :  { %7842 = vmatpush.bf16.msrb.mxu1 %v12865_v37  ;;  %7868 = vmatpush.bf16.msra.mxu3 %v12869_v30  ;;  %v12833_v37 = vor.u32 %v14246_v46, %v12832_v51  ;;  %v12816_v30 = vld [vmem:[#allocation22 + $0x180] sm:$0xf]  ;;  %v12697_v46 = vor.u32 %v14211_v59, %v12696_v13  ;;  %v14201_v13 = vld [vmem:[#allocation22 + $0x4c] sm:$0xf]  ;;  %v12666_v59 = vld [vmem:[#allocation22 + $0x58] sm:$0xf0] }
 0xd3b   :  { %7881 = vmatpush.bf16.msrb.mxu0 %v12745_v31  ;;  %7907 = vmatpush.bf16.msrb.mxu2 %v12749_v49  ;;  %v12713_v31 = vor.u32 %v14215_v20, %v12712_v16  ;;  %v12717_v49 = vor.u32 %v14213_v28, %v12714_v48  ;;  %v12800_v51 = vld [vmem:[#allocation22 + $0x160] sm:$0xf]  ;;  %v14207_v16 = vld [vmem:[#allocation22 + $0x74] sm:$0xf0]  ;;  %v14205_v20 = vld [vmem:[#allocation22 + $0x6c] sm:$0xf] }
 0xd3c   :  { %7837 = vmatmul.bf16.vlgmr.msra.gmra.mxu0 %v17118_v23  ;;  %7863 = vmatmul.bf16.vlgmr.msra.gmra.mxu2 %v17118_v23  ;;  %v12682_v28 = vld [vmem:[#allocation22 + $0x78] sm:$0xf0] }
 0xd3e   :  { %7843 = vmatpush.bf16.msrb.mxu1 %v12849_v60  ;;  %v7016_v38 = vpop.f32.mrf.mxu3  ;;  %7869 = vmatpush.bf16.msra.mxu3 %v12853_v17  ;;  %v12817_v60 = vor.u32 %v14242_v57, %v12816_v30  ;;  %v14238_v17 = vld [vmem:[#allocation22 + $0x16c] sm:$0xf0]  ;;  %v12685_v57 = vor.u32 %v14205_v20, %v12682_v28  ;;  %v12752_v20 = vld [vmem:[#allocation22 + $0x100] sm:$0xf] }
 0xd3f   :  { %7882 = vmatpush.bf16.msrb.mxu0 %v12729_v27  ;;  %7908 = vmatpush.bf16.msrb.mxu2 %v12733_v6  ;;  %v12821_v38 = vor.u32 %v14240_v58, %v12818_v43  ;;  %v14236_v27 = vld [vmem:[#allocation22 + $0x164] sm:$0xf]  ;;  %v12802_v6 = vld [vmem:[#allocation22 + $0x170] sm:$0xf0]  ;;  %v12801_v48 = vor.u32 %v14238_v17, %v12800_v51  ;;  %v14234_v30 = vld [vmem:[#allocation22 + $0x14c] sm:$0xf0]  ;;  %v12669_v17 = vor.u32 %v14201_v13, %v12666_v59 }
 0xd40   :  { %v12805_v1 = vor.u32 %v14236_v27, %v12802_v6  ;;  %v12664_v58 = vld [vmem:[#allocation22 + $0x48] sm:$0xf]  ;;  %v14203_v43 = vld [vmem:[#allocation22 + $0x54] sm:$0xf0]  ;;  %v12634_v13 = vld [vmem:[#allocation22 + $0x18] sm:$0xf0] }
 0xd41   :  { %v12665_v51 = vor.u32 %v14203_v43, %v12664_v58  ;;  %v12648_v27 = vld [vmem:[#allocation22 + $0x28] sm:$0xf]  ;;  %v14199_v6 = vld [vmem:[#allocation22 + $0x34] sm:$0xf0]  ;;  %v14193_v43 = vld [vmem:[#allocation22 + $0xc] sm:$0xf] }
 0xd42   :  { %7844 = vmatpush.bf16.msrb.mxu1 %v12833_v37  ;;  %7870 = vmatpush.bf16.msra.mxu3 %v12837_v55  ;;  %v12784_v37 = vld [vmem:[#allocation22 + $0x140] sm:$0xf]  ;;  %v12681_v55 = vor.u32 %v14207_v16, %v12680_v56  ;;  %v14197_v56 = vld [vmem:[#allocation22 + $0x2c] sm:$0xf]  ;;  %v12650_v16 = vld [vmem:[#allocation22 + $0x38] sm:$0xf0] }
 0xd43   :  { %7883 = vmatpush.bf16.msrb.mxu0 %v12713_v31  ;;  %7909 = vmatpush.bf16.msrb.mxu2 %v12717_v49  ;;  %v14232_v31 = vld [vmem:[#allocation22 + $0x144] sm:$0xf]  ;;  %v12786_v49 = vld [vmem:[#allocation22 + $0x150] sm:$0xf0]  ;;  %v12785_v26 = vor.u32 %v14234_v30, %v12784_v37  ;;  %v12649_v30 = vor.u32 %v14199_v6, %v12648_v27  ;;  %v14195_v58 = vld [vmem:[#allocation22 + $0x14] sm:$0xf0]  ;;  %v17126_v6 = vpack.c.bf16 %v17112_v33, %v17112_v33 }
 0xd44   :  { %v12789_v50 = vor.u32 %v14232_v31, %v12786_v49  ;;  %v12754_v37 = vld [vmem:[#allocation22 + $0x110] sm:$0xf0]  ;;  %v12872_v31 = vld [vmem:[#allocation22 + $0x1e8] sm:$0xf]  ;;  %v14255_v49 = vld [vmem:[#allocation22 + $0x1f4] sm:$0xf0] }
 0xd45   :  { %v14251_v27 = vld [vmem:[#allocation22 + $0x1d4] sm:$0xf0]  ;;  %v12842_v33 = vld [vmem:[#allocation22 + $0x1b8] sm:$0xf0] }
 0xd46   :  { %7845 = vmatpush.bf16.msrb.mxu1 %v12817_v60  ;;  %7871 = vmatpush.bf16.msra.mxu3 %v12821_v38  ;;  %v12768_v60 = vld [vmem:[#allocation22 + $0x120] sm:$0xf]  ;;  %v14230_v38 = vld [vmem:[#allocation22 + $0x12c] sm:$0xf0] }
 0xd47   :  { %7884 = vmatpush.bf16.msrb.mxu0 %v12697_v46  ;;  %7910 = vmatpush.bf16.msrb.mxu2 %v12701_v35  ;;  %v14228_v46 = vld [vmem:[#allocation22 + $0x124] sm:$0xf]  ;;  %v12770_v35 = vld [vmem:[#allocation22 + $0x130] sm:$0xf0] }
 0xd48   :  { %v12773_v28 = vor.u32 %v14228_v46, %v12770_v35  ;;  %v12856_v35 = vld [vmem:[#allocation22 + $0x1c8] sm:$0xf] }
 0xd49   :  { %7478 = vmatmul.bf16.vlgmr.msra.gmra.mxu1 %v17110_v45  ;;  %7504 = vmatmul.bf16.vlgmr.msrb.gmra.mxu3 %v17110_v45  ;;  %v12769_v45 = vor.u32 %v14230_v38, %v12768_v60  ;;  %v12874_v60 = vld [vmem:[#allocation22 + $0x1f8] sm:$0xf0]  ;;  %v12873_v38 = vor.u32 %v14255_v49, %v12872_v31 }
 0xd4a   :  { %7846 = vmatpush.bf16.msrb.mxu1 %v12801_v48  ;;  %7872 = vmatpush.bf16.msra.mxu3 %v12805_v1  ;;  %v14226_v48 = vld [vmem:[#allocation22 + $0x10c] sm:$0xf0]  ;;  %v14224_v1 = vld [vmem:[#allocation22 + $0x104] sm:$0xf]  ;;  %v12826_v31 = vld [vmem:[#allocation22 + $0x198] sm:$0xf0] }
 0xd4b   :  { %7885 = vmatpush.bf16.msrb.mxu0 %v12681_v55  ;;  %7911 = vmatpush.bf16.msrb.mxu2 %v12685_v57  ;;  %v12653_v55 = vor.u32 %v14197_v56, %v12650_v16  ;;  %v12632_v57 = vld [vmem:[#allocation22 + $0x8] sm:$0xf]  ;;  %v12753_v59 = vor.u32 %v14226_v48, %v12752_v20  ;;  %v14249_v56 = vld [vmem:[#allocation22 + $0x1cc] sm:$0xf]  ;;  %v12858_v16 = vld [vmem:[#allocation22 + $0x1d8] sm:$0xf0] }
 0xd4c   :  { %v12633_v46 = vor.u32 %v14195_v58, %v12632_v57  ;;  %v12861_v20 = vor.u32 %v14249_v56, %v12858_v16  ;;  %v14247_v48 = vld [vmem:[#allocation22 + $0x1b4] sm:$0xf0]  ;;  %v12776_v56 = vld [vmem:[#allocation22 + $0x128] sm:$0xf] }
 0xd4d   :  { %v14243_v57 = vld [vmem:[#allocation22 + $0x194] sm:$0xf0] }
 0xd4e   :  { %7847 = vmatpush.bf16.msrb.mxu1 %v12785_v26  ;;  %7873 = vmatpush.bf16.msra.mxu3 %v12789_v50  ;;  %v14253_v26 = vld [vmem:[#allocation22 + $0x1ec] sm:$0xf]  ;;  %v12757_v50 = vor.u32 %v14224_v1, %v12754_v37  ;;  %v14231_v16 = vld [vmem:[#allocation22 + $0x134] sm:$0xf0] }
 0xd4f   :  { %7886 = vmatpush.bf16.msrb.mxu0 %v12665_v51  ;;  %7912 = vmatpush.bf16.msrb.mxu2 %v12669_v17  ;;  %v12637_v51 = vor.u32 %v14193_v43, %v12634_v13  ;;  %v12877_v17 = vor.u32 %v14253_v26, %v12874_v60  ;;  %v14245_v1 = vld [vmem:[#allocation22 + $0x1ac] sm:$0xf]  ;;  %v12808_v43 = vld [vmem:[#allocation22 + $0x168] sm:$0xf]  ;;  %v14239_v13 = vld [vmem:[#allocation22 + $0x174] sm:$0xf0] }
 0xd50   :  { %v12810_v26 = vld [vmem:[#allocation22 + $0x178] sm:$0xf0]  ;;  %v12809_v60 = vor.u32 %v14239_v13, %v12808_v43  ;;  %v14348_v43 = vld [vmem:[#allocation22 + $0x4e4] sm:$0xf] }
 0xd52   :  { %7848 = vmatpush.bf16.msrb.mxu1 %v12769_v45  ;;  %7874 = vmatpush.bf16.msra.mxu3 %v12773_v28  ;;  %v12857_v45 = vor.u32 %v14251_v27, %v12856_v35  ;;  %v12840_v28 = vld [vmem:[#allocation22 + $0x1a8] sm:$0xf]  ;;  %v7934_v35 = vld [vmem:[#allocation21 + $0x8] sm:$0xf] }
 0xd53   :  { %7887 = vmatpush.bf16.msrb.mxu0 %v12649_v30  ;;  %7913 = vmatpush.bf16.msrb.mxu2 %v12653_v55  ;;  %v12841_v37 = vor.u32 %v14247_v48, %v12840_v28  ;;  %v12845_v30 = vor.u32 %v14245_v1, %v12842_v33  ;;  %v12824_v55 = vld [vmem:[#allocation22 + $0x188] sm:$0xf]  ;;  %v12777_v28 = vor.u32 %v14231_v16, %v12776_v56  ;;  %v14227_v33 = vld [vmem:[#allocation22 + $0x114] sm:$0xf0]  ;;  %v12964_v16 = vld [vmem:[#allocation22 + $0x4b0] sm:$0xf0] }
 0xd54   :  { %v12825_v49 = vor.u32 %v14243_v57, %v12824_v55  ;;  %v12760_v1 = vld [vmem:[#allocation22 + $0x108] sm:$0xf] }
 0xd55   :  { %v12761_v55 = vor.u32 %v14227_v33, %v12760_v1  ;;  %v14336_v1 = vld [vmem:[#allocation22 + $0x484] sm:$0xf] }
 0xd56   :  { %7849 = vmatpush.bf16.msrb.mxu1 %v12753_v59  ;;  %7875 = vmatpush.bf16.msra.mxu3 %v12757_v50  ;;  %v14237_v59 = vld [vmem:[#allocation22 + $0x16c] sm:$0xf]  ;;  %v12792_v50 = vld [vmem:[#allocation22 + $0x148] sm:$0xf] }
 0xd57   :  { %7888 = vmatpush.bf16.msrb.mxu0 %v12633_v46  ;;  %7914 = vmatpush.bf16.msrb.mxu2 %v12637_v51  ;;  %v14233_v46 = vld [vmem:[#allocation22 + $0x14c] sm:$0xf]  ;;  %v12794_v51 = vld [vmem:[#allocation22 + $0x158] sm:$0xf0] }
 0xd58   :  { %v12797_v27 = vor.u32 %v14233_v46, %v12794_v51  ;;  %v12980_v46 = vld [vmem:[#allocation22 + $0x4d0] sm:$0xf0]  ;;  %v12962_v51 = vld [vmem:[#allocation22 + $0x4a0] sm:$0xf] }
 0xd59   :  { %7850 = vmatmul.bf16.vlgmr.msrb.gmra.mxu1 %v17126_v6  ;;  %7876 = vmatmul.bf16.vlgmr.msra.gmra.mxu3 %v17126_v6 }
 0xd5a   :  { %7894 = vmatpush.bf16.msra.mxu1 %v12873_v38  ;;  %7920 = vmatpush.bf16.msrb.mxu3 %v12877_v17  ;;  %v14235_v38 = vld [vmem:[#allocation22 + $0x154] sm:$0xf0] }
 0xd5b   :  { %7945 = vmatpush.bf16.msra.mxu0 %v17085_v21  ;;  %7915 = vmatmul.bf16.vlgmr.msrb.gmra.mxu2 %v17118_v23  ;;  %v14241_v21 = vld [vmem:[#allocation22 + $0x18c] sm:$0xf]  ;;  %v12793_v17 = vor.u32 %v14235_v38, %v12792_v50  ;;  %v14346_v50 = vld [vmem:[#allocation22 + $0x4cc] sm:$0xf0] }
 0xd5c   :  { %7889 = vmatmul.bf16.vlgmr.msrb.gmra.mxu0 %v17118_v23  ;;  %v12829_v58 = vor.u32 %v14241_v21, %v12826_v31  ;;  %v12813_v23 = vor.u32 %v14237_v59, %v12810_v26  ;;  %v12996_v26 = vld [vmem:[#allocation22 + $0x4f0] sm:$0xf0] }
 0xd5e   :  { %7895 = vmatpush.bf16.msra.mxu1 %v12857_v45  ;;  %7921 = vmatpush.bf16.msrb.mxu3 %v12861_v20  ;;  %v14229_v45 = vld [vmem:[#allocation22 + $0x12c] sm:$0xf]  ;;  %v12778_v20 = vld [vmem:[#allocation22 + $0x138] sm:$0xf0] }
 0xd5f   :  { %v12781_v48 = vor.u32 %v14229_v45, %v12778_v20 }
 0xd62   :  { %7896 = vmatpush.bf16.msra.mxu1 %v12841_v37  ;;  %7922 = vmatpush.bf16.msrb.mxu3 %v12845_v30  ;;  %v14225_v37 = vld [vmem:[#allocation22 + $0x10c] sm:$0xf]  ;;  %v12762_v30 = vld [vmem:[#allocation22 + $0x118] sm:$0xf0] }
 0xd63   :  { %v12765_v57 = vor.u32 %v14225_v37, %v12762_v30  ;;  %v12948_v37 = vld [vmem:[#allocation22 + $0x490] sm:$0xf0]  ;;  %v12930_v30 = vld [vmem:[#allocation22 + $0x460] sm:$0xf] }
 0xd66   :  { %7897 = vmatpush.bf16.msra.mxu1 %v12825_v49  ;;  %7923 = vmatpush.bf16.msrb.mxu3 %v12829_v58  ;;  %v12994_v49 = vld [vmem:[#allocation22 + $0x4e0] sm:$0xf]  ;;  %v14350_v58 = vld [vmem:[#allocation22 + $0x4ec] sm:$0xf0] }
 0xd67   :  { %v12995_v59 = vor.u32 %v14350_v58, %v12994_v49  ;;  %v14332_v49 = vld [vmem:[#allocation22 + $0x464] sm:$0xf]  ;;  %v12932_v58 = vld [vmem:[#allocation22 + $0x470] sm:$0xf0] }
 0xd69   :  { %8351 = vmatpush.bf16.msra.mxu2 %v12995_v59  ;;  %v12935_v59 = vor.u32 %v14332_v49, %v12932_v58 }
 0xd6a   :  { %7898 = vmatpush.bf16.msra.mxu1 %v12809_v60  ;;  %7924 = vmatpush.bf16.msrb.mxu3 %v12813_v23  ;;  %v12999_v60 = vor.u32 %v14348_v43, %v12996_v26  ;;  %v12978_v23 = vld [vmem:[#allocation22 + $0x4c0] sm:$0xf] }
 0xd6b   :  { %v12979_v38 = vor.u32 %v14346_v50, %v12978_v23  ;;  %v14330_v23 = vld [vmem:[#allocation22 + $0x44c] sm:$0xf0]  ;;  %v14328_v50 = vld [vmem:[#allocation22 + $0x444] sm:$0xf] }
 0xd6c   :  { %12878 = vmatmul.msk.bf16.vlgmr.msra.gmra.mxu0 %vm6884_vm4, %v7934_v35 }
 0xd6d   :  { %8377 = vmatpush.bf16.msrb.mxu0 %v12999_v60  ;;  %8352 = vmatpush.bf16.msra.mxu2 %v12979_v38  ;;  %v12914_v60 = vld [vmem:[#allocation22 + $0x440] sm:$0xf]  ;;  %v12916_v38 = vld [vmem:[#allocation22 + $0x450] sm:$0xf0] }
 0xd6e   :  { %7899 = vmatpush.bf16.msra.mxu1 %v12793_v17  ;;  %7925 = vmatpush.bf16.msrb.mxu3 %v12797_v27  ;;  %v14342_v17 = vld [vmem:[#allocation22 + $0x4ac] sm:$0xf0] }
 0xd6f   :  { %v12963_v56 = vor.u32 %v14342_v17, %v12962_v51 }
 0xd71   :  { %8353 = vmatpush.bf16.msra.mxu2 %v12963_v56  ;;  %v13122_v56 = vld [vmem:[#allocation22 + $0x5e0] sm:$0xf] }
 0xd72   :  { %7900 = vmatpush.bf16.msra.mxu1 %v12777_v28  ;;  %7926 = vmatpush.bf16.msrb.mxu3 %v12781_v48  ;;  %v12946_v28 = vld [vmem:[#allocation22 + $0x480] sm:$0xf]  ;;  %v14338_v48 = vld [vmem:[#allocation22 + $0x48c] sm:$0xf0] }
 0xd73   :  { %v12947_v33 = vor.u32 %v14338_v48, %v12946_v28  ;;  %v14382_v28 = vld [vmem:[#allocation22 + $0x5ec] sm:$0xf0]  ;;  %v14324_v48 = vld [vmem:[#allocation22 + $0x424] sm:$0xf] }
 0xd75   :  { %8354 = vmatpush.bf16.msra.mxu2 %v12947_v33 }
 0xd76   :  { %7901 = vmatpush.bf16.msra.mxu1 %v12761_v55  ;;  %7927 = vmatpush.bf16.msrb.mxu3 %v12765_v57  ;;  %v14334_v55 = vld [vmem:[#allocation22 + $0x46c] sm:$0xf0]  ;;  %v12951_v57 = vor.u32 %v14336_v1, %v12948_v37  ;;  %v12900_v1 = vld [vmem:[#allocation22 + $0x430] sm:$0xf0]  ;;  %v13123_v37 = vor.u32 %v14382_v28, %v13122_v56  ;;  %v14351_v56 = vld [vmem:[#allocation22 + $0x4f4] sm:$0xf0] }
 0xd79   :  { %7902 = vmatmul.bf16.vlgmr.msra.gmra.mxu1 %v17126_v6  ;;  %7928 = vmatmul.bf16.vlgmr.msrb.gmra.mxu3 %v17126_v6 }
 0xd7a   :  { %7958 = vmatpush.bf16.msrb.mxu1 %v17100_v11  ;;  %v14344_v11 = vld [vmem:[#allocation22 + $0x4c4] sm:$0xf]  ;;  %8364 = vmatpush.bf16.msra.mxu3 %v13123_v37  ;;  %v14374_v37 = vld [vmem:[#allocation22 + $0x5ac] sm:$0xf0] }
 0xd7b   :  { %v12983_v6 = vor.u32 %v14344_v11, %v12980_v46  ;;  %v12915_v11 = vor.u32 %v14330_v23, %v12914_v60 }
 0xd7d   :  { %8378 = vmatpush.bf16.msrb.mxu0 %v12983_v6  ;;  %v12919_v6 = vor.u32 %v14328_v50, %v12916_v38  ;;  %v14378_v50 = vld [vmem:[#allocation22 + $0x5cc] sm:$0xf0]  ;;  %v12884_v38 = vld [vmem:[#allocation22 + $0x410] sm:$0xf0] }
 0xd89   :  { %12879 = vmatmul.msk.bf16.vlgmr.msrb.gmra.mxu1 %vm6884_vm4, %v7934_v35  ;;  %v14340_v35 = vld [vmem:[#allocation22 + $0x4a4] sm:$0xf] }
 0xd8a   :  { %v12967_v45 = vor.u32 %v14340_v35, %v12964_v16  ;;  %v12898_v35 = vld [vmem:[#allocation22 + $0x420] sm:$0xf] }
 0xd8c   :  { %8379 = vmatpush.bf16.msrb.mxu0 %v12967_v45 }
 0xd90   :  { %8380 = vmatpush.bf16.msrb.mxu0 %v12951_v57  ;;  %v13124_v57 = vld [vmem:[#allocation22 + $0x5f0] sm:$0xf0] }
 0xd94   :  { %8381 = vmatpush.bf16.msrb.mxu0 %v12935_v59  ;;  %v14322_v59 = vld [vmem:[#allocation22 + $0x40c] sm:$0xf0] }
 0xd96   :  { %v7414_v21 = vpop.f32.mrf.mxu0 }
 0xd98   :  { %8382 = vmatpush.bf16.msrb.mxu0 %v12919_v6 }
 0xd9c   :  { %v17138_v31 = vpop.f32.mrf.mxu2 }
 0xd9e   :  { %v7416_v13 = vpop.f32.mrf.mxu0 }
 0xd9f   :  { %v12931_v13 = vor.u32 %v14334_v55, %v12930_v30  ;;  %v12903_v30 = vor.u32 %v14324_v48, %v12900_v1  ;;  %v14380_v55 = vld [vmem:[#allocation22 + $0x5e4] sm:$0xf]  ;;  %v13090_v1 = vld [vmem:[#allocation22 + $0x5a0] sm:$0xf] }
 0xda1   :  { %8355 = vmatpush.bf16.msra.mxu2 %v12931_v13  ;;  %8383 = vmatpush.bf16.msrb.mxu0 %v12903_v30  ;;  %v12882_v13 = vld [vmem:[#allocation22 + $0x400] sm:$0xf]  ;;  %v14372_v30 = vld [vmem:[#allocation22 + $0x5a4] sm:$0xf] }
 0xda2   :  { %v12883_v23 = vor.u32 %v14322_v59, %v12882_v13  ;;  %v12986_v13 = vld [vmem:[#allocation22 + $0x4c8] sm:$0xf]  ;;  %v14347_v59 = vld [vmem:[#allocation22 + $0x4d4] sm:$0xf0] }
 0xda4   :  { %v7442_v27 = vpop.f32.mrf.mxu2 }
 0xda5   :  { %8356 = vmatpush.bf16.msra.mxu2 %v12915_v11  ;;  %v14326_v27 = vld [vmem:[#allocation22 + $0x42c] sm:$0xf0]  ;;  %v14320_v11 = vld [vmem:[#allocation22 + $0x404] sm:$0xf] }
 0xda6   :  { %v17140_v20 = vpop.f32.mrf.mxu0  ;;  %v12899_v45 = vor.u32 %v14326_v27, %v12898_v35  ;;  %v12887_v6 = vor.u32 %v14320_v11, %v12884_v38  ;;  %v13002_v35 = vld [vmem:[#allocation22 + $0x4e8] sm:$0xf]  ;;  %v13074_v11 = vld [vmem:[#allocation22 + $0x580] sm:$0xf] }
 0xda7   :  { %v13003_v28 = vor.u32 %v14351_v56, %v13002_v35  ;;  %v12970_v35 = vld [vmem:[#allocation22 + $0x4a8] sm:$0xf]  ;;  %v14341_v56 = vld [vmem:[#allocation22 + $0x4ac] sm:$0xf] }
 0xda8   :  { %8384 = vmatpush.bf16.msrb.mxu0 %v12887_v6  ;;  %v14370_v6 = vld [vmem:[#allocation22 + $0x58c] sm:$0xf0] }
 0xda9   :  { %8357 = vmatpush.bf16.msra.mxu2 %v12899_v45 }
 0xdac   :  { %v17142_v43 = vpop.f32.mrf.mxu2 }
 0xdad   :  { %8358 = vmatpush.bf16.msra.mxu2 %v12883_v23  ;;  %v14345_v23 = vld [vmem:[#allocation22 + $0x4cc] sm:$0xf] }
 0xdae   :  { %v7468_v26 = vpop.f32.mrf.mxu0 }
 0xdaf   :  { %v13106_v26 = vld [vmem:[#allocation22 + $0x5c0] sm:$0xf] }
 0xdb1   :  { %8403 = vmatpush.bf16.msrb.mxu2 %v13003_v28  ;;  %v13058_v28 = vld [vmem:[#allocation22 + $0x560] sm:$0xf] }
 0xdb4   :  { %v7494_v17 = vpop.f32.mrf.mxu2 }
 0xdb5   :  { %v13108_v17 = vld [vmem:[#allocation22 + $0x5d0] sm:$0xf0] }
 0xdb6   :  { %v7427_v46 = vpop.f32.mrf.mxu1 }
 0xdb7   :  { %v7428_v51 = vadd.f32 %v7427_v46, %v7414_v21  ;;  %v13127_v21 = vor.u32 %v14380_v55, %v13124_v57  ;;  %v13107_v46 = vor.u32 %v14378_v50, %v13106_v26  ;;  %v12988_v50 = vld [vmem:[#allocation22 + $0x4d8] sm:$0xf0] }
 0xdb9   :  { %v7838_v16 = vpop.f32.mrf.mxu0  ;;  %8390 = vmatpush.bf16.msra.mxu1 %v13127_v21  ;;  %8365 = vmatpush.bf16.msra.mxu3 %v13107_v46  ;;  %v13092_v21 = vld [vmem:[#allocation22 + $0x5b0] sm:$0xf0]  ;;  %v12991_v46 = vor.u32 %v14345_v23, %v12988_v50  ;;  %v14339_v23 = vld [vmem:[#allocation22 + $0x494] sm:$0xf0]  ;;  %v14337_v50 = vld [vmem:[#allocation22 + $0x48c] sm:$0xf] }
 0xdba   :  { %v17144_v33 = vadd.f32 %v7838_v16, %v7428_v51  ;;  %v14376_v51 = vld [vmem:[#allocation22 + $0x5c4] sm:$0xf]  ;;  %v13004_v16 = vld [vmem:[#allocation22 + $0x4f8] sm:$0xf0]  ;;  %v13095_v26 = vor.u32 %v14372_v30, %v13092_v21  ;;  %v13060_v21 = vld [vmem:[#allocation22 + $0x570] sm:$0xf0] }
 0xdbb   :  { %v13111_v27 = vor.u32 %v14376_v51, %v13108_v17  ;;  %v14368_v51 = vld [vmem:[#allocation22 + $0x584] sm:$0xf]  ;;  %v13076_v17 = vld [vmem:[#allocation22 + $0x590] sm:$0xf0] }
 0xdbc   :  { %v7453_v49 = vpop.f32.mrf.mxu3 }
 0xdbd   :  { %v7454_v58 = vadd.f32 %v7453_v49, %v17138_v31  ;;  %v14349_v31 = vld [vmem:[#allocation22 + $0x4ec] sm:$0xf]  ;;  %8391 = vmatpush.bf16.msra.mxu1 %v13111_v27  ;;  %v13091_v49 = vor.u32 %v14374_v37, %v13090_v1  ;;  %v14343_v27 = vld [vmem:[#allocation22 + $0x4b4] sm:$0xf0] }
 0xdbe   :  { %v7429_v60 = vpop.f32.mrf.mxu1  ;;  %v13007_v48 = vor.u32 %v14349_v31, %v13004_v16  ;;  %v13079_v16 = vor.u32 %v14368_v51, %v13076_v17  ;;  %v12971_v37 = vor.u32 %v14343_v27, %v12970_v35  ;;  %v13044_v17 = vld [vmem:[#allocation22 + $0x550] sm:$0xf0]  ;;  %v12938_v35 = vld [vmem:[#allocation22 + $0x468] sm:$0xf]  ;;  %v14335_v27 = vld [vmem:[#allocation22 + $0x474] sm:$0xf0] }
 0xdbf   :  { %v7864_v45 = vpop.f32.mrf.mxu2  ;;  %v12987_v60 = vor.u32 %v14347_v59, %v12986_v13  ;;  %8366 = vmatpush.bf16.msra.mxu3 %v13091_v49  ;;  %v12954_v59 = vld [vmem:[#allocation22 + $0x488] sm:$0xf] }
 0xdc0   :  { %v17147_v55 = vadd.f32 %v7864_v45, %v7454_v58  ;;  %8429 = vmatpush.bf16.msra.mxu0 %v13007_v48  ;;  %v13075_v58 = vor.u32 %v14370_v6, %v13074_v11  ;;  %v12972_v45 = vld [vmem:[#allocation22 + $0x4b8] sm:$0xf0]  ;;  %v14366_v48 = vld [vmem:[#allocation22 + $0x56c] sm:$0xf0]  ;;  %v13042_v6 = vld [vmem:[#allocation22 + $0x540] sm:$0xf] }
 0xdc1   :  { %v7840_v57 = vpop.f32.mrf.mxu0  ;;  %8392 = vmatpush.bf16.msra.mxu1 %v13095_v26  ;;  %8404 = vmatpush.bf16.msrb.mxu2 %v12987_v60  ;;  %v12975_v30 = vor.u32 %v14341_v56, %v12972_v45  ;;  %v13059_v13 = vor.u32 %v14366_v48, %v13058_v28  ;;  %v12956_v11 = vld [vmem:[#allocation22 + $0x498] sm:$0xf0]  ;;  %v14362_v60 = vld [vmem:[#allocation22 + $0x54c] sm:$0xf0]  ;;  %v13026_v48 = vld [vmem:[#allocation22 + $0x520] sm:$0xf] }
 0xdc2   :  { %v14364_v57 = vld [vmem:[#allocation22 + $0x564] sm:$0xf]  ;;  %v13043_v56 = vor.u32 %v14362_v60, %v13042_v6 }
 0xdc3   :  { %8367 = vmatpush.bf16.msra.mxu3 %v13075_v58  ;;  %v13063_v26 = vor.u32 %v14364_v57, %v13060_v21  ;;  %v14356_v21 = vld [vmem:[#allocation22 + $0x524] sm:$0xf] }
 0xdc4   :  { %v7455_v38 = vpop.f32.mrf.mxu3  ;;  %8430 = vmatpush.bf16.msra.mxu0 %v12991_v46  ;;  %v14360_v46 = vld [vmem:[#allocation22 + $0x544] sm:$0xf] }
 0xdc5   :  { %8393 = vmatpush.bf16.msra.mxu1 %v13079_v16  ;;  %8405 = vmatpush.bf16.msrb.mxu2 %v12971_v37  ;;  %v12955_v38 = vor.u32 %v14339_v23, %v12954_v59  ;;  %v12940_v16 = vld [vmem:[#allocation22 + $0x478] sm:$0xf0]  ;;  %v13047_v28 = vor.u32 %v14360_v46, %v13044_v17  ;;  %v14358_v37 = vld [vmem:[#allocation22 + $0x52c] sm:$0xf0]  ;;  %v12922_v23 = vld [vmem:[#allocation22 + $0x448] sm:$0xf] }
 0xdc6   :  { %v7479_v31 = vpop.f32.mrf.mxu1  ;;  %v13027_v59 = vor.u32 %v14358_v37, %v13026_v48  ;;  %v14352_v46 = vld [vmem:[#allocation22 + $0x504] sm:$0xf]  ;;  %v13012_v17 = vld [vmem:[#allocation22 + $0x510] sm:$0xf0]  ;;  %v14325_v48 = vld [vmem:[#allocation22 + $0x42c] sm:$0xf] }
 0xdc7   :  { %v17150_v1 = vadd.f32 %v7479_v31, %v17140_v20  ;;  %v7866_v49 = vpop.f32.mrf.mxu2  ;;  %v12959_v20 = vor.u32 %v14337_v50, %v12956_v11  ;;  %8368 = vmatpush.bf16.msra.mxu3 %v13059_v13  ;;  %v14333_v31 = vld [vmem:[#allocation22 + $0x46c] sm:$0xf]  ;;  %v14331_v13 = vld [vmem:[#allocation22 + $0x454] sm:$0xf0] }
 0xdc8   :  { %8431 = vmatpush.bf16.msra.mxu0 %v12975_v30  ;;  %v12939_v30 = vor.u32 %v14335_v27, %v12938_v35  ;;  %v12943_v57 = vor.u32 %v14333_v31, %v12940_v16  ;;  %v13028_v49 = vld [vmem:[#allocation22 + $0x530] sm:$0xf0]  ;;  %v14329_v50 = vld [vmem:[#allocation22 + $0x44c] sm:$0xf]  ;;  %v12923_v11 = vor.u32 %v14331_v13, %v12922_v23  ;;  %v12906_v35 = vld [vmem:[#allocation22 + $0x428] sm:$0xf]  ;;  %v13015_v31 = vor.u32 %v14352_v46, %v13012_v17 }
 0xdc9   :  { %8394 = vmatpush.bf16.msra.mxu1 %v13063_v26  ;;  %8406 = vmatpush.bf16.msrb.mxu2 %v12955_v38  ;;  %v12924_v26 = vld [vmem:[#allocation22 + $0x458] sm:$0xf0]  ;;  %v13010_v38 = vld [vmem:[#allocation22 + $0x500] sm:$0xf]  ;;  %v14327_v27 = vld [vmem:[#allocation22 + $0x434] sm:$0xf0] }
 0xdca   :  { %v12927_v60 = vor.u32 %v14329_v50, %v12924_v26  ;;  %v12907_v16 = vor.u32 %v14327_v27, %v12906_v35  ;;  %v12890_v50 = vld [vmem:[#allocation22 + $0x408] sm:$0xf]  ;;  %v14377_v17 = vld [vmem:[#allocation22 + $0x5cc] sm:$0xf] }
 0xdcb   :  { %8369 = vmatpush.bf16.msra.mxu3 %v13043_v56  ;;  %v13114_v26 = vld [vmem:[#allocation22 + $0x5c8] sm:$0xf] }
 0xdcc   :  { %v7505_v51 = vpop.f32.mrf.mxu3  ;;  %8432 = vmatpush.bf16.msra.mxu0 %v12959_v20  ;;  %v14354_v20 = vld [vmem:[#allocation22 + $0x50c] sm:$0xf0]  ;;  %v13098_v35 = vld [vmem:[#allocation22 + $0x5a8] sm:$0xf] }
 0xdcd   :  { %v17153_v58 = vadd.f32 %v7505_v51, %v17142_v43  ;;  %8395 = vmatpush.bf16.msra.mxu1 %v13047_v28  ;;  %v13031_v43 = vor.u32 %v14356_v21, %v13028_v49  ;;  %8407 = vmatpush.bf16.msrb.mxu2 %v12939_v30  ;;  %v13011_v51 = vor.u32 %v14354_v20, %v13010_v38  ;;  %v14383_v28 = vld [vmem:[#allocation22 + $0x5f4] sm:$0xf0]  ;;  %v12908_v21 = vld [vmem:[#allocation22 + $0x438] sm:$0xf0]  ;;  %v14381_v49 = vld [vmem:[#allocation22 + $0x5ec] sm:$0xf] }
 0xdce   :  { %v7481_v45 = vpop.f32.mrf.mxu1  ;;  %v12911_v23 = vor.u32 %v14325_v48, %v12908_v21  ;;  %v12892_v38 = vld [vmem:[#allocation22 + $0x418] sm:$0xf0] }
 0xdcf   :  { %8370 = vmatpush.bf16.msra.mxu3 %v13027_v59  ;;  %v13130_v45 = vld [vmem:[#allocation22 + $0x5e8] sm:$0xf]  ;;  %v13132_v59 = vld [vmem:[#allocation22 + $0x5f8] sm:$0xf0] }
 0xdd0   :  { %8433 = vmatpush.bf16.msra.mxu0 %v12943_v57  ;;  %v13131_v57 = vor.u32 %v14383_v28, %v13130_v45  ;;  %v13135_v13 = vor.u32 %v14381_v49, %v13132_v59  ;;  %v13100_v45 = vld [vmem:[#allocation22 + $0x5b8] sm:$0xf0]  ;;  %v13082_v59 = vld [vmem:[#allocation22 + $0x588] sm:$0xf] }
 0xdd1   :  { %8396 = vmatpush.bf16.msra.mxu1 %v13031_v43  ;;  %8408 = vmatpush.bf16.msrb.mxu2 %v12923_v11  ;;  %v14323_v11 = vld [vmem:[#allocation22 + $0x414] sm:$0xf0] }
 0xdd3   :  { %8371 = vmatpush.bf16.msra.mxu3 %v13011_v51 }
 0xdd4   :  { %v7507_v6 = vpop.f32.mrf.mxu3  ;;  %8434 = vmatpush.bf16.msra.mxu0 %v12927_v60  ;;  %v14321_v60 = vld [vmem:[#allocation22 + $0x40c] sm:$0xf] }
 0xdd5   :  { %8397 = vmatpush.bf16.msra.mxu1 %v13015_v31  ;;  %8409 = vmatpush.bf16.msrb.mxu2 %v12907_v16  ;;  %v14379_v6 = vld [vmem:[#allocation22 + $0x5d4] sm:$0xf0]  ;;  %v12895_v46 = vor.u32 %v14321_v60, %v12892_v38  ;;  %v14373_v31 = vld [vmem:[#allocation22 + $0x5ac] sm:$0xf]  ;;  %v13066_v60 = vld [vmem:[#allocation22 + $0x568] sm:$0xf] }
 0xdd6   :  { %v7851_v56 = vpop.f32.mrf.mxu1  ;;  %v13115_v20 = vor.u32 %v14379_v6, %v13114_v26  ;;  %v13103_v49 = vor.u32 %v14373_v31, %v13100_v45  ;;  %v14367_v38 = vld [vmem:[#allocation22 + $0x574] sm:$0xf0]  ;;  %v13052_v31 = vld [vmem:[#allocation22 + $0x558] sm:$0xf0] }
 0xdd7   :  { %v17156_v37 = vadd.f32 %v7851_v56, %v17144_v33  ;;  %8416 = vmatpush.bf16.msrb.mxu3 %v13131_v57  ;;  %v12891_v33 = vor.u32 %v14323_v11, %v12890_v50  ;;  %v14375_v56 = vld [vmem:[#allocation22 + $0x5b4] sm:$0xf0]  ;;  %v13084_v11 = vld [vmem:[#allocation22 + $0x598] sm:$0xf0] }
 0xdd8   :  { %8435 = vmatpush.bf16.msra.mxu0 %v12911_v23  ;;  %v13099_v48 = vor.u32 %v14375_v56, %v13098_v35  ;;  %v14371_v23 = vld [vmem:[#allocation22 + $0x594] sm:$0xf0]  ;;  %v13050_v35 = vld [vmem:[#allocation22 + $0x548] sm:$0xf] }
 0xdd9   :  { %v7890_v30 = vpop.f32.mrf.mxu0  ;;  %8442 = vmatpush.bf16.msrb.mxu1 %v13135_v13  ;;  %8410 = vmatpush.bf16.msrb.mxu2 %v12891_v33  ;;  %v14369_v13 = vld [vmem:[#allocation22 + $0x58c] sm:$0xf]  ;;  %v13083_v50 = vor.u32 %v14371_v23, %v13082_v59  ;;  %v13068_v33 = vld [vmem:[#allocation22 + $0x578] sm:$0xf0]  ;;  %v13018_v59 = vld [vmem:[#allocation22 + $0x508] sm:$0xf] }
 0xdda   :  { %v17159_v43 = vadd.f32 %v7890_v30, %v17150_v1  ;;  %v13116_v1 = vld [vmem:[#allocation22 + $0x5d8] sm:$0xf0]  ;;  %v14355_v23 = vld [vmem:[#allocation22 + $0x514] sm:$0xf0] }
 0xddb   :  { %v13119_v27 = vor.u32 %v14377_v17, %v13116_v1  ;;  %8417 = vmatpush.bf16.msrb.mxu3 %v13115_v20  ;;  %v13067_v20 = vor.u32 %v14367_v38, %v13066_v60 }
 0xddc   :  { %v7877_v51 = vpop.f32.mrf.mxu3  ;;  %8436 = vmatpush.bf16.msra.mxu0 %v12895_v46 }
 0xddd   :  { %v17162_v28 = vadd.f32 %v7877_v51, %v17147_v55  ;;  %8443 = vmatpush.bf16.msrb.mxu1 %v13119_v27  ;;  %v13087_v55 = vor.u32 %v14369_v13, %v13084_v11  ;;  %v14363_v51 = vld [vmem:[#allocation22 + $0x554] sm:$0xf0]  ;;  %v14361_v27 = vld [vmem:[#allocation22 + $0x54c] sm:$0xf] }
 0xdde   :  { %v7916_v16 = vpop.f32.mrf.mxu2  ;;  %v7853_v57 = vpop.f32.mrf.mxu1  ;;  %v13051_v56 = vor.u32 %v14363_v51, %v13050_v35  ;;  %v13055_v45 = vor.u32 %v14361_v27, %v13052_v31  ;;  %v14353_v11 = vld [vmem:[#allocation22 + $0x50c] sm:$0xf] }
 0xddf   :  { %v7917_v30 = vadd.f32 %v7916_v16, %v17153_v58  ;;  %8418 = vmatpush.bf16.msrb.mxu3 %v13099_v48  ;;  %v14365_v58 = vld [vmem:[#allocation22 + $0x56c] sm:$0xf]  ;;  %v13034_v16 = vld [vmem:[#allocation22 + $0x528] sm:$0xf]  ;;  %v14359_v48 = vld [vmem:[#allocation22 + $0x534] sm:$0xf0] }
 0xde0   :  { %v13071_v17 = vor.u32 %v14365_v58, %v13068_v33  ;;  %v14357_v57 = vld [vmem:[#allocation22 + $0x52c] sm:$0xf] }
 0xde1   :  { %v7892_v21 = vpop.f32.mrf.mxu0  ;;  %8444 = vmatpush.bf16.msrb.mxu1 %v13103_v49  ;;  %v13035_v49 = vor.u32 %v14359_v48, %v13034_v16 }
 0xde2   :  { %v13036_v21 = vld [vmem:[#allocation22 + $0x538] sm:$0xf0] }
 0xde3   :  { %8419 = vmatpush.bf16.msrb.mxu3 %v13083_v50  ;;  %v13039_v50 = vor.u32 %v14357_v57, %v13036_v21  ;;  %v8459_v57 = vld [vmem:[%s18009_s15] sm:$0xf] }
 0xde4   :  { %v7879_v26 = vpop.f32.mrf.mxu3  ;;  %v8462_v21 = vperm.slane %v8459_v57, 1 }
 0xde5   :  { %8445 = vmatpush.bf16.msrb.mxu1 %v13087_v55  ;;  %v13020_v55 = vld [vmem:[#allocation22 + $0x518] sm:$0xf0]  ;;  %v13019_v26 = vor.u32 %v14355_v23, %v13018_v59 }
 0xde6   :  { %v7918_v6 = vpop.f32.mrf.mxu2  ;;  %v13023_v60 = vor.u32 %v14353_v11, %v13020_v55  ;;  %v8461_v55 = vperm.slane %v8459_v57, 0 }
 0xde7   :  { %8420 = vmatpush.bf16.msrb.mxu3 %v13067_v20 }
 0xde9   :  { %v7947_v46 = vpop.f32.mrf.mxu0  ;;  %8446 = vmatpush.bf16.msrb.mxu1 %v13071_v17 }
 0xdea   :  { %v7964_v1 = vpack.c.bf16 %v7947_v46, %v7947_v46 }
 0xdeb   :  { %8421 = vmatpush.bf16.msrb.mxu3 %v13051_v56 }
 0xdec   :  { %8359 = vmatmul.bf16.vlgmr.msra.gmra.mxu2 %v7964_v1  ;;  %8385 = vmatmul.bf16.vlgmr.msrb.gmra.mxu0 %v7964_v1 }
 0xded   :  { %8447 = vmatpush.bf16.msrb.mxu1 %v13055_v45 }
 0xdef   :  { %8422 = vmatpush.bf16.msrb.mxu3 %v13035_v49 }
 0xdf1   :  { %v7949_v13 = vpop.f32.mrf.mxu0  ;;  %8448 = vmatpush.bf16.msrb.mxu1 %v13039_v50 }
 0xdf3   :  { %8423 = vmatpush.bf16.msrb.mxu3 %v13019_v26 }
 0xdf5   :  { %8449 = vmatpush.bf16.msrb.mxu1 %v13023_v60 }
 0xdf6   :  { %v7903_v6 = vpop.f32.mrf.mxu1 }
 0xdf7   :  { %v17166_v38 = vadd.f32 %v7903_v6, %v17159_v43 }
 0xdfc   :  { %v7929_v58 = vpop.f32.mrf.mxu3  ;;  %8411 = vmatmul.bf16.vlgmr.msrb.gmra.mxu2 %v7964_v1  ;;  %8437 = vmatmul.bf16.vlgmr.msra.gmra.mxu0 %v7964_v1 }
 0xdfd   :  { %v7930_v20 = vadd.f32 %v7929_v58, %v7917_v30 }
 0xdfe   :  { %v7905_v33 = vpop.f32.mrf.mxu1 }
 0xe04   :  { %v7931_v46 = vpop.f32.mrf.mxu3 }
 0xe05   :  { %v8481_v46 = vld [vmem:[#allocation24] sm:$0x3] }
 0xe06   :  { %v7960_v17 = vpop.f32.mrf.mxu1 }
 0xe07   :  { %v7965_v35 = vpack.c.bf16 %v7960_v17, %v7960_v17 }
 0xe09   :  { %8372 = vmatmul.bf16.vlgmr.msra.gmra.mxu3 %v7965_v35  ;;  %8398 = vmatmul.bf16.vlgmr.msra.gmra.mxu1 %v7965_v35 }
 0xe0e   :  { %v7962_v51 = vpop.f32.mrf.mxu1 }
 0xe19   :  { %8424 = vmatmul.bf16.vlgmr.msrb.gmra.mxu3 %v7965_v35  ;;  %8450 = vmatmul.bf16.vlgmr.msrb.gmra.mxu1 %v7965_v35 }
 0xe69   :  { %v8386_v27 = vpop.f32.mrf.mxu0 }
 0xe6f   :  { %v8360_v56 = vpop.f32.mrf.mxu2 }
 0xe71   :  { %v8388_v43 = vpop.f32.mrf.mxu0 }
 0xe77   :  { %v8362_v31 = vpop.f32.mrf.mxu2 }
 0xe79   :  { %v8438_v45 = vpop.f32.mrf.mxu0 }
 0xe7f   :  { %v8412_v16 = vpop.f32.mrf.mxu2 }
 0xe81   :  { %v8440_v48 = vpop.f32.mrf.mxu0 }
 0xe86   :  { %v8399_v1 = vpop.f32.mrf.mxu1 }
 0xe87   :  { %v8400_v30 = vadd.f32 %v8399_v1, %v8386_v27  ;;  %v8414_v49 = vpop.f32.mrf.mxu2 }
 0xe89   :  { %v8456_v59 = vadd.f32 %v8400_v30, %v17162_v28 }
 0xe8b   :  { %v8470_v23 = vadd.f32 %v8462_v21, %v8456_v59  ;;  %v8463_v21 = vperm.slane %v8459_v57, 2  ;;  %v8550_v59 = vld [vmem:[#allocation24 + $0x2] sm:$0x3] }
 0xe8c   :  { %v8373_v13 = vpop.f32.mrf.mxu3 }
 0xe8d   :  { %v8474_v50 = vmax.f32 %v8470_v23, 0.0  ;;  %v8374_v11 = vadd.f32 %v8373_v13, %v8360_v56  ;;  %v8464_v56 = vperm.slane %v8459_v57, 3  ;;  %v18040_v57 = vld [vmem:[#allocation124_spill] sm:$0xff] }
 0xe8e   :  { %v8401_v26 = vpop.f32.mrf.mxu1 }
 0xe8f   :  { %v8455_v6 = vadd.f32 %v8374_v11, %v17156_v37  ;;  %v8478_v60 = vpack.c.bf16 %v8474_v50, %v8474_v50 }
 0xe91   :  { %v8469_v58 = vadd.f32 %v8461_v55, %v8455_v6  ;;  %v8489_v33 = vsel %vm6888_vm3, %v8478_v60, 0 }
 0xe92   :  { %8517 = vmatpush.bf16.msra.mxu3 %v8489_v33 }
 0xe93   :  { %v8473_v17 = vmax.f32 %v8469_v58, 0.0 }
 0xe94   :  { %v8375_v35 = vpop.f32.mrf.mxu3 }
 0xe95   :  { %13137 = vmatmul.msk.bf16.vlgmr.msra.gmra.mxu3 %vm6884_vm4, %v8481_v46  ;;  %v8477_v28 = vpack.c.bf16 %v8473_v17, %v8473_v17  ;;  %v18041_v17 = vld [vmem:[#allocation147_spill] sm:$0xff] }
 0xe96   :  { %8574 = vmatpush.bf16.msrb.mxu3 %v8489_v33  ;;  %v8451_v51 = vpop.f32.mrf.mxu1 }
 0xe97   :  { %v8452_v27 = vadd.f32 %v8451_v51, %v8438_v45  ;;  %v8486_v43 = vsel %vm6888_vm3, %v8477_v28, 0 }
 0xe98   :  { %8504 = vmatpush.bf16.msra.mxu2 %v8486_v43 }
 0xe99   :  { %v8458_v37 = vadd.f32 %v8452_v27, %v7930_v20 }
 0xe9a   :  { %8627 = vmatpush.bf16.msra.mxu3 %v15947_v61 }
 0xe9b   :  { %v8472_v31 = vadd.f32 %v8464_v56, %v8458_v37  ;;  %13136 = vmatmul.msk.bf16.vlgmr.msra.gmra.mxu2 %vm6884_vm4, %v8481_v46 }
 0xe9c   :  { %8561 = vmatpush.bf16.msrb.mxu2 %v8486_v43  ;;  %v8425_v48 = vpop.f32.mrf.mxu3  ;;  %v18042_v43 = vld [vmem:[#allocation150_spill] sm:$0xff] }
 0xe9d   :  { %v8476_v1 = vmax.f32 %v8472_v31, 0.0  ;;  %v8426_v30 = vadd.f32 %v8425_v48, %v8412_v16  ;;  %v18039_v16 = vld [vmem:[#allocation120_spill] sm:$0xff]  ;;  %v18043_v48 = vld [vmem:[#allocation89_spill] sm:$0xff] }
 0xe9e   :  { %8628 = vmatpush.bf16.msra.mxu3 %v15961_v5  ;;  %v8453_v49 = vpop.f32.mrf.mxu1 }
 0xe9f   :  { %v8457_v61 = vadd.f32 %v8426_v30, %v17166_v38  ;;  %v8480_v45 = vpack.c.bf16 %v8476_v1, %v8476_v1  ;;  %v18038_v38 = vld [vmem:[#allocation118_spill] sm:$0xff]  ;;  %v18044_v30 = vld [vmem:[#allocation153_spill] sm:$0xff]  ;;  %v18045_v49 = vld [vmem:[#allocation92_spill] sm:$0xff] }
 0xea0   :  { %8614 = vmatpush.bf16.msra.mxu2 %v15853_v34 }
 0xea1   :  { %v8471_v20 = vadd.f32 %v8463_v21, %v8457_v61  ;;  %v8495_v5 = vsel %vm6888_vm3, %v8480_v45, 0  ;;  %v18046_v61 = vld [vmem:[#allocation122_spill] sm:$0xff] }
 0xea2   :  { %8629 = vmatpush.bf16.msra.mxu3 %v15975_v52  ;;  %8543 = vmatpush.bf16.msra.mxu1 %v8495_v5 }
 0xea3   :  { %v8475_v23 = vmax.f32 %v8471_v20, 0.0 }
 0xea4   :  { %8615 = vmatpush.bf16.msra.mxu2 %v15856_v44  ;;  %v8427_v34 = vpop.f32.mrf.mxu3 }
 0xea5   :  { %13139 = vmatmul.msk.bf16.vlgmr.msra.gmra.mxu1 %vm6884_vm4, %v8481_v46  ;;  %13141 = vmatmul.msk.bf16.vlgmr.msrb.gmra.mxu3 %vm6884_vm4, %v8550_v59  ;;  %v8479_v52 = vpack.c.bf16 %v8475_v23, %v8475_v23  ;;  %v18048_v34 = vld [vmem:[#allocation95_spill] sm:$0xff] }
 0xea6   :  { %8630 = vmatpush.bf16.msra.mxu3 %v15989_v18  ;;  %8600 = vmatpush.bf16.msrb.mxu1 %v8495_v5  ;;  %v18011_v18 = vld [vmem:[#allocation88_spill] sm:$0xff] }
 0xea7   :  { %v8492_v44 = vsel %vm6888_vm3, %v8479_v52, 0  ;;  %v18047_v5 = vld [vmem:[#allocation156_spill] sm:$0xff]  ;;  %v18049_v52 = vld [vmem:[#allocation126_spill] sm:$0xff] }
 0xea8   :  { %8616 = vmatpush.bf16.msra.mxu2 %v15860_v54  ;;  %8530 = vmatpush.bf16.msrb.mxu0 %v8492_v44  ;;  %v18010_v54 = vld [vmem:[#allocation127_spill] sm:$0xff] }
 0xeaa   :  { %8653 = vmatpush.bf16.msra.mxu1 %v17804_v12  ;;  %8631 = vmatpush.bf16.msra.mxu3 %v16006_v10  ;;  %v18012_v10 = vld [vmem:[#allocation71_spill] sm:$0xff] }
 0xeab   :  { %13138 = vmatmul.msk.bf16.vlgmr.msrb.gmra.mxu0 %vm6884_vm4, %v8481_v46  ;;  %13140 = vmatmul.msk.bf16.vlgmr.msrb.gmra.mxu2 %vm6884_vm4, %v8550_v59  ;;  %v18024_v12 = vld [vmem:[#allocation139_spill] sm:$0xff] }
 0xeac   :  { %8617 = vmatpush.bf16.msra.mxu2 %v17776_v47  ;;  %8587 = vmatpush.bf16.msra.mxu0 %v8492_v44  ;;  %v18013_v47 = vld [vmem:[#allocation90_spill] sm:$0xff]  ;;  %v18050_v44 = vld [vmem:[#allocation159_spill] sm:$0xff] }
 0xeae   :  { %8654 = vmatpush.bf16.msra.mxu1 %v17808_v7  ;;  %8632 = vmatpush.bf16.msra.mxu3 %v17779_v8  ;;  %v18014_v8 = vld [vmem:[#allocation93_spill] sm:$0xff]  ;;  %v18025_v7 = vld [vmem:[#allocation100_spill] sm:$0xff] }
 0xeb0   :  { %8640 = vmatpush.bf16.msrb.mxu0 %v17789_v39  ;;  %8618 = vmatpush.bf16.msra.mxu2 %v17782_v0  ;;  %v18015_v0 = vld [vmem:[#allocation131_spill] sm:$0xff]  ;;  %v18018_v39 = vld [vmem:[#allocation96_spill] sm:$0xff] }
 0xeb2   :  { %8655 = vmatpush.bf16.msra.mxu1 %v17903_v32  ;;  %8633 = vmatpush.bf16.msra.mxu3 %v17902_v3  ;;  %v18026_v3 = vld [vmem:[#allocation80_spill] sm:$0xff]  ;;  %v18027_v32 = vld [vmem:[#allocation102_spill] sm:$0xff] }
 0xeb4   :  { %8641 = vmatpush.bf16.msrb.mxu0 %v17793_v42  ;;  %8619 = vmatpush.bf16.msra.mxu2 %v17785_v19  ;;  %v18016_v19 = vld [vmem:[#allocation91_spill] sm:$0xff]  ;;  %v18021_v42 = vld [vmem:[#allocation97_spill] sm:$0xff] }
 0xeb5   :  { %13143 = vmatmul.msk.bf16.vlgmr.msrb.gmra.mxu1 %vm6884_vm4, %v8550_v59 }
 0xeb6   :  { %8656 = vmatpush.bf16.msra.mxu1 %v17907_v40  ;;  %8634 = vmatpush.bf16.msra.mxu3 %v17906_v62  ;;  %v18030_v62 = vld [vmem:[#allocation83_spill] sm:$0xff]  ;;  %v18031_v40 = vld [vmem:[#allocation106_spill] sm:$0xff] }
 0xeb8   :  { %8642 = vmatpush.bf16.msrb.mxu0 %v17796_v36  ;;  %8620 = vmatpush.bf16.msra.mxu2 %v17788_v41  ;;  %v18017_v41 = vld [vmem:[#allocation74_spill] sm:$0xff]  ;;  %v18022_v36 = vld [vmem:[#allocation77_spill] sm:$0xff] }
 0xeba   :  { %8679 = vmatpush.bf16.msrb.mxu3 %v17908_v22  ;;  %8657 = vmatpush.bf16.msra.mxu1 %v17911_v29  ;;  %v18032_v22 = vld [vmem:[#allocation108_spill] sm:$0xff]  ;;  %v18033_v29 = vld [vmem:[#allocation86_spill] sm:$0xff] }
 0xebb   :  { %13142 = vmatmul.msk.bf16.vlgmr.msra.gmra.mxu0 %vm6884_vm4, %v8550_v59 }
 0xebc   :  { %8643 = vmatpush.bf16.msrb.mxu0 %v17799_v14  ;;  %8621 = vmatpush.bf16.msra.mxu2 %v17791_v2  ;;  %v18019_v2 = vld [vmem:[#allocation135_spill] sm:$0xff] }
 0xebd   :  { %v18023_v14 = vld [vmem:[#allocation99_spill] sm:$0xff] }
 0xebe   :  { %8680 = vmatpush.bf16.msrb.mxu3 %v17912_v24  ;;  %8658 = vmatpush.bf16.msra.mxu1 %v17915_v15  ;;  %v18034_v24 = vld [vmem:[#allocation110_spill] sm:$0xff]  ;;  %v18035_v15 = vld [vmem:[#allocation112_spill] sm:$0xff] }
 0xec0   :  { %8666 = vmatpush.bf16.msrb.mxu2 %v17792_v63  ;;  %8644 = vmatpush.bf16.msrb.mxu0 %v17904_v53  ;;  %v18020_v63 = vld [vmem:[#allocation94_spill] sm:$0xff]  ;;  %v18028_v53 = vld [vmem:[#allocation143_spill] sm:$0xff] }
 0xec2   :  { %8681 = vmatpush.bf16.msrb.mxu3 %v17916_v9  ;;  %8659 = vmatpush.bf16.msra.mxu1 %v17920_v4  ;;  %v18036_v9 = vld [vmem:[#allocation114_spill] sm:$0xff]  ;;  %v18037_v4 = vld [vmem:[#allocation116_spill] sm:$0xff] }
 0xec4   :  { %8667 = vmatpush.bf16.msrb.mxu2 %v17905_v25  ;;  %8645 = vmatpush.bf16.msrb.mxu0 %v18011_v18  ;;  %v18029_v25 = vld [vmem:[#allocation104_spill] sm:$0xff]  ;;  %v18052_v18 = vld [vmem:[#allocation98_spill] sm:$0xff] }
 0xec6   :  { %8682 = vmatpush.bf16.msrb.mxu3 %v18010_v54  ;;  %8660 = vmatpush.bf16.msra.mxu1 %v18013_v47  ;;  %v18051_v54 = vld [vmem:[#allocation128_spill] sm:$0xff] }
 0xec8   :  { %8668 = vmatpush.bf16.msrb.mxu2 %v18012_v10  ;;  %8646 = vmatpush.bf16.msrb.mxu0 %v18016_v19  ;;  %v18053_v10 = vld [vmem:[#allocation130_spill] sm:$0xff]  ;;  %v18056_v19 = vld [vmem:[#allocation101_spill] sm:$0xff] }
 0xeca   :  { %8705 = vmatpush.bf16.msrb.mxu1 %v18014_v8  ;;  %8683 = vmatpush.bf16.msrb.mxu3 %v18015_v0  ;;  %v18054_v8 = vld [vmem:[#allocation162_spill] sm:$0xff]  ;;  %v18055_v0 = vld [vmem:[#allocation132_spill] sm:$0xff] }
 0xecc   :  { %8669 = vmatpush.bf16.msrb.mxu2 %v18017_v41  ;;  %8647 = vmatpush.bf16.msrb.mxu0 %v18020_v63  ;;  %v18057_v41 = vld [vmem:[#allocation134_spill] sm:$0xff]  ;;  %v18060_v63 = vld [vmem:[#allocation105_spill] sm:$0xff] }
 0xece   :  { %8706 = vmatpush.bf16.msrb.mxu1 %v18018_v39  ;;  %8684 = vmatpush.bf16.msrb.mxu3 %v18019_v2  ;;  %v18058_v39 = vld [vmem:[#allocation165_spill] sm:$0xff]  ;;  %v18059_v2 = vld [vmem:[#allocation136_spill] sm:$0xff] }
 0xed0   :  { %8692 = vmatpush.bf16.msra.mxu0 %v18021_v42  ;;  %8670 = vmatpush.bf16.msrb.mxu2 %v18022_v36  ;;  %v18061_v42 = vld [vmem:[#allocation138_spill] sm:$0xff]  ;;  %v18062_v36 = vld [vmem:[#allocation168_spill] sm:$0xff] }
 0xed2   :  { %8707 = vmatpush.bf16.msrb.mxu1 %v18023_v14  ;;  %8685 = vmatpush.bf16.msrb.mxu3 %v18024_v12  ;;  %v18063_v14 = vld [vmem:[#allocation140_spill] sm:$0xff]  ;;  %v18064_v12 = vld [vmem:[#allocation171_spill] sm:$0xff] }
 0xed4   :  { %8693 = vmatpush.bf16.msra.mxu0 %v18025_v7  ;;  %8671 = vmatpush.bf16.msrb.mxu2 %v18026_v3  ;;  %v18065_v7 = vld [vmem:[#allocation109_spill] sm:$0xff]  ;;  %v18066_v3 = vld [vmem:[#allocation142_spill] sm:$0xff] }
 0xed6   :  { %8708 = vmatpush.bf16.msrb.mxu1 %v18027_v32  ;;  %8686 = vmatpush.bf16.msrb.mxu3 %v18028_v53  ;;  %v18067_v32 = vld [vmem:[#allocation144_spill] sm:$0xff]  ;;  %v18068_v53 = vld [vmem:[#allocation174_spill] sm:$0xff] }
 0xed8   :  { %8694 = vmatpush.bf16.msra.mxu0 %v18029_v25  ;;  %8672 = vmatpush.bf16.msrb.mxu2 %v18030_v62  ;;  %v18069_v25 = vld [vmem:[#allocation113_spill] sm:$0xff]  ;;  %v18070_v62 = vld [vmem:[#allocation146_spill] sm:$0xff] }
 0xeda   :  { %8709 = vmatpush.bf16.msrb.mxu1 %v18031_v40  ;;  %v18071_v40 = vld [vmem:[#allocation117_spill] sm:$0xff] }
 0xedc   :  { %8695 = vmatpush.bf16.msra.mxu0 %v18032_v22  ;;  %8673 = vmatpush.bf16.msrb.mxu2 %v18033_v29  ;;  %v18073_v22 = vld [vmem:[#allocation148_spill] sm:$0xff] }
 0xedd   :  { %v18074_v29 = vld [vmem:[#allocation176_spill] sm:$0xff] }
 0xede   :  { %8710 = vmatpush.bf16.msrb.mxu1 %v18034_v24  ;;  %v18075_v24 = vld [vmem:[#allocation149_spill] sm:$0xff] }
 0xee0   :  { %8696 = vmatpush.bf16.msra.mxu0 %v18035_v15  ;;  %v18076_v15 = vld [vmem:[#allocation121_spill] sm:$0xff] }
 0xee2   :  { %8711 = vmatpush.bf16.msrb.mxu1 %v18036_v9  ;;  %v18077_v9 = vld [vmem:[#allocation152_spill] sm:$0xff] }
 0xee4   :  { %8697 = vmatpush.bf16.msra.mxu0 %v18037_v4  ;;  %v18078_v4 = vld [vmem:[#allocation151_spill] sm:$0xff] }
 0xee6   :  { %8712 = vmatpush.bf16.msrb.mxu1 %v18038_v38  ;;  %v18079_v38 = vld [vmem:[#allocation178_spill] sm:$0xff] }
 0xee8   :  { %8698 = vmatpush.bf16.msra.mxu0 %v18039_v16  ;;  %v18080_v16 = vld [vmem:[#allocation125_spill] sm:$0xff] }
 0xeec   :  { %8699 = vmatpush.bf16.msra.mxu0 %v18040_v57  ;;  %v18081_v57 = vld [vmem:[#allocation155_spill] sm:$0xff] }
 0xf18   :  { %v8519_v13 = vpop.f32.mrf.mxu3 }
 0xf1e   :  { %v8506_v50 = vpop.f32.mrf.mxu2 }
 0xf20   :  { %v8521_v11 = vpop.f32.mrf.mxu3 }
 0xf21   :  { %v18084_v11 = vld [vmem:[#allocation157_spill] sm:$0xff] }
 0xf22   :  { %v8545_v55 = vpop.f32.mrf.mxu1 }
 0xf26   :  { %v8508_v26 = vpop.f32.mrf.mxu2 }
 0xf27   :  { %v15185_v26 = vmov 0  }
 0xf28   :  { %v8532_v6 = vpop.f32.mrf.mxu0  ;;  %v8576_v60 = vpop.f32.mrf.mxu3  ;;  %14567 = vset.pattern.permute.xlu0 %v15185_v26  ;;  %v14387_v26 = vld [vmem:[#allocation27 + $0x18] sm:$0xff] }
 0xf29   :  { %v8607_v58 = vmax.f32 %v8519_v13, %v8576_v60  ;;  %v18082_v13 = vld [vmem:[#allocation154_spill] sm:$0xff] }
 0xf2a   :  { %v8547_v33 = vpop.f32.mrf.mxu1  ;;  %v18086_v60 = vld [vmem:[#allocation158_spill] sm:$0xff] }
 0xf2b   :  { %v17248_v46 = vpack.c.bf16 %v8607_v58, %v8607_v58  ;;  %v18087_v58 = vld [vmem:[#allocation180_spill] sm:$0xff] }
 0xf2c   :  { %v18088_v33 = vld [vmem:[#allocation160_spill] sm:$0xff] }
 0xf2d   :  { %8635 = vmatmul.bf16.vlgmr.msra.gmra.mxu3 %v17248_v46 }
 0xf2e   :  { %8731 = vmatpush.bf16.msra.mxu3 %v18041_v17  ;;  %v8563_v35 = vpop.f32.mrf.mxu2  ;;  %v18089_v17 = vld [vmem:[#allocation133_spill] sm:$0xff] }
 0xf2f   :  { %v8606_v28 = vmax.f32 %v8506_v50, %v8563_v35  ;;  %v18083_v50 = vld [vmem:[#allocation179_spill] sm:$0xff]  ;;  %v18090_v35 = vld [vmem:[#allocation161_spill] sm:$0xff] }
 0xf30   :  { %v8534_v51 = vpop.f32.mrf.mxu0  ;;  %v8578_v27 = vpop.f32.mrf.mxu3 }
 0xf31   :  { %v17252_v56 = vpack.c.bf16 %v8606_v28, %v8606_v28  ;;  %v18091_v28 = vld [vmem:[#allocation181_spill] sm:$0xff]  ;;  %v18092_v51 = vld [vmem:[#allocation163_spill] sm:$0xff] }
 0xf32   :  { %8732 = vmatpush.bf16.msra.mxu3 %v18042_v43  ;;  %v8602_v37 = vpop.f32.mrf.mxu1  ;;  %v18093_v27 = vld [vmem:[#allocation137_spill] sm:$0xff]  ;;  %v18094_v43 = vld [vmem:[#allocation164_spill] sm:$0xff] }
 0xf33   :  { %v8609_v31 = vmax.f32 %v8545_v55, %v8602_v37  ;;  %8622 = vmatmul.bf16.vlgmr.msra.gmra.mxu2 %v17252_v56  ;;  %v8899_v55 = vld [vmem:[%s18072_s16] sm:$0x3]  ;;  %v18095_v37 = vld [vmem:[#allocation182_spill] sm:$0xff] }
 0xf34   :  { %8718 = vmatpush.bf16.msra.mxu2 %v18043_v48  ;;  %8903 = vperm.xlu0 %14567, %v8899_v55   ;;  %v18097_v48 = vld [vmem:[#allocation141_spill] sm:$0xff] }
 0xf35   :  { %v17257_v1 = vpack.c.bf16 %v8609_v31, %v8609_v31  ;;  %v18096_v31 = vld [vmem:[#allocation166_spill] sm:$0xff] }
 0xf36   :  { %8733 = vmatpush.bf16.msra.mxu3 %v18044_v30  ;;  %v8565_v21 = vpop.f32.mrf.mxu2  ;;  %v18098_v30 = vld [vmem:[#allocation167_spill] sm:$0xff] }
 0xf37   :  { %8661 = vmatmul.bf16.vlgmr.msra.gmra.mxu1 %v17257_v1  ;;  %v18099_v21 = vld [vmem:[#allocation169_spill] sm:$0xff] }
 0xf38   :  { %8719 = vmatpush.bf16.msra.mxu2 %v18045_v49  ;;  %8757 = vmatpush.bf16.msra.mxu1 %v18046_v61  ;;  %v8589_v45 = vpop.f32.mrf.mxu0  ;;  %v18100_v49 = vld [vmem:[#allocation145_spill] sm:$0xff]  ;;  %v18101_v61 = vld [vmem:[#allocation170_spill] sm:$0xff] }
 0xf39   :  { %v8608_v20 = vmax.f32 %v8532_v6, %v8589_v45  ;;  %v18085_v6 = vld [vmem:[#allocation129_spill] sm:$0xff]  ;;  %v18102_v45 = vld [vmem:[#allocation172_spill] sm:$0xff] }
 0xf3a   :  { %8734 = vmatpush.bf16.msra.mxu3 %v18047_v5  ;;  %v8604_v59 = vpop.f32.mrf.mxu1  ;;  %v18104_v5 = vld [vmem:[#allocation175_spill] sm:$0xff] }
 0xf3b   :  { %v17264_v23 = vpack.c.bf16 %v8608_v20, %v8608_v20  ;;  %v18103_v20 = vld [vmem:[#allocation173_spill] sm:$0xff] }
 0xf3c   :  { %8720 = vmatpush.bf16.msra.mxu2 %v18048_v34  ;;  %8758 = vmatpush.bf16.msra.mxu1 %v18049_v52  ;;  %v18105_v59 = vld [vmem:[#allocation177_spill] sm:$0xff] }
 0xf3d   :  { %8648 = vmatmul.bf16.vlgmr.msrb.gmra.mxu0 %v17264_v23  ;;  %8687 = vmatmul.bf16.vlgmr.msrb.gmra.mxu3 %v17248_v46 }
 0xf3e   :  { %8735 = vmatpush.bf16.msra.mxu3 %v18050_v44  ;;  %8744 = vmatpush.bf16.msrb.mxu0 %v18051_v54 }
 0xf40   :  { %8721 = vmatpush.bf16.msra.mxu2 %v18052_v18  ;;  %8759 = vmatpush.bf16.msra.mxu1 %v18053_v10  ;;  %v8591_v47 = vpop.f32.mrf.mxu0 }
 0xf42   :  { %8736 = vmatpush.bf16.msra.mxu3 %v18054_v8  ;;  %8745 = vmatpush.bf16.msrb.mxu0 %v18055_v0 }
 0xf43   :  { %8674 = vmatmul.bf16.vlgmr.msrb.gmra.mxu2 %v17252_v56 }
 0xf44   :  { %8722 = vmatpush.bf16.msra.mxu2 %v18056_v19  ;;  %8760 = vmatpush.bf16.msra.mxu1 %v18057_v41 }
 0xf46   :  { %8737 = vmatpush.bf16.msra.mxu3 %v18058_v39  ;;  %8746 = vmatpush.bf16.msrb.mxu0 %v18059_v2 }
 0xf47   :  { %8713 = vmatmul.bf16.vlgmr.msrb.gmra.mxu1 %v17257_v1 }
 0xf48   :  { %8723 = vmatpush.bf16.msra.mxu2 %v18060_v63  ;;  %8761 = vmatpush.bf16.msra.mxu1 %v18061_v42 }
 0xf4a   :  { %8738 = vmatpush.bf16.msra.mxu3 %v18062_v36  ;;  %8747 = vmatpush.bf16.msrb.mxu0 %v18063_v14 }
 0xf4c   :  { %8724 = vmatpush.bf16.msra.mxu2 %v18065_v7  ;;  %8762 = vmatpush.bf16.msra.mxu1 %v18066_v3 }
 0xf4d   :  { %8700 = vmatmul.bf16.vlgmr.msra.gmra.mxu0 %v17264_v23  ;;  %8739 = vmatmul.bf16.vlgmr.msra.gmra.mxu3 %v17248_v46 }
 0xf4e   :  { %8783 = vmatpush.bf16.msrb.mxu3 %v18064_v12  ;;  %8748 = vmatpush.bf16.msrb.mxu0 %v18067_v32 }
 0xf50   :  { %8725 = vmatpush.bf16.msra.mxu2 %v18069_v25  ;;  %8763 = vmatpush.bf16.msra.mxu1 %v18070_v62 }
 0xf52   :  { %8784 = vmatpush.bf16.msrb.mxu3 %v18068_v53  ;;  %8749 = vmatpush.bf16.msrb.mxu0 %v18073_v22 }
 0xf53   :  { %8726 = vmatmul.bf16.vlgmr.msra.gmra.mxu2 %v17252_v56 }
 0xf54   :  { %8770 = vmatpush.bf16.msrb.mxu2 %v18071_v40  ;;  %8764 = vmatpush.bf16.msra.mxu1 %v18075_v24  ;;  %v14391_v24 = vld [vmem:[#allocation27 + $0x38] sm:$0xff] }
 0xf56   :  { %8785 = vmatpush.bf16.msrb.mxu3 %v18074_v29  ;;  %8750 = vmatpush.bf16.msrb.mxu0 %v18078_v4  ;;  %v14390_v4 = vld [vmem:[#allocation27 + $0x30] sm:$0xff] }
 0xf57   :  { %8765 = vmatmul.bf16.vlgmr.msra.gmra.mxu1 %v17257_v1 }
 0xf58   :  { %8771 = vmatpush.bf16.msrb.mxu2 %v18076_v15  ;;  %8809 = vmatpush.bf16.msrb.mxu1 %v18077_v9 }
 0xf5a   :  { %8786 = vmatpush.bf16.msrb.mxu3 %v18079_v38  ;;  %8751 = vmatpush.bf16.msrb.mxu0 %v18082_v13  ;;  %v8826_v38 = vld [vmem:[%s18106_s29] sm:$0x1]  ;;  %v14388_v13 = vld [vmem:[#allocation27 + $0x20] sm:$0xff] }
 0xf5c   :  { %8772 = vmatpush.bf16.msrb.mxu2 %v18080_v16  ;;  %8810 = vmatpush.bf16.msrb.mxu1 %v18081_v57  ;;  %v14389_v16 = vld [vmem:[#allocation27 + $0x28] sm:$0xff] }
 0xf5d   :  { %8752 = vmatmul.bf16.vlgmr.msrb.gmra.mxu0 %v17264_v23 }
 0xf5e   :  { %8787 = vmatpush.bf16.msrb.mxu3 %v18083_v50  ;;  %8796 = vmatpush.bf16.msra.mxu0 %v18084_v11  ;;  %v17341_v50 = vld [vmem:[%s18107_s26] sm:$0x3] }
 0xf5f   :  { %v8907_v55 = vperm.slane %v17341_v50, 0 }
 0xf60   :  { %8773 = vmatpush.bf16.msrb.mxu2 %v18085_v6  ;;  %8811 = vmatpush.bf16.msrb.mxu1 %v18086_v60  ;;  %v17345_v6 = vld [vmem:[%s18108_s0] sm:$0x3] }
 0xf62   :  { %8788 = vmatpush.bf16.msrb.mxu3 %v18087_v58  ;;  %8797 = vmatpush.bf16.msra.mxu0 %v18088_v33 }
 0xf64   :  { %8774 = vmatpush.bf16.msrb.mxu2 %v18089_v17  ;;  %8812 = vmatpush.bf16.msrb.mxu1 %v18090_v35  ;;  %v8915_v35 = vperm.slane %v17345_v6, 0 }
 0xf66   :  { %8789 = vmatpush.bf16.msrb.mxu3 %v18091_v28  ;;  %8798 = vmatpush.bf16.msra.mxu0 %v18092_v51 }
 0xf68   :  { %8775 = vmatpush.bf16.msrb.mxu2 %v18093_v27  ;;  %8813 = vmatpush.bf16.msrb.mxu1 %v18094_v43  ;;  %v14386_v43 = vld [vmem:[#allocation27 + $0x10] sm:$0xff] }
 0xf6a   :  { %8790 = vmatpush.bf16.msrb.mxu3 %v18095_v37  ;;  %8799 = vmatpush.bf16.msra.mxu0 %v18096_v31 }
 0xf6c   :  { %8776 = vmatpush.bf16.msrb.mxu2 %v18097_v48  ;;  %8814 = vmatpush.bf16.msrb.mxu1 %v18098_v30 }
 0xf6d   :  { %8791 = vmatmul.bf16.vlgmr.msrb.gmra.mxu3 %v17248_v46 }
 0xf6e   :  { %8800 = vmatpush.bf16.msra.mxu0 %v18099_v21 }
 0xf70   :  { %8777 = vmatpush.bf16.msrb.mxu2 %v18100_v49  ;;  %8815 = vmatpush.bf16.msrb.mxu1 %v18101_v61  ;;  %v14385_v61 = vld [vmem:[#allocation27 + $0x8] sm:$0xff] }
 0xf72   :  { %8801 = vmatpush.bf16.msra.mxu0 %v18102_v45 }
 0xf73   :  { %8778 = vmatmul.bf16.vlgmr.msrb.gmra.mxu2 %v17252_v56 }
 0xf74   :  { %8816 = vmatpush.bf16.msrb.mxu1 %v18103_v20 }
 0xf76   :  { %8802 = vmatpush.bf16.msra.mxu0 %v18104_v5 }
 0xf77   :  { %8817 = vmatmul.bf16.vlgmr.msrb.gmra.mxu1 %v17257_v1 }
 0xf7a   :  { %8803 = vmatpush.bf16.msra.mxu0 %v18105_v59 }
 0xf7d   :  { %8804 = vmatmul.bf16.vlgmr.msra.gmra.mxu0 %v17264_v23 }
 0xfa6   :  { %v17347_v60 = vpop.permute.xlu0 %8903 }
 0xfa7   :  { %v8911_v28 = vmul.f32 %v8907_v55, %v17347_v60  ;;  %v14424_v55 = vld [vmem:[#allocation30 + $0x44] sm:$0xf] }
 0xfa9   :  { %v8919_v30 = vadd.f32 %v8915_v35, %v8911_v28  ;;  %v13239_v28 = vld [vmem:[#allocation30 + $0x30] sm:$0xf] }
 0xfab   :  { %v8921_v5 = vmax.f32 %v8919_v30, 0.0  ;;  %v8916_v30 = vperm.slane %v17345_v6, 1  ;;  %v14393_v6 = vld [vmem:[#allocation27 + $0x48] sm:$0xff] }
 0xfb0   :  { %v8636_v46 = vpop.f32.mrf.mxu3 }
 0xfb4   :  { %v8662_v34 = vpop.f32.mrf.mxu1 }
 0xfb6   :  { %v8623_v52 = vpop.f32.mrf.mxu2 }
 0xfb7   :  { %v8637_v23 = vadd.f32 %v8636_v46, %v8623_v52  ;;  %v14399_v46 = vld [vmem:[#allocation27 + $0x78] sm:$0xff] }
 0xfb8   :  { %v8638_v44 = vpop.f32.mrf.mxu3 }
 0xfba   :  { %v8649_v54 = vpop.f32.mrf.mxu0 }
 0xfbb   :  { %v8650_v12 = vadd.f32 %v8649_v54, %v8637_v23  ;;  %v14398_v54 = vld [vmem:[#allocation27 + $0x70] sm:$0xff]  ;;  %v14397_v23 = vld [vmem:[#allocation27 + $0x68] sm:$0xff] }
 0xfbc   :  { %v8664_v18 = vpop.f32.mrf.mxu1 }
 0xfbd   :  { %v8663_v25 = vadd.f32 %v8662_v34, %v8650_v12  ;;  %v14384_v34 = vld [vmem:[#allocation27] sm:$0xff]  ;;  %v8923_v18 = vpack.c.bf16 %v8921_v5, %v8921_v5 }
 0xfbe   :  { %v8625_v10 = vpop.f32.mrf.mxu2  ;;  %v13295_v5 = vld [vmem:[#allocation30 + $0xa0] sm:$0xf] }
 0xfbf   :  { %v13146_v10 = vld [vmem:[%s18106_s29 + $0x1] sm:$0x1] }
 0xfc0   :  { %v8688_v47 = vpop.f32.mrf.mxu3 }
 0xfc2   :  { %v8651_v8 = vpop.f32.mrf.mxu0 }
 0xfc3   :  { %v14431_v8 = vld [vmem:[#allocation30 + $0x74] sm:$0xf0] }
 0xfc4   :  { %v8714_v56 = vpop.f32.mrf.mxu1 }
 0xfc6   :  { %v8675_v0 = vpop.f32.mrf.mxu2 }
 0xfc7   :  { %v8689_v33 = vadd.f32 %v8688_v47, %v8675_v0  ;;  %v13271_v47 = vld [vmem:[#allocation30 + $0x70] sm:$0xf] }
 0xfc8   :  { %v8690_v19 = vpop.f32.mrf.mxu3  ;;  %v13335_v0 = vld [vmem:[#allocation30 + $0xf0] sm:$0xf] }
 0xfc9   :  { %v14447_v19 = vld [vmem:[#allocation30 + $0xf4] sm:$0xf0] }
 0xfca   :  { %v8701_v41 = vpop.f32.mrf.mxu0 }
 0xfcb   :  { %v8702_v51 = vadd.f32 %v8701_v41, %v8689_v33  ;;  %v13263_v41 = vld [vmem:[#allocation30 + $0x60] sm:$0xf] }
 0xfcc   :  { %v8716_v39 = vpop.f32.mrf.mxu1 }
 0xfcd   :  { %v8715_v21 = vadd.f32 %v8714_v56, %v8702_v51  ;;  %v13272_v56 = vor.u32 %v14431_v8, %v13271_v47  ;;  %v13336_v39 = vor.u32 %v14447_v19, %v13335_v0  ;;  %v14423_v51 = vld [vmem:[#allocation30 + $0x34] sm:$0xf0]  ;;  %v14446_v47 = vld [vmem:[#allocation30 + $0xf4] sm:$0xf]  ;;  %v13287_v8 = vld [vmem:[#allocation30 + $0x90] sm:$0xf] }
 0xfce   :  { %v8677_v2 = vpop.f32.mrf.mxu2  ;;  %v13337_v19 = vld [vmem:[#allocation30 + $0xf8] sm:$0xf0] }
 0xfcf   :  { %v14429_v2 = vld [vmem:[#allocation30 + $0x64] sm:$0xf0] }
 0xfd0   :  { %v8740_v1 = vpop.f32.mrf.mxu3 }
 0xfd2   :  { %v8703_v63 = vpop.f32.mrf.mxu0 }
 0xfd3   :  { %v14445_v63 = vld [vmem:[#allocation30 + $0xe4] sm:$0xf0] }
 0xfd4   :  { %v8766_v42 = vpop.f32.mrf.mxu1 }
 0xfd6   :  { %v8727_v36 = vpop.f32.mrf.mxu2 }
 0xfd7   :  { %v8741_v7 = vadd.f32 %v8740_v1, %v8727_v36  ;;  %v13327_v1 = vld [vmem:[#allocation30 + $0xe0] sm:$0xf]  ;;  %v13273_v36 = vld [vmem:[#allocation30 + $0x78] sm:$0xf0] }
 0xfd8   :  { %v8742_v14 = vpop.f32.mrf.mxu3 }
 0xfd9   :  { %v13264_v14 = vor.u32 %v14429_v2, %v13263_v41  ;;  %v14418_v41 = vld [vmem:[#allocation30 + $0x14] sm:$0xf] }
 0xfda   :  { %v8753_v3 = vpop.f32.mrf.mxu0 }
 0xfdb   :  { %v8754_v32 = vadd.f32 %v8753_v3, %v8741_v7  ;;  %v13328_v7 = vor.u32 %v14445_v63, %v13327_v1  ;;  %v13255_v3 = vld [vmem:[#allocation30 + $0x50] sm:$0xf]  ;;  %v14392_v1 = vld [vmem:[#allocation27 + $0x40] sm:$0xff] }
 0xfdc   :  { %v8768_v53 = vpop.f32.mrf.mxu1 }
 0xfdd   :  { %v8767_v62 = vadd.f32 %v8766_v42, %v8754_v32  ;;  %v14430_v42 = vld [vmem:[#allocation30 + $0x74] sm:$0xf]  ;;  %v14427_v32 = vld [vmem:[#allocation30 + $0x54] sm:$0xf0]  ;;  %v14428_v53 = vld [vmem:[#allocation30 + $0x64] sm:$0xf] }
 0xfde   :  { %v8729_v40 = vpop.f32.mrf.mxu2  ;;  %v13276_v12 = vor.u32 %v14430_v42, %v13273_v36  ;;  %v14444_v42 = vld [vmem:[#allocation30 + $0xe4] sm:$0xf] }
 0xfdf   :  { %v8822_v22 = vmax.f32 %v8663_v25, %v8767_v62  ;;  %v13319_v25 = vld [vmem:[#allocation30 + $0xd0] sm:$0xf]  ;;  %v14443_v62 = vld [vmem:[#allocation30 + $0xd4] sm:$0xf0]  ;;  %v13265_v40 = vld [vmem:[#allocation30 + $0x68] sm:$0xf0] }
 0xfe1   :  { %v8824_v29 = vpack.c.bf16 %v8822_v22, %v8822_v22  ;;  %v13268_v22 = vor.u32 %v14428_v53, %v13265_v40  ;;  %v14415_v53 = vld [vmem:[#allocation28 + $0x74] sm:$0xf0]  ;;  %v14414_v40 = vld [vmem:[#allocation28 + $0x74] sm:$0xf] }
 0xfe2   :  { %v8755_v15 = vpop.f32.mrf.mxu0 }
 0xfe3   :  { %v8833_v9 = vsel %vm8831_vm5, %v8824_v29, 0  ;;  %v13256_v29 = vor.u32 %v14427_v32, %v13255_v3  ;;  %v13257_v15 = vld [vmem:[#allocation30 + $0x58] sm:$0xf0]  ;;  %v14433_v3 = vld [vmem:[#allocation30 + $0x84] sm:$0xf0] }
 0xfe4   :  { %8845 = vmatpush.bf16.msra.mxu2 %v8833_v9  ;;  %8878 = vmatpush.bf16.msrb.mxu0 %v8833_v9  ;;  %v14396_v9 = vld [vmem:[#allocation27 + $0x60] sm:$0xff]  ;;  %v13399_v32 = vld [vmem:[#allocation28 + $0x70] sm:$0xf] }
 0xfe7   :  { %13144 = vmatmul.msk.bf16.vlgmr.msra.gmra.mxu2 %vm8827_vm6, %v8826_v38  ;;  %13147 = vmatmul.msk.bf16.vlgmr.msrb.gmra.mxu0 %vm8827_vm6, %v13146_v10 }
 0xfe8   :  { %9057 = vmatpush.bf16.msrb.mxu2 %v14391_v24  ;;  %9293 = vmatpush.bf16.msra.mxu0 %v13272_v56  ;;  %v14426_v24 = vld [vmem:[#allocation30 + $0x54] sm:$0xf]  ;;  %v14435_v56 = vld [vmem:[#allocation30 + $0x94] sm:$0xf0] }
 0xfe9   :  { %v13288_v36 = vor.u32 %v14435_v56, %v13287_v8  ;;  %v14479_v8 = vld [vmem:[#allocation31 + $0xf4] sm:$0xf0] }
 0xfec   :  { %9058 = vmatpush.bf16.msrb.mxu2 %v14390_v4  ;;  %9294 = vmatpush.bf16.msra.mxu0 %v13264_v14  ;;  %v13320_v4 = vor.u32 %v14443_v62, %v13319_v25  ;;  %v14417_v14 = vld [vmem:[#allocation30 + $0x4] sm:$0xf0]  ;;  %v13329_v62 = vld [vmem:[#allocation30 + $0xe8] sm:$0xf0] }
 0xff0   :  { %v8792_v57 = vpop.f32.mrf.mxu3  ;;  %9059 = vmatpush.bf16.msrb.mxu2 %v14389_v16  ;;  %v14425_v16 = vld [vmem:[#allocation30 + $0x44] sm:$0xf0]  ;;  %9295 = vmatpush.bf16.msra.mxu0 %v13256_v29 }
 0xff4   :  { %v8818_v11 = vpop.f32.mrf.mxu1  ;;  %9060 = vmatpush.bf16.msrb.mxu2 %v14388_v13  ;;  %v14441_v13 = vld [vmem:[#allocation30 + $0xc4] sm:$0xf0] }
 0xff6   :  { %v8779_v58 = vpop.f32.mrf.mxu2 }
 0xff7   :  { %v8793_v27 = vadd.f32 %v8792_v57, %v8779_v58  ;;  %v13311_v57 = vld [vmem:[#allocation30 + $0xc0] sm:$0xf]  ;;  %v8908_v58 = vperm.slane %v17341_v50, 1  ;;  %v13240_v50 = vor.u32 %v14423_v51, %v13239_v28 }
 0xff8   :  { %v8794_v17 = vpop.f32.mrf.mxu3  ;;  %9061 = vmatpush.bf16.msrb.mxu2 %v14387_v26  ;;  %v13249_v26 = vld [vmem:[#allocation30 + $0x48] sm:$0xf0]  ;;  %v13312_v35 = vor.u32 %v14441_v13, %v13311_v57  ;;  %v13332_v13 = vor.u32 %v14444_v42, %v13329_v62  ;;  %v14409_v42 = vld [vmem:[#allocation28 + $0x44] sm:$0xf0]  ;;  %v14475_v62 = vld [vmem:[#allocation31 + $0xd4] sm:$0xf0] }
 0xff9   :  { %v14395_v17 = vld [vmem:[#allocation27 + $0x58] sm:$0xff] }
 0xffa   :  { %v8805_v37 = vpop.f32.mrf.mxu0 }
 0xffb   :  { %v8806_v31 = vadd.f32 %v8805_v37, %v8793_v27  ;;  %v13303_v27 = vld [vmem:[#allocation30 + $0xb0] sm:$0xf]  ;;  %v13252_v37 = vor.u32 %v14424_v55, %v13249_v26  ;;  %v13391_v26 = vld [vmem:[#allocation28 + $0x60] sm:$0xf] }
 0xffc   :  { %v8820_v48 = vpop.f32.mrf.mxu1  ;;  %9062 = vmatpush.bf16.msrb.mxu2 %v14386_v43  ;;  %v14439_v43 = vld [vmem:[#allocation30 + $0xb4] sm:$0xf0] }
 0xffd   :  { %v8819_v49 = vadd.f32 %v8818_v11, %v8806_v31  ;;  %v13260_v11 = vor.u32 %v14426_v24, %v13257_v15  ;;  %v14422_v31 = vld [vmem:[#allocation30 + $0x34] sm:$0xf]  ;;  %v13241_v48 = vld [vmem:[#allocation30 + $0x38] sm:$0xf0]  ;;  %v14416_v24 = vld [vmem:[#allocation30 + $0x4] sm:$0xf] }
 0xffe   :  { %v8781_v45 = vpop.f32.mrf.mxu2  ;;  %v13217_v15 = vld [vmem:[#allocation30 + $0x8] sm:$0xf0] }
 0xfff   :  { %v8823_v20 = vmax.f32 %v8715_v21, %v8819_v49  ;;  %v8912_v21 = vmul.f32 %v8908_v58, %v17347_v60  ;;  %v14394_v49 = vld [vmem:[#allocation27 + $0x50] sm:$0xff]  ;;  %v13231_v45 = vld [vmem:[#allocation30 + $0x20] sm:$0xf]  ;;  %v14413_v58 = vld [vmem:[#allocation28 + $0x64] sm:$0xf0]  ;;  %v13220_v28 = vor.u32 %v14416_v24, %v13217_v15 }
0x1000   :  { %9063 = vmatpush.bf16.msrb.mxu2 %v14385_v61  ;;  %v13304_v61 = vor.u32 %v14439_v43, %v13303_v27  ;;  %v13392_v27 = vor.u32 %v14413_v58, %v13391_v26  ;;  %v14406_v24 = vld [vmem:[#allocation28 + $0x34] sm:$0xf]  ;;  %v14473_v26 = vld [vmem:[#allocation31 + $0xc4] sm:$0xf0]  ;;  %v13359_v58 = vld [vmem:[#allocation28 + $0x20] sm:$0xf] }
0x1001   :  { %v8825_v59 = vpack.c.bf16 %v8823_v20, %v8823_v20  ;;  %v14421_v20 = vld [vmem:[#allocation30 + $0x24] sm:$0xf0] }
0x1002   :  { %v8807_v52 = vpop.f32.mrf.mxu0 }
0x1003   :  { %v8836_v44 = vsel %vm8831_vm5, %v8825_v59, 0  ;;  %v14437_v59 = vld [vmem:[#allocation30 + $0xa4] sm:$0xf0]  ;;  %v13233_v52 = vld [vmem:[#allocation30 + $0x28] sm:$0xf0] }
0x1004   :  { %8858 = vmatpush.bf16.msra.mxu3 %v8836_v44  ;;  %8891 = vmatpush.bf16.msra.mxu1 %v8836_v44  ;;  %v8920_v44 = vadd.f32 %v8916_v30, %v8912_v21  ;;  %v13296_v60 = vor.u32 %v14437_v59, %v13295_v5  ;;  %v14411_v30 = vld [vmem:[#allocation28 + $0x54] sm:$0xf0]  ;;  %v13313_v21 = vld [vmem:[#allocation30 + $0xc8] sm:$0xf0]  ;;  %v14438_v5 = vld [vmem:[#allocation30 + $0xb4] sm:$0xf] }
0x1005   :  { %9064 = vmatpush.bf16.msrb.mxu2 %v14384_v34  ;;  %v14420_v34 = vld [vmem:[#allocation30 + $0x24] sm:$0xf]  ;;  %v13305_v59 = vld [vmem:[#allocation30 + $0xb8] sm:$0xf0] }
0x1006   :  { %v13236_v0 = vor.u32 %v14420_v34, %v13233_v52  ;;  %v8922_v2 = vmax.f32 %v8920_v44, 0.0  ;;  %v14436_v34 = vld [vmem:[#allocation30 + $0xa4] sm:$0xf]  ;;  %v13297_v52 = vld [vmem:[#allocation30 + $0xa8] sm:$0xf0] }
0x1007   :  { %13145 = vmatmul.msk.bf16.vlgmr.msra.gmra.mxu3 %vm8827_vm6, %v8826_v38  ;;  %13148 = vmatmul.msk.bf16.vlgmr.msra.gmra.mxu1 %vm8827_vm6, %v13146_v10  ;;  %v13247_v38 = vld [vmem:[#allocation30 + $0x40] sm:$0xf]  ;;  %v14419_v10 = vld [vmem:[#allocation30 + $0x14] sm:$0xf0]  ;;  %v13300_v44 = vor.u32 %v14436_v34, %v13297_v52 }
0x1008   :  { %9070 = vmatpush.bf16.msrb.mxu3 %v14399_v46  ;;  %9065 = vmatmul.bf16.vlgmr.msrb.gmra.mxu2 %v8923_v18  ;;  %v13248_v33 = vor.u32 %v14425_v16, %v13247_v38  ;;  %v13244_v46 = vor.u32 %v14422_v31, %v13241_v48  ;;  %v13223_v18 = vld [vmem:[#allocation30 + $0x10] sm:$0xf]  ;;  %v14463_v16 = vld [vmem:[#allocation31 + $0x74] sm:$0xf0]  ;;  %v8924_v57 = vpack.c.bf16 %v8922_v2, %v8922_v2 }
0x1009   :  { %9306 = vmatpush.bf16.msrb.mxu1 %v13336_v39  ;;  %9319 = vmatpush.bf16.msra.mxu2 %v13276_v12  ;;  %v13225_v39 = vld [vmem:[#allocation30 + $0x18] sm:$0xf0]  ;;  %v13224_v63 = vor.u32 %v14419_v10, %v13223_v18  ;;  %v13279_v12 = vld [vmem:[#allocation30 + $0x80] sm:$0xf]  ;;  %v13463_v38 = vld [vmem:[#allocation31 + $0x70] sm:$0xf] }
0x100a   :  { %9296 = vmatpush.bf16.msra.mxu0 %v13248_v33  ;;  %v13228_v25 = vor.u32 %v14418_v41, %v13225_v39  ;;  %v13321_v33 = vld [vmem:[#allocation30 + $0xd8] sm:$0xf0]  ;;  %v13464_v51 = vor.u32 %v14463_v16, %v13463_v38  ;;  %v13383_v48 = vld [vmem:[#allocation28 + $0x50] sm:$0xf]  ;;  %v14432_v18 = vld [vmem:[#allocation30 + $0x84] sm:$0xf] }
0x100b   :  { %v13281_v10 = vld [vmem:[#allocation30 + $0x88] sm:$0xf0]  ;;  %v14461_v41 = vld [vmem:[#allocation31 + $0x64] sm:$0xf0]  ;;  %v13519_v39 = vld [vmem:[#allocation31 + $0xe0] sm:$0xf] }
0x100c   :  { %9071 = vmatpush.bf16.msrb.mxu3 %v14398_v54  ;;  %v13232_v54 = vor.u32 %v14421_v20, %v13231_v45  ;;  %v13284_v56 = vor.u32 %v14432_v18, %v13281_v10  ;;  %v13439_v38 = vld [vmem:[#allocation31 + $0x40] sm:$0xf]  ;;  %v14457_v16 = vld [vmem:[#allocation31 + $0x44] sm:$0xf0]  ;;  %v14400_v10 = vld [vmem:[#allocation28 + $0x4] sm:$0xf] }
0x100d   :  { %9307 = vmatpush.bf16.msrb.mxu1 %v13328_v7  ;;  %9320 = vmatpush.bf16.msra.mxu2 %v13268_v22  ;;  %v13340_v7 = vor.u32 %v14446_v47, %v13337_v19  ;;  %v13401_v22 = vld [vmem:[#allocation28 + $0x78] sm:$0xf0]  ;;  %v13527_v47 = vld [vmem:[#allocation31 + $0xf0] sm:$0xf]  ;;  %v13455_v19 = vld [vmem:[#allocation31 + $0x60] sm:$0xf] }
0x100e   :  { %9297 = vmatpush.bf16.msra.mxu0 %v13240_v50  ;;  %v13404_v55 = vor.u32 %v14414_v40, %v13401_v22  ;;  %v14410_v50 = vld [vmem:[#allocation28 + $0x54] sm:$0xf]  ;;  %v13456_v2 = vor.u32 %v14461_v41, %v13455_v19  ;;  %v13367_v22 = vld [vmem:[#allocation28 + $0x30] sm:$0xf] }
0x100f   :  { %v13415_v41 = vld [vmem:[#allocation31 + $0x10] sm:$0xf] }
0x1010   :  { %9072 = vmatpush.bf16.msrb.mxu3 %v14397_v23  ;;  %v13215_v23 = vld [vmem:[#allocation30] sm:$0xf] }
0x1011   :  { %9308 = vmatpush.bf16.msrb.mxu1 %v13320_v4  ;;  %9321 = vmatpush.bf16.msra.mxu2 %v13260_v11  ;;  %v13216_v29 = vor.u32 %v14417_v14, %v13215_v23  ;;  %v13400_v4 = vor.u32 %v14415_v53, %v13399_v32  ;;  %v14442_v11 = vld [vmem:[#allocation30 + $0xd4] sm:$0xf]  ;;  %v14408_v14 = vld [vmem:[#allocation28 + $0x44] sm:$0xf]  ;;  %v14459_v32 = vld [vmem:[#allocation31 + $0x54] sm:$0xf0] }
0x1012   :  { %9298 = vmatpush.bf16.msra.mxu0 %v13232_v54  ;;  %v13324_v43 = vor.u32 %v14442_v11, %v13321_v33  ;;  %v14434_v54 = vld [vmem:[#allocation30 + $0x94] sm:$0xf]  ;;  %v13511_v53 = vld [vmem:[#allocation31 + $0xd0] sm:$0xf]  ;;  %v13440_v11 = vor.u32 %v14457_v16, %v13439_v38  ;;  %v13529_v38 = vld [vmem:[#allocation31 + $0xf8] sm:$0xf0] }
0x1013   :  { %v13512_v40 = vor.u32 %v14475_v62, %v13511_v53  ;;  %v14456_v16 = vld [vmem:[#allocation31 + $0x44] sm:$0xf] }
0x1014   :  { %9073 = vmatpush.bf16.msrb.mxu3 %v14396_v9  ;;  %v13280_v9 = vor.u32 %v14433_v3, %v13279_v12  ;;  %v13377_v12 = vld [vmem:[#allocation28 + $0x48] sm:$0xf0]  ;;  %v13447_v3 = vld [vmem:[#allocation31 + $0x50] sm:$0xf] }
0x1015   :  { %9309 = vmatpush.bf16.msrb.mxu1 %v13312_v35  ;;  %9322 = vmatpush.bf16.msra.mxu2 %v13252_v37  ;;  %v13393_v35 = vld [vmem:[#allocation28 + $0x68] sm:$0xf0]  ;;  %v14440_v37 = vld [vmem:[#allocation30 + $0xc4] sm:$0xf] }
0x1016   :  { %9299 = vmatpush.bf16.msra.mxu0 %v13224_v63  ;;  %v13316_v45 = vor.u32 %v14440_v37, %v13313_v21  ;;  %v13375_v63 = vld [vmem:[#allocation28 + $0x40] sm:$0xf]  ;;  %v14455_v37 = vld [vmem:[#allocation31 + $0x34] sm:$0xf0]  ;;  %v13351_v21 = vld [vmem:[#allocation28 + $0x10] sm:$0xf] }
0x1017   :  { %v13376_v23 = vor.u32 %v14409_v42, %v13375_v63  ;;  %v14467_v42 = vld [vmem:[#allocation31 + $0x94] sm:$0xf0] }
0x1018   :  { %9074 = vmatpush.bf16.msrb.mxu3 %v14395_v17  ;;  %v14412_v17 = vld [vmem:[#allocation28 + $0x64] sm:$0xf] }
0x1019   :  { %9310 = vmatpush.bf16.msrb.mxu1 %v13304_v61  ;;  %9323 = vmatpush.bf16.msra.mxu2 %v13244_v46  ;;  %v13396_v31 = vor.u32 %v14412_v17, %v13393_v35  ;;  %v13384_v61 = vor.u32 %v14411_v30, %v13383_v48  ;;  %v13308_v46 = vor.u32 %v14438_v5, %v13305_v59  ;;  %v14405_v17 = vld [vmem:[#allocation28 + $0x24] sm:$0xf0]  ;;  %v14404_v35 = vld [vmem:[#allocation28 + $0x24] sm:$0xf]  ;;  %v14471_v30 = vld [vmem:[#allocation31 + $0xb4] sm:$0xf0] }
0x101a   :  { %9300 = vmatpush.bf16.msra.mxu0 %v13216_v29  ;;  %v14407_v29 = vld [vmem:[#allocation28 + $0x34] sm:$0xf0]  ;;  %v13423_v5 = vld [vmem:[#allocation31 + $0x20] sm:$0xf]  ;;  %v14453_v59 = vld [vmem:[#allocation31 + $0x24] sm:$0xf0] }
0x101c   :  { %9075 = vmatpush.bf16.msrb.mxu3 %v14394_v49  ;;  %v13385_v49 = vld [vmem:[#allocation28 + $0x58] sm:$0xf0] }
0x101d   :  { %9311 = vmatpush.bf16.msrb.mxu1 %v13296_v60  ;;  %9324 = vmatpush.bf16.msra.mxu2 %v13236_v0  ;;  %v13388_v20 = vor.u32 %v14410_v50, %v13385_v49  ;;  %v13528_v0 = vor.u32 %v14479_v8, %v13527_v47  ;;  %v14403_v50 = vld [vmem:[#allocation28 + $0x14] sm:$0xf0]  ;;  %v13345_v47 = vld [vmem:[#allocation28 + $0x8] sm:$0xf0]  ;;  %v14462_v8 = vld [vmem:[#allocation31 + $0x74] sm:$0xf] }
0x101e   :  { %9425 = vmatpush.bf16.msrb.mxu0 %v13400_v4  ;;  %v13369_v4 = vld [vmem:[#allocation28 + $0x38] sm:$0xf0] }
0x1020   :  { %9076 = vmatpush.bf16.msrb.mxu3 %v14393_v6  ;;  %v13289_v6 = vld [vmem:[#allocation30 + $0x98] sm:$0xf0] }
0x1021   :  { %9312 = vmatpush.bf16.msrb.mxu1 %v13288_v36  ;;  %9325 = vmatpush.bf16.msra.mxu2 %v13228_v25  ;;  %v13292_v60 = vor.u32 %v14434_v54, %v13289_v6  ;;  %v13448_v25 = vor.u32 %v14459_v32, %v13447_v3  ;;  %v14469_v54 = vld [vmem:[#allocation31 + $0xa4] sm:$0xf0]  ;;  %v13343_v6 = vld [vmem:[#allocation28] sm:$0xf] }
0x1022   :  { %9426 = vmatpush.bf16.msrb.mxu0 %v13392_v27  ;;  %v13471_v3 = vld [vmem:[#allocation31 + $0x80] sm:$0xf]  ;;  %v14465_v32 = vld [vmem:[#allocation31 + $0x84] sm:$0xf0] }
0x1023   :  { %v13472_v62 = vor.u32 %v14465_v32, %v13471_v3 }
0x1024   :  { %9077 = vmatpush.bf16.msrb.mxu3 %v14392_v1  ;;  %v14477_v1 = vld [vmem:[#allocation31 + $0xe4] sm:$0xf0] }
0x1025   :  { %9313 = vmatpush.bf16.msrb.mxu1 %v13280_v9  ;;  %9326 = vmatpush.bf16.msra.mxu2 %v13220_v28  ;;  %v13520_v36 = vor.u32 %v14477_v1, %v13519_v39  ;;  %v13368_v9 = vor.u32 %v14407_v29, %v13367_v22  ;;  %v13361_v28 = vld [vmem:[#allocation28 + $0x28] sm:$0xf0]  ;;  %v14451_v39 = vld [vmem:[#allocation31 + $0x14] sm:$0xf0]  ;;  %v13348_v1 = vor.u32 %v14400_v10, %v13345_v47 }
0x1026   :  { %9427 = vmatpush.bf16.msrb.mxu0 %v13384_v61  ;;  %v13364_v27 = vor.u32 %v14404_v35, %v13361_v28  ;;  %v13352_v61 = vor.u32 %v14403_v50, %v13351_v21  ;;  %v13416_v63 = vor.u32 %v14451_v39, %v13415_v41  ;;  %v14454_v28 = vld [vmem:[#allocation31 + $0x34] sm:$0xf]  ;;  %v13425_v21 = vld [vmem:[#allocation31 + $0x28] sm:$0xf0]  ;;  %v13481_v41 = vld [vmem:[#allocation31 + $0x98] sm:$0xf0] }
0x1027   :  { %9078 = vmatmul.bf16.vlgmr.msrb.gmra.mxu3 %v8924_v57  ;;  %v14568_v39 = vld [vmem:[%s18109_s1] ss:$0 sm:$0xff] }
0x1028   :  { %9332 = vmatpush.bf16.msra.mxu3 %v13340_v7  ;;  %v13380_v7 = vor.u32 %v14408_v14, %v13377_v12  ;;  %v13407_v12 = vld [vmem:[#allocation31] sm:$0xf] }
0x1029   :  { %9438 = vmatpush.bf16.msra.mxu1 %v13404_v55  ;;  %9643 = vmatpush.bf16.msrb.mxu2 %v13464_v51  ;;  %v13503_v55 = vld [vmem:[#allocation31 + $0xc0] sm:$0xf]  ;;  %v13360_v51 = vor.u32 %v14405_v17, %v13359_v58  ;;  %v13521_v17 = vld [vmem:[#allocation31 + $0xe8] sm:$0xf0] }
0x102a   :  { %9428 = vmatpush.bf16.msrb.mxu0 %v13376_v23  ;;  %v13504_v33 = vor.u32 %v14473_v26, %v13503_v55  ;;  %v13457_v23 = vld [vmem:[#allocation31 + $0x68] sm:$0xf0] }
0x102c   :  { %9333 = vmatpush.bf16.msra.mxu3 %v13332_v13  ;;  %v13372_v13 = vor.u32 %v14406_v24, %v13369_v4  ;;  %v14458_v24 = vld [vmem:[#allocation31 + $0x54] sm:$0xf] }
0x102d   :  { %9439 = vmatpush.bf16.msra.mxu1 %v13396_v31  ;;  %9644 = vmatpush.bf16.msrb.mxu2 %v13456_v2  ;;  %v13495_v31 = vld [vmem:[#allocation31 + $0xb0] sm:$0xf]  ;;  %v14478_v4 = vld [vmem:[#allocation31 + $0xf4] sm:$0xf] }
0x102e   :  { %9429 = vmatpush.bf16.msrb.mxu0 %v13368_v9  ;;  %v13496_v49 = vor.u32 %v14471_v30, %v13495_v31  ;;  %v13479_v2 = vld [vmem:[#allocation31 + $0x90] sm:$0xf]  ;;  %v13532_v55 = vor.u32 %v14478_v4, %v13529_v38  ;;  %v14474_v31 = vld [vmem:[#allocation31 + $0xd4] sm:$0xf]  ;;  %v14452_v30 = vld [vmem:[#allocation31 + $0x24] sm:$0xf] }
0x102f   :  { %v13480_v14 = vor.u32 %v14467_v42, %v13479_v2  ;;  %v13428_v50 = vor.u32 %v14452_v30, %v13425_v21  ;;  %v14483_v4 = vld [vmem:[#allocation33 + $0x18] sm:$0xff]  ;;  %v14482_v38 = vld [vmem:[#allocation33 + $0x10] sm:$0xff]  ;;  %v9697_v21 = vld [vmem:[%s18110_s17] sm:$0x3] }
0x1030   :  { %9334 = vmatpush.bf16.msra.mxu3 %v13324_v43  ;;  %v13431_v43 = vld [vmem:[#allocation31 + $0x30] sm:$0xf] }
0x1031   :  { %9440 = vmatpush.bf16.msra.mxu1 %v13388_v20  ;;  %9645 = vmatpush.bf16.msrb.mxu2 %v13448_v25  ;;  %v13432_v48 = vor.u32 %v14455_v37, %v13431_v43  ;;  %v13353_v20 = vld [vmem:[#allocation28 + $0x18] sm:$0xf0]  ;;  %v14502_v30 = vld [vmem:[#allocation34 + $0x30] sm:$0xff] }
0x1032   :  { %9430 = vmatpush.bf16.msrb.mxu0 %v13360_v51  ;;  %v13433_v51 = vld [vmem:[#allocation31 + $0x38] sm:$0xf0] }
0x1033   :  { %v13436_v43 = vor.u32 %v14454_v28, %v13433_v51  ;;  %v14490_v51 = vld [vmem:[#allocation33 + $0x50] sm:$0xff] }
0x1034   :  { %9335 = vmatpush.bf16.msra.mxu3 %v13316_v45  ;;  %v14402_v45 = vld [vmem:[#allocation28 + $0x14] sm:$0xf] }
0x1035   :  { %9441 = vmatpush.bf16.msra.mxu1 %v13380_v7  ;;  %9646 = vmatpush.bf16.msrb.mxu2 %v13440_v11  ;;  %v13356_v52 = vor.u32 %v14402_v45, %v13353_v20  ;;  %v14449_v7 = vld [vmem:[#allocation31 + $0x4] sm:$0xf0] }
0x1036   :  { %9431 = vmatpush.bf16.msrb.mxu0 %v13352_v61  ;;  %v13408_v25 = vor.u32 %v14449_v7, %v13407_v12  ;;  %v13417_v61 = vld [vmem:[#allocation31 + $0x18] sm:$0xf0] }
0x1038   :  { %9336 = vmatpush.bf16.msra.mxu3 %v13308_v46  ;;  %v13487_v46 = vld [vmem:[#allocation31 + $0xa0] sm:$0xf] }
0x1039   :  { %9442 = vmatpush.bf16.msra.mxu1 %v13372_v13  ;;  %9647 = vmatpush.bf16.msrb.mxu2 %v13432_v48  ;;  %v13488_v18 = vor.u32 %v14469_v54, %v13487_v46  ;;  %v13513_v48 = vld [vmem:[#allocation31 + $0xd8] sm:$0xf0]  ;;  %v13505_v46 = vld [vmem:[#allocation31 + $0xc8] sm:$0xf0] }
0x103a   :  { %v13516_v20 = vor.u32 %v14474_v31, %v13513_v48  ;;  %v14503_v31 = vld [vmem:[#allocation34 + $0x38] sm:$0xff] }
0x103c   :  { %9337 = vmatpush.bf16.msra.mxu3 %v13300_v44  ;;  %v13424_v44 = vor.u32 %v14453_v59, %v13423_v5  ;;  %v14472_v59 = vld [vmem:[#allocation31 + $0xc4] sm:$0xf] }
0x103d   :  { %9443 = vmatpush.bf16.msra.mxu1 %v13364_v27  ;;  %v13508_v54 = vor.u32 %v14472_v59, %v13505_v46 }
0x103e   :  { %9648 = vmatpush.bf16.msrb.mxu2 %v13424_v44  ;;  %v13409_v44 = vld [vmem:[#allocation31 + $0x8] sm:$0xf0] }
0x1040   :  { %9338 = vmatpush.bf16.msra.mxu3 %v13292_v60  ;;  %v14401_v60 = vld [vmem:[#allocation28 + $0x4] sm:$0xf0] }
0x1041   :  { %9444 = vmatpush.bf16.msra.mxu1 %v13356_v52  ;;  %v14448_v52 = vld [vmem:[#allocation31 + $0x4] sm:$0xf] }
0x1042   :  { %9649 = vmatpush.bf16.msrb.mxu2 %v13416_v63  ;;  %v13473_v63 = vld [vmem:[#allocation31 + $0x88] sm:$0xf0] }
0x1044   :  { %9339 = vmatpush.bf16.msra.mxu3 %v13284_v56  ;;  %v13344_v56 = vor.u32 %v14401_v60, %v13343_v6  ;;  %v14470_v6 = vld [vmem:[#allocation31 + $0xb4] sm:$0xf]  ;;  %v13497_v60 = vld [vmem:[#allocation31 + $0xb8] sm:$0xf0] }
0x1045   :  { %9445 = vmatpush.bf16.msra.mxu1 %v13348_v1  ;;  %v13500_v47 = vor.u32 %v14470_v6, %v13497_v60  ;;  %v14464_v1 = vld [vmem:[#allocation31 + $0x84] sm:$0xf] }
0x1046   :  { %9432 = vmatpush.bf16.msrb.mxu0 %v13344_v56  ;;  %9650 = vmatpush.bf16.msrb.mxu2 %v13408_v25  ;;  %v13489_v56 = vld [vmem:[#allocation31 + $0xa8] sm:$0xf0] }
0x1048   :  { %9656 = vmatpush.bf16.msrb.mxu3 %v13528_v0  ;;  %v13465_v0 = vld [vmem:[#allocation31 + $0x78] sm:$0xf0] }
0x1049   :  { %v13468_v19 = vor.u32 %v14462_v8, %v13465_v0  ;;  %v14468_v8 = vld [vmem:[#allocation31 + $0xa4] sm:$0xf] }
0x104a   :  { %v13492_v0 = vor.u32 %v14468_v8, %v13489_v56  ;;  %v9700_v8 = vperm.slane %v9697_v21, 1 }
0x104c   :  { %9657 = vmatpush.bf16.msrb.mxu3 %v13520_v36  ;;  %v14460_v36 = vld [vmem:[#allocation31 + $0x64] sm:$0xf] }
0x104d   :  { %v13460_v53 = vor.u32 %v14460_v36, %v13457_v23  ;;  %v13476_v36 = vor.u32 %v14464_v1, %v13473_v63  ;;  %v14501_v1 = vld [vmem:[#allocation34 + $0x28] sm:$0xff]  ;;  %v14500_v63 = vld [vmem:[#allocation34 + $0x20] sm:$0xff] }
0x1050   :  { %9658 = vmatpush.bf16.msrb.mxu3 %v13512_v40 }
0x1054   :  { %9659 = vmatpush.bf16.msrb.mxu3 %v13504_v33  ;;  %v14476_v33 = vld [vmem:[#allocation31 + $0xe4] sm:$0xf] }
0x1055   :  { %v13524_v37 = vor.u32 %v14476_v33, %v13521_v17 }
0x1058   :  { %9660 = vmatpush.bf16.msrb.mxu3 %v13496_v49  ;;  %v14450_v49 = vld [vmem:[#allocation31 + $0x14] sm:$0xf] }
0x105c   :  { %9661 = vmatpush.bf16.msrb.mxu3 %v13488_v18  ;;  %v13412_v18 = vor.u32 %v14448_v52, %v13409_v44 }
0x1060   :  { %9662 = vmatpush.bf16.msrb.mxu3 %v13480_v14 }
0x1064   :  { %v8880_v40 = vpop.f32.mrf.mxu0  ;;  %9663 = vmatpush.bf16.msrb.mxu3 %v13472_v62  ;;  %v14486_v62 = vld [vmem:[#allocation33 + $0x30] sm:$0xff] }
0x1065   :  { %v17359_v22 = vpack.c.bf16 %v8880_v40, %v8880_v40 }
0x106a   :  { %v8847_v15 = vpop.f32.mrf.mxu2 }
0x106b   :  { %v8864_v57 = vpack.c.bf16 %v8847_v15, %v8847_v15  ;;  %v13449_v15 = vld [vmem:[#allocation31 + $0x58] sm:$0xf0] }
0x106c   :  { %v13452_v9 = vor.u32 %v14458_v24, %v13449_v15  ;;  %v8882_v35 = vpop.f32.mrf.mxu0  ;;  %v14495_v24 = vld [vmem:[#allocation33 + $0x78] sm:$0xff] }
0x106d   :  { %9301 = vmatmul.bf16.vlgmr.msra.gmra.mxu0 %v8864_v57  ;;  %9327 = vmatmul.bf16.vlgmr.msra.gmra.mxu2 %v8864_v57  ;;  %v13441_v57 = vld [vmem:[#allocation31 + $0x48] sm:$0xf0]  ;;  %v14491_v35 = vld [vmem:[#allocation33 + $0x58] sm:$0xff] }
0x106e   :  { %9669 = vmatpush.bf16.msra.mxu0 %v13468_v19  ;;  %v13444_v13 = vor.u32 %v14456_v16, %v13441_v57  ;;  %v14466_v19 = vld [vmem:[#allocation31 + $0x94] sm:$0xf] }
0x106f   :  { %v13484_v2 = vor.u32 %v14466_v19, %v13481_v41  ;;  %v14494_v16 = vld [vmem:[#allocation33 + $0x70] sm:$0xff] }
0x1072   :  { %v8849_v34 = vpop.f32.mrf.mxu2  ;;  %9670 = vmatpush.bf16.msra.mxu0 %v13460_v53  ;;  %v14487_v53 = vld [vmem:[#allocation33 + $0x38] sm:$0xff] }
0x1073   :  { %v13420_v34 = vor.u32 %v14450_v49, %v13417_v61  ;;  %9841 = vmatpush.bf16.msra.mxu2 %v14487_v53 }
0x1076   :  { %9671 = vmatpush.bf16.msra.mxu0 %v13452_v9  ;;  %v14484_v9 = vld [vmem:[#allocation33 + $0x20] sm:$0xff] }
0x1077   :  { %9842 = vmatpush.bf16.msra.mxu2 %v14486_v62 }
0x107a   :  { %9672 = vmatpush.bf16.msra.mxu0 %v13444_v13  ;;  %v14481_v13 = vld [vmem:[#allocation33 + $0x8] sm:$0xff] }
0x107d   :  { %9651 = vmatmul.bf16.vlgmr.msrb.gmra.mxu2 %v17359_v22 }
0x107e   :  { %9673 = vmatpush.bf16.msra.mxu0 %v13436_v43 }
0x1082   :  { %9674 = vmatpush.bf16.msra.mxu0 %v13428_v50 }
0x1084   :  { %v8893_v29 = vpop.f32.mrf.mxu1 }
0x1085   :  { %v8898_v10 = vpack.c.bf16 %v8893_v29, %v8893_v29  ;;  %v14485_v29 = vld [vmem:[#allocation33 + $0x28] sm:$0xff] }
0x1086   :  { %9675 = vmatpush.bf16.msra.mxu0 %v13420_v34  ;;  %9843 = vmatpush.bf16.msra.mxu2 %v14485_v29 }
0x108a   :  { %v8860_v11 = vpop.f32.mrf.mxu3  ;;  %9676 = vmatpush.bf16.msra.mxu0 %v13412_v18  ;;  %9844 = vmatpush.bf16.msra.mxu2 %v14484_v9 }
0x108b   :  { %v8865_v26 = vpack.c.bf16 %v8860_v11, %v8860_v11  ;;  %v9066_v58 = vpop.f32.mrf.mxu2  ;;  %v14493_v11 = vld [vmem:[#allocation33 + $0x68] sm:$0xff] }
0x108c   :  { %v8895_v27 = vpop.f32.mrf.mxu1  ;;  %v9067_v42 = vadd.f32 %v14568_v39, %v9066_v58  ;;  %v14492_v58 = vld [vmem:[#allocation33 + $0x60] sm:$0xff] }
0x108d   :  { %9314 = vmatmul.bf16.vlgmr.msrb.gmra.mxu1 %v8865_v26  ;;  %9340 = vmatmul.bf16.vlgmr.msra.gmra.mxu3 %v8865_v26  ;;  %v14480_v26 = vld [vmem:[#allocation33] sm:$0xff]  ;;  %v14489_v27 = vld [vmem:[#allocation33 + $0x48] sm:$0xff] }
0x108e   :  { %9682 = vmatpush.bf16.msrb.mxu1 %v13532_v55  ;;  %9854 = vmatpush.bf16.msra.mxu3 %v14495_v24  ;;  %v14570_v24 = vld [vmem:[%s15349_s6] ss:$0 sm:$0xff] }
0x108f   :  { %9845 = vmatpush.bf16.msra.mxu2 %v14483_v4 }
0x1092   :  { %v8862_v45 = vpop.f32.mrf.mxu3  ;;  %9683 = vmatpush.bf16.msrb.mxu1 %v13524_v37  ;;  %9855 = vmatpush.bf16.msra.mxu3 %v14494_v16  ;;  %v14488_v37 = vld [vmem:[#allocation33 + $0x40] sm:$0xff] }
0x1093   :  { %v9068_v5 = vpop.f32.mrf.mxu2  ;;  %9846 = vmatpush.bf16.msra.mxu2 %v14482_v38 }
0x1094   :  { %v9699_v5 = vperm.slane %v9697_v21, 0 }
0x1096   :  { %9684 = vmatpush.bf16.msrb.mxu1 %v13516_v20  ;;  %9856 = vmatpush.bf16.msra.mxu3 %v14493_v11 }
0x1097   :  { %9847 = vmatpush.bf16.msra.mxu2 %v14481_v13 }
0x109a   :  { %9685 = vmatpush.bf16.msrb.mxu1 %v13508_v54  ;;  %9857 = vmatpush.bf16.msra.mxu3 %v14492_v58 }
0x109b   :  { %9848 = vmatpush.bf16.msra.mxu2 %v14480_v26 }
0x109d   :  { %9664 = vmatmul.bf16.vlgmr.msrb.gmra.mxu3 %v8898_v10 }
0x109e   :  { %9686 = vmatpush.bf16.msrb.mxu1 %v13500_v47  ;;  %9858 = vmatpush.bf16.msra.mxu3 %v14491_v35 }
0x10a2   :  { %9687 = vmatpush.bf16.msrb.mxu1 %v13492_v0  ;;  %9859 = vmatpush.bf16.msra.mxu3 %v14490_v51 }
0x10a6   :  { %9688 = vmatpush.bf16.msrb.mxu1 %v13484_v2  ;;  %9860 = vmatpush.bf16.msra.mxu3 %v14489_v27 }
0x10aa   :  { %v9079_v23 = vpop.f32.mrf.mxu3  ;;  %9689 = vmatpush.bf16.msrb.mxu1 %v13476_v36  ;;  %9861 = vmatpush.bf16.msra.mxu3 %v14488_v37  ;;  %v14498_v36 = vld [vmem:[#allocation34 + $0x10] sm:$0xff] }
0x10ab   :  { %v9080_v14 = vadd.f32 %v9079_v23, %v9067_v42  ;;  %v14499_v42 = vld [vmem:[#allocation34 + $0x18] sm:$0xff]  ;;  %v14497_v23 = vld [vmem:[#allocation34 + $0x8] sm:$0xff] }
0x10ad   :  { %v9083_v12 = vmax.f32 %v9080_v14, 0.0  ;;  %v14496_v14 = vld [vmem:[#allocation34] sm:$0xff] }
0x10af   :  { %v9084_v7 = vpack.c.bf16 %v9083_v12, %v9083_v12 }
0x10b1   :  { %9433 = vmatmul.bf16.vlgmr.msrb.gmra.mxu0 %v9084_v7  ;;  %9446 = vmatmul.bf16.vlgmr.msra.gmra.mxu1 %v9084_v7 }
0x10b2   :  { %v9081_v3 = vpop.f32.mrf.mxu3  ;;  %9937 = vmatpush.bf16.msrb.mxu0 %v14503_v31 }
0x10b3   :  { %v14569_v3 = vld [vmem:[%s15339_s4] ss:$0 sm:$0xff] }
0x10b6   :  { %9938 = vmatpush.bf16.msrb.mxu0 %v14502_v30 }
0x10ba   :  { %9939 = vmatpush.bf16.msrb.mxu0 %v14501_v1 }
0x10be   :  { %9940 = vmatpush.bf16.msrb.mxu0 %v14500_v63 }
0x10c1   :  { %9677 = vmatmul.bf16.vlgmr.msra.gmra.mxu0 %v17359_v22  ;;  %9690 = vmatmul.bf16.vlgmr.msrb.gmra.mxu1 %v8898_v10 }
0x10c2   :  { %9941 = vmatpush.bf16.msrb.mxu0 %v14499_v42 }
0x10c6   :  { %9942 = vmatpush.bf16.msrb.mxu0 %v14498_v36 }
0x10ca   :  { %9943 = vmatpush.bf16.msrb.mxu0 %v14497_v23 }
0x10ce   :  { %9944 = vmatpush.bf16.msrb.mxu0 %v14496_v14 }
0x10ea   :  { %v9302_v32 = vpop.f32.mrf.mxu0 }
0x10f0   :  { %v9328_v25 = vpop.f32.mrf.mxu2 }
0x10f2   :  { %v9304_v40 = vpop.f32.mrf.mxu0 }
0x10f8   :  { %v9330_v15 = vpop.f32.mrf.mxu2 }
0x1100   :  { %v9652_v57 = vpop.f32.mrf.mxu2 }
0x1108   :  { %v9654_v17 = vpop.f32.mrf.mxu2 }
0x110a   :  { %v9315_v22 = vpop.f32.mrf.mxu1 }
0x110b   :  { %v9316_v50 = vadd.f32 %v9315_v22, %v9302_v32 }
0x1110   :  { %v9341_v55 = vpop.f32.mrf.mxu3 }
0x1111   :  { %v9342_v6 = vadd.f32 %v9341_v55, %v9328_v25 }
0x1112   :  { %v9317_v33 = vpop.f32.mrf.mxu1 }
0x1118   :  { %v9343_v28 = vpop.f32.mrf.mxu3 }
0x1120   :  { %v9665_v43 = vpop.f32.mrf.mxu3 }
0x1121   :  { %v9666_v49 = vadd.f32 %v9665_v43, %v9652_v57 }
0x1128   :  { %v9667_v48 = vpop.f32.mrf.mxu3 }
0x112e   :  { %v9434_v61 = vpop.f32.mrf.mxu0  ;;  %v9447_v45 = vpop.f32.mrf.mxu1 }
0x112f   :  { %v9435_v20 = vadd.f32 %v9434_v61, %v9316_v50  ;;  %v9448_v10 = vadd.f32 %v9447_v45, %v9342_v6 }
0x1131   :  { %v9695_v59 = vadd.f32 %v9666_v49, %v9435_v20 }
0x1133   :  { %v9703_v46 = vadd.f32 %v9699_v5, %v9695_v59 }
0x1135   :  { %v9705_v34 = vmax.f32 %v9703_v46, 0.0 }
0x1136   :  { %v9436_v52 = vpop.f32.mrf.mxu0  ;;  %v9449_v44 = vpop.f32.mrf.mxu1 }
0x1137   :  { %v9707_v54 = vpack.c.bf16 %v9705_v34, %v9705_v34 }
0x1139   :  { %9849 = vmatmul.bf16.vlgmr.msra.gmra.mxu2 %v9707_v54 }
0x113e   :  { %v9678_v60 = vpop.f32.mrf.mxu0  ;;  %v9691_v18 = vpop.f32.mrf.mxu1 }
0x113f   :  { %v9692_v47 = vadd.f32 %v9691_v18, %v9678_v60 }
0x1141   :  { %v9696_v56 = vadd.f32 %v9692_v47, %v9448_v10 }
0x1143   :  { %v9704_v0 = vadd.f32 %v9700_v8, %v9696_v56 }
0x1145   :  { %v9706_v19 = vmax.f32 %v9704_v0, 0.0 }
0x1146   :  { %v9680_v41 = vpop.f32.mrf.mxu0  ;;  %v9693_v39 = vpop.f32.mrf.mxu1 }
0x1147   :  { %v9708_v2 = vpack.c.bf16 %v9706_v19, %v9706_v19 }
0x1149   :  { %9862 = vmatmul.bf16.vlgmr.msra.gmra.mxu3 %v9708_v2 }
0x11bc   :  { %v9850_v12 = vpop.f32.mrf.mxu2 }
0x11bd   :  { %v9851_v32 = vadd.f32 %v14569_v3, %v9850_v12 }
0x11c4   :  { %v9852_v7 = vpop.f32.mrf.mxu2 }
0x11cc   :  { %v9863_v53 = vpop.f32.mrf.mxu3 }
0x11cd   :  { %v9864_v25 = vadd.f32 %v9863_v53, %v9851_v32 }
0x11cf   :  { %v9867_v62 = vmax.f32 %v9864_v25, 0.0 }
0x11d1   :  { %v9868_v40 = vpack.c.bf16 %v9867_v62, %v9867_v62 }
0x11d3   :  { %9945 = vmatmul.bf16.vlgmr.msrb.gmra.mxu0 %v9868_v40 }
0x11d4   :  { %v9865_v29 = vpop.f32.mrf.mxu3 }
0x1250   :  { %v9946_v15 = vpop.f32.mrf.mxu0 }
0x1251   :  { %v9947_v9 = vadd.f32 %v14570_v24, %v9946_v15 }
0x1253   :  { %9950 = vst [vmem:[%s15354_s24] sm:$0x3] %v9947_v9 }
0x1258   :  { %v9948_v4 = vpop.f32.mrf.mxu0 }
0x1259   :  { %9955 = vsyncpa [#allocation3], 1 }
0x125a   :  { %9956 = vsyncpa [#allocation5], 1 }
0x125b   :  { %9957 = vsyncpa [#allocation8], 1 }
0x125c   :  { %9958 = vsyncpa [#allocation11], 1 }
0x125d   :  { %9959 = vsyncpa [#allocation14], 1 }
0x125e   :  { %9960 = vsyncpa [#allocation17], 1 }
0x125f   :  { %9961 = vsyncpa [#allocation20], 1 }
0x1260   :  { %9962 = vsyncpa [#allocation23], 1 }
0x1261   :  { %9963 = vsyncpa [#allocation26], 1 }
0x1262   :  { %9964 = vsyncpa [#allocation29], 1 }
0x1263   :  { %9965 = vsyncpa [#allocation32], 1 }
0x1264   :  { %9966 = vsyncpa [#allocation35], 1 }

</bundles_post_ra>
